<compile_context>
chip_gen: v5e
topology: v5e:2x2
jax: 0.10.0
libtpu: 0.0.40
codegen_flags: <defaults>
</compile_context>

<pallas_src>
import numpy as np
import jax
import jax.numpy as jnp
from jax.experimental import pallas as pl
from jax.experimental.pallas import tpu as pltpu

MAX_CAV = 5
AGENT_PAD = 8            # MAX_CAV padded to a sublane-aligned count for the softmax
DOWNSAMPLE_RATE = 2
DISCRETE_RATIO = 0.4     # voxel_size[0]
CHANNELS = 64            # fixed by channel_fuse = Conv2d(64, 64, 7, padding=3)


def _vmem_limit_bytes():
    """Generation-aware scoped-VMEM limit (v5e/v6e: 128 MiB phys, v7x: 64 MiB)."""
    try:
        cap = int(pltpu.get_tpu_info().vmem_capacity_bytes)
    except Exception:
        cap = 64 << 20
    return max(32 << 20, min(int(cap * 0.7), 96 << 20))


# ----------------------------------------------------------------------------
# Pallas kernel: KxK stride-1 "same" convolution as one im2col matmul
# (bf16 operands, f32 accumulation, optional fused sparsity mask)
# ----------------------------------------------------------------------------
def _make_conv_kernel(K, th, Wo, Cin, Cout, nb, has_mask):
    rows = th * Wo
    n_taps = K * K

    def kernel(*args):
        if has_mask:
            xp_ref, m_ref, w_ref, b_ref, o_ref, col_ref = args
        else:
            xp_ref, w_ref, b_ref, o_ref, col_ref = args
            m_ref = None

        def tap(n, j):
            kh, kw = divmod(j, K)
            p = xp_ref[n, kh:kh + th, kw:kw + Wo, :]
            if has_mask:
                # fuse the communication sparsity mask into the patch build
                p = p * m_ref[n, kh:kh + th, kw:kw + Wo, :]
            return p.reshape(rows, Cin).astype(jnp.bfloat16)

        # im2col build: two taps packed per 128-lane aligned store (unmasked vst).
        # nb is capped at 4 so the static unroll stays small; the per-pair
        # temporaries die at each store (bounded liveness).
        for n in range(nb):
            base = n * rows
            for j in range(0, n_taps - 1, 2):
                slab = jnp.concatenate([tap(n, j), tap(n, j + 1)], axis=-1)
                col_ref[base:base + rows, j * Cin:(j + 2) * Cin] = slab
            # K*K is odd: one trailing 64-lane store per band (128-aligned start)
            col_ref[base:base + rows,
                    (n_taps - 1) * Cin:n_taps * Cin] = tap(n, n_taps - 1)

        # one deep MXU matmul over the whole K*K*Cin contraction (bf16 -> f32)
        acc = jnp.dot(col_ref[...], w_ref[...],
                      preferred_element_type=jnp.float32)
        acc = acc + b_ref[0, :].astype(jnp.float32)          # bias add in f32

        # lane-dense output: pack two bands channel-wise -> 128-wide stores
        for p in range(nb // 2):
            lo = acc[(2 * p) * rows:(2 * p + 1) * rows, :]
            hi = acc[(2 * p + 1) * rows:(2 * p + 2) * rows, :]
            o_ref[p] = jnp.concatenate([lo, hi], axis=-1).astype(o_ref.dtype)

    return kernel


def _conv_tiling(H, Wo, K, Cin, vmem_limit):
    """Rows of im2col per grid step sized from the VMEM budget."""
    col_bytes_per_row = K * K * Cin * 2                     # bf16 im2col row
    rows_target = max(256, min(4096, (vmem_limit // 4) // col_bytes_per_row))
    if H * Wo <= rows_target:
        nb = min(4, max(2, (rows_target // (H * Wo)) & ~1))  # whole images, nb even
        th = H
    else:
        nb = 2                                               # two row-bands per step
        th = min(H, max(1, rows_target // (2 * Wo)))
    return nb, th


def conv2d_nhwc(x, w, b, padding, mask=None):
    """x: (N,H,W,Cin), w: (K,K,Cin,Cout), b: (Cout,), mask: (N,H,W,1) or None."""
    N, H, W, Cin = x.shape
    K = int(w.shape[0])
    Cout = int(w.shape[3])
    assert 2 * padding == K - 1, "only odd-K 'same' convs used in How2comm"
    vmem_limit = _vmem_limit_bytes()

    Wo = W + (W % 2)                    # even output width -> even rows per band
    nb, th = _conv_tiling(H, Wo, K, Cin, vmem_limit)
    n_bands = -(-H // th)
    Hpad = n_bands * th
    Nb_total = N * n_bands
    if Nb_total <= nb:                  # keep >=2 grid steps where possible (megacore)
        nb = max(2, 2 * ((Nb_total + 3) // 4))
    n_steps = -(-Nb_total // nb)
    Nb_pad = n_steps * nb
    rows = th * Wo
    Wp = Wo + 2 * padding

    pad_spec = ((0, 0), (padding, padding + (Hpad - H)),
                (padding, padding + (Wo - W)), (0, 0))
    xp = jnp.pad(x, pad_spec)

    def bands_of(a):
        # (N, Hpad+K-1, Wp, c) -> (Nb_pad, th+K-1, Wp, c) overlapping row bands.
        # TODO(synk): for large 7x7 maps, replace the wrapper-side halo copy with
        # a manual in-kernel halo DMA to avoid the (K-1)/th extra HBM reads.
        if n_bands == 1:
            bd = a
        else:
            starts = jnp.arange(n_bands) * th
            sl = jax.vmap(lambda img: jax.vmap(
                lambda s: jax.lax.dynamic_slice_in_dim(img, s, th + K - 1, axis=0)
            )(starts))(a)
            bd = sl.reshape(N * n_bands, th + K - 1, a.shape[2], a.shape[3])
        if Nb_pad > Nb_total:
            bd = jnp.pad(bd, ((0, Nb_pad - Nb_total), (0, 0), (0, 0), (0, 0)))
        return bd

    x_bands = bands_of(xp)
    w2 = w.reshape(K * K * Cin, Cout).astype(jnp.bfloat16)
    b2 = b.reshape(1, Cout).astype(jnp.float32)

    has_mask = mask is not None
    inputs = [x_bands]
    in_specs = [pl.BlockSpec((nb, th + K - 1, Wp, Cin), lambda i: (i, 0, 0, 0))]
    if has_mask:
        inputs.append(bands_of(jnp.pad(mask, pad_spec)))
        in_specs.append(pl.BlockSpec((nb, th + K - 1, Wp, 1), lambda i: (i, 0, 0, 0)))
    inputs += [w2, b2]
    in_specs += [pl.BlockSpec((K * K * Cin, Cout), lambda i: (0, 0)),
                 pl.BlockSpec((1, Cout), lambda i: (0, 0))]

    kernel = _make_conv_kernel(K, th, Wo, Cin, Cout, nb, has_mask)
    out = pl.pallas_call(
        kernel,
        out_shape=jax.ShapeDtypeStruct((Nb_pad // 2, rows, 2 * Cout), x.dtype),
        grid=(n_steps,),
        in_specs=in_specs,
        out_specs=pl.BlockSpec((nb // 2, rows, 2 * Cout), lambda i: (i, 0, 0)),
        scratch_shapes=[pltpu.VMEM((nb * rows, K * K * Cin), jnp.bfloat16)],
        compiler_params=pltpu.CompilerParams(
            dimension_semantics=("parallel",),
            vmem_limit_bytes=vmem_limit),
    )(*inputs)

    # unpack the channel-paired bands (plain XLA reshapes, outside the kernel)
    out = out.reshape(Nb_pad // 2, rows, 2, Cout).transpose(0, 2, 1, 3)
    out = out.reshape(Nb_pad, rows, Cout)[:Nb_total]
    out = out.reshape(N, n_bands, th, Wo, Cout).reshape(N, Hpad, Wo, Cout)
    return out[:, :H, :W, :]


# ----------------------------------------------------------------------------
# Pallas kernel: STCFormer-style agent fusion (confidence-softmax attention)
# ----------------------------------------------------------------------------
def _make_fuse_kernel(sT, C):
    half = sT // 2

    def kernel(rec_ref, feat_ref, psm_ref, o_ref, acc_ref):
        # TODO(synk): STCFormer internals are external to the provided source; a
        # confidence-softmax attention over agents stands in for the fusion.
        b = pl.program_id(0)
        n_valid = rec_ref[b]

        # lane-dense agent softmax on (AGENT_PAD, sT)
        psm = psm_ref[0].astype(jnp.float32)
        agent = jax.lax.broadcasted_iota(jnp.int32, psm.shape, 0)
        scores = jnp.where(agent < n_valid, psm, -1e30)
        scores = scores - jnp.max(scores, axis=0, keepdims=True)
        e = jnp.exp(scores)
        wgt = e * pl.reciprocal(jnp.sum(e, axis=0, keepdims=True), approx=True)
        wgt_t = wgt.T                                  # (sT, AGENT_PAD) one XLU transpose

        # accumulate into VMEM scratch (bounds value liveness for large sT)
        acc_ref[...] = wgt_t[:, 0:1] * feat_ref[0, 0].astype(jnp.float32)
        for a in range(1, MAX_CAV):                    # padded agents have wgt == 0
            acc_ref[...] += wgt_t[:, a:a + 1] * feat_ref[0, a].astype(jnp.float32)

        # lane-dense output: pack the two spatial halves of the tile -> 128 lanes
        o_ref[0, 0] = jnp.concatenate(
            [acc_ref[0:half, :], acc_ref[half:sT, :]], axis=-1).astype(o_ref.dtype)

    return kernel


def stc_fuse(feat_pad, psm_pad, record_len_arr, sT_cap=1024):
    """feat_pad: (B, MAX_CAV, HW, C); psm_pad: (B, AGENT_PAD, HW); rec: (B,)."""
    B, _, HW, C = feat_pad.shape
    if HW <= sT_cap:
        sT = -(-HW // 128) * 128
    else:
        sT = sT_cap                                     # multiple of 128
    HWp = -(-HW // sT) * sT
    n_sp = HWp // sT
    if HWp > HW:                                        # pad spatial tail, crop after
        feat_pad = jnp.pad(feat_pad, ((0, 0), (0, 0), (0, HWp - HW), (0, 0)))
        psm_pad = jnp.pad(psm_pad, ((0, 0), (0, 0), (0, HWp - HW)))
    vmem_limit = _vmem_limit_bytes()

    grid_spec = pltpu.PrefetchScalarGridSpec(
        num_scalar_prefetch=1,
        grid=(B, n_sp),
        in_specs=[pl.BlockSpec((1, MAX_CAV, sT, C), lambda b, s, rec: (b, 0, s, 0)),
                  pl.BlockSpec((1, AGENT_PAD, sT), lambda b, s, rec: (b, 0, s))],
        out_specs=pl.BlockSpec((1, 1, sT // 2, 2 * C), lambda b, s, rec: (b, s, 0, 0)),
        scratch_shapes=[pltpu.VMEM((sT, C), jnp.float32)],
    )
    out = pl.pallas_call(
        _make_fuse_kernel(sT, C),
        grid_spec=grid_spec,
        out_shape=jax.ShapeDtypeStruct((B, n_sp, sT // 2, 2 * C), feat_pad.dtype),
        compiler_params=pltpu.CompilerParams(
            dimension_semantics=("parallel", "parallel"),
            vmem_limit_bytes=vmem_limit),
    )(record_len_arr, feat_pad, psm_pad)

    # unpack the lane-paired spatial halves (plain XLA)
    out = out.reshape(B, n_sp, sT // 2, 2, C).transpose(0, 1, 3, 2, 4)
    out = out.reshape(B, HWp, C)[:, :HW, :]
    return out


# ----------------------------------------------------------------------------
# warp_affine_simple (F.affine_grid + F.grid_sample, bilinear, zero padding)
# ----------------------------------------------------------------------------
# TODO(synk): the bilinear grid_sample gather stays in XLA (4x take_along_axis);
# a Pallas double-buffered DMA-gather version is the remaining large lever at
# production sizes.  align_corners=True convention (PyTorch default is False).
def warp_affine_nhwc(src, theta, dsize):
    """src: (N, H, W, C), theta: (N, 2, 3) -> (N, Hd, Wd, C)."""
    N, H, W, C = src.shape
    Hd, Wd = dsize
    ys = jnp.linspace(-1.0, 1.0, Hd)
    xs = jnp.linspace(-1.0, 1.0, Wd)
    gy, gx = jnp.meshgrid(ys, xs, indexing="ij")
    base = jnp.stack([gx, gy, jnp.ones_like(gx)], axis=-1)        # (Hd, Wd, 3)
    coords = jnp.einsum("nij,hwj->nhwi", theta, base)             # (N, Hd, Wd, 2)
    px = (coords[..., 0] + 1.0) * (W - 1) / 2.0
    py = (coords[..., 1] + 1.0) * (H - 1) / 2.0

    x0 = jnp.floor(px)
    y0 = jnp.floor(py)
    x1 = x0 + 1.0
    y1 = y0 + 1.0

    flat = src.reshape(N, H * W, C)

    def gather(yi, xi):
        valid = ((xi >= 0) & (xi <= W - 1) & (yi >= 0) & (yi <= H - 1))
        xc = jnp.clip(xi, 0, W - 1).astype(jnp.int32)
        yc = jnp.clip(yi, 0, H - 1).astype(jnp.int32)
        idx = (yc * W + xc).reshape(N, Hd * Wd, 1)
        vals = jnp.take_along_axis(flat, idx, axis=1).reshape(N, Hd, Wd, C)
        return vals * valid[..., None].astype(src.dtype)

    wa = (x1 - px) * (y1 - py)
    wb = (x1 - px) * (py - y0)
    wc = (px - x0) * (y1 - py)
    wd = (px - x0) * (py - y0)
    out = (wa[..., None] * gather(y0, x0) + wb[..., None] * gather(y1, x0) +
           wc[..., None] * gather(y0, x1) + wd[..., None] * gather(y1, x1))
    return out.astype(src.dtype)


def _pad_agent_groups(a, record_len, n_agents):
    """a: (Nsum, ...) grouped by record_len -> (B, n_agents, ...) zero-padded."""
    B = len(record_len)
    starts = np.concatenate([[0], np.cumsum(record_len)[:-1]]).astype(int)
    groups = []
    for b in range(B):
        n = int(record_len[b])
        g = a[int(starts[b]):int(starts[b]) + n]
        pad = jnp.zeros((n_agents - n,) + a.shape[1:], a.dtype)
        groups.append(jnp.concatenate([g, pad], axis=0))
    return jnp.stack(groups, axis=0)


# ----------------------------------------------------------------------------
# How2comm forward (single level, communication=True, agg_mode='STCFormer')
# ----------------------------------------------------------------------------
def how2comm_forward(x, psm, record_len, pairwise_t_matrix, params,
                     communication_flag=True):
    Nsum, C, H, W = x.shape
    B, L = pairwise_t_matrix.shape[:2]
    # TODO(synk): record_len is consumed at trace time (static grouping); new
    # record_len combinations retrace.
    rl = [int(r) for r in record_len]

    # --- normalize the pairwise affine matrices (as in the PyTorch forward) ---
    t = pairwise_t_matrix[:, :, :, (0, 1), :][:, :, :, :, (0, 1, 3)]  # (B,L,L,2,3)
    t = t.at[..., 0, 1].multiply(H / W)
    t = t.at[..., 1, 0].multiply(W / H)
    t = t.at[..., 0, 2].set(t[..., 0, 2] / (DOWNSAMPLE_RATE * DISCRETE_RATIO * W) * 2)
    t = t.at[..., 1, 2].set(t[..., 1, 2] / (DOWNSAMPLE_RATE * DISCRETE_RATIO * H) * 2)

    # history=None path: no How2commPreprocess delay compensation; his == x.
    offset_loss = jnp.zeros((1,), jnp.float32)

    # single NCHW -> NHWC transpose; NHWC kept until the module boundary.
    x_nhwc = jnp.transpose(x, (0, 2, 3, 1))

    # TODO(synk): real PointPillars backbone (resnet/blocks/deblocks) is external;
    # one 3x3-conv level (Pallas im2col matmul) stands in for backbone.blocks[0].
    # his == x here, so the his-branch conv is skipped and x_feat is reused.
    x_feat = conv2d_nhwc(x_nhwc, params["block_w"], params["block_b"], padding=1)

    # Communication confidence map: trivial sigmoid + anchor-max, left to XLA
    # (fuses with the warp preprocessing; a Pallas step per sample was overhead).
    conf = jnp.max(jax.nn.sigmoid(psm), axis=1)[..., None]          # (Nsum, H, W, 1)

    # --- single batched warp over all valid agents; features and confidence are
    # warped together in one gather (65 channels) ---
    theta = jnp.concatenate([t[b, 0, :rl[b]] for b in range(B)], axis=0)  # (Nsum,2,3)
    warped = warp_affine_nhwc(jnp.concatenate([x_feat, conf], axis=-1), theta, (H, W))
    x_w, psm_w = warped[..., :C], warped[..., C:]

    if communication_flag:
        # TODO(synk): How2commPreprocess.communication (learned sparse mask) is
        # external; confidence-threshold masking is used as a stand-in.
        mask = (psm_w > 0.5).astype(x_w.dtype)
        communication_rates = jnp.mean(mask)
        commu_loss = jnp.zeros((1,), jnp.float32)
        # F.interpolate(scale_factor=1, mode='bilinear') is the identity here.
        # Sparsity mask fused into channel_fuse's im2col build: the masked
        # feature map never round-trips HBM.
        x_f = conv2d_nhwc(x_w, params["fuse_w"], params["fuse_b"], padding=3,
                          mask=mask)
        # sparse_history == sparse_feats (his == x) -> second 7x7 conv skipped.
    else:
        communication_rates = jnp.zeros((), x_w.dtype)
        commu_loss = jnp.zeros((1,), jnp.float32)
        x_f = x_w

    # --- pad each sample to MAX_CAV agents and fuse (Pallas) ---
    feat_pad = _pad_agent_groups(x_f, rl, MAX_CAV).reshape(B, MAX_CAV, H * W, C)
    psm_pad = _pad_agent_groups(psm_w.reshape(Nsum, H * W), rl, AGENT_PAD)
    rec_arr = jnp.asarray(rl, dtype=jnp.int32)
    x_fuse = stc_fuse(feat_pad, psm_pad, rec_arr)                   # (B, H*W, C)

    # history=None forward: his == x  =>  temporal == fused,
    # exclusive == relu(fused - fused) == 0, common == min(fused, fused) == fused.
    x_temporal = x_fuse
    x_exclusive = jnp.zeros_like(x_fuse)
    x_common = x_fuse

    # back to PyTorch NCHW at the module boundary
    def to_nchw(a):
        return jnp.transpose(a.reshape(B, H, W, C), (0, 3, 1, 2))

    return (to_nchw(x_fuse), communication_rates, {}, offset_loss, commu_loss,
            None, [to_nchw(x_temporal), to_nchw(x_exclusive), to_nchw(x_common)])


# ----------------------------------------------------------------------------
if __name__ == "__main__":
    key = jax.random.PRNGKey(0)
    k1, k2, k3, k4 = jax.random.split(key, 4)

    record_len = [2, 1]                 # B=2 samples, 3 agents total
    B = len(record_len)
    Nsum = int(sum(record_len))
    C, H, W, A = CHANNELS, 16, 16, 2

    x = jax.random.normal(k1, (Nsum, C, H, W), jnp.float32)
    psm = jax.random.normal(k2, (Nsum, A, H, W), jnp.float32)
    pairwise_t_matrix = jnp.tile(jnp.eye(4, dtype=jnp.float32),
                                 (B, MAX_CAV, MAX_CAV, 1, 1))

    params = {
        # backbone.blocks[0] stand-in: 3x3 conv, 64 -> 64
        "block_w": 0.05 * jax.random.normal(k3, (3, 3, C, C), jnp.float32),
        "block_b": jnp.zeros((C,), jnp.float32),
        # channel_fuse: 7x7 conv, 64 -> 64, padding 3
        "fuse_w": 0.05 * jax.random.normal(k4, (7, 7, C, C), jnp.float32),
        "fuse_b": jnp.zeros((C,), jnp.float32),
    }

    out = how2comm_forward(x, psm, record_len, pairwise_t_matrix, params)
    jax.block_until_ready((out[0], out[1], out[3], out[4], out[6]))
    print("KERNEL_OK")
</pallas_src>

<mosaic_0001>
module attributes {stable_mosaic.version = 11 : i64} {
  func.func @kernel(%arg0: i32, %arg1: memref<2x18x18x64xf32, #tpu.memory_space<vmem>>, %arg2: memref<576x64xbf16, #tpu.memory_space<vmem>>, %arg3: memref<1x64xf32, #tpu.memory_space<vmem>>, %arg4: memref<1x256x128xf32, #tpu.memory_space<vmem>>, %arg5: memref<512x576xbf16, #tpu.memory_space<vmem>>) attributes {dimension_semantics = [#tpu.dimension_semantics<parallel>], iteration_bounds = array<i64: 2>, scalar_prefetch = 0 : i64, scratch_operands = 1 : i64, tpu.core_type = #tpu.core_type<tc>, window_params = [{transform_indices = @transform_0, window_bounds = array<i64: 2, 18, 18, 64>}, {pipeline_mode = #tpu.pipeline_mode<synchronous>, transform_indices = @transform_1, window_bounds = array<i64: 576, 64>}, {pipeline_mode = #tpu.pipeline_mode<synchronous>, transform_indices = @transform_2, window_bounds = array<i64: 1, 64>}, {transform_indices = @transform_3, window_bounds = array<i64: 1, 256, 128>}]} {
    %c0 = arith.constant 0 : index
    %c0_0 = arith.constant 0 : index
    %c0_1 = arith.constant 0 : index
    %c0_2 = arith.constant 0 : index
    %0 = vector.load %arg1[%c0, %c0_0, %c0_1, %c0_2] : memref<2x18x18x64xf32, #tpu.memory_space<vmem>>, vector<1x16x16x64xf32>
    %1 = vector.shape_cast %0 : vector<1x16x16x64xf32> to vector<16x16x64xf32>
    %2 = vector.shape_cast %1 : vector<16x16x64xf32> to vector<256x64xf32>
    %3 = arith.truncf %2 : vector<256x64xf32> to vector<256x64xbf16>
    %c0_3 = arith.constant 0 : index
    %c0_4 = arith.constant 0 : index
    %c1 = arith.constant 1 : index
    %c0_5 = arith.constant 0 : index
    %4 = vector.load %arg1[%c0_3, %c0_4, %c1, %c0_5] : memref<2x18x18x64xf32, #tpu.memory_space<vmem>>, vector<1x16x16x64xf32>
    %5 = vector.shape_cast %4 : vector<1x16x16x64xf32> to vector<16x16x64xf32>
    %6 = vector.shape_cast %5 : vector<16x16x64xf32> to vector<256x64xf32>
    %7 = arith.truncf %6 : vector<256x64xf32> to vector<256x64xbf16>
    %8 = tpu.concatenate %3, %7 in 1 : vector<256x64xbf16>, vector<256x64xbf16> -> vector<256x128xbf16>
    %c0_6 = arith.constant 0 : index
    %c0_7 = arith.constant 0 : index
    %9 = vector.load %arg5[%c0_6, %c0_7] : memref<512x576xbf16, #tpu.memory_space<vmem>>, vector<256x128xbf16>
    tpu.vector_store %arg5[%c0_6, %c0_7], %8 {strides = array<i32>} : memref<512x576xbf16, #tpu.memory_space<vmem>>, vector<256x128xbf16>,
    %c0_8 = arith.constant 0 : index
    %c0_9 = arith.constant 0 : index
    %c2 = arith.constant 2 : index
    %c0_10 = arith.constant 0 : index
    %10 = vector.load %arg1[%c0_8, %c0_9, %c2, %c0_10] : memref<2x18x18x64xf32, #tpu.memory_space<vmem>>, vector<1x16x16x64xf32>
    %11 = vector.shape_cast %10 : vector<1x16x16x64xf32> to vector<16x16x64xf32>
    %12 = vector.shape_cast %11 : vector<16x16x64xf32> to vector<256x64xf32>
    %13 = arith.truncf %12 : vector<256x64xf32> to vector<256x64xbf16>
    %c0_11 = arith.constant 0 : index
    %c1_12 = arith.constant 1 : index
    %c0_13 = arith.constant 0 : index
    %c0_14 = arith.constant 0 : index
    %14 = vector.load %arg1[%c0_11, %c1_12, %c0_13, %c0_14] : memref<2x18x18x64xf32, #tpu.memory_space<vmem>>, vector<1x16x16x64xf32>
    %15 = vector.shape_cast %14 : vector<1x16x16x64xf32> to vector<16x16x64xf32>
    %16 = vector.shape_cast %15 : vector<16x16x64xf32> to vector<256x64xf32>
    %17 = arith.truncf %16 : vector<256x64xf32> to vector<256x64xbf16>
    %18 = tpu.concatenate %13, %17 in 1 : vector<256x64xbf16>, vector<256x64xbf16> -> vector<256x128xbf16>
    %c0_15 = arith.constant 0 : index
    %c128 = arith.constant 128 : index
    %19 = vector.load %arg5[%c0_15, %c128] : memref<512x576xbf16, #tpu.memory_space<vmem>>, vector<256x128xbf16>
    tpu.vector_store %arg5[%c0_15, %c128], %18 {strides = array<i32>} : memref<512x576xbf16, #tpu.memory_space<vmem>>, vector<256x128xbf16>,
    %c0_16 = arith.constant 0 : index
    %c1_17 = arith.constant 1 : index
    %c1_18 = arith.constant 1 : index
    %c0_19 = arith.constant 0 : index
    %20 = vector.load %arg1[%c0_16, %c1_17, %c1_18, %c0_19] : memref<2x18x18x64xf32, #tpu.memory_space<vmem>>, vector<1x16x16x64xf32>
    %21 = vector.shape_cast %20 : vector<1x16x16x64xf32> to vector<16x16x64xf32>
    %22 = vector.shape_cast %21 : vector<16x16x64xf32> to vector<256x64xf32>
    %23 = arith.truncf %22 : vector<256x64xf32> to vector<256x64xbf16>
    %c0_20 = arith.constant 0 : index
    %c1_21 = arith.constant 1 : index
    %c2_22 = arith.constant 2 : index
    %c0_23 = arith.constant 0 : index
    %24 = vector.load %arg1[%c0_20, %c1_21, %c2_22, %c0_23] : memref<2x18x18x64xf32, #tpu.memory_space<vmem>>, vector<1x16x16x64xf32>
    %25 = vector.shape_cast %24 : vector<1x16x16x64xf32> to vector<16x16x64xf32>
    %26 = vector.shape_cast %25 : vector<16x16x64xf32> to vector<256x64xf32>
    %27 = arith.truncf %26 : vector<256x64xf32> to vector<256x64xbf16>
    %28 = tpu.concatenate %23, %27 in 1 : vector<256x64xbf16>, vector<256x64xbf16> -> vector<256x128xbf16>
    %c0_24 = arith.constant 0 : index
    %c256 = arith.constant 256 : index
    %29 = vector.load %arg5[%c0_24, %c256] : memref<512x576xbf16, #tpu.memory_space<vmem>>, vector<256x128xbf16>
    tpu.vector_store %arg5[%c0_24, %c256], %28 {strides = array<i32>} : memref<512x576xbf16, #tpu.memory_space<vmem>>, vector<256x128xbf16>,
    %c0_25 = arith.constant 0 : index
    %c2_26 = arith.constant 2 : index
    %c0_27 = arith.constant 0 : index
    %c0_28 = arith.constant 0 : index
    %30 = vector.load %arg1[%c0_25, %c2_26, %c0_27, %c0_28] : memref<2x18x18x64xf32, #tpu.memory_space<vmem>>, vector<1x16x16x64xf32>
    %31 = vector.shape_cast %30 : vector<1x16x16x64xf32> to vector<16x16x64xf32>
    %32 = vector.shape_cast %31 : vector<16x16x64xf32> to vector<256x64xf32>
    %33 = arith.truncf %32 : vector<256x64xf32> to vector<256x64xbf16>
    %c0_29 = arith.constant 0 : index
    %c2_30 = arith.constant 2 : index
    %c1_31 = arith.constant 1 : index
    %c0_32 = arith.constant 0 : index
    %34 = vector.load %arg1[%c0_29, %c2_30, %c1_31, %c0_32] : memref<2x18x18x64xf32, #tpu.memory_space<vmem>>, vector<1x16x16x64xf32>
    %35 = vector.shape_cast %34 : vector<1x16x16x64xf32> to vector<16x16x64xf32>
    %36 = vector.shape_cast %35 : vector<16x16x64xf32> to vector<256x64xf32>
    %37 = arith.truncf %36 : vector<256x64xf32> to vector<256x64xbf16>
    %38 = tpu.concatenate %33, %37 in 1 : vector<256x64xbf16>, vector<256x64xbf16> -> vector<256x128xbf16>
    %c0_33 = arith.constant 0 : index
    %c384 = arith.constant 384 : index
    %39 = vector.load %arg5[%c0_33, %c384] : memref<512x576xbf16, #tpu.memory_space<vmem>>, vector<256x128xbf16>
    tpu.vector_store %arg5[%c0_33, %c384], %38 {strides = array<i32>} : memref<512x576xbf16, #tpu.memory_space<vmem>>, vector<256x128xbf16>,
    %c0_34 = arith.constant 0 : index
    %c2_35 = arith.constant 2 : index
    %c2_36 = arith.constant 2 : index
    %c0_37 = arith.constant 0 : index
    %40 = vector.load %arg1[%c0_34, %c2_35, %c2_36, %c0_37] : memref<2x18x18x64xf32, #tpu.memory_space<vmem>>, vector<1x16x16x64xf32>
    %41 = vector.shape_cast %40 : vector<1x16x16x64xf32> to vector<16x16x64xf32>
    %42 = vector.shape_cast %41 : vector<16x16x64xf32> to vector<256x64xf32>
    %43 = arith.truncf %42 : vector<256x64xf32> to vector<256x64xbf16>
    %c0_38 = arith.constant 0 : index
    %c512 = arith.constant 512 : index
    %44 = vector.load %arg5[%c0_38, %c512] : memref<512x576xbf16, #tpu.memory_space<vmem>>, vector<256x64xbf16>
    tpu.vector_store %arg5[%c0_38, %c512], %43 {strides = array<i32>} : memref<512x576xbf16, #tpu.memory_space<vmem>>, vector<256x64xbf16>,
    %c1_39 = arith.constant 1 : index
    %c0_40 = arith.constant 0 : index
    %c0_41 = arith.constant 0 : index
    %c0_42 = arith.constant 0 : index
    %45 = vector.load %arg1[%c1_39, %c0_40, %c0_41, %c0_42] : memref<2x18x18x64xf32, #tpu.memory_space<vmem>>, vector<1x16x16x64xf32>
    %46 = vector.shape_cast %45 : vector<1x16x16x64xf32> to vector<16x16x64xf32>
    %47 = vector.shape_cast %46 : vector<16x16x64xf32> to vector<256x64xf32>
    %48 = arith.truncf %47 : vector<256x64xf32> to vector<256x64xbf16>
    %c1_43 = arith.constant 1 : index
    %c0_44 = arith.constant 0 : index
    %c1_45 = arith.constant 1 : index
    %c0_46 = arith.constant 0 : index
    %49 = vector.load %arg1[%c1_43, %c0_44, %c1_45, %c0_46] : memref<2x18x18x64xf32, #tpu.memory_space<vmem>>, vector<1x16x16x64xf32>
    %50 = vector.shape_cast %49 : vector<1x16x16x64xf32> to vector<16x16x64xf32>
    %51 = vector.shape_cast %50 : vector<16x16x64xf32> to vector<256x64xf32>
    %52 = arith.truncf %51 : vector<256x64xf32> to vector<256x64xbf16>
    %53 = tpu.concatenate %48, %52 in 1 : vector<256x64xbf16>, vector<256x64xbf16> -> vector<256x128xbf16>
    %c256_47 = arith.constant 256 : index
    %c0_48 = arith.constant 0 : index
    %54 = vector.load %arg5[%c256_47, %c0_48] : memref<512x576xbf16, #tpu.memory_space<vmem>>, vector<256x128xbf16>
    tpu.vector_store %arg5[%c256_47, %c0_48], %53 {strides = array<i32>} : memref<512x576xbf16, #tpu.memory_space<vmem>>, vector<256x128xbf16>,
    %c1_49 = arith.constant 1 : index
    %c0_50 = arith.constant 0 : index
    %c2_51 = arith.constant 2 : index
    %c0_52 = arith.constant 0 : index
    %55 = vector.load %arg1[%c1_49, %c0_50, %c2_51, %c0_52] : memref<2x18x18x64xf32, #tpu.memory_space<vmem>>, vector<1x16x16x64xf32>
    %56 = vector.shape_cast %55 : vector<1x16x16x64xf32> to vector<16x16x64xf32>
    %57 = vector.shape_cast %56 : vector<16x16x64xf32> to vector<256x64xf32>
    %58 = arith.truncf %57 : vector<256x64xf32> to vector<256x64xbf16>
    %c1_53 = arith.constant 1 : index
    %c1_54 = arith.constant 1 : index
    %c0_55 = arith.constant 0 : index
    %c0_56 = arith.constant 0 : index
    %59 = vector.load %arg1[%c1_53, %c1_54, %c0_55, %c0_56] : memref<2x18x18x64xf32, #tpu.memory_space<vmem>>, vector<1x16x16x64xf32>
    %60 = vector.shape_cast %59 : vector<1x16x16x64xf32> to vector<16x16x64xf32>
    %61 = vector.shape_cast %60 : vector<16x16x64xf32> to vector<256x64xf32>
    %62 = arith.truncf %61 : vector<256x64xf32> to vector<256x64xbf16>
    %63 = tpu.concatenate %58, %62 in 1 : vector<256x64xbf16>, vector<256x64xbf16> -> vector<256x128xbf16>
    %c256_57 = arith.constant 256 : index
    %c128_58 = arith.constant 128 : index
    %64 = vector.load %arg5[%c256_57, %c128_58] : memref<512x576xbf16, #tpu.memory_space<vmem>>, vector<256x128xbf16>
    tpu.vector_store %arg5[%c256_57, %c128_58], %63 {strides = array<i32>} : memref<512x576xbf16, #tpu.memory_space<vmem>>, vector<256x128xbf16>,
    %c1_59 = arith.constant 1 : index
    %c1_60 = arith.constant 1 : index
    %c1_61 = arith.constant 1 : index
    %c0_62 = arith.constant 0 : index
    %65 = vector.load %arg1[%c1_59, %c1_60, %c1_61, %c0_62] : memref<2x18x18x64xf32, #tpu.memory_space<vmem>>, vector<1x16x16x64xf32>
    %66 = vector.shape_cast %65 : vector<1x16x16x64xf32> to vector<16x16x64xf32>
    %67 = vector.shape_cast %66 : vector<16x16x64xf32> to vector<256x64xf32>
    %68 = arith.truncf %67 : vector<256x64xf32> to vector<256x64xbf16>
    %c1_63 = arith.constant 1 : index
    %c1_64 = arith.constant 1 : index
    %c2_65 = arith.constant 2 : index
    %c0_66 = arith.constant 0 : index
    %69 = vector.load %arg1[%c1_63, %c1_64, %c2_65, %c0_66] : memref<2x18x18x64xf32, #tpu.memory_space<vmem>>, vector<1x16x16x64xf32>
    %70 = vector.shape_cast %69 : vector<1x16x16x64xf32> to vector<16x16x64xf32>
    %71 = vector.shape_cast %70 : vector<16x16x64xf32> to vector<256x64xf32>
    %72 = arith.truncf %71 : vector<256x64xf32> to vector<256x64xbf16>
    %73 = tpu.concatenate %68, %72 in 1 : vector<256x64xbf16>, vector<256x64xbf16> -> vector<256x128xbf16>
    %c256_67 = arith.constant 256 : index
    %c256_68 = arith.constant 256 : index
    %74 = vector.load %arg5[%c256_67, %c256_68] : memref<512x576xbf16, #tpu.memory_space<vmem>>, vector<256x128xbf16>
    tpu.vector_store %arg5[%c256_67, %c256_68], %73 {strides = array<i32>} : memref<512x576xbf16, #tpu.memory_space<vmem>>, vector<256x128xbf16>,
    %c1_69 = arith.constant 1 : index
    %c2_70 = arith.constant 2 : index
    %c0_71 = arith.constant 0 : index
    %c0_72 = arith.constant 0 : index
    %75 = vector.load %arg1[%c1_69, %c2_70, %c0_71, %c0_72] : memref<2x18x18x64xf32, #tpu.memory_space<vmem>>, vector<1x16x16x64xf32>
    %76 = vector.shape_cast %75 : vector<1x16x16x64xf32> to vector<16x16x64xf32>
    %77 = vector.shape_cast %76 : vector<16x16x64xf32> to vector<256x64xf32>
    %78 = arith.truncf %77 : vector<256x64xf32> to vector<256x64xbf16>
    %c1_73 = arith.constant 1 : index
    %c2_74 = arith.constant 2 : index
    %c1_75 = arith.constant 1 : index
    %c0_76 = arith.constant 0 : index
    %79 = vector.load %arg1[%c1_73, %c2_74, %c1_75, %c0_76] : memref<2x18x18x64xf32, #tpu.memory_space<vmem>>, vector<1x16x16x64xf32>
    %80 = vector.shape_cast %79 : vector<1x16x16x64xf32> to vector<16x16x64xf32>
    %81 = vector.shape_cast %80 : vector<16x16x64xf32> to vector<256x64xf32>
    %82 = arith.truncf %81 : vector<256x64xf32> to vector<256x64xbf16>
    %83 = tpu.concatenate %78, %82 in 1 : vector<256x64xbf16>, vector<256x64xbf16> -> vector<256x128xbf16>
    %c256_77 = arith.constant 256 : index
    %c384_78 = arith.constant 384 : index
    %84 = vector.load %arg5[%c256_77, %c384_78] : memref<512x576xbf16, #tpu.memory_space<vmem>>, vector<256x128xbf16>
    tpu.vector_store %arg5[%c256_77, %c384_78], %83 {strides = array<i32>} : memref<512x576xbf16, #tpu.memory_space<vmem>>, vector<256x128xbf16>,
    %c1_79 = arith.constant 1 : index
    %c2_80 = arith.constant 2 : index
    %c2_81 = arith.constant 2 : index
    %c0_82 = arith.constant 0 : index
    %85 = vector.load %arg1[%c1_79, %c2_80, %c2_81, %c0_82] : memref<2x18x18x64xf32, #tpu.memory_space<vmem>>, vector<1x16x16x64xf32>
    %86 = vector.shape_cast %85 : vector<1x16x16x64xf32> to vector<16x16x64xf32>
    %87 = vector.shape_cast %86 : vector<16x16x64xf32> to vector<256x64xf32>
    %88 = arith.truncf %87 : vector<256x64xf32> to vector<256x64xbf16>
    %c256_83 = arith.constant 256 : index
    %c512_84 = arith.constant 512 : index
    %89 = vector.load %arg5[%c256_83, %c512_84] : memref<512x576xbf16, #tpu.memory_space<vmem>>, vector<256x64xbf16>
    tpu.vector_store %arg5[%c256_83, %c512_84], %88 {strides = array<i32>} : memref<512x576xbf16, #tpu.memory_space<vmem>>, vector<256x64xbf16>,
    %c0_85 = arith.constant 0 : index
    %c0_86 = arith.constant 0 : index
    %90 = vector.load %arg5[%c0_85, %c0_86] : memref<512x576xbf16, #tpu.memory_space<vmem>>, vector<512x576xbf16>
    %c0_87 = arith.constant 0 : index
    %c0_88 = arith.constant 0 : index
    %91 = vector.load %arg2[%c0_87, %c0_88] : memref<576x64xbf16, #tpu.memory_space<vmem>>, vector<576x64xbf16>
    %cst = arith.constant dense<0.000000e+00> : vector<512x64xf32>
    %92 = tpu.matmul %90, %91, %cst {dimension_numbers = #tpu.dot_dimension_numbers<[1], [0], [0], [1], [0, 0, 1, 1], [], []>} : vector<512x576xbf16>, vector<576x64xbf16>, vector<512x64xf32> -> vector<512x64xf32>
    %c0_89 = arith.constant 0 : index
    %c0_90 = arith.constant 0 : index
    %93 = vector.load %arg3[%c0_89, %c0_90] : memref<1x64xf32, #tpu.memory_space<vmem>>, vector<1x64xf32>
    %94 = vector.shape_cast %93 : vector<1x64xf32> to vector<64xf32>
    %95 = vector.shape_cast %94 : vector<64xf32> to vector<1x64xf32>
    %96 = vector.broadcast %95 : vector<1x64xf32> to vector<512x64xf32>
    %97 = arith.addf %92, %96 : vector<512x64xf32>
    %98 = vector.extract_strided_slice %97 {offsets = [0, 0], sizes = [256, 64], strides = [1, 1]} : vector<512x64xf32> to vector<256x64xf32>
    %99 = vector.extract_strided_slice %97 {offsets = [256, 0], sizes = [256, 64], strides = [1, 1]} : vector<512x64xf32> to vector<256x64xf32>
    %100 = tpu.concatenate %98, %99 in 1 : vector<256x64xf32>, vector<256x64xf32> -> vector<256x128xf32>
    %c0_91 = arith.constant 0 : index
    %c0_92 = arith.constant 0 : index
    %c0_93 = arith.constant 0 : index
    %101 = vector.load %arg4[%c0_91, %c0_92, %c0_93] : memref<1x256x128xf32, #tpu.memory_space<vmem>>, vector<1x256x128xf32>
    %102 = vector.shape_cast %101 : vector<1x256x128xf32> to vector<256x128xf32>
    %103 = vector.shape_cast %100 : vector<256x128xf32> to vector<1x256x128xf32>
    tpu.vector_store %arg4[%c0_91, %c0_92, %c0_93], %103 {strides = array<i32>} : memref<1x256x128xf32, #tpu.memory_space<vmem>>, vector<1x256x128xf32>,
    return
  }
  func.func @transform_0(%arg0: i32) -> (i32, i32, i32, i32) {
    %c0_i32 = arith.constant 0 : i32
    %c0_i32_0 = arith.constant 0 : i32
    %c0_i32_1 = arith.constant 0 : i32
    %c0_i32_2 = arith.constant 0 : i32
    return %arg0, %c0_i32, %c0_i32_0, %c0_i32_1 : i32, i32, i32, i32
  }
  func.func @transform_1(%arg0: i32) -> (i32, i32) {
    %c0_i32 = arith.constant 0 : i32
    %c0_i32_0 = arith.constant 0 : i32
    %c0_i32_1 = arith.constant 0 : i32
    return %c0_i32, %c0_i32_0 : i32, i32
  }
  func.func @transform_2(%arg0: i32) -> (i32, i32) {
    %c0_i32 = arith.constant 0 : i32
    %c0_i32_0 = arith.constant 0 : i32
    %c0_i32_1 = arith.constant 0 : i32
    return %c0_i32, %c0_i32_0 : i32, i32
  }
  func.func @transform_3(%arg0: i32) -> (i32, i32, i32) {
    %c0_i32 = arith.constant 0 : i32
    %c0_i32_0 = arith.constant 0 : i32
    %c0_i32_1 = arith.constant 0 : i32
    return %arg0, %c0_i32, %c0_i32_0 : i32, i32, i32
  }
}

</mosaic_0001>

<bundles_post_ra>
// kernel: tpu_custom_call.1
= control target key start
LH: loop header
LB: loop body
LE: loop exit
PB: predicated region body
PF: predicated region fallthrough
CT: control target
= control target key end

     0   :  { %8 = vsyncpa [#allocation4], 0  ;;  %s10541_s0 = inlined_call_operand.vmem [shape: f32[4,18,18,64], index: 0, kind: input, shape index: {}]   ;;  %s10542_s1 = inlined_call_operand.vmem [shape: bf16[576,64], index: 1, kind: input, shape index: {}]   ;;  %s10543_s2 = inlined_call_operand.vmem [shape: f32[1,64], index: 2, kind: input, shape index: {}]   ;;  %s10544_s3 = inlined_call_operand.hbm [shape: f32[2,256,128], index: 3, kind: output, shape index: {}]  }
   0x1   :  { %10 = vsyncpa [#allocation4 + $0x1], 0  ;;  %s8629_s12 = smov 0   ;;  %s8631_s13 = smov 0  }
   0x2   :  { %s8633_s14 = smov 0   ;;  %s8635_s15 = smov 0  }
   0x3 LB: > { %s8650_s16 = sadd.s32 4294967295, %s8604_s15   ;;  %s6965_s17 = sadd.s32 4294967294, %s8604_s15   ;;  %s8604_s15 = sphi %s8635_s15, %s10618_s15   ;;  %s8600_s14 = sphi %s8633_s14, %s10617_s14   ;;  %s8596_s13 = sphi %s8631_s13, %s10616_s13   ;;  %s8592_s12 = sphi %s8629_s12, %s10615_s12  }
   0x4   : > { %s8654_s18 = sadd.s32 1, %s8604_s15   ;;  %s91_s19 = sadd.s32 1, %s8600_s14 }
   0x5   : > { %s88_s20 = ssub.s32 %s8604_s15, %s8654_s18  ;;  %p101_p0 = scmp.ne.s32.totalorder %s8600_s14, %s8596_s13 }
   0x6   : > { %p89_p1 = scmp.eq.s32.totalorder %s88_s20, 0  ;;  %p102_p2 = scmp.eq.s32.totalorder %s8650_s16, 1 }
   0x7   : > { %p107_p3 = scmp.ne.s32.totalorder %s8596_s13, %s8592_s12  ;;  %p108_p4 = scmp.eq.s32.totalorder %s6965_s17, 1 }
   0x8   : > { %s8665_s21 = scalar_select %p89_p1, %s8600_s14, %s91_s19  }
   0x9   : > { %p8667_p5 = por %p102_p2, %p101_p0  ;;  %p8671_p6 = por %p108_p4, %p107_p3 }
   0xa   : > { %p6968_p7 = scmp.ge.s32.totalorder %s8604_s15, 1  ;;  %p142_p8 = scmp.lt.s32.totalorder %s8604_s15, 3 }
   0xc   : > { %p143_p9 = pnand %p6968_p7, %p142_p8 }
   0xe   : > { %146 = sbr.rel (%p143_p9) target bundleno = 1060 (0x424), region = 32 }
  0x13   : > { %s6970_s24 = sshll.u32 %s8650_s16, 1  ;;  %s8606_s29 = smov 64   ;;  %vm495_vm0 = vcmask 523264   ;;  %vm2290_vm1 = vcmask 519168  }
  0x14   : > { %p168_p10 = scmp.lt.s32.totalorder %s6970_s24, 3 }
  0x16   : > { %s10620_s24 = smov (!%p168_p10, %s6970_s24), 3 }
  0x17   : > { %s8494_s25 = smul.u32 432, %s10620_s24 }
  0x19   : > { %s8681_s28 = scalar_lea.vmem %s10541_s0, %s8494_s25  ;;  %s8562_s25 = scalar_lea.hbm %s10544_s3, 512 }
  0x1a   : > { %v7196_v0 = vld [vmem:[%s8681_s28 + $0x1b1] sm:$0xff]  ;;  %v7197_v1 = vld [vmem:[%s8681_s28 + $0x1b9] sm:$0xff]  ;;  %v255_v2 = vld [vmem:[%s8681_s28 + $0xc1] sm:$0xff] }
  0x1b   : > { %v2420_v3 = vpack.c.bf16 %v7196_v0, %v7196_v0  ;;  %v2421_v4 = vpack.c.bf16 %v7197_v1, %v7197_v1  ;;  %v256_v5 = vld [vmem:[%s8681_s28 + $0xc9] sm:$0xff]  ;;  %v287_v6 = vpack.c.bf16 %v255_v2, %v255_v2  ;;  %v7212_v7 = vld [vmem:[%s8681_s28 + $0x271] sm:$0xff]  ;;  %v7213_v8 = vld [vmem:[%s8681_s28 + $0x279] sm:$0xff] }
  0x1c   : > { %v288_v9 = vpack.c.bf16 %v256_v5, %v256_v5  ;;  %v2436_v10 = vpack.c.bf16 %v7212_v7, %v7212_v7  ;;  %v239_v11 = vld [vmem:[%s8681_s28 + $0x1] sm:$0xff]  ;;  %v240_v12 = vld [vmem:[%s8681_s28 + $0x9] sm:$0xff]  ;;  %v2437_v16 = vpack.c.bf16 %v7213_v8, %v7213_v8  ;;  %v7199_v23 = vld [vmem:[%s8681_s28 + $0x1d1] sm:$0xff] }
  0x1d   : > { %v2564_v13 = vunpack.c.l.b16 %v2420_v3  ;;  %v2565_v14 = vunpack.c.l.b16 %v2421_v4  ;;  %v431_v15 = vunpack.c.l.b16 %v287_v6  ;;  %v271_v18 = vpack.c.bf16 %v239_v11, %v239_v11  ;;  %v7198_v21 = vld [vmem:[%s8681_s28 + $0x1c9] sm:$0xff]  ;;  %v257_v26 = vld [vmem:[%s8681_s28 + $0xd9] sm:$0xff]  ;;  %v258_v27 = vld [vmem:[%s8681_s28 + $0xe1] sm:$0xff] }
  0x1e   : > { %v432_v17 = vunpack.c.l.b16 %v288_v9  ;;  %v272_v19 = vpack.c.bf16 %v240_v12, %v240_v12  ;;  %v2580_v24 = vunpack.c.l.b16 %v2436_v10  ;;  %v2581_v25 = vunpack.c.l.b16 %v2437_v16  ;;  %v7214_v31 = vld [vmem:[%s8681_s28 + $0x289] sm:$0xff]  ;;  %v7215_v32 = vld [vmem:[%s8681_s28 + $0x291] sm:$0xff]  ;;  %v241_v33 = vld [vmem:[%s8681_s28 + $0x19] sm:$0xff] }
  0x1f   : > { %v2596_v20 = vpack.c.b16 %v2565_v14, %v2564_v13  ;;  %v415_v28 = vunpack.c.l.b16 %v271_v18  ;;  %v2422_v30 = vpack.c.bf16 %v7198_v21, %v7198_v21  ;;  %v242_v34 = vld [vmem:[%s8681_s28 + $0x21] sm:$0xff]  ;;  %v2423_v35 = vpack.c.bf16 %v7199_v23, %v7199_v23  ;;  %v7217_v54 = vld [vmem:[%s8681_s28 + $0x2a9] sm:$0xff]  ;;  %v259_v57 = vld [vmem:[%s8681_s28 + $0xf1] sm:$0xff] }
  0x20   : > { %v455_v22 = vpack.c.b16 %v432_v17, %v431_v15  ;;  %v416_v29 = vunpack.c.l.b16 %v272_v19  ;;  %v289_v36 = vpack.c.bf16 %v257_v26, %v257_v26  ;;  %v290_v37 = vpack.c.bf16 %v258_v27, %v258_v27  ;;  %v7216_v49 = vld [vmem:[%s8681_s28 + $0x2a1] sm:$0xff]  ;;  %v7201_v56 = vld [vmem:[%s8681_s28 + $0x1e9] sm:$0xff]  ;;  %v260_v58 = vld [vmem:[%s8681_s28 + $0xf9] sm:$0xff] }
  0x21   : > { %2612 = vrot.lane.b32.xlu0 %v2596_v20, %s8606_s29  ;;  %v2566_v38 = vunpack.c.l.b16 %v2422_v30  ;;  %v2604_v39 = vpack.c.b16 %v2581_v25, %v2580_v24  ;;  %v2567_v40 = vunpack.c.l.b16 %v2423_v35  ;;  %v2438_v41 = vpack.c.bf16 %v7214_v31, %v7214_v31  ;;  %v7200_v55 = vld [vmem:[%s8681_s28 + $0x1e1] sm:$0xff]  ;;  %v7202_v6 = vld [vmem:[%s8681_s28 + $0x1f9] sm:$0xff]  ;;  %v243_v12 = vld [vmem:[%s8681_s28 + $0x31] sm:$0xff] }
  0x22   : > { %479 = vrot.lane.b32.xlu1 %v455_v22, %s8606_s29  ;;  %v2439_v42 = vpack.c.bf16 %v7215_v32, %v7215_v32  ;;  %v447_v43 = vpack.c.b16 %v416_v29, %v415_v28  ;;  %v273_v44 = vpack.c.bf16 %v241_v33, %v241_v33  ;;  %v274_v45 = vpack.c.bf16 %v242_v34, %v242_v34  ;;  %v7203_v7 = vld [vmem:[%s8681_s28 + $0x201] sm:$0xff]  ;;  %v244_v13 = vld [vmem:[%s8681_s28 + $0x39] sm:$0xff]  ;;  %v245_v27 = vld [vmem:[%s8681_s28 + $0x49] sm:$0xff] }
  0x23   : > { %v2597_v46 = vpack.c.b16 %v2567_v40, %v2566_v38  ;;  %v433_v47 = vunpack.c.l.b16 %v289_v36  ;;  %v434_v48 = vunpack.c.l.b16 %v290_v37  ;;  %v2582_v50 = vunpack.c.l.b16 %v2438_v41  ;;  %v7218_v14 = vld [vmem:[%s8681_s28 + $0x2b9] sm:$0xff]  ;;  %v7219_v15 = vld [vmem:[%s8681_s28 + $0x2c1] sm:$0xff]  ;;  %v246_v28 = vld [vmem:[%s8681_s28 + $0x51] sm:$0xff] }
  0x24   : > { %v2583_v51 = vunpack.c.l.b16 %v2439_v42  ;;  %v417_v52 = vunpack.c.l.b16 %v273_v44  ;;  %v418_v53 = vunpack.c.l.b16 %v274_v45  ;;  %v2440_v60 = vpack.c.bf16 %v7216_v49, %v7216_v49  ;;  %v261_v33 = vld [vmem:[%s8681_s28 + $0x109] sm:$0xff]  ;;  %v262_v34 = vld [vmem:[%s8681_s28 + $0x111] sm:$0xff]  ;;  %v7205_v36 = vld [vmem:[%s8681_s28 + $0x219] sm:$0xff] }
  0x25   : > { %2614 = vrot.lane.b32.xlu2 %v2597_v46, %s8606_s29  ;;  %v456_v59 = vpack.c.b16 %v434_v48, %v433_v47  ;;  %v2441_v61 = vpack.c.bf16 %v7217_v54, %v7217_v54  ;;  %v2424_v63 = vpack.c.bf16 %v7200_v55, %v7200_v55  ;;  %v2425_v0 = vpack.c.bf16 %v7201_v56, %v7201_v56  ;;  %v7204_v35 = vld [vmem:[%s8681_s28 + $0x211] sm:$0xff]  ;;  %v263_v48 = vld [vmem:[%s8681_s28 + $0x121] sm:$0xff]  ;;  %v264_v49 = vld [vmem:[%s8681_s28 + $0x129] sm:$0xff] }
  0x26   : > { %v2605_v62 = vpack.c.b16 %v2583_v51, %v2582_v50  ;;  %v448_v1 = vpack.c.b16 %v418_v53, %v417_v52  ;;  %v291_v2 = vpack.c.bf16 %v259_v57, %v259_v57  ;;  %v292_v3 = vpack.c.bf16 %v260_v58, %v260_v58  ;;  %v7220_v54 = vld [vmem:[%s8681_s28 + $0x2d1] sm:$0xff]  ;;  %v7221_v55 = vld [vmem:[%s8681_s28 + $0x2d9] sm:$0xff]  ;;  %v247_v57 = vld [vmem:[%s8681_s28 + $0x61] sm:$0xff] }
  0x27   : > { %v2584_v4 = vunpack.c.l.b16 %v2440_v60  ;;  %v2585_v5 = vunpack.c.l.b16 %v2441_v61  ;;  %v2568_v8 = vunpack.c.l.b16 %v2424_v63  ;;  %v2569_v9 = vunpack.c.l.b16 %v2425_v0  ;;  %v8440_v56 = vld [vmem:[%s10542_s1 + $0x38] sm:$0xff]  ;;  %v248_v58 = vld [vmem:[%s8681_s28 + $0x69] sm:$0xff] }
  0x28   : > { %v435_v10 = vunpack.c.l.b16 %v291_v2  ;;  %v436_v11 = vunpack.c.l.b16 %v292_v3  ;;  %v2426_v16 = vpack.c.bf16 %v7202_v6, %v7202_v6  ;;  %v2427_v17 = vpack.c.bf16 %v7203_v7, %v7203_v7  ;;  %8470 = vmatpush.bf16.msra.mxu1 %v8440_v56  ;;  %8471 = vmatpush.bf16.msra.mxu2 %v8440_v56  ;;  %v7222_v7 = vld [vmem:[%s8681_s28 + $0x2e9] sm:$0xff] }
  0x29   : > { %2628 = vrot.lane.b32.xlu0 %v2604_v39, %s8606_s29  ;;  %v2606_v18 = vpack.c.b16 %v2585_v5, %v2584_v4  ;;  %v2598_v19 = vpack.c.b16 %v2569_v9, %v2568_v8  ;;  %v275_v20 = vpack.c.bf16 %v243_v12, %v243_v12  ;;  %v276_v21 = vpack.c.bf16 %v244_v13, %v244_v13  ;;  %v7223_v8 = vld [vmem:[%s8681_s28 + $0x2f1] sm:$0xff]  ;;  %v7206_v13 = vld [vmem:[%s8681_s28 + $0x229] sm:$0xff] }
  0x2a   : > { %463 = vrot.lane.b32.xlu1 %v447_v43, %s8606_s29  ;;  %v457_v22 = vpack.c.b16 %v436_v11, %v435_v10  ;;  %v2442_v23 = vpack.c.bf16 %v7218_v14, %v7218_v14  ;;  %v2443_v24 = vpack.c.bf16 %v7219_v15, %v7219_v15  ;;  %v2570_v25 = vunpack.c.l.b16 %v2426_v16  ;;  %5850 = vmatpush.bf16.msra.mxu0 %v8440_v56  ;;  %v7207_v14 = vld [vmem:[%s8681_s28 + $0x231] sm:$0xff]  ;;  %v8438_v15 = vld [vmem:[%s10542_s1 + $0x28] sm:$0xff]  ;;  %v265_v16 = vld [vmem:[%s8681_s28 + $0x139] sm:$0xff] }
  0x2b   : > { %v2571_v26 = vunpack.c.l.b16 %v2427_v17  ;;  %v419_v29 = vunpack.c.l.b16 %v275_v20  ;;  %v420_v30 = vunpack.c.l.b16 %v276_v21  ;;  %v277_v37 = vpack.c.bf16 %v245_v27, %v245_v27  ;;  %8472 = vmatpush.bf16.msra.mxu3 %v8440_v56  ;;  %v266_v17 = vld [vmem:[%s8681_s28 + $0x141] sm:$0xff] }
  0x2c   : > { %v2586_v31 = vunpack.c.l.b16 %v2442_v23  ;;  %v2587_v32 = vunpack.c.l.b16 %v2443_v24  ;;  %v278_v38 = vpack.c.bf16 %v246_v28, %v246_v28  ;;  %v293_v41 = vpack.c.bf16 %v261_v33, %v261_v33  ;;  %v8437_v20 = vld [vmem:[%s10542_s1 + $0x20] sm:$0xff] }
  0x2d   : > { %2630 = vrot.lane.b32.xlu2 %v2605_v62, %s8606_s29  ;;  %v2599_v39 = vpack.c.b16 %v2571_v26, %v2570_v25  ;;  %v8728_v40 = vpack.c.b16 %v420_v30, %v419_v29  ;;  %v294_v42 = vpack.c.bf16 %v262_v34, %v262_v34  ;;  %v2428_v44 = vpack.c.bf16 %v7204_v35, %v7204_v35  ;;  %v8439_v62 = vld [vmem:[%s10542_s1 + $0x30] sm:$0xff]  ;;  %v7208_v30 = vld [vmem:[%s8681_s28 + $0x241] sm:$0xff] }
  0x2e   : > { %v2607_v43 = vpack.c.b16 %v2587_v32, %v2586_v31  ;;  %v2429_v45 = vpack.c.bf16 %v7205_v36, %v7205_v36  ;;  %v421_v46 = vunpack.c.l.b16 %v277_v37  ;;  %v422_v47 = vunpack.c.l.b16 %v278_v38  ;;  %8473 = vmatpush.bf16.msra.mxu1 %v8439_v62  ;;  %8474 = vmatpush.bf16.msra.mxu2 %v8439_v62  ;;  %v7209_v31 = vld [vmem:[%s8681_s28 + $0x249] sm:$0xff]  ;;  %v249_v36 = vld [vmem:[%s8681_s28 + $0x79] sm:$0xff]  ;;  %v250_v37 = vld [vmem:[%s8681_s28 + $0x81] sm:$0xff] }
  0x2f   : > { %v437_v50 = vunpack.c.l.b16 %v293_v41  ;;  %v438_v51 = vunpack.c.l.b16 %v294_v42  ;;  %v2572_v52 = vunpack.c.l.b16 %v2428_v44  ;;  %v295_v60 = vpack.c.bf16 %v263_v48, %v263_v48  ;;  %5851 = vmatpush.bf16.msra.mxu0 %v8439_v62  ;;  %8475 = vmatpush.bf16.msra.mxu3 %v8439_v62  ;;  %v7224_v38 = vld [vmem:[%s8681_s28 + $0x301] sm:$0xff] }
  0x30   : > { %v2573_v53 = vunpack.c.l.b16 %v2429_v45  ;;  %v296_v61 = vpack.c.bf16 %v264_v49, %v264_v49  ;;  %v2444_v0 = vpack.c.bf16 %v7220_v54, %v7220_v54  ;;  %v279_v3 = vpack.c.bf16 %v247_v57, %v247_v57  ;;  %v251_v54 = vld [vmem:[%s8681_s28 + $0x91] sm:$0xff] }
  0x31   : > { %481 = vrot.lane.b32.xlu0 %v456_v59, %s8606_s29  ;;  %v8743_v59 = vpack.c.b16 %v422_v47, %v421_v46  ;;  %v458_v63 = vpack.c.b16 %v438_v51, %v437_v50  ;;  %v280_v4 = vpack.c.bf16 %v248_v58, %v248_v58  ;;  %v439_v5 = vunpack.c.l.b16 %v295_v60  ;;  %v7210_v58 = vld [vmem:[%s8681_s28 + $0x259] sm:$0xff]  ;;  %v7211_v60 = vld [vmem:[%s8681_s28 + $0x261] sm:$0xff] }
  0x32   : > { %465 = vrot.lane.b32.xlu1 %v448_v1, %s8606_s29  ;;  %v2445_v1 = vpack.c.bf16 %v7221_v55, %v7221_v55  ;;  %v2600_v2 = vpack.c.b16 %v2573_v53, %v2572_v52  ;;  %v440_v6 = vunpack.c.l.b16 %v296_v61  ;;  %v2588_v9 = vunpack.c.l.b16 %v2444_v0  ;;  %8476 = vmatpush.bf16.msra.mxu1 %v8438_v15  ;;  %v252_v55 = vld [vmem:[%s8681_s28 + $0x99] sm:$0xff] }
  0x33   : > { %v423_v11 = vunpack.c.l.b16 %v279_v3  ;;  %v424_v12 = vunpack.c.l.b16 %v280_v4  ;;  %8477 = vmatpush.bf16.msra.mxu2 %v8438_v15  ;;  %v2447_v21 = vpack.c.bf16 %v7223_v8, %v7223_v8  ;;  %v2430_v23 = vpack.c.bf16 %v7206_v13, %v7206_v13  ;;  %5852 = vmatpush.bf16.msra.mxu0 %v8438_v15 }
  0x34   : > { %v2589_v10 = vunpack.c.l.b16 %v2445_v1  ;;  %v2431_v24 = vpack.c.bf16 %v7207_v14, %v7207_v14  ;;  %v297_v26 = vpack.c.bf16 %v265_v16, %v265_v16  ;;  %v298_v27 = vpack.c.bf16 %v266_v17, %v266_v17  ;;  %8478 = vmatpush.bf16.msra.mxu3 %v8438_v15  ;;  %v8436_v17 = vld [vmem:[%s10542_s1 + $0x18] sm:$0xff] }
  0x35   : > { %2616 = vrot.lane.b32.xlu2 %v2598_v19, %s8606_s29  ;;  %v2446_v19 = vpack.c.bf16 %v7222_v7, %v7222_v7  ;;  %v8764_v25 = vpack.c.b16 %v424_v12, %v423_v11  ;;  %v2591_v29 = vunpack.c.l.b16 %v2447_v21  ;;  %v2574_v32 = vunpack.c.l.b16 %v2430_v23  ;;  %v270_v7 = vld [vmem:[%s8681_s28 + $0x171] sm:$0xff] }
  0x36   : > { %8479 = vmatpush.bf16.msra.mxu1 %v8437_v20  ;;  %v2575_v33 = vunpack.c.l.b16 %v2431_v24  ;;  %v441_v34 = vunpack.c.l.b16 %v297_v26  ;;  %v442_v35 = vunpack.c.l.b16 %v298_v27  ;;  %v2432_v41 = vpack.c.bf16 %v7208_v30, %v7208_v30  ;;  %v254_v23 = vld [vmem:[%s8681_s28 + $0xb1] sm:$0xff] }
  0x37   : > { %8480 = vmatpush.bf16.msra.mxu2 %v8437_v20  ;;  %v2590_v28 = vunpack.c.l.b16 %v2446_v19  ;;  %5853 = vmatpush.bf16.msra.mxu0 %v8437_v20  ;;  %v2433_v42 = vpack.c.bf16 %v7209_v31, %v7209_v31  ;;  %v281_v45 = vpack.c.bf16 %v249_v36, %v249_v36  ;;  %v282_v46 = vpack.c.bf16 %v250_v37, %v250_v37  ;;  %v268_v19 = vld [vmem:[%s8681_s28 + $0x159] sm:$0xff] }
  0x38   : > { %8481 = vmatpush.bf16.msra.mxu3 %v8437_v20  ;;  %v2601_v44 = vpack.c.b16 %v2575_v33, %v2574_v32  ;;  %v460_v47 = vpack.c.b16 %v442_v35, %v441_v34  ;;  %v2448_v48 = vpack.c.bf16 %v7224_v38, %v7224_v38  ;;  %v2576_v50 = vunpack.c.l.b16 %v2432_v41  ;;  %v8434_v34 = vld [vmem:[%s10542_s1 + $0x8] sm:$0xff]  ;;  %v6973_v35 = vld [vmem:[%s8681_s28 + $0x20] sm:$0xff]  ;;  %v7164_v38 = vld [vmem:[%s8681_s28 + $0x1b0] sm:$0xff] }
  0x39   : > { %2632 = vrot.lane.b32.xlu0 %v2606_v18, %s8606_s29  ;;  %v459_v18 = vpack.c.b16 %v440_v6, %v439_v5  ;;  %v2577_v51 = vunpack.c.l.b16 %v2433_v42  ;;  %v425_v52 = vunpack.c.l.b16 %v281_v45  ;;  %v426_v53 = vunpack.c.l.b16 %v282_v46  ;;  %v269_v6 = vld [vmem:[%s8681_s28 + $0x169] sm:$0xff]  ;;  %v191_v45 = vld [vmem:[%s8681_s28 + $0xc0] sm:$0xff] }
  0x3a   : > { %483 = vrot.lane.b32.xlu1 %v457_v22, %s8606_s29  ;;  %v2608_v22 = vpack.c.b16 %v2589_v10, %v2588_v9  ;;  %v2592_v56 = vunpack.c.l.b16 %v2448_v48  ;;  %v283_v62 = vpack.c.bf16 %v251_v54, %v251_v54  ;;  %v2435_v3 = vpack.c.bf16 %v7211_v60, %v7211_v60  ;;  %8482 = vmatpush.bf16.msra.mxu1 %v8436_v17  ;;  %v192_v46 = vld [vmem:[%s8681_s28 + $0xc8] sm:$0xff] }
  0x3b   : > { %v2602_v61 = vpack.c.b16 %v2577_v51, %v2576_v50  ;;  %v452_v0 = vpack.c.b16 %v426_v53, %v425_v52  ;;  %v301_v11 = vpack.c.bf16 %v269_v6, %v269_v6  ;;  %v302_v12 = vpack.c.bf16 %v270_v7, %v270_v7  ;;  %8483 = vmatpush.bf16.msra.mxu2 %v8436_v17  ;;  %v175_v7 = vld [vmem:[%s8681_s28] sm:$0xff] }
  0x3c   : > { %v427_v4 = vunpack.c.l.b16 %v283_v62  ;;  %v2579_v9 = vunpack.c.l.b16 %v2435_v3  ;;  %v300_v21 = vpack.c.bf16 %v268_v19, %v268_v19  ;;  %v286_v26 = vpack.c.bf16 %v254_v23, %v254_v23  ;;  %5854 = vmatpush.bf16.msra.mxu0 %v8436_v17  ;;  %8484 = vmatpush.bf16.msra.mxu3 %v8436_v17  ;;  %v7181_v62 = vld [vmem:[%s8681_s28 + $0x278] sm:$0xff] }
  0x3d   : > { %467 = vrot.lane.b32.xlu2 %v8728_v40, %s8606_s29  ;;  %v445_v14 = vunpack.c.l.b16 %v301_v11  ;;  %v446_v15 = vunpack.c.l.b16 %v302_v12  ;;  %v786_v37 = vpack.c.bf16 %v6973_v35, %v6973_v35  ;;  %v2356_v51 = vpack.c.bf16 %v7164_v38, %v7164_v38  ;;  %v176_v11 = vld [vmem:[%s8681_s28 + $0x8] sm:$0xff]  ;;  %v193_v19 = vld [vmem:[%s8681_s28 + $0xd8] sm:$0xff] }
  0x3e   : > { %v430_v31 = vunpack.c.l.b16 %v286_v26  ;;  %v207_v23 = vpack.c.bf16 %v175_v7, %v175_v7  ;;  %v8468_v35 = vld [vmem:[%s10542_s1 + $0x118] sm:$0xff] }
  0x3f   : > { %v462_v16 = vpack.c.b16 %v446_v15, %v445_v14  ;;  %v930_v42 = vunpack.c.l.b16 %v786_v37  ;;  %v8826_v60 = vunpack.c.l.b16 %v2356_v51  ;;  %v8456_v14 = vld [vmem:[%s10542_s1 + $0xb8] sm:$0xff] }
  0x40   : > { %v8464_v15 = vld [vmem:[%s10542_s1 + $0xf8] sm:$0xff] }
  0x41   : > { %2618 = vrot.lane.b32.xlu0 %v2599_v39, %s8606_s29  ;;  %v7225_v39 = vld [vmem:[%s8681_s28 + $0x309] sm:$0xff] }
  0x42   : > { %2634 = vrot.lane.b32.xlu1 %v2607_v43, %s8606_s29  ;;  %v2609_v43 = vpack.c.b16 %v2591_v29, %v2590_v28  ;;  %v2449_v49 = vpack.c.bf16 %v7225_v39, %v7225_v39  ;;  %v444_v28 = vunpack.c.l.b16 %v300_v21  ;;  %v8435_v29 = vld [vmem:[%s10542_s1 + $0x10] sm:$0xff]  ;;  %v7165_v39 = vld [vmem:[%s8681_s28 + $0x1b8] sm:$0xff] }
  0x43   : > { %8485 = vmatpush.bf16.msra.mxu1 %v8435_v29  ;;  %8486 = vmatpush.bf16.msra.mxu2 %v8435_v29  ;;  %v2357_v52 = vpack.c.bf16 %v7165_v39, %v7165_v39 }
  0x44   : > { %v2593_v57 = vunpack.c.l.b16 %v2449_v49  ;;  %5855 = vmatpush.bf16.msra.mxu0 %v8435_v29  ;;  %8487 = vmatpush.bf16.msra.mxu3 %v8435_v29  ;;  %v6974_v29 = vld [vmem:[%s8681_s28 + $0x30] sm:$0xff] }
  0x45   : > { %485 = vrot.lane.b32.xlu2 %v458_v63, %s8606_s29  ;;  %v284_v63 = vpack.c.bf16 %v252_v55, %v252_v55  ;;  %v223_v55 = vpack.c.bf16 %v191_v45, %v191_v45 }
  0x46   : > { %v2610_v1 = vpack.c.b16 %v2593_v57, %v2592_v56  ;;  %v224_v56 = vpack.c.bf16 %v192_v46, %v192_v46 }
  0x47   : > { %v428_v5 = vunpack.c.l.b16 %v284_v63  ;;  %8488 = vmatpush.bf16.msra.mxu1 %v8434_v34  ;;  %8489 = vmatpush.bf16.msra.mxu2 %v8434_v34 }
  0x48   : > { %5856 = vmatpush.bf16.msra.mxu0 %v8434_v34  ;;  %8490 = vmatpush.bf16.msra.mxu3 %v8434_v34  ;;  %v6975_v34 = vld [vmem:[%s8681_s28 + $0x38] sm:$0xff] }
  0x49   : > { %469 = vrot.lane.b32.xlu0 %v8743_v59, %s8606_s29  ;;  %v453_v10 = vpack.c.b16 %v428_v5, %v427_v4  ;;  %v7182_v4 = vld [vmem:[%s8681_s28 + $0x288] sm:$0xff]  ;;  %v7183_v5 = vld [vmem:[%s8681_s28 + $0x290] sm:$0xff]  ;;  %v788_v39 = vpack.c.bf16 %v6975_v34, %v6975_v34 }
  0x4a   : > { %2620 = vrot.lane.b32.xlu1 %v2600_v2, %s8606_s29  ;;  %v2434_v2 = vpack.c.bf16 %v7210_v58, %v7210_v58  ;;  %v7180_v58 = vld [vmem:[%s8681_s28 + $0x270] sm:$0xff] }
  0x4b   : > { %v2372_v6 = vpack.c.bf16 %v7180_v58, %v7180_v58 }
  0x4c   : > { %v2578_v8 = vunpack.c.l.b16 %v2434_v2 }
  0x4d   : > { %2636 = vrot.lane.b32.xlu2 %v2608_v22, %s8606_s29  ;;  %v253_v22 = vld [vmem:[%s8681_s28 + $0xa9] sm:$0xff] }
  0x4e   : > { %v2603_v13 = vpack.c.b16 %v2579_v9, %v2578_v8  ;;  %v285_v24 = vpack.c.bf16 %v253_v22, %v253_v22  ;;  %v2374_v8 = vpack.c.bf16 %v7182_v4, %v7182_v4  ;;  %v2375_v9 = vpack.c.bf16 %v7183_v5, %v7183_v5 }
  0x4f   : > { %v8854_v22 = vunpack.c.l.b16 %v2372_v6 }
  0x50   : > { %v429_v30 = vunpack.c.l.b16 %v285_v24  ;;  %v2503_v17 = vunpack.c.l.b16 %v2375_v9  ;;  %v208_v24 = vpack.c.bf16 %v176_v11, %v176_v11  ;;  %v7036_v9 = vld [vmem:[%s8681_s28 + $0x1a] sm:$0xff] }
  0x51   : > { %487 = vrot.lane.b32.xlu0 %v459_v18, %s8606_s29  ;;  %v267_v18 = vld [vmem:[%s8681_s28 + $0x151] sm:$0xff] }
  0x52   : > { %471 = vrot.lane.b32.xlu1 %v8764_v25, %s8606_s29  ;;  %v299_v20 = vpack.c.bf16 %v267_v18, %v267_v18  ;;  %v454_v33 = vpack.c.b16 %v430_v31, %v429_v30  ;;  %v8448_v31 = vld [vmem:[%s10542_s1 + $0x78] sm:$0xff] }
  0x54   : > { %v443_v27 = vunpack.c.l.b16 %v299_v20  ;;  %v194_v20 = vld [vmem:[%s8681_s28 + $0xe0] sm:$0xff] }
  0x55   : > { %2622 = vrot.lane.b32.xlu2 %v2601_v44, %s8606_s29  ;;  %v7167_v44 = vld [vmem:[%s8681_s28 + $0x1d0] sm:$0xff]  ;;  %v226_v37 = vpack.c.bf16 %v194_v20, %v194_v20 }
  0x56   : > { %v461_v32 = vpack.c.b16 %v444_v28, %v443_v27  ;;  %v2359_v49 = vpack.c.bf16 %v7167_v44, %v7167_v44  ;;  %v7226_v27 = vld [vmem:[%s8681_s28 + $0x319] sm:$0xff]  ;;  %v7227_v28 = vld [vmem:[%s8681_s28 + $0x321] sm:$0xff] }
  0x58   : > { %v2487_v54 = vunpack.c.l.b16 %v2359_v49 }
  0x59   : > { %2638 = vrot.lane.b32.xlu0 %v2609_v43, %s8606_s29  ;;  %v7166_v43 = vld [vmem:[%s8681_s28 + $0x1c8] sm:$0xff] }
  0x5a   : > { %489 = vrot.lane.b32.xlu1 %v460_v47, %s8606_s29  ;;  %v8433_v47 = vld [vmem:[%s10542_s1] sm:$0xff]  ;;  %v2358_v48 = vpack.c.bf16 %v7166_v43, %v7166_v43 }
  0x5b   : > { %8491 = vmatpush.bf16.msra.mxu1 %v8433_v47  ;;  %8492 = vmatpush.bf16.msra.mxu2 %v8433_v47 }
  0x5c   : > { %v2486_v53 = vunpack.c.l.b16 %v2358_v48  ;;  %5857 = vmatpush.bf16.msra.mxu0 %v8433_v47  ;;  %8493 = vmatpush.bf16.msra.mxu3 %v8433_v47  ;;  %v932_v48 = vunpack.c.l.b16 %v788_v39 }
  0x5d   : > { %473 = vrot.lane.b32.xlu2 %v452_v0, %s8606_s29  ;;  %v8832_v0 = vunpack.c.l.b16 %v223_v55 }
  0x5f   : > { %6188 = vmatpush.bf16.msrb.mxu2 %v8456_v14  ;;  %6019 = vmatpush.bf16.msrb.mxu1 %v8448_v31  ;;  %v8455_v14 = vld [vmem:[%s10542_s1 + $0xb0] sm:$0xff]  ;;  %v7184_v31 = vld [vmem:[%s8681_s28 + $0x2a0] sm:$0xff] }
  0x60   : > { %6357 = vmatpush.bf16.msrb.mxu3 %v8464_v15  ;;  %6530 = vmatpush.bf16.msrb.mxu0 %v8468_v35  ;;  %v7037_v15 = vld [vmem:[%s8681_s28 + $0x22] sm:$0xff] }
  0x61   : > { %2624 = vrot.lane.b32.xlu0 %v2602_v61, %s8606_s29  ;;  %v8828_v61 = vunpack.c.l.b16 %v2357_v52  ;;  %v8871_v52 = vunpack.c.l.b16 %v207_v23 }
  0x62   : > { %2640 = vrot.lane.b32.xlu1 %v2610_v1, %s8606_s29  ;;  %v8834_v1 = vunpack.c.l.b16 %v224_v56 }
  0x63   : > { %6189 = vmatpush.bf16.msrb.mxu2 %v8455_v14 }
  0x64   : > { %v375_v18 = vpack.c.b16 %v8834_v1, %v8832_v0 }
  0x65   : > { %491 = vrot.lane.b32.xlu2 %v461_v32, %s8606_s29  ;;  %v2450_v32 = vpack.c.bf16 %v7226_v27, %v7226_v27 }
  0x67   : > { %v2594_v45 = vunpack.c.l.b16 %v2450_v32  ;;  %v7185_v32 = vld [vmem:[%s8681_s28 + $0x2a8] sm:$0xff] }
  0x69   : > { %475 = vrot.lane.b32.xlu0 %v453_v10, %s8606_s29  ;;  %v2373_v10 = vpack.c.bf16 %v7181_v62, %v7181_v62  ;;  %v196_v62 = vld [vmem:[%s8681_s28 + $0xf8] sm:$0xff] }
  0x6a   : > { %2626 = vrot.lane.b32.xlu1 %v2603_v13, %s8606_s29 }
  0x6b   : > { %v8859_v30 = vunpack.c.l.b16 %v2373_v10 }
  0x6d   : > { %v2524_v1 = vpack.c.b16 %v8859_v30, %v8854_v22 }
  0x71   : > { %493 = vrot.lane.b32.xlu0 %v462_v16, %s8606_s29  ;;  %v2502_v16 = vunpack.c.l.b16 %v2374_v8 }
  0x72   : > { %477 = vrot.lane.b32.xlu1 %v454_v33, %s8606_s29  ;;  %v2451_v33 = vpack.c.bf16 %v7227_v28, %v7227_v28 }
  0x73   : > { %v2525_v26 = vpack.c.b16 %v2503_v17, %v2502_v16 }
  0x74   : > { %v2595_v46 = vunpack.c.l.b16 %v2451_v33 }
  0x76   : > { %v2611_v55 = vpack.c.b16 %v2595_v46, %v2594_v45 }
  0x78   : > { %2642 = vrot.lane.b32.xlu2 %v2611_v55, %s8606_s29 }
  0x79   : > { %2002 = vrot.lane.b32.xlu0 %v8728_v40, %s8606_s29  ;;  %v6972_v40 = vld [vmem:[%s8681_s28 + $0x18] sm:$0xff] }
  0x7a   : > { %v785_v36 = vpack.c.bf16 %v6972_v40, %v6972_v40  ;;  %v787_v40 = vpack.c.bf16 %v6974_v29, %v6974_v29 }
  0x7c   : > { %v929_v41 = vunpack.c.l.b16 %v785_v36  ;;  %v225_v36 = vpack.c.bf16 %v193_v19, %v193_v19  ;;  %v931_v47 = vunpack.c.l.b16 %v787_v40 }
  0x7e   : > { %v8821_v50 = vpack.c.b16 %v930_v42, %v929_v41  ;;  %v7168_v41 = vld [vmem:[%s8681_s28 + $0x1e0] sm:$0xff]  ;;  %v7169_v42 = vld [vmem:[%s8681_s28 + $0x1e8] sm:$0xff] }
  0x7f   : > { %v2615_v57 = vpop.permute.xlu2 %2614  ;;  %v2360_v49 = vpack.c.bf16 %v7168_v41, %v7168_v41  ;;  %v2361_v51 = vpack.c.bf16 %v7169_v42, %v7169_v42 }
  0x80   : > { %977 = vrot.lane.b32.xlu1 %v8821_v50, %s8606_s29 }
  0x81   : > { %2004 = vrot.lane.b32.xlu0 %v8743_v59, %s8606_s29  ;;  %v2517_v59 = vpack.c.b16 %v2487_v54, %v2486_v53  ;;  %v2488_v58 = vunpack.c.l.b16 %v2360_v49  ;;  %v8447_v49 = vld [vmem:[%s10542_s1 + $0x70] sm:$0xff] }
  0x82   : > { %6020 = vmatpush.bf16.msrb.mxu1 %v8447_v49 }
  0x83   : > { %v2649_v63 = vsel %vm495_vm0, %v2517_v59, %v2615_v57  ;;  %v336_v57 = vunpack.c.l.b16 %v208_v24  ;;  %v8873_v59 = vpack.c.b16 %v932_v48, %v931_v47  ;;  %v1298_v24 = vpack.c.bf16 %v7037_v15, %v7037_v15 }
  0x84   : > { %v2710_v2 = vunpack.c.l.b16 %v2649_v63  ;;  %v2711_v3 = vunpack.c.h.b16 %v2649_v63  ;;  %v2376_v47 = vpack.c.bf16 %v7184_v31, %v7184_v31  ;;  %v2377_v48 = vpack.c.bf16 %v7185_v32, %v7185_v32 }
  0x85   : > { %v367_v23 = vpack.c.b16 %v336_v57, %v8871_v52  ;;  %v1442_v30 = vunpack.c.l.b16 %v1298_v24  ;;  %v7039_v24 = vld [vmem:[%s8681_s28 + $0x3a] sm:$0xff] }
  0x86   : > { %v2742_v12 = vpack.c.b16 %v2710_v2, %v2710_v2  ;;  %v2743_v13 = vpack.c.b16 %v2711_v3, %v2711_v3  ;;  %v8880_v2 = vunpack.c.l.b16 %v225_v36  ;;  %v8882_v3 = vunpack.c.l.b16 %v226_v37  ;;  %v8463_v37 = vld [vmem:[%s10542_s1 + $0xf0] sm:$0xff] }
  0x87   : > { %v2631_v21 = vpop.permute.xlu2 %2630  ;;  %6358 = vmatpush.bf16.msrb.mxu3 %v8463_v37 }
  0x88   : > { %2806 = vst [vmem:[#allocation2 + $0x2a8] sm:$0xf] %v2742_v12  ;;  %v2673_v38 = vsel %vm495_vm0, %v2525_v26, %v2631_v21  ;;  %979 = vrot.lane.b32.xlu1 %v8873_v59, %s8606_s29  ;;  %v376_v40 = vpack.c.b16 %v8882_v3, %v8880_v2  ;;  %v198_v2 = vld [vmem:[%s8681_s28 + $0x110] sm:$0xff] }
  0x89   : > { %2006 = vrot.lane.b32.xlu0 %v8764_v25, %s8606_s29  ;;  %v2516_v25 = vpack.c.b16 %v8828_v61, %v8826_v60  ;;  %2807 = vst [vmem:[#allocation2 + $0x2bc] sm:$0xf] %v2743_v13  ;;  %v2726_v43 = vunpack.c.l.b16 %v2673_v38  ;;  %v2727_v44 = vunpack.c.h.b16 %v2673_v38  ;;  %v2489_v60 = vunpack.c.l.b16 %v2361_v51  ;;  %v195_v61 = vld [vmem:[%s8681_s28 + $0xf0] sm:$0xff] }
  0x8a   : > { %v227_v12 = vpack.c.bf16 %v195_v61, %v195_v61  ;;  %v228_v13 = vpack.c.bf16 %v196_v62, %v196_v62  ;;  %v6977_v51 = vld [vmem:[%s8681_s28 + $0x50] sm:$0xff]  ;;  %v230_v14 = vpack.c.bf16 %v198_v2, %v198_v2 }
  0x8b   : > { %v2758_v53 = vpack.c.b16 %v2726_v43, %v2726_v43  ;;  %v2759_v54 = vpack.c.b16 %v2727_v44, %v2727_v44  ;;  %v2518_v8 = vpack.c.b16 %v2489_v60, %v2488_v58  ;;  %v6976_v44 = vld [vmem:[%s8681_s28 + $0x48] sm:$0xff] }
  0x8c   : > { %v8900_v35 = vunpack.c.l.b16 %v227_v12  ;;  %v8902_v36 = vunpack.c.l.b16 %v228_v13  ;;  %v789_v55 = vpack.c.bf16 %v6976_v44, %v6976_v44  ;;  %v7170_v12 = vld [vmem:[%s8681_s28 + $0x1f8] sm:$0xff]  ;;  %v7171_v13 = vld [vmem:[%s8681_s28 + $0x200] sm:$0xff] }
  0x8d   : > { %2822 = vst [vmem:[#allocation2 + $0x3e8] sm:$0xf] %v2758_v53 }
  0x8e   : > { %2823 = vst [vmem:[#allocation2 + $0x3fc] sm:$0xf] %v2759_v54 }
  0x8f   : > { %v2617_v4 = vpop.permute.xlu2 %2616 }
  0x93   : > { %v2613_v56 = vpop.permute.xlu0 %2612 }
  0x94   : > { %v2646_v63 = vsel %vm495_vm0, %v2516_v25, %v2613_v56  ;;  %v480_v0 = vpop.permute.xlu1 %479  ;;  %v2652_v25 = vsel %vm495_vm0, %v2518_v8, %v2617_v4 }
  0x95   : > { %v2708_v5 = vunpack.c.l.b16 %v2646_v63  ;;  %v2709_v6 = vunpack.c.h.b16 %v2646_v63  ;;  %v522_v7 = vsel %vm495_vm0, %v375_v18, %v480_v0  ;;  %v1297_v18 = vpack.c.bf16 %v7036_v9, %v7036_v9 }
  0x96   : > { %v576_v10 = vunpack.c.l.b16 %v522_v7  ;;  %v577_v11 = vunpack.c.h.b16 %v522_v7  ;;  %v2712_v21 = vunpack.c.l.b16 %v2652_v25  ;;  %v2713_v22 = vunpack.c.h.b16 %v2652_v25 }
  0x97   : > { %v2740_v16 = vpack.c.b16 %v2708_v5, %v2708_v5  ;;  %v2741_v17 = vpack.c.b16 %v2709_v6, %v2709_v6  ;;  %v1441_v26 = vunpack.c.l.b16 %v1297_v18  ;;  %v468_v38 = vpop.permute.xlu2 %467  ;;  %v790_v63 = vpack.c.bf16 %v6977_v51, %v6977_v51 }
  0x98   : > { %v608_v19 = vpack.c.b16 %v576_v10, %v576_v10  ;;  %v609_v20 = vpack.c.b16 %v577_v11, %v577_v11  ;;  %v2744_v27 = vpack.c.b16 %v2712_v21, %v2712_v21  ;;  %v2745_v28 = vpack.c.b16 %v2713_v22, %v2713_v22 }
  0x99   : > { %2804 = vst [vmem:[#allocation2 + $0x280] sm:$0xf] %v2740_v16  ;;  %v1473_v43 = vpack.c.b16 %v1442_v30, %v1441_v26  ;;  %v504_v54 = vsel %vm495_vm0, %v8873_v59, %v468_v38  ;;  %v933_v0 = vunpack.c.l.b16 %v789_v55  ;;  %v377_v9 = vpack.c.b16 %v8902_v36, %v8900_v35  ;;  %v8454_v30 = vld [vmem:[%s10542_s1 + $0xa8] sm:$0xff] }
  0x9a   : > { %2805 = vst [vmem:[#allocation2 + $0x294] sm:$0xf] %v2741_v17  ;;  %v564_v60 = vunpack.c.l.b16 %v504_v54  ;;  %v565_v61 = vunpack.c.h.b16 %v504_v54  ;;  %v8920_v10 = vunpack.c.l.b16 %v2376_v47  ;;  %v934_v11 = vunpack.c.l.b16 %v790_v63  ;;  %6190 = vmatpush.bf16.msrb.mxu2 %v8454_v30  ;;  %v6979_v35 = vld [vmem:[%s8681_s28 + $0x68] sm:$0xff] }
  0x9b   : > { %672 = vst [vmem:[#allocation2 + $0x140] sm:$0xf] %v608_v19  ;;  %v2629_v29 = vpop.permute.xlu0 %2628  ;;  %1489 = vrot.lane.b32.xlu2 %v1473_v43, %s8606_s29  ;;  %v2505_v25 = vunpack.c.l.b16 %v2377_v48  ;;  %v7187_v43 = vld [vmem:[%s8681_s28 + $0x2c0] sm:$0xff]  ;;  %v8962_v36 = vld [vmem:[#allocation2 + $0x3e8] sm:$0xf] }
  0x9c   : > { %673 = vst [vmem:[#allocation2 + $0x154] sm:$0xf] %v609_v20  ;;  %v2670_v33 = vsel %vm495_vm0, %v2524_v1, %v2629_v29  ;;  %v464_v34 = vpop.permute.xlu1 %463  ;;  %v197_v1 = vld [vmem:[%s8681_s28 + $0x108] sm:$0xff]  ;;  %v596_v5 = vpack.c.b16 %v564_v60, %v564_v60  ;;  %v597_v59 = vpack.c.b16 %v565_v61, %v565_v61  ;;  %v8927_v22 = vpack.c.b16 %v934_v11, %v933_v0 }
  0x9d   : > { %v2724_v39 = vunpack.c.l.b16 %v2670_v33  ;;  %v2725_v41 = vunpack.c.h.b16 %v2670_v33  ;;  %v498_v42 = vsel %vm495_vm0, %v367_v23, %v464_v34  ;;  %2808 = vst [vmem:[#allocation2 + $0x2d0] sm:$0xf] %v2744_v27  ;;  %v229_v6 = vpack.c.bf16 %v197_v1, %v197_v1  ;;  %v7038_v23 = vld [vmem:[%s8681_s28 + $0x32] sm:$0xff] }
  0x9e   : > { %v560_v45 = vunpack.c.l.b16 %v498_v42  ;;  %v561_v46 = vunpack.c.h.b16 %v498_v42  ;;  %2809 = vst [vmem:[#allocation2 + $0x2e4] sm:$0xf] %v2745_v28  ;;  %v2362_v28 = vpack.c.bf16 %v7170_v12, %v7170_v12  ;;  %v2363_v29 = vpack.c.bf16 %v7171_v13, %v7171_v13  ;;  %981 = vrot.lane.b32.xlu1 %v8927_v22, %s8606_s29  ;;  %v7186_v42 = vld [vmem:[%s8681_s28 + $0x2b8] sm:$0xff] }
  0x9f   : > { %v2756_v52 = vpack.c.b16 %v2724_v39, %v2724_v39  ;;  %v2757_v53 = vpack.c.b16 %v2725_v41, %v2725_v41  ;;  %v357_v18 = vunpack.c.l.b16 %v229_v6  ;;  %660 = vst [vmem:[#allocation2 + $0x50] sm:$0xf] %v596_v5  ;;  %v1299_v33 = vpack.c.bf16 %v7038_v23, %v7038_v23  ;;  %v486_v39 = vpop.permute.xlu2 %485  ;;  %v199_v23 = vld [vmem:[%s8681_s28 + $0x120] sm:$0xff] }
  0xa0   : > { %v592_v56 = vpack.c.b16 %v560_v45, %v560_v45  ;;  %v593_v57 = vpack.c.b16 %v561_v46, %v561_v46  ;;  %v7774_v58 = vld [vmem:[#allocation2 + $0x280] sm:$0xf]  ;;  %661 = vst [vmem:[#allocation2 + $0x64] sm:$0xf] %v597_v59  ;;  %v2526_v38 = vpack.c.b16 %v2505_v25, %v8920_v10  ;;  %v1300_v41 = vpack.c.bf16 %v7039_v24, %v7039_v24  ;;  %v200_v24 = vld [vmem:[%s8681_s28 + $0x128] sm:$0xff] }
  0xa1   : > { %2820 = vst [vmem:[#allocation2 + $0x3c0] sm:$0xf] %v2756_v52  ;;  %v8355_v62 = vld [vmem:[#allocation2 + $0x290] sm:$0xf0]  ;;  %v1443_v46 = vunpack.c.l.b16 %v1299_v33  ;;  %v2378_v47 = vpack.c.bf16 %v7186_v42, %v7186_v42  ;;  %v2379_v48 = vpack.c.bf16 %v7187_v43, %v7187_v43  ;;  %v8939_v52 = vld [vmem:[#allocation2 + $0x2a8] sm:$0xf]  ;;  %v232_v30 = vpack.c.bf16 %v200_v24, %v200_v24 }
  0xa2   : > { %2821 = vst [vmem:[#allocation2 + $0x3d4] sm:$0xf] %v2757_v53  ;;  %v7775_v3 = vor.u32 %v8355_v62, %v7774_v58  ;;  %v7614_v4 = vld [vmem:[#allocation2 + $0x140] sm:$0xf]  ;;  %v8941_v53 = vunpack.c.l.b16 %v2362_v28  ;;  %v1444_v54 = vunpack.c.l.b16 %v1300_v41  ;;  %v2491_v58 = vunpack.c.l.b16 %v2363_v29  ;;  %v8467_v43 = vld [vmem:[%s10542_s1 + $0x110] sm:$0xff] }
  0xa3   : > { %656 = vst [vmem:[#allocation2] sm:$0xf] %v592_v56  ;;  %v482_v7 = vpop.permute.xlu0 %481  ;;  %v8315_v8 = vld [vmem:[#allocation2 + $0x150] sm:$0xf0]  ;;  %v8360_v56 = vld [vmem:[#allocation2 + $0x2b8] sm:$0xf0]  ;;  %v8944_v61 = vunpack.c.l.b16 %v2378_v47  ;;  %v8946_v62 = vunpack.c.l.b16 %v2379_v48  ;;  %v792_v28 = vpack.c.bf16 %v6979_v35, %v6979_v35  ;;  %v231_v29 = vpack.c.bf16 %v199_v23, %v199_v23  ;;  %6531 = vmatpush.bf16.msrb.mxu0 %v8467_v43 }
  0xa4   : > { %657 = vst [vmem:[#allocation2 + $0x14] sm:$0xf] %v593_v57  ;;  %5938 = vmatmul.bf16.vlgmr.msra.gmra.mxu2 %v7775_v3  ;;  %v525_v15 = vsel %vm495_vm0, %v376_v40, %v482_v7  ;;  %v7615_v16 = vor.u32 %v8315_v8, %v7614_v4  ;;  %v466_v17 = vpop.permute.xlu1 %465  ;;  %v8462_v4 = vld [vmem:[%s10542_s1 + $0xe8] sm:$0xff]  ;;  %v1474_v7 = vpack.c.b16 %v1444_v54, %v1443_v46  ;;  %v6978_v8 = vld [vmem:[%s8681_s28 + $0x60] sm:$0xff] }
  0xa5   : > { %v578_v19 = vunpack.c.l.b16 %v525_v15  ;;  %v579_v20 = vunpack.c.h.b16 %v525_v15  ;;  %v501_v21 = vsel %vm495_vm0, %v8821_v50, %v466_v17  ;;  %v358_v50 = vunpack.c.l.b16 %v230_v14  ;;  %6359 = vmatpush.bf16.msrb.mxu3 %v8462_v4  ;;  %v8446_v14 = vld [vmem:[%s10542_s1 + $0x68] sm:$0xff] }
  0xa6   : > { %5898 = vmatmul.bf16.vlgmr.msra.gmra.mxu1 %v7615_v16  ;;  %v562_v26 = vunpack.c.l.b16 %v501_v21  ;;  %v563_v27 = vunpack.c.h.b16 %v501_v21  ;;  %v7795_v10 = vor.u32 %v8360_v56, %v8939_v52  ;;  %v2519_v17 = vpack.c.b16 %v2491_v58, %v8941_v53  ;;  %1491 = vrot.lane.b32.xlu2 %v1474_v7, %s8606_s29  ;;  %v7106_v53 = vld [vmem:[%s8681_s28 + $0x79] sm:$0xff]  ;;  %v7107_v54 = vld [vmem:[%s8681_s28 + $0x81] sm:$0xff] }
  0xa7   : > { %v610_v31 = vpack.c.b16 %v578_v19, %v578_v19  ;;  %v611_v32 = vpack.c.b16 %v579_v20, %v579_v20  ;;  %v378_v45 = vpack.c.b16 %v358_v50, %v357_v18  ;;  %6021 = vmatpush.bf16.msrb.mxu1 %v8446_v14  ;;  %v791_v21 = vpack.c.bf16 %v6978_v8, %v6978_v8 }
  0xa8   : > { %v7934_v34 = vld [vmem:[#allocation2 + $0x3c0] sm:$0xf]  ;;  %v594_v40 = vpack.c.b16 %v562_v26, %v562_v26  ;;  %v595_v37 = vpack.c.b16 %v563_v27, %v563_v27  ;;  %v2527_v27 = vpack.c.b16 %v8946_v62, %v8944_v61  ;;  %v8988_v58 = vunpack.c.l.b16 %v232_v30  ;;  %v7041_v62 = vld [vmem:[%s8681_s28 + $0x52] sm:$0xff] }
  0xa9   : > { %674 = vst [vmem:[#allocation2 + $0x168] sm:$0xf] %v610_v31  ;;  %v8395_v44 = vld [vmem:[#allocation2 + $0x3d0] sm:$0xf0]  ;;  %v531_v60 = vsel %vm495_vm0, %v378_v45, %v486_v39  ;;  %v935_v33 = vunpack.c.l.b16 %v791_v21  ;;  %v936_v39 = vunpack.c.l.b16 %v792_v28  ;;  %v8453_v61 = vld [vmem:[%s10542_s1 + $0xa0] sm:$0xff]  ;;  %v1816_v4 = vpack.c.bf16 %v7106_v53, %v7106_v53  ;;  %v201_v53 = vld [vmem:[%s8681_s28 + $0x138] sm:$0xff] }
  0xaa   : > { %675 = vst [vmem:[#allocation2 + $0x17c] sm:$0xf] %v611_v32  ;;  %v7935_v49 = vor.u32 %v8395_v44, %v7934_v34  ;;  %v7454_v51 = vld [vmem:[#allocation2] sm:$0xf]  ;;  %v582_v2 = vunpack.c.l.b16 %v531_v60  ;;  %v583_v3 = vunpack.c.h.b16 %v531_v60  ;;  %v7172_v31 = vld [vmem:[%s8681_s28 + $0x210] sm:$0xff]  ;;  %v7173_v32 = vld [vmem:[%s8681_s28 + $0x218] sm:$0xff]  ;;  %v8980_v44 = vunpack.c.l.b16 %v231_v29  ;;  %6191 = vmatpush.bf16.msrb.mxu2 %v8453_v61 }
  0xab   : > { %658 = vst [vmem:[#allocation2 + $0x28] sm:$0xf] %v594_v40  ;;  %v8275_v55 = vld [vmem:[#allocation2 + $0x10] sm:$0xf0]  ;;  %v2633_v57 = vpop.permute.xlu0 %2632  ;;  %v2364_v34 = vpack.c.bf16 %v7172_v31, %v7172_v31  ;;  %v2365_v40 = vpack.c.bf16 %v7173_v32, %v7173_v32  ;;  %v8983_v52 = vpack.c.b16 %v936_v39, %v935_v33  ;;  %v1960_v14 = vunpack.c.l.b16 %v1816_v4  ;;  %v6980_v31 = vld [vmem:[%s8681_s28 + $0x78] sm:$0xff]  ;;  %v6981_v32 = vld [vmem:[%s8681_s28 + $0x80] sm:$0xff] }
  0xac   : > { %5978 = vmatmul.bf16.vlgmr.msra.gmra.mxu3 %v7935_v49  ;;  %659 = vst [vmem:[#allocation2 + $0x3c] sm:$0xf] %v595_v37  ;;  %v7455_v63 = vor.u32 %v8275_v55, %v7454_v51  ;;  %v484_v0 = vpop.permute.xlu1 %483  ;;  %v2676_v1 = vsel %vm495_vm0, %v2526_v38, %v2633_v57  ;;  %v614_v13 = vpack.c.b16 %v582_v2, %v582_v2  ;;  %v7040_v55 = vld [vmem:[%s8681_s28 + $0x4a] sm:$0xff] }
  0xad   : > { %v528_v5 = vsel %vm495_vm0, %v377_v9, %v484_v0  ;;  %v2728_v59 = vunpack.c.l.b16 %v2676_v1  ;;  %v2729_v6 = vunpack.c.h.b16 %v2676_v1  ;;  %v8964_v9 = vld [vmem:[#allocation2 + $0x3f8] sm:$0xf0]  ;;  %v615_v25 = vpack.c.b16 %v583_v3, %v583_v3  ;;  %v8997_v0 = vpop.permute.xlu2 %2636  ;;  %983 = vrot.lane.b32.xlu1 %v8983_v52, %s8606_s29 }
  0xae   : > { %5858 = vmatmul.bf16.vlgmr.msra.gmra.mxu0 %v7455_v63  ;;  %v580_v11 = vunpack.c.l.b16 %v528_v5  ;;  %v581_v12 = vunpack.c.h.b16 %v528_v5  ;;  %678 = vst [vmem:[#allocation2 + $0x1b8] sm:$0xf] %v614_v13  ;;  %v7955_v37 = vor.u32 %v8964_v9, %v8962_v36  ;;  %v2492_v45 = vunpack.c.l.b16 %v2364_v34  ;;  %v8461_v63 = vld [vmem:[%s10542_s1 + $0xe0] sm:$0xff] }
  0xaf   : > { %v2760_v15 = vpack.c.b16 %v2728_v59, %v2728_v59  ;;  %v2761_v16 = vpack.c.b16 %v2729_v6, %v2729_v6  ;;  %v2493_v46 = vunpack.c.l.b16 %v2365_v40  ;;  %679 = vst [vmem:[#allocation2 + $0x1cc] sm:$0xf] %v615_v25  ;;  %v1817_v5 = vpack.c.bf16 %v7107_v54, %v7107_v54  ;;  %v7188_v59 = vld [vmem:[%s8681_s28 + $0x2d0] sm:$0xff]  ;;  %v7189_v6 = vld [vmem:[%s8681_s28 + $0x2d8] sm:$0xff]  ;;  %v9005_v13 = vld [vmem:[#allocation2 + $0x2e0] sm:$0xf0]  ;;  %6360 = vmatpush.bf16.msrb.mxu3 %v8461_v63 }
  0xb0   : > { %v612_v18 = vpack.c.b16 %v580_v11, %v580_v11  ;;  %v613_v19 = vpack.c.b16 %v581_v12, %v581_v12  ;;  %v7634_v20 = vld [vmem:[#allocation2 + $0x168] sm:$0xf]  ;;  %v1302_v11 = vpack.c.bf16 %v7041_v62, %v7041_v62  ;;  %v9003_v12 = vld [vmem:[#allocation2 + $0x2d0] sm:$0xf]  ;;  %v2380_v36 = vpack.c.bf16 %v7188_v59, %v7188_v59  ;;  %v8445_v34 = vld [vmem:[%s10542_s1 + $0x60] sm:$0xff] }
  0xb1   : > { %v8320_v26 = vld [vmem:[#allocation2 + $0x178] sm:$0xf0]  ;;  %2824 = vst [vmem:[#allocation2 + $0x410] sm:$0xf] %v2760_v15  ;;  %v2520_v60 = vpack.c.b16 %v2493_v46, %v2492_v45  ;;  %v1961_v35 = vunpack.c.l.b16 %v1817_v5  ;;  %v2381_v9 = vpack.c.bf16 %v7189_v6, %v7189_v6  ;;  %v7815_v21 = vor.u32 %v9005_v13, %v9003_v12  ;;  %6022 = vmatpush.bf16.msrb.mxu1 %v8445_v34  ;;  %v202_v54 = vld [vmem:[%s8681_s28 + $0x140] sm:$0xff] }
  0xb2   : > { %676 = vst [vmem:[#allocation2 + $0x190] sm:$0xf] %v612_v18  ;;  %v7635_v50 = vor.u32 %v8320_v26, %v7634_v20  ;;  %v7474_v47 = vld [vmem:[#allocation2 + $0x28] sm:$0xf]  ;;  %v379_v29 = vpack.c.b16 %v8988_v58, %v8980_v44  ;;  %v793_v40 = vpack.c.bf16 %v6980_v31, %v6980_v31  ;;  %v794_v44 = vpack.c.bf16 %v6981_v32, %v6981_v32 }
  0xb3   : > { %677 = vst [vmem:[#allocation2 + $0x1a4] sm:$0xf] %v613_v19  ;;  %v2619_v38 = vpop.permute.xlu0 %2618  ;;  %v8280_v1 = vld [vmem:[#allocation2 + $0x38] sm:$0xf0]  ;;  %v1989_v18 = vpack.c.b16 %v1961_v35, %v1960_v14  ;;  %v2508_v19 = vunpack.c.l.b16 %v2380_v36  ;;  %v2509_v20 = vunpack.c.l.b16 %v2381_v9  ;;  %v7108_v36 = vld [vmem:[%s8681_s28 + $0x91] sm:$0xff] }
  0xb4   : > { %5943 = vmatmul.bf16.gmra.mxu2 %v7795_v10  ;;  %2825 = vst [vmem:[#allocation2 + $0x424] sm:$0xf] %v2761_v16  ;;  %v2655_v41 = vsel %vm495_vm0, %v2519_v17, %v2619_v38  ;;  %v2635_v42 = vpop.permute.xlu1 %2634  ;;  %v1301_v10 = vpack.c.bf16 %v7040_v55, %v7040_v55  ;;  %v7475_v15 = vor.u32 %v8280_v1, %v7474_v47  ;;  %v1446_v17 = vunpack.c.l.b16 %v1302_v11  ;;  %v7175_v38 = vld [vmem:[%s8681_s28 + $0x230] sm:$0xff]  ;;  %v7109_v9 = vld [vmem:[%s8681_s28 + $0x99] sm:$0xff] }
  0xb5   : > { %v2714_v48 = vunpack.c.l.b16 %v2655_v41  ;;  %v2715_v49 = vunpack.c.h.b16 %v2655_v41  ;;  %v2679_v51 = vsel %vm495_vm0, %v2527_v27, %v2635_v42  ;;  %2008 = vrot.lane.b32.xlu0 %v1989_v18, %s8606_s29  ;;  %v2623_v46 = vpop.permute.xlu2 %2622  ;;  %v2367_v61 = vpack.c.bf16 %v7175_v38, %v7175_v38  ;;  %v8452_v18 = vld [vmem:[%s10542_s1 + $0x98] sm:$0xff] }
  0xb6   : > { %5903 = vmatmul.bf16.gmra.mxu1 %v7635_v50  ;;  %v2730_v56 = vunpack.c.l.b16 %v2679_v51  ;;  %v2731_v57 = vunpack.c.h.b16 %v2679_v51  ;;  %v1445_v16 = vunpack.c.l.b16 %v1301_v10  ;;  %v937_v51 = vunpack.c.l.b16 %v793_v40  ;;  %6192 = vmatpush.bf16.msrb.mxu2 %v8452_v18 }
  0xb7   : > { %v2746_v2 = vpack.c.b16 %v2714_v48, %v2714_v48  ;;  %v2747_v3 = vpack.c.b16 %v2715_v49, %v2715_v49  ;;  %v233_v1 = vpack.c.bf16 %v201_v53, %v201_v53  ;;  %v2495_v59 = vunpack.c.l.b16 %v2367_v61  ;;  %v6982_v61 = vld [vmem:[%s8681_s28 + $0x90] sm:$0xff] }
  0xb8   : > { %v2762_v7 = vpack.c.b16 %v2730_v56, %v2730_v56  ;;  %v2763_v8 = vpack.c.b16 %v2731_v57, %v2731_v57  ;;  %v1475_v26 = vpack.c.b16 %v1446_v17, %v1445_v16  ;;  %v9027_v55 = vld [vmem:[#allocation2 + $0x410] sm:$0xf] }
  0xb9   : > { %2810 = vst [vmem:[#allocation2 + $0x2f8] sm:$0xf] %v2746_v2  ;;  %v7654_v39 = vld [vmem:[#allocation2 + $0x190] sm:$0xf]  ;;  %v234_v2 = vpack.c.bf16 %v202_v54, %v202_v54  ;;  %v361_v10 = vunpack.c.l.b16 %v233_v1 }
  0xba   : > { %2811 = vst [vmem:[#allocation2 + $0x30c] sm:$0xf] %v2747_v3  ;;  %1493 = vrot.lane.b32.xlu2 %v1475_v26, %s8606_s29  ;;  %v8325_v41 = vld [vmem:[#allocation2 + $0x1a0] sm:$0xf0] }
  0xbb   : > { %v470_v25 = vpop.permute.xlu0 %469  ;;  %2826 = vst [vmem:[#allocation2 + $0x438] sm:$0xf] %v2762_v7  ;;  %v9029_v56 = vld [vmem:[#allocation2 + $0x420] sm:$0xf0]  ;;  %v7655_v62 = vor.u32 %v8325_v41, %v7654_v39  ;;  %v362_v11 = vunpack.c.l.b16 %v234_v2 }
  0xbc   : > { %5983 = vmatmul.bf16.gmra.mxu3 %v7955_v37  ;;  %v507_v23 = vsel %vm495_vm0, %v8927_v22, %v470_v25  ;;  %2827 = vst [vmem:[#allocation2 + $0x44c] sm:$0xf] %v2763_v8  ;;  %v2621_v24 = vpop.permute.xlu1 %2620  ;;  %v2528_v22 = vpack.c.b16 %v2509_v20, %v2508_v19  ;;  %v7174_v37 = vld [vmem:[%s8681_s28 + $0x228] sm:$0xff]  ;;  %v7975_v6 = vor.u32 %v9029_v56, %v9027_v55  ;;  %v8460_v20 = vld [vmem:[%s10542_s1 + $0xd8] sm:$0xff] }
  0xbd   : > { %v566_v27 = vunpack.c.l.b16 %v507_v23  ;;  %v567_v28 = vunpack.c.h.b16 %v507_v23  ;;  %v2658_v30 = vsel %vm495_vm0, %v2520_v60, %v2621_v24  ;;  %v2366_v45 = vpack.c.bf16 %v7174_v37, %v7174_v37  ;;  %v8285_v23 = vld [vmem:[#allocation2 + $0x60] sm:$0xf0]  ;;  %6361 = vmatpush.bf16.msrb.mxu3 %v8460_v20  ;;  %v474_v38 = vpop.permute.xlu2 %473 }
  0xbe   : > { %5863 = vmatmul.bf16.gmra.mxu0 %v7475_v15  ;;  %v2716_v50 = vunpack.c.l.b16 %v2658_v30  ;;  %v2717_v33 = vunpack.c.h.b16 %v2658_v30  ;;  %v2682_v49 = vsel %vm495_vm0, %v2528_v22, %v8997_v0  ;;  %v938_v60 = vunpack.c.l.b16 %v794_v44  ;;  %v7042_v15 = vld [vmem:[%s8681_s28 + $0x62] sm:$0xff] }
  0xbf   : > { %v598_v42 = vpack.c.b16 %v566_v27, %v566_v27  ;;  %v599_v43 = vpack.c.b16 %v567_v28, %v567_v28  ;;  %v2732_v57 = vunpack.c.l.b16 %v2682_v49  ;;  %v2733_v58 = vunpack.c.h.b16 %v2682_v49 }
  0xc0   : > { %v2748_v47 = vpack.c.b16 %v2716_v50, %v2716_v50  ;;  %v2749_v48 = vpack.c.b16 %v2717_v33, %v2717_v33  ;;  %v2494_v63 = vunpack.c.l.b16 %v2366_v45  ;;  %v9031_v5 = vpack.c.b16 %v938_v60, %v937_v51  ;;  %v7191_v33 = vld [vmem:[%s8681_s28 + $0x2f0] sm:$0xff]  ;;  %v7834_v44 = vld [vmem:[#allocation2 + $0x2f8] sm:$0xf] }
  0xc1   : > { %662 = vst [vmem:[#allocation2 + $0x78] sm:$0xf] %v598_v42  ;;  %v2764_v0 = vpack.c.b16 %v2732_v57, %v2732_v57  ;;  %v2765_v4 = vpack.c.b16 %v2733_v58, %v2733_v58  ;;  %v380_v25 = vpack.c.b16 %v362_v11, %v361_v10  ;;  %v1818_v19 = vpack.c.bf16 %v7108_v36, %v7108_v36  ;;  %v8370_v45 = vld [vmem:[#allocation2 + $0x308] sm:$0xf0]  ;;  %v203_v36 = vld [vmem:[%s8681_s28 + $0x150] sm:$0xff] }
  0xc2   : > { %663 = vst [vmem:[#allocation2 + $0x8c] sm:$0xf] %v599_v43  ;;  %985 = vrot.lane.b32.xlu1 %v9031_v5, %s8606_s29  ;;  %v2521_v35 = vpack.c.b16 %v2495_v59, %v2494_v63  ;;  %v1819_v28 = vpack.c.bf16 %v7109_v9, %v7109_v9  ;;  %v1303_v40 = vpack.c.bf16 %v7042_v15, %v7042_v15  ;;  %v7674_v59 = vld [vmem:[#allocation2 + $0x1b8] sm:$0xf] }
  0xc3   : > { %v488_v3 = vpop.permute.xlu0 %487  ;;  %2812 = vst [vmem:[#allocation2 + $0x320] sm:$0xf] %v2748_v47  ;;  %v1962_v22 = vunpack.c.l.b16 %v1818_v19  ;;  %v2383_v49 = vpack.c.bf16 %v7191_v33, %v7191_v33  ;;  %v513_v55 = vsel %vm495_vm0, %v9031_v5, %v474_v38  ;;  %v7835_v63 = vor.u32 %v8370_v45, %v7834_v44  ;;  %v7176_v5 = vld [vmem:[%s8681_s28 + $0x240] sm:$0xff]  ;;  %v204_v9 = vld [vmem:[%s8681_s28 + $0x158] sm:$0xff] }
  0xc4   : > { %5948 = vmatmul.bf16.gmra.mxu2 %v7815_v21  ;;  %v534_v7 = vsel %vm495_vm0, %v379_v29, %v488_v3  ;;  %2813 = vst [vmem:[#allocation2 + $0x334] sm:$0xf] %v2749_v48  ;;  %v472_v8 = vpop.permute.xlu1 %471  ;;  %v7494_v21 = vld [vmem:[#allocation2 + $0x50] sm:$0xf]  ;;  %v2661_v27 = vsel %vm495_vm0, %v2521_v35, %v2623_v46  ;;  %v7190_v29 = vld [vmem:[%s8681_s28 + $0x2e8] sm:$0xff]  ;;  %v1963_v34 = vunpack.c.l.b16 %v1819_v28  ;;  %v1447_v47 = vunpack.c.l.b16 %v1303_v40 }
  0xc5   : > { %v584_v12 = vunpack.c.l.b16 %v534_v7  ;;  %v585_v13 = vunpack.c.h.b16 %v534_v7  ;;  %2828 = vst [vmem:[#allocation2 + $0x460] sm:$0xf] %v2764_v0  ;;  %v510_v14 = vsel %vm495_vm0, %v8983_v52, %v472_v8  ;;  %v7043_v52 = vld [vmem:[%s8681_s28 + $0x6a] sm:$0xff]  ;;  %v2718_v32 = vunpack.c.l.b16 %v2661_v27  ;;  %v8444_v0 = vld [vmem:[%s10542_s1 + $0x58] sm:$0xff]  ;;  %v7045_v44 = vld [vmem:[%s8681_s28 + $0x82] sm:$0xff] }
  0xc6   : > { %5908 = vmatmul.bf16.gmra.mxu1 %v7655_v62  ;;  %2829 = vst [vmem:[#allocation2 + $0x474] sm:$0xf] %v2765_v4  ;;  %v568_v16 = vunpack.c.l.b16 %v510_v14  ;;  %v569_v17 = vunpack.c.h.b16 %v510_v14  ;;  %v2719_v50 = vunpack.c.h.b16 %v2661_v27  ;;  %v1304_v37 = vpack.c.bf16 %v7043_v52, %v7043_v52  ;;  %v6983_v62 = vld [vmem:[%s8681_s28 + $0x98] sm:$0xff]  ;;  %v8466_v4 = vld [vmem:[%s10542_s1 + $0x108] sm:$0xff] }
  0xc7   : > { %v616_v24 = vpack.c.b16 %v584_v12, %v584_v12  ;;  %v617_v26 = vpack.c.b16 %v585_v13, %v585_v13  ;;  %v7495_v39 = vor.u32 %v8285_v23, %v7494_v21  ;;  %v2750_v41 = vpack.c.b16 %v2718_v32, %v2718_v32  ;;  %v7177_v12 = vld [vmem:[%s8681_s28 + $0x248] sm:$0xff]  ;;  %6023 = vmatpush.bf16.msrb.mxu1 %v8444_v0  ;;  %v7994_v21 = vld [vmem:[#allocation2 + $0x438] sm:$0xf] }
  0xc8   : > { %v600_v30 = vpack.c.b16 %v568_v16, %v568_v16  ;;  %v601_v31 = vpack.c.b16 %v569_v17, %v569_v17  ;;  %v2751_v42 = vpack.c.b16 %v2719_v50, %v2719_v50  ;;  %v2382_v43 = vpack.c.bf16 %v7190_v29, %v7190_v29  ;;  %6532 = vmatpush.bf16.msrb.mxu0 %v8466_v4  ;;  %v8410_v29 = vld [vmem:[#allocation2 + $0x448] sm:$0xf0] }
  0xc9   : > { %680 = vst [vmem:[#allocation2 + $0x1e0] sm:$0xf] %v616_v24  ;;  %v1990_v46 = vpack.c.b16 %v1963_v34, %v1962_v22  ;;  %v1448_v48 = vunpack.c.l.b16 %v1304_v37  ;;  %v2511_v58 = vunpack.c.l.b16 %v2383_v49  ;;  %v570_v60 = vunpack.c.l.b16 %v513_v55  ;;  %v8290_v33 = vld [vmem:[#allocation2 + $0x88] sm:$0xf0]  ;;  %v7111_v37 = vld [vmem:[%s8681_s28 + $0xb1] sm:$0xff] }
  0xca   : > { %681 = vst [vmem:[#allocation2 + $0x1f4] sm:$0xf] %v617_v26  ;;  %v2510_v54 = vunpack.c.l.b16 %v2382_v43  ;;  %v571_v3 = vunpack.c.h.b16 %v513_v55  ;;  %v795_v10 = vpack.c.bf16 %v6982_v61, %v6982_v61  ;;  %v796_v11 = vpack.c.bf16 %v6983_v62, %v6983_v62  ;;  %v7110_v40 = vld [vmem:[%s8681_s28 + $0xa9] sm:$0xff]  ;;  %v7044_v43 = vld [vmem:[%s8681_s28 + $0x7a] sm:$0xff] }
  0xcb   : > { %664 = vst [vmem:[#allocation2 + $0xa0] sm:$0xf] %v600_v30  ;;  %v2639_v51 = vpop.permute.xlu0 %2638  ;;  %2010 = vrot.lane.b32.xlu0 %v1990_v46, %s8606_s29  ;;  %v1476_v57 = vpack.c.b16 %v1448_v48, %v1447_v47  ;;  %v602_v8 = vpack.c.b16 %v570_v60, %v570_v60  ;;  %v2369_v20 = vpack.c.bf16 %v7177_v12, %v7177_v12  ;;  %v7514_v30 = vld [vmem:[#allocation2 + $0x78] sm:$0xf]  ;;  %v8459_v49 = vld [vmem:[%s10542_s1 + $0xd0] sm:$0xff] }
  0xcc   : > { %5988 = vmatmul.bf16.gmra.mxu3 %v7975_v6  ;;  %665 = vst [vmem:[#allocation2 + $0xb4] sm:$0xf] %v601_v31  ;;  %v490_v53 = vpop.permute.xlu1 %489  ;;  %v8330_v6 = vld [vmem:[#allocation2 + $0x1c8] sm:$0xf0]  ;;  %v2529_v7 = vpack.c.b16 %v2511_v58, %v2510_v54  ;;  %v603_v35 = vpack.c.b16 %v571_v3, %v571_v3  ;;  %v939_v16 = vunpack.c.l.b16 %v795_v10  ;;  %v940_v17 = vunpack.c.l.b16 %v796_v11 }
  0xcd   : > { %2814 = vst [vmem:[#allocation2 + $0x348] sm:$0xf] %v2750_v41  ;;  %v537_v56 = vsel %vm495_vm0, %v380_v25, %v490_v53  ;;  %1495 = vrot.lane.b32.xlu2 %v1476_v57, %s8606_s29  ;;  %v2368_v25 = vpack.c.bf16 %v7176_v5, %v7176_v5  ;;  %v7675_v18 = vor.u32 %v8330_v6, %v7674_v59  ;;  %v2497_v50 = vunpack.c.l.b16 %v2369_v20  ;;  %v8451_v41 = vld [vmem:[%s10542_s1 + $0x90] sm:$0xff]  ;;  %v7193_v3 = vld [vmem:[%s8681_s28 + $0x308] sm:$0xff]  ;;  %v7854_v6 = vld [vmem:[#allocation2 + $0x320] sm:$0xf] }
  0xce   : > { %5868 = vmatmul.bf16.gmra.mxu0 %v7495_v39  ;;  %2815 = vst [vmem:[#allocation2 + $0x35c] sm:$0xf] %v2751_v42  ;;  %v586_v1 = vunpack.c.l.b16 %v537_v56  ;;  %v587_v2 = vunpack.c.h.b16 %v537_v56  ;;  %v2685_v15 = vsel %vm495_vm0, %v2529_v7, %v2639_v51  ;;  %v966_v23 = vpack.c.b16 %v940_v17, %v939_v16  ;;  %v492_v39 = vpop.permute.xlu2 %491  ;;  %6193 = vmatpush.bf16.msrb.mxu2 %v8451_v41  ;;  %v8375_v7 = vld [vmem:[#allocation2 + $0x330] sm:$0xf0]  ;;  %v8014_v41 = vld [vmem:[#allocation2 + $0x460] sm:$0xf] }
  0xcf   : > { %666 = vst [vmem:[#allocation2 + $0xc8] sm:$0xf] %v602_v8  ;;  %v2734_v19 = vunpack.c.l.b16 %v2685_v15  ;;  %v2735_v52 = vunpack.c.h.b16 %v2685_v15  ;;  %v2496_v24 = vunpack.c.l.b16 %v2368_v25  ;;  %v235_v27 = vpack.c.bf16 %v203_v36, %v203_v36  ;;  %6362 = vmatpush.bf16.msrb.mxu3 %v8459_v49  ;;  %v6984_v15 = vld [vmem:[%s8681_s28 + $0xa8] sm:$0xff]  ;;  %v6985_v16 = vld [vmem:[%s8681_s28 + $0xb0] sm:$0xff] }
  0xd0   : > { %v618_v13 = vpack.c.b16 %v586_v1, %v586_v1  ;;  %v619_v14 = vpack.c.b16 %v587_v2, %v587_v2  ;;  %v236_v28 = vpack.c.bf16 %v204_v9, %v204_v9  ;;  %667 = vst [vmem:[#allocation2 + $0xdc] sm:$0xf] %v603_v35  ;;  %987 = vrot.lane.b32.xlu1 %v966_v23, %s8606_s29  ;;  %v7192_v2 = vld [vmem:[%s8681_s28 + $0x300] sm:$0xff]  ;;  %v8443_v25 = vld [vmem:[%s10542_s1 + $0x50] sm:$0xff] }
  0xd1   : > { %v2766_v31 = vpack.c.b16 %v2734_v19, %v2734_v19  ;;  %v2767_v32 = vpack.c.b16 %v2735_v52, %v2735_v52  ;;  %v363_v22 = vunpack.c.l.b16 %v235_v27  ;;  %v2522_v38 = vpack.c.b16 %v2497_v50, %v2496_v24  ;;  %v7694_v17 = vld [vmem:[#allocation2 + $0x1e0] sm:$0xf]  ;;  %v205_v52 = vld [vmem:[%s8681_s28 + $0x168] sm:$0xff]  ;;  %v206_v27 = vld [vmem:[%s8681_s28 + $0x170] sm:$0xff]  ;;  %6024 = vmatpush.bf16.msrb.mxu1 %v8443_v25 }
  0xd2   : > { %682 = vst [vmem:[#allocation2 + $0x208] sm:$0xf] %v618_v13  ;;  %v364_v34 = vunpack.c.l.b16 %v236_v28  ;;  %v1820_v42 = vpack.c.bf16 %v7110_v40, %v7110_v40  ;;  %v1821_v46 = vpack.c.bf16 %v7111_v37, %v7111_v37  ;;  %v1305_v47 = vpack.c.bf16 %v7044_v43, %v7044_v43  ;;  %v7179_v50 = vld [vmem:[%s8681_s28 + $0x260] sm:$0xff] }
  0xd3   : > { %683 = vst [vmem:[#allocation2 + $0x21c] sm:$0xf] %v619_v14  ;;  %v2625_v26 = vpop.permute.xlu0 %2624  ;;  %v1306_v48 = vpack.c.bf16 %v7045_v44, %v7045_v44  ;;  %v7995_v51 = vor.u32 %v8410_v29, %v7994_v21  ;;  %v7515_v53 = vor.u32 %v8290_v33, %v7514_v30  ;;  %v2384_v36 = vpack.c.bf16 %v7192_v2, %v7192_v2  ;;  %v8335_v21 = vld [vmem:[#allocation2 + $0x1f0] sm:$0xf0]  ;;  %v7534_v49 = vld [vmem:[#allocation2 + $0xa0] sm:$0xf] }
  0xd4   : > { %5953 = vmatmul.bf16.gmra.mxu2 %v7835_v63  ;;  %2830 = vst [vmem:[#allocation2 + $0x488] sm:$0xf] %v2766_v31  ;;  %v381_v45 = vpack.c.b16 %v364_v34, %v363_v22  ;;  %v2664_v54 = vsel %vm495_vm0, %v2522_v38, %v2625_v26  ;;  %v1964_v55 = vunpack.c.l.b16 %v1820_v42  ;;  %v1965_v60 = vunpack.c.l.b16 %v1821_v46  ;;  %v2641_v13 = vpop.permute.xlu1 %2640  ;;  %v8415_v42 = vld [vmem:[#allocation2 + $0x470] sm:$0xf0]  ;;  %v7874_v25 = vld [vmem:[#allocation2 + $0x348] sm:$0xf] }
  0xd5   : > { %2831 = vst [vmem:[#allocation2 + $0x49c] sm:$0xf] %v2767_v32  ;;  %v2720_v56 = vunpack.c.l.b16 %v2664_v54  ;;  %v2721_v57 = vunpack.c.h.b16 %v2664_v54  ;;  %v1449_v63 = vunpack.c.l.b16 %v1305_v47  ;;  %v1450_v1 = vunpack.c.l.b16 %v1306_v48  ;;  %v7178_v32 = vld [vmem:[%s8681_s28 + $0x258] sm:$0xff] }
  0xd6   : > { %5913 = vmatmul.bf16.gmra.mxu1 %v7675_v18  ;;  %v540_v58 = vsel %vm495_vm0, %v381_v45, %v492_v39  ;;  %v1991_v5 = vpack.c.b16 %v1965_v60, %v1964_v55  ;;  %v2385_v9 = vpack.c.bf16 %v7193_v3, %v7193_v3  ;;  %v797_v18 = vpack.c.bf16 %v6984_v15, %v6984_v15 }
  0xd7   : > { %v588_v61 = vunpack.c.l.b16 %v540_v58  ;;  %v589_v62 = vunpack.c.h.b16 %v540_v58  ;;  %v2752_v0 = vpack.c.b16 %v2720_v56, %v2720_v56  ;;  %v2753_v4 = vpack.c.b16 %v2721_v57, %v2721_v57  ;;  %v7112_v56 = vld [vmem:[%s8681_s28 + $0xc1] sm:$0xff]  ;;  %v7113_v57 = vld [vmem:[%s8681_s28 + $0xc9] sm:$0xff]  ;;  %v8295_v58 = vld [vmem:[#allocation2 + $0xb0] sm:$0xf0] }
  0xd8   : > { %v1477_v11 = vpack.c.b16 %v1450_v1, %v1449_v63  ;;  %2012 = vrot.lane.b32.xlu0 %v1991_v5, %s8606_s29  ;;  %v798_v19 = vpack.c.bf16 %v6985_v16, %v6985_v16  ;;  %v7855_v20 = vor.u32 %v8375_v7, %v7854_v6  ;;  %v2512_v26 = vunpack.c.l.b16 %v2384_v36  ;;  %v7046_v1 = vld [vmem:[%s8681_s28 + $0x92] sm:$0xff]  ;;  %v8458_v5 = vld [vmem:[%s10542_s1 + $0xc8] sm:$0xff]  ;;  %v7195_v36 = vld [vmem:[%s8681_s28 + $0x320] sm:$0xff] }
  0xd9   : > { %v620_v8 = vpack.c.b16 %v588_v61, %v588_v61  ;;  %v621_v10 = vpack.c.b16 %v589_v62, %v589_v62  ;;  %2816 = vst [vmem:[#allocation2 + $0x370] sm:$0xf] %v2752_v0  ;;  %v2513_v28 = vunpack.c.l.b16 %v2385_v9  ;;  %v941_v29 = vunpack.c.l.b16 %v797_v18  ;;  %v8450_v61 = vld [vmem:[%s10542_s1 + $0x88] sm:$0xff]  ;;  %6363 = vmatpush.bf16.msrb.mxu3 %v8458_v5 }
  0xda   : > { %2817 = vst [vmem:[#allocation2 + $0x384] sm:$0xf] %v2753_v4  ;;  %1497 = vrot.lane.b32.xlu2 %v1477_v11, %s8606_s29  ;;  %v942_v30 = vunpack.c.l.b16 %v798_v19  ;;  %v237_v31 = vpack.c.bf16 %v205_v52, %v205_v52  ;;  %v238_v33 = vpack.c.bf16 %v206_v27, %v206_v27  ;;  %v2370_v22 = vpack.c.bf16 %v7178_v32, %v7178_v32  ;;  %v7194_v11 = vld [vmem:[%s8681_s28 + $0x318] sm:$0xff]  ;;  %v8442_v32 = vld [vmem:[%s10542_s1 + $0x48] sm:$0xff] }
  0xdb   : > { %v476_v59 = vpop.permute.xlu0 %475  ;;  %684 = vst [vmem:[#allocation2 + $0x230] sm:$0xf] %v620_v8  ;;  %v2371_v34 = vpack.c.bf16 %v7179_v50, %v7179_v50  ;;  %v7695_v40 = vor.u32 %v8335_v21, %v7694_v17  ;;  %v2530_v37 = vpack.c.b16 %v2513_v28, %v2512_v26  ;;  %v8015_v60 = vor.u32 %v8415_v42, %v8014_v41  ;;  %v7714_v21 = vld [vmem:[#allocation2 + $0x208] sm:$0xf]  ;;  %v8340_v26 = vld [vmem:[#allocation2 + $0x218] sm:$0xf0] }
  0xdc   : > { %5993 = vmatmul.bf16.gmra.mxu3 %v7995_v51  ;;  %v516_v12 = vsel %vm495_vm0, %v966_v23, %v476_v59  ;;  %685 = vst [vmem:[#allocation2 + $0x244] sm:$0xf] %v621_v10  ;;  %v9098_v38 = vpack.c.b16 %v942_v30, %v941_v29  ;;  %v365_v39 = vunpack.c.l.b16 %v237_v31  ;;  %v366_v43 = vunpack.c.l.b16 %v238_v33  ;;  %v2627_v48 = vpop.permute.xlu1 %2626  ;;  %6194 = vmatpush.bf16.msrb.mxu2 %v8450_v61  ;;  %v7047_v10 = vld [vmem:[%s8681_s28 + $0x9a] sm:$0xff]  ;;  %v6987_v30 = vld [vmem:[%s8681_s28 + $0xc8] sm:$0xff] }
  0xdd   : > { %v572_v14 = vunpack.c.l.b16 %v516_v12  ;;  %v573_v35 = vunpack.c.h.b16 %v516_v12  ;;  %v2498_v44 = vunpack.c.l.b16 %v2370_v22  ;;  %v2499_v45 = vunpack.c.l.b16 %v2371_v34  ;;  %v6986_v29 = vld [vmem:[%s8681_s28 + $0xc0] sm:$0xff]  ;;  %6025 = vmatpush.bf16.msrb.mxu1 %v8442_v32  ;;  %v7554_v5 = vld [vmem:[#allocation2 + $0xc8] sm:$0xf] }
  0xde   : > { %5873 = vmatmul.bf16.gmra.mxu0 %v7515_v53  ;;  %v2688_v46 = vsel %vm495_vm0, %v2530_v37, %v2641_v13  ;;  %989 = vrot.lane.b32.xlu1 %v9098_v38, %s8606_s29  ;;  %v382_v54 = vpack.c.b16 %v366_v43, %v365_v39  ;;  %v1822_v62 = vpack.c.bf16 %v7112_v56, %v7112_v56  ;;  %v8465_v22 = vld [vmem:[%s10542_s1 + $0x100] sm:$0xff]  ;;  %v2643_v39 = vpop.permute.xlu2 %2642 }
  0xdf   : > { %v604_v23 = vpack.c.b16 %v572_v14, %v572_v14  ;;  %v605_v24 = vpack.c.b16 %v573_v35, %v573_v35  ;;  %v2736_v51 = vunpack.c.l.b16 %v2688_v46  ;;  %v2737_v53 = vunpack.c.h.b16 %v2688_v46  ;;  %v7004_v34 = vld [vmem:[%s8681_s28 + $0x19] sm:$0xff]  ;;  %v7005_v42 = vld [vmem:[%s8681_s28 + $0x21] sm:$0xff]  ;;  %6533 = vmatpush.bf16.msrb.mxu0 %v8465_v22 }
  0xe0   : > { %v2523_v55 = vpack.c.b16 %v2499_v45, %v2498_v44  ;;  %v1823_v63 = vpack.c.bf16 %v7113_v57, %v7113_v57  ;;  %v7535_v12 = vor.u32 %v8295_v58, %v7534_v49  ;;  %v1966_v13 = vunpack.c.l.b16 %v1822_v62 }
  0xe1   : > { %668 = vst [vmem:[#allocation2 + $0xf0] sm:$0xf] %v604_v23  ;;  %v2768_v2 = vpack.c.b16 %v2736_v51, %v2736_v51  ;;  %v2769_v3 = vpack.c.b16 %v2737_v53, %v2737_v53  ;;  %v1307_v35 = vpack.c.bf16 %v7046_v1, %v7046_v1  ;;  %v1308_v19 = vpack.c.bf16 %v7047_v10, %v7047_v10  ;;  %v8380_v23 = vld [vmem:[#allocation2 + $0x358] sm:$0xf0]  ;;  %v8034_v1 = vld [vmem:[#allocation2 + $0x488] sm:$0xf] }
  0xe2   : > { %669 = vst [vmem:[#allocation2 + $0x104] sm:$0xf] %v605_v24  ;;  %v2667_v4 = vsel %vm495_vm0, %v2523_v55, %v2627_v48  ;;  %v1967_v14 = vunpack.c.l.b16 %v1823_v63  ;;  %v2387_v24 = vpack.c.bf16 %v7195_v36, %v7195_v36  ;;  %v799_v50 = vpack.c.bf16 %v6986_v29, %v6986_v29  ;;  %v688_v48 = vld [vmem:[%s8681_s28 + $0x2] sm:$0xff]  ;;  %v689_v55 = vld [vmem:[%s8681_s28 + $0xa] sm:$0xff]  ;;  %v8300_v10 = vld [vmem:[#allocation2 + $0xd8] sm:$0xf0] }
  0xe3   : > { %v494_v47 = vpop.permute.xlu0 %493  ;;  %v2722_v7 = vunpack.c.l.b16 %v2667_v4  ;;  %v2723_v8 = vunpack.c.h.b16 %v2667_v4  ;;  %2832 = vst [vmem:[#allocation2 + $0x4b0] sm:$0xf] %v2768_v2  ;;  %v1451_v52 = vunpack.c.l.b16 %v1307_v35  ;;  %v1452_v27 = vunpack.c.l.b16 %v1308_v19  ;;  %v8420_v2 = vld [vmem:[#allocation2 + $0x498] sm:$0xf0]  ;;  %v7048_v36 = vld [vmem:[%s8681_s28 + $0xaa] sm:$0xff] }
  0xe4   : > { %5958 = vmatmul.bf16.gmra.mxu2 %v7855_v20  ;;  %v543_v0 = vsel %vm495_vm0, %v382_v54, %v494_v47  ;;  %2833 = vst [vmem:[#allocation2 + $0x4c4] sm:$0xf] %v2769_v3  ;;  %v1992_v18 = vpack.c.b16 %v1967_v14, %v1966_v13  ;;  %v2386_v20 = vpack.c.bf16 %v7194_v11, %v7194_v11  ;;  %v2515_v31 = vunpack.c.l.b16 %v2387_v24  ;;  %v478_v41 = vpop.permute.xlu1 %477  ;;  %v8449_v13 = vld [vmem:[%s10542_s1 + $0x80] sm:$0xff] }
  0xe5   : > { %v590_v59 = vunpack.c.l.b16 %v543_v0  ;;  %v591_v6 = vunpack.c.h.b16 %v543_v0  ;;  %v2754_v16 = vpack.c.b16 %v2722_v7, %v2722_v7  ;;  %v2755_v17 = vpack.c.b16 %v2723_v8, %v2723_v8  ;;  %v7114_v7 = vld [vmem:[%s8681_s28 + $0xd9] sm:$0xff]  ;;  %v7115_v8 = vld [vmem:[%s8681_s28 + $0xe1] sm:$0xff]  ;;  %6195 = vmatpush.bf16.msrb.mxu2 %v8449_v13 }
  0xe6   : > { %5918 = vmatmul.bf16.gmra.mxu1 %v7695_v40  ;;  %2014 = vrot.lane.b32.xlu0 %v1992_v18, %s8606_s29  ;;  %v2514_v28 = vunpack.c.l.b16 %v2386_v20  ;;  %v800_v33 = vpack.c.bf16 %v6987_v30, %v6987_v30  ;;  %v7875_v40 = vor.u32 %v8380_v23, %v7874_v25  ;;  %v1478_v37 = vpack.c.b16 %v1452_v27, %v1451_v52  ;;  %v8457_v25 = vld [vmem:[%s10542_s1 + $0xc0] sm:$0xff]  ;;  %v7068_v18 = vld [vmem:[%s8681_s28 + $0x30] sm:$0xff]  ;;  %v7069_v23 = vld [vmem:[%s8681_s28 + $0x38] sm:$0xff] }
  0xe7   : > { %v622_v9 = vpack.c.b16 %v590_v59, %v590_v59  ;;  %v623_v15 = vpack.c.b16 %v591_v6, %v591_v6  ;;  %2818 = vst [vmem:[#allocation2 + $0x398] sm:$0xf] %v2754_v16  ;;  %v1233_v43 = vpack.c.bf16 %v7004_v34, %v7004_v34  ;;  %v519_v45 = vsel %vm495_vm0, %v9098_v38, %v478_v41  ;;  %v7049_v16 = vld [vmem:[%s8681_s28 + $0xb2] sm:$0xff] }
  0xe8   : > { %2819 = vst [vmem:[#allocation2 + $0x3ac] sm:$0xf] %v2755_v17  ;;  %v2531_v44 = vpack.c.b16 %v2515_v31, %v2514_v28  ;;  %v943_v46 = vunpack.c.l.b16 %v799_v50  ;;  %v944_v47 = vunpack.c.l.b16 %v800_v33  ;;  %v7715_v49 = vor.u32 %v8340_v26, %v7714_v21  ;;  %1499 = vrot.lane.b32.xlu2 %v1478_v37, %s8606_s29  ;;  %6364 = vmatpush.bf16.msrb.mxu3 %v8457_v25  ;;  %v7894_v37 = vld [vmem:[#allocation2 + $0x370] sm:$0xf] }
  0xe9   : > { %686 = vst [vmem:[#allocation2 + $0x258] sm:$0xf] %v622_v9  ;;  %v574_v51 = vunpack.c.l.b16 %v519_v45  ;;  %v575_v53 = vunpack.c.h.b16 %v519_v45  ;;  %v1234_v54 = vpack.c.bf16 %v7005_v42, %v7005_v42  ;;  %v1361_v58 = vunpack.c.l.b16 %v1233_v43  ;;  %v7734_v41 = vld [vmem:[#allocation2 + $0x230] sm:$0xf]  ;;  %v8345_v45 = vld [vmem:[#allocation2 + $0x240] sm:$0xf0] }
  0xea   : > { %687 = vst [vmem:[#allocation2 + $0x26c] sm:$0xf] %v623_v15  ;;  %v2691_v56 = vsel %vm495_vm0, %v2531_v44, %v2643_v39  ;;  %v968_v57 = vpack.c.b16 %v944_v47, %v943_v46  ;;  %v721_v0 = vpack.c.bf16 %v689_v55, %v689_v55  ;;  %v1824_v14 = vpack.c.bf16 %v7114_v7, %v7114_v7  ;;  %v8385_v39 = vld [vmem:[#allocation2 + $0x380] sm:$0xf0]  ;;  %v7133_v7 = vld [vmem:[%s8681_s28 + $0x3a] sm:$0xff] }
  0xeb   : > { %v2738_v61 = vunpack.c.l.b16 %v2691_v56  ;;  %v2739_v38 = vunpack.c.h.b16 %v2691_v56  ;;  %v606_v62 = vpack.c.b16 %v574_v51, %v574_v51  ;;  %v607_v63 = vpack.c.b16 %v575_v53, %v575_v53  ;;  %v6988_v51 = vld [vmem:[%s8681_s28 + $0xd8] sm:$0xff]  ;;  %v6989_v53 = vld [vmem:[%s8681_s28 + $0xe0] sm:$0xff] }
  0xec   : > { %5998 = vmatmul.bf16.gmra.mxu3 %v8015_v60  ;;  %v720_v60 = vpack.c.bf16 %v688_v48, %v688_v48  ;;  %991 = vrot.lane.b32.xlu1 %v968_v57, %s8606_s29  ;;  %v1362_v3 = vunpack.c.l.b16 %v1234_v54  ;;  %v1825_v35 = vpack.c.bf16 %v7115_v8, %v7115_v8  ;;  %v8035_v9 = vor.u32 %v8420_v2, %v8034_v1  ;;  %v8441_v56 = vld [vmem:[%s10542_s1 + $0x40] sm:$0xff] }
  0xed   : > { %v2770_v59 = vpack.c.b16 %v2738_v61, %v2738_v61  ;;  %v2771_v6 = vpack.c.b16 %v2739_v38, %v2739_v38  ;;  %670 = vst [vmem:[#allocation2 + $0x118] sm:$0xf] %v606_v62  ;;  %v1309_v17 = vpack.c.bf16 %v7048_v36, %v7048_v36  ;;  %v1968_v52 = vunpack.c.l.b16 %v1824_v14  ;;  %6026 = vmatpush.bf16.msrb.mxu1 %v8441_v56  ;;  %v7007_v1 = vld [vmem:[%s8681_s28 + $0x39] sm:$0xff] }
  0xee   : > { %5878 = vmatmul.bf16.gmra.mxu0 %v7535_v12  ;;  %v849_v4 = vunpack.c.l.b16 %v720_v60  ;;  %671 = vst [vmem:[#allocation2 + $0x12c] sm:$0xf] %v607_v63  ;;  %v1393_v11 = vpack.c.b16 %v1362_v3, %v1361_v58  ;;  %v850_v12 = vunpack.c.l.b16 %v721_v0  ;;  %v1969_v20 = vunpack.c.l.b16 %v1825_v35  ;;  %v7006_v63 = vld [vmem:[%s8681_s28 + $0x31] sm:$0xff]  ;;  %v690_v2 = vld [vmem:[%s8681_s28 + $0x1a] sm:$0xff] }
  0xef   : > { %2834 = vst [vmem:[#allocation2 + $0x4d8] sm:$0xf] %v2770_v59  ;;  %v1310_v21 = vpack.c.bf16 %v7049_v16, %v7049_v16  ;;  %v7555_v24 = vor.u32 %v8300_v10, %v7554_v5  ;;  %v1453_v27 = vunpack.c.l.b16 %v1309_v17  ;;  %v1746_v28 = vpack.c.bf16 %v7068_v18, %v7068_v18  ;;  %v691_v59 = vld [vmem:[%s8681_s28 + $0x22] sm:$0xff] }
  0xf0   : > { %2835 = vst [vmem:[#allocation2 + $0x4ec] sm:$0xf] %v2771_v6  ;;  %v881_v19 = vpack.c.b16 %v850_v12, %v849_v4  ;;  %v1747_v29 = vpack.c.bf16 %v7069_v23, %v7069_v23  ;;  %v1993_v32 = vpack.c.b16 %v1969_v20, %v1968_v52  ;;  %v801_v57 = vpack.c.bf16 %v6988_v51, %v6988_v51  ;;  %v7132_v6 = vld [vmem:[%s8681_s28 + $0x32] sm:$0xff]  ;;  %v7050_v20 = vld [vmem:[%s8681_s28 + $0xc2] sm:$0xff] }
  0xf1   : > { %v1454_v50 = vunpack.c.l.b16 %v1310_v21  ;;  %v1874_v43 = vunpack.c.l.b16 %v1746_v28  ;;  %v802_v58 = vpack.c.bf16 %v6989_v53, %v6989_v53  ;;  %v7895_v60 = vor.u32 %v8385_v39, %v7894_v37  ;;  %v7117_v52 = vld [vmem:[%s8681_s28 + $0xf9] sm:$0xff]  ;;  %v8305_v28 = vld [vmem:[#allocation2 + $0x100] sm:$0xf0] }
  0xf2   : > { %v978_v15 = vpop.permute.xlu1 %977  ;;  %2016 = vrot.lane.b32.xlu0 %v1993_v32, %s8606_s29  ;;  %v1875_v44 = vunpack.c.l.b16 %v1747_v29  ;;  %v7735_v61 = vor.u32 %v8345_v45, %v7734_v41  ;;  %v945_v62 = vunpack.c.l.b16 %v801_v57  ;;  %v1235_v5 = vpack.c.bf16 %v7006_v63, %v7006_v63  ;;  %v6991_v63 = vld [vmem:[%s8681_s28 + $0xf8] sm:$0xff] }
  0xf3   : > { %v1011_v31 = vsel %vm495_vm0, %v881_v19, %v978_v15  ;;  %v1479_v42 = vpack.c.b16 %v1454_v50, %v1453_v27  ;;  %v946_v4 = vunpack.c.l.b16 %v802_v58  ;;  %v1236_v8 = vpack.c.bf16 %v7007_v1, %v7007_v1  ;;  %v8425_v15 = vld [vmem:[#allocation2 + $0x4c0] sm:$0xf0]  ;;  %v7116_v19 = vld [vmem:[%s8681_s28 + $0xf1] sm:$0xff] }
  0xf4   : > { %5963 = vmatmul.bf16.gmra.mxu2 %v7875_v40  ;;  %v1073_v34 = vunpack.c.l.b16 %v1011_v31  ;;  %v1074_v40 = vunpack.c.h.b16 %v1011_v31  ;;  %v1906_v55 = vpack.c.b16 %v1875_v44, %v1874_v43  ;;  %v722_v10 = vpack.c.bf16 %v690_v2, %v690_v2  ;;  %v7574_v27 = vld [vmem:[#allocation2 + $0xf0] sm:$0xf] }
  0xf5   : > { %v1490_v26 = vpop.permute.xlu2 %1489  ;;  %1501 = vrot.lane.b32.xlu2 %v1479_v42, %s8606_s29  ;;  %v9163_v12 = vpack.c.bf16 %v7132_v6, %v7132_v6  ;;  %v969_v35 = vpack.c.b16 %v946_v4, %v945_v62  ;;  %v1363_v36 = vunpack.c.l.b16 %v1235_v5  ;;  %v1364_v16 = vunpack.c.l.b16 %v1236_v8  ;;  %v7071_v43 = vld [vmem:[%s8681_s28 + $0x50] sm:$0xff] }
  0xf6   : > { %5923 = vmatmul.bf16.gmra.mxu1 %v7715_v49  ;;  %v1523_v30 = vsel %vm495_vm0, %v1393_v11, %v1490_v26  ;;  %v1105_v48 = vpack.c.b16 %v1073_v34, %v1073_v34  ;;  %v2003_v49 = vpop.permute.xlu0 %2002  ;;  %v1106_v54 = vpack.c.b16 %v1074_v40, %v1074_v40  ;;  %v723_v11 = vpack.c.bf16 %v691_v59, %v691_v59  ;;  %v7051_v26 = vld [vmem:[%s8681_s28 + $0xca] sm:$0xff] }
  0xf7   : > { %v1585_v33 = vunpack.c.l.b16 %v1523_v30  ;;  %v1586_v22 = vunpack.c.h.b16 %v1523_v30  ;;  %v2036_v38 = vsel %vm495_vm0, %v1906_v55, %v2003_v49  ;;  %v851_v17 = vunpack.c.l.b16 %v722_v10  ;;  %993 = vrot.lane.b32.xlu1 %v969_v35, %s8606_s29  ;;  %2291 = vst.msk [vmem:[#allocation2 + $0x10] sm:$0xf] %vm2290_vm1, %v9163_v12  ;;  %v7070_v34 = vld [vmem:[%s8681_s28 + $0x48] sm:$0xff]  ;;  %v6990_v62 = vld [vmem:[%s8681_s28 + $0xf0] sm:$0xff] }
  0xf8   : > { %1169 = vst [vmem:[#allocation2 + $0x4] sm:$0xf] %v1105_v48  ;;  %v2098_v3 = vunpack.c.l.b16 %v2036_v38  ;;  %v2099_v0 = vunpack.c.h.b16 %v2036_v38  ;;  %v852_v25 = vunpack.c.l.b16 %v723_v11  ;;  %v9165_v18 = vpack.c.bf16 %v7133_v7, %v7133_v7  ;;  %v7008_v8 = vld [vmem:[%s8681_s28 + $0x49] sm:$0xff]  ;;  %v7009_v10 = vld [vmem:[%s8681_s28 + $0x51] sm:$0xff] }
  0xf9   : > { %v1617_v46 = vpack.c.b16 %v1585_v33, %v1585_v33  ;;  %v1618_v47 = vpack.c.b16 %v1586_v22, %v1586_v22  ;;  %1170 = vst [vmem:[#allocation2 + $0x18] sm:$0xf] %v1106_v54  ;;  %v1394_v21 = vpack.c.b16 %v1364_v16, %v1363_v36  ;;  %v1827_v30 = vpack.c.bf16 %v7117_v52, %v7117_v52  ;;  %v7914_v54 = vld [vmem:[#allocation2 + $0x398] sm:$0xf]  ;;  %v7134_v35 = vld [vmem:[%s8681_s28 + $0x4a] sm:$0xff] }
  0xfa   : > { %v2130_v13 = vpack.c.b16 %v2098_v3, %v2098_v3  ;;  %v2131_v14 = vpack.c.b16 %v2099_v0, %v2099_v0  ;;  %v882_v23 = vpack.c.b16 %v852_v25, %v851_v17  ;;  %v980_v29 = vpop.permute.xlu1 %979  ;;  %v1311_v31 = vpack.c.bf16 %v7050_v20, %v7050_v20  ;;  %2292 = vst.msk [vmem:[#allocation2 + $0x24] sm:$0xf] %vm2290_vm1, %v9165_v18  ;;  %v7754_v3 = vld [vmem:[#allocation2 + $0x258] sm:$0xf]  ;;  %v8350_v0 = vld [vmem:[#allocation2 + $0x268] sm:$0xf0] }
  0xfb   : > { %1681 = vst [vmem:[#allocation2 + $0x8] sm:$0xf] %v1617_v46  ;;  %v1312_v32 = vpack.c.bf16 %v7051_v26, %v7051_v26  ;;  %v1971_v41 = vunpack.c.l.b16 %v1827_v30  ;;  %v7575_v44 = vor.u32 %v8305_v28, %v7574_v27  ;;  %v1749_v57 = vpack.c.bf16 %v7071_v43, %v7071_v43  ;;  %v7135_v36 = vld [vmem:[%s8681_s28 + $0x52] sm:$0xff] }
  0xfc   : > { %6003 = vmatmul.bf16.gmra.mxu3 %v8035_v9  ;;  %1682 = vst [vmem:[#allocation2 + $0x1c] sm:$0xf] %v1618_v47  ;;  %v8054_v9 = vld [vmem:[#allocation2 + $0x4b0] sm:$0xf]  ;;  %v1014_v33 = vsel %vm495_vm0, %v882_v23, %v980_v29  ;;  %v1455_v42 = vunpack.c.l.b16 %v1311_v31  ;;  %v1748_v47 = vpack.c.bf16 %v7070_v34, %v7070_v34  ;;  %v803_v2 = vpack.c.bf16 %v6990_v62, %v6990_v62  ;;  %v7594_v25 = vld [vmem:[#allocation2 + $0x118] sm:$0xf] }
  0xfd   : > { %2194 = vst [vmem:[#allocation2 + $0xc] sm:$0xf] %v2130_v13  ;;  %v8055_v50 = vor.u32 %v8425_v15, %v8054_v9  ;;  %v1075_v37 = vunpack.c.l.b16 %v1014_v33  ;;  %v1076_v39 = vunpack.c.h.b16 %v1014_v33  ;;  %v1456_v46 = vunpack.c.l.b16 %v1312_v32  ;;  %v8310_v23 = vld [vmem:[#allocation2 + $0x128] sm:$0xf0]  ;;  %v7052_v34 = vld [vmem:[%s8681_s28 + $0xda] sm:$0xff] }
  0xfe   : > { %5883 = vmatmul.bf16.gmra.mxu0 %v7555_v24  ;;  %2195 = vst [vmem:[#allocation2 + $0x20] sm:$0xf] %v2131_v14  ;;  %v1826_v24 = vpack.c.bf16 %v7116_v19, %v7116_v19  ;;  %v1876_v58 = vunpack.c.l.b16 %v1748_v47  ;;  %v1877_v1 = vunpack.c.l.b16 %v1749_v57  ;;  %v2005_v4 = vpop.permute.xlu0 %2004  ;;  %v804_v5 = vpack.c.bf16 %v6991_v63, %v6991_v63  ;;  %v8430_v29 = vld [vmem:[#allocation2 + $0x4e8] sm:$0xf0] }
  0xff   : > { %v1107_v51 = vpack.c.b16 %v1075_v37, %v1075_v37  ;;  %v1108_v53 = vpack.c.b16 %v1076_v39, %v1076_v39  ;;  %v1480_v56 = vpack.c.b16 %v1456_v46, %v1455_v42  ;;  %v947_v7 = vunpack.c.l.b16 %v803_v2  ;;  %v7118_v32 = vld [vmem:[%s8681_s28 + $0x109] sm:$0xff] }
 0x100   : > { %v1970_v22 = vunpack.c.l.b16 %v1826_v24  ;;  %v1492_v40 = vpop.permute.xlu2 %1491  ;;  %v1907_v6 = vpack.c.b16 %v1877_v1, %v1876_v58  ;;  %v948_v11 = vunpack.c.l.b16 %v804_v5  ;;  %v1237_v13 = vpack.c.bf16 %v7008_v8, %v7008_v8  ;;  %v8074_v24 = vld [vmem:[#allocation2 + $0x4d8] sm:$0xf] }
 0x101   : > { %v1526_v45 = vsel %vm495_vm0, %v1394_v21, %v1492_v40  ;;  %1171 = vst [vmem:[#allocation2 + $0x2c] sm:$0xf] %v1107_v51  ;;  %1503 = vrot.lane.b32.xlu2 %v1480_v56, %s8606_s29  ;;  %v1238_v14 = vpack.c.bf16 %v7009_v10, %v7009_v10  ;;  %v7755_v9 = vor.u32 %v8350_v0, %v7754_v3  ;;  %v853_v27 = vunpack.c.l.b16 %v9163_v12  ;;  %v7456_v8 = vld [vmem:[#allocation2 + $0x14] sm:$0xf0] }
 0x102   : > { %v1587_v48 = vunpack.c.l.b16 %v1526_v45  ;;  %v1588_v49 = vunpack.c.h.b16 %v1526_v45  ;;  %v1994_v55 = vpack.c.b16 %v1971_v41, %v1970_v22  ;;  %1172 = vst [vmem:[#allocation2 + $0x40] sm:$0xf] %v1108_v53  ;;  %v2039_v15 = vsel %vm495_vm0, %v1907_v6, %v2005_v4  ;;  %v7072_v45 = vld [vmem:[%s8681_s28 + $0x60] sm:$0xff]  ;;  %v7073_v53 = vld [vmem:[%s8681_s28 + $0x68] sm:$0xff]  ;;  %v6993_v6 = vld [vmem:[%s8681_s28 + $0x110] sm:$0xff] }
 0x103   : > { %v9189_v16 = vpack.c.bf16 %v7134_v35, %v7134_v35  ;;  %v9191_v17 = vpack.c.bf16 %v7135_v36, %v7135_v36  ;;  %v2100_v19 = vunpack.c.l.b16 %v2039_v15  ;;  %v2101_v52 = vunpack.c.h.b16 %v2039_v15  ;;  %v7462_v62 = vld [vmem:[#allocation2 + $0x8] sm:$0xf]  ;;  %v8276_v0 = vld [vmem:[#allocation2 + $0x18] sm:$0xf0] }
 0x104   : > { %5968 = vmatmul.bf16.gmra.mxu2 %v7895_v60  ;;  %v8390_v60 = vld [vmem:[#allocation2 + $0x3a8] sm:$0xf0]  ;;  %v1620_v38 = vpack.c.b16 %v1588_v49, %v1588_v49  ;;  %2018 = vrot.lane.b32.xlu0 %v1994_v55, %s8606_s29  ;;  %v970_v20 = vpack.c.b16 %v948_v11, %v947_v7  ;;  %v1365_v21 = vunpack.c.l.b16 %v1237_v13  ;;  %v1366_v26 = vunpack.c.l.b16 %v1238_v14  ;;  %v8273_v7 = vld [vmem:[#allocation2 + $0x4] sm:$0xf] }
 0x105   : > { %v7915_v59 = vor.u32 %v8390_v60, %v7914_v54  ;;  %v854_v28 = vunpack.c.l.b16 %v9165_v18  ;;  %2293 = vst.msk [vmem:[#allocation2 + $0x38] sm:$0xf] %vm2290_vm1, %v9189_v16  ;;  %v2132_v30 = vpack.c.b16 %v2100_v19, %v2100_v19  ;;  %v2133_v31 = vpack.c.b16 %v2101_v52, %v2101_v52  ;;  %v7053_v18 = vld [vmem:[%s8681_s28 + $0xe2] sm:$0xff] }
 0x106   : > { %5928 = vmatmul.bf16.gmra.mxu1 %v7735_v61  ;;  %v1619_v61 = vpack.c.b16 %v1587_v48, %v1587_v48  ;;  %1684 = vst [vmem:[#allocation2 + $0x44] sm:$0xf] %v1620_v38  ;;  %995 = vrot.lane.b32.xlu1 %v970_v20, %s8606_s29  ;;  %v1395_v33 = vpack.c.b16 %v1366_v26, %v1365_v21  ;;  %v2007_v14 = vpop.permute.xlu0 %2006  ;;  %v7011_v19 = vld [vmem:[%s8681_s28 + $0x69] sm:$0xff] }
 0x107   : > { %2294 = vst.msk [vmem:[#allocation2 + $0x4c] sm:$0xf] %vm2290_vm1, %v9191_v17  ;;  %v883_v22 = vpack.c.b16 %v854_v28, %v853_v27  ;;  %v1828_v12 = vpack.c.bf16 %v7118_v32, %v7118_v32  ;;  %v1313_v37 = vpack.c.bf16 %v7052_v34, %v7052_v34  ;;  %v1314_v39 = vpack.c.bf16 %v7053_v18, %v7053_v18 }
 0x108   : > { %1683 = vst [vmem:[#allocation2 + $0x30] sm:$0xf] %v1619_v61  ;;  %v7595_v41 = vor.u32 %v8310_v23, %v7594_v25  ;;  %v8075_v42 = vor.u32 %v8430_v29, %v8074_v24  ;;  %v1750_v57 = vpack.c.bf16 %v7072_v45, %v7072_v45  ;;  %v1751_v2 = vpack.c.bf16 %v7073_v53, %v7073_v53  ;;  %v7010_v25 = vld [vmem:[%s8681_s28 + $0x61] sm:$0xff]  ;;  %v7137_v24 = vld [vmem:[%s8681_s28 + $0x6a] sm:$0xff] }
 0x109   : > { %2196 = vst [vmem:[#allocation2 + $0x34] sm:$0xf] %v2132_v30  ;;  %v1457_v49 = vunpack.c.l.b16 %v1313_v37  ;;  %v1458_v51 = vunpack.c.l.b16 %v1314_v39  ;;  %v806_v13 = vpack.c.bf16 %v6993_v6, %v6993_v6  ;;  %v7463_v35 = vor.u32 %v8276_v0, %v7462_v62  ;;  %v7136_v23 = vld [vmem:[%s8681_s28 + $0x62] sm:$0xff] }
 0x10a   : > { %2197 = vst [vmem:[#allocation2 + $0x48] sm:$0xf] %v2133_v31  ;;  %v1878_v3 = vunpack.c.l.b16 %v1750_v57  ;;  %v1879_v10 = vunpack.c.l.b16 %v1751_v2  ;;  %v7459_v52 = vor.u32 %v8273_v7, %v7456_v8  ;;  %v1239_v20 = vpack.c.bf16 %v7010_v25, %v7010_v25  ;;  %v7075_v57 = vld [vmem:[%s8681_s28 + $0x80] sm:$0xff]  ;;  %v6995_v25 = vld [vmem:[%s8681_s28 + $0x128] sm:$0xff] }
 0x10b   : > { %v1481_v38 = vpack.c.b16 %v1458_v51, %v1457_v49  ;;  %v950_v15 = vunpack.c.l.b16 %v806_v13  ;;  %v1240_v21 = vpack.c.bf16 %v7011_v19, %v7011_v19  ;;  %v9217_v28 = vpack.c.bf16 %v7136_v23, %v7136_v23 }
 0x10c   : > { %6008 = vmatmul.bf16.gmra.mxu3 %v8055_v50  ;;  %v7119_v50 = vld [vmem:[%s8681_s28 + $0x111] sm:$0xff]  ;;  %v1908_v36 = vpack.c.b16 %v1879_v10, %v1878_v3  ;;  %v9219_v29 = vpack.c.bf16 %v7137_v24, %v7137_v24  ;;  %v855_v34 = vunpack.c.l.b16 %v9189_v16  ;;  %v856_v18 = vunpack.c.l.b16 %v9191_v17 }
 0x10d   : > { %v1829_v40 = vpack.c.bf16 %v7119_v50, %v7119_v50  ;;  %1505 = vrot.lane.b32.xlu2 %v1481_v38, %s8606_s29  ;;  %v1367_v50 = vunpack.c.l.b16 %v1239_v20  ;;  %2295 = vst.msk [vmem:[#allocation2 + $0x60] sm:$0xf] %vm2290_vm1, %v9217_v28  ;;  %v7054_v17 = vld [vmem:[%s8681_s28 + $0xf2] sm:$0xff]  ;;  %v1753_v0 = vpack.c.bf16 %v7075_v57, %v7075_v57  ;;  %v857_v57 = vunpack.c.l.b16 %v9217_v28 }
 0x10e   : > { %5888 = vmatmul.bf16.gmra.mxu0 %v7575_v44  ;;  %v1972_v44 = vunpack.c.l.b16 %v1828_v12  ;;  %v2042_v26 = vsel %vm495_vm0, %v1908_v36, %v2007_v14  ;;  %v7464_v12 = vld [vmem:[#allocation2 + $0x1c] sm:$0xf0]  ;;  %2296 = vst.msk [vmem:[#allocation2 + $0x74] sm:$0xf] %vm2290_vm1, %v9219_v29  ;;  %v884_v16 = vpack.c.b16 %v856_v18, %v855_v34  ;;  %v1315_v49 = vpack.c.bf16 %v7054_v17, %v7054_v17  ;;  %v8281_v14 = vld [vmem:[#allocation2 + $0x40] sm:$0xf0] }
 0x10f   : > { %v1973_v48 = vunpack.c.l.b16 %v1829_v40  ;;  %v2102_v31 = vunpack.c.l.b16 %v2042_v26  ;;  %v2103_v32 = vunpack.c.h.b16 %v2042_v26  ;;  %v7470_v40 = vld [vmem:[#allocation2 + $0x10] sm:$0xf]  ;;  %v8278_v26 = vld [vmem:[#allocation2 + $0x2c] sm:$0xf] }
 0x110   : > { %v982_v47 = vpop.permute.xlu1 %981  ;;  %v1459_v38 = vunpack.c.l.b16 %v1315_v49  ;;  %v7482_v10 = vld [vmem:[#allocation2 + $0x30] sm:$0xf]  ;;  %v9268_v17 = vld [vmem:[#allocation2 + $0x48] sm:$0xf0] }
 0x111   : > { %v1017_v56 = vsel %vm495_vm0, %v883_v22, %v982_v47  ;;  %v1995_v61 = vpack.c.b16 %v1973_v48, %v1972_v44  ;;  %v8274_v22 = vld [vmem:[#allocation2 + $0xc] sm:$0xf]  ;;  %v2134_v37 = vpack.c.b16 %v2102_v31, %v2102_v31  ;;  %v2135_v39 = vpack.c.b16 %v2103_v32, %v2103_v32  ;;  %v7055_v47 = vld [vmem:[%s8681_s28 + $0xfa] sm:$0xff] }
 0x112   : > { %v1077_v58 = vunpack.c.l.b16 %v1017_v56  ;;  %v1078_v60 = vunpack.c.h.b16 %v1017_v56  ;;  %v1316_v51 = vpack.c.bf16 %v7055_v47, %v7055_v47  ;;  %v7467_v53 = vor.u32 %v8274_v22, %v7464_v12  ;;  %v7074_v56 = vld [vmem:[%s8681_s28 + $0x78] sm:$0xff]  ;;  %v7013_v22 = vld [vmem:[%s8681_s28 + $0x81] sm:$0xff] }
 0x113   : > { %2020 = vrot.lane.b32.xlu0 %v1995_v61, %s8606_s29  ;;  %2198 = vst [vmem:[#allocation2 + $0x5c] sm:$0xf] %v2134_v37  ;;  %v7483_v31 = vor.u32 %v8281_v14, %v7482_v10  ;;  %v7138_v37 = vld [vmem:[%s8681_s28 + $0x7a] sm:$0xff] }
 0x114   : > { %5973 = vmatmul.bf16.gmra.mxu2 %v7915_v59  ;;  %v1494_v43 = vpop.permute.xlu2 %1493  ;;  %v1109_v4 = vpack.c.b16 %v1077_v58, %v1077_v58  ;;  %v1110_v5 = vpack.c.b16 %v1078_v60, %v1078_v60  ;;  %v6992_v59 = vld [vmem:[%s8681_s28 + $0x108] sm:$0xff]  ;;  %2199 = vst [vmem:[#allocation2 + $0x70] sm:$0xf] %v2135_v39  ;;  %v1460_v62 = vunpack.c.l.b16 %v1316_v51 }
 0x115   : > { %v1529_v46 = vsel %vm495_vm0, %v1395_v33, %v1494_v43  ;;  %v805_v11 = vpack.c.bf16 %v6992_v59, %v6992_v59  ;;  %v1368_v33 = vunpack.c.l.b16 %v1240_v21  ;;  %v8277_v43 = vld [vmem:[#allocation2 + $0x20] sm:$0xf0]  ;;  %v808_v21 = vpack.c.bf16 %v6995_v25, %v6995_v25 }
 0x116   : > { %5933 = vmatmul.bf16.gmra.mxu1 %v7755_v9  ;;  %v1589_v54 = vunpack.c.l.b16 %v1529_v46  ;;  %v1590_v55 = vunpack.c.h.b16 %v1529_v46  ;;  %1173 = vst [vmem:[#allocation2 + $0x54] sm:$0xf] %v1109_v4  ;;  %v7471_v58 = vor.u32 %v8277_v43, %v7470_v40  ;;  %v1242_v40 = vpack.c.bf16 %v7013_v22, %v7013_v22  ;;  %v7139_v39 = vld [vmem:[%s8681_s28 + $0x82] sm:$0xff] }
 0x117   : > { %v949_v9 = vunpack.c.l.b16 %v805_v11  ;;  %1174 = vst [vmem:[#allocation2 + $0x68] sm:$0xf] %v1110_v5  ;;  %v1396_v44 = vpack.c.b16 %v1368_v33, %v1367_v50  ;;  %v1482_v11 = vpack.c.b16 %v1460_v62, %v1459_v38  ;;  %v7012_v33 = vld [vmem:[%s8681_s28 + $0x79] sm:$0xff]  ;;  %v952_v34 = vunpack.c.l.b16 %v808_v21  ;;  %v7123_v62 = vld [vmem:[%s8681_s28 + $0x141] sm:$0xff] }
 0x118   : > { %v1621_v63 = vpack.c.b16 %v1589_v54, %v1589_v54  ;;  %v1622_v1 = vpack.c.b16 %v1590_v55, %v1590_v55  ;;  %v1241_v18 = vpack.c.bf16 %v7012_v33, %v7012_v33  ;;  %v9258_v43 = vpack.c.bf16 %v7138_v37, %v7138_v37  ;;  %v7122_v38 = vld [vmem:[%s8681_s28 + $0x139] sm:$0xff] }
 0x119   : > { %v971_v27 = vpack.c.b16 %v950_v15, %v949_v9  ;;  %v6994_v15 = vld [vmem:[%s8681_s28 + $0x120] sm:$0xff]  ;;  %1507 = vrot.lane.b32.xlu2 %v1482_v11, %s8606_s29  ;;  %v1833_v28 = vpack.c.bf16 %v7123_v62, %v7123_v62 }
 0x11a   : > { %1685 = vst [vmem:[#allocation2 + $0x58] sm:$0xf] %v1621_v63  ;;  %v1752_v63 = vpack.c.bf16 %v7074_v56, %v7074_v56  ;;  %v807_v20 = vpack.c.bf16 %v6994_v15, %v6994_v15  ;;  %v1370_v56 = vunpack.c.l.b16 %v1242_v40 }
 0x11b   : > { %1686 = vst [vmem:[#allocation2 + $0x6c] sm:$0xf] %v1622_v1  ;;  %997 = vrot.lane.b32.xlu1 %v971_v27, %s8606_s29  ;;  %v7476_v27 = vld [vmem:[#allocation2 + $0x3c] sm:$0xf0]  ;;  %v1977_v15 = vunpack.c.l.b16 %v1833_v28  ;;  %v7140_v28 = vld [vmem:[%s8681_s28 + $0x92] sm:$0xff] }
 0x11c   : > { %6013 = vmatmul.bf16.gmra.mxu3 %v8075_v42  ;;  %v7121_v42 = vld [vmem:[%s8681_s28 + $0x129] sm:$0xff]  ;;  %v1880_v13 = vunpack.c.l.b16 %v1752_v63  ;;  %v951_v12 = vunpack.c.l.b16 %v807_v20  ;;  %2297 = vst.msk [vmem:[#allocation2 + $0x88] sm:$0xf] %vm2290_vm1, %v9258_v43 }
 0x11d   : > { %v1831_v46 = vpack.c.bf16 %v7121_v42, %v7121_v42  ;;  %v7056_v63 = vld [vmem:[%s8681_s28 + $0x10a] sm:$0xff] }
 0x11e   : > { %5893 = vmatmul.bf16.gmra.mxu0 %v7595_v41  ;;  %v7120_v41 = vld [vmem:[%s8681_s28 + $0x121] sm:$0xff]  ;;  %v972_v51 = vpack.c.b16 %v952_v34, %v951_v12 }
 0x11f   : > { %v1830_v45 = vpack.c.bf16 %v7120_v41, %v7120_v41  ;;  %v1975_v55 = vunpack.c.l.b16 %v1831_v46  ;;  %v984_v61 = vpop.permute.xlu1 %983  ;;  %v7479_v41 = vor.u32 %v8278_v26, %v7476_v27  ;;  %v9266_v46 = vld [vmem:[#allocation2 + $0x38] sm:$0xf] }
 0x120   : > { %v1020_v2 = vsel %vm495_vm0, %v884_v16, %v984_v61  ;;  %v858_v61 = vunpack.c.l.b16 %v9219_v29  ;;  %v7491_v10 = vor.u32 %v9268_v17, %v9266_v46  ;;  %v7077_v26 = vld [vmem:[%s8681_s28 + $0x98] sm:$0xff]  ;;  %v6997_v46 = vld [vmem:[%s8681_s28 + $0x140] sm:$0xff] }
 0x121   : > { %v1974_v54 = vunpack.c.l.b16 %v1830_v45  ;;  %v1079_v7 = vunpack.c.l.b16 %v1020_v2  ;;  %v1080_v8 = vunpack.c.h.b16 %v1020_v2  ;;  %v1832_v2 = vpack.c.bf16 %v7122_v38, %v7122_v38  ;;  %v7502_v22 = vld [vmem:[#allocation2 + $0x58] sm:$0xf] }
 0x122   : > { %v7015_v38 = vld [vmem:[%s8681_s28 + $0x99] sm:$0xff] }
 0x123   : > { %v9221_v30 = vpop.f32.mrf.mxu1  ;;  %v1996_v3 = vpack.c.b16 %v1975_v55, %v1974_v54  ;;  %v1111_v9 = vpack.c.b16 %v1079_v7, %v1079_v7  ;;  %v1112_v19 = vpack.c.b16 %v1080_v8, %v1080_v8  ;;  %v8279_v54 = vld [vmem:[#allocation2 + $0x34] sm:$0xf]  ;;  %v7484_v55 = vld [vmem:[#allocation2 + $0x44] sm:$0xf0]  ;;  %999 = vrot.lane.b32.xlu1 %v972_v51, %s8606_s29  ;;  %v885_v7 = vpack.c.b16 %v858_v61, %v857_v57 }
 0x124   : > { %6196 = vmatmul.bf16.vlgmr.msrb.gmra.mxu2 %v7463_v35  ;;  %v7487_v8 = vor.u32 %v8279_v54, %v7484_v55  ;;  %v1976_v14 = vunpack.c.l.b16 %v1832_v2  ;;  %v8283_v54 = vld [vmem:[#allocation2 + $0x54] sm:$0xf]  ;;  %v7496_v55 = vld [vmem:[#allocation2 + $0x64] sm:$0xf0]  ;;  %v1244_v2 = vpack.c.bf16 %v7015_v38, %v7015_v38 }
 0x125   : > { %2022 = vrot.lane.b32.xlu0 %v1996_v3, %s8606_s29  ;;  %1175 = vst [vmem:[#allocation2 + $0x7c] sm:$0xf] %v1111_v9  ;;  %v7057_v3 = vld [vmem:[%s8681_s28 + $0x112] sm:$0xff] }
 0x126   : > { %6027 = vmatmul.bf16.vlgmr.msrb.gmra.mxu1 %v7459_v52  ;;  %v1881_v52 = vunpack.c.l.b16 %v1753_v0  ;;  %1176 = vst [vmem:[#allocation2 + $0x90] sm:$0xf] %v1112_v19  ;;  %v1317_v0 = vpack.c.bf16 %v7056_v63, %v7056_v63  ;;  %v1318_v29 = vpack.c.bf16 %v7057_v3, %v7057_v3  ;;  %v7014_v61 = vld [vmem:[%s8681_s28 + $0x91] sm:$0xff]  ;;  %v7141_v3 = vld [vmem:[%s8681_s28 + $0x9a] sm:$0xff] }
 0x127   : > { %v9234_v48 = vpop.f32.mrf.mxu2  ;;  %v1496_v60 = vpop.permute.xlu2 %1495 }
 0x128   : > { %10547 = vst [vmem:[#allocation6_spill] sm:$0xff] %v9234_v48  ;;  %v1532_v1 = vsel %vm495_vm0, %v1396_v44, %v1496_v60  ;;  %v1909_v32 = vpack.c.b16 %v1881_v52, %v1880_v13  ;;  %v2009_v50 = vpop.permute.xlu0 %2008  ;;  %v9260_v44 = vpack.c.bf16 %v7139_v39, %v7139_v39  ;;  %v1461_v25 = vunpack.c.l.b16 %v1317_v0  ;;  %v7266_v48 = vld [vmem:[%s8681_s28 + $0x210] sm:$0xff] }
 0x129   : > { %v1591_v59 = vunpack.c.l.b16 %v1532_v1  ;;  %v1592_v6 = vunpack.c.h.b16 %v1532_v1  ;;  %v7499_v0 = vor.u32 %v8283_v54, %v7496_v55  ;;  %v7079_v54 = vld [vmem:[%s8681_s28 + $0xb0] sm:$0xff] }
 0x12a   : > { %v2045_v42 = vsel %vm495_vm0, %v1909_v32, %v2009_v50  ;;  %2298 = vst.msk [vmem:[#allocation2 + $0x9c] sm:$0xf] %vm2290_vm1, %v9260_v44  ;;  %v1997_v32 = vpack.c.b16 %v1977_v15, %v1976_v14  ;;  %v1462_v50 = vunpack.c.l.b16 %v1318_v29  ;;  %v9310_v29 = vpack.c.bf16 %v7141_v3, %v7141_v3 }
 0x12b   : > { %v9240_v4 = vpop.f32.mrf.mxu0  ;;  %v9242_v5 = vpop.f32.mrf.mxu1  ;;  %v1623_v35 = vpack.c.b16 %v1591_v59, %v1591_v59  ;;  %v1624_v36 = vpack.c.b16 %v1592_v6, %v1592_v6  ;;  %v2104_v47 = vunpack.c.l.b16 %v2045_v42  ;;  %v2105_v49 = vunpack.c.h.b16 %v2045_v42  ;;  %v6996_v42 = vld [vmem:[%s8681_s28 + $0x138] sm:$0xff] }
 0x12c   : > { %6365 = vmatmul.bf16.vlgmr.msrb.gmra.mxu3 %v7467_v53  ;;  %v1369_v53 = vunpack.c.l.b16 %v1241_v18  ;;  %v8286_v18 = vld [vmem:[#allocation2 + $0x68] sm:$0xf0]  ;;  %v1483_v39 = vpack.c.b16 %v1462_v50, %v1461_v25  ;;  %v7504_v25 = vld [vmem:[#allocation2 + $0x6c] sm:$0xf0]  ;;  %2300 = vst.msk [vmem:[#allocation2 + $0xc4] sm:$0xf] %vm2290_vm1, %v9310_v29 }
 0x12d   : > { %1687 = vst [vmem:[#allocation2 + $0x80] sm:$0xf] %v1623_v35  ;;  %v2137_v60 = vpack.c.b16 %v2105_v49, %v2105_v49  ;;  %v7076_v35 = vld [vmem:[%s8681_s28 + $0x90] sm:$0xff]  ;;  %2024 = vrot.lane.b32.xlu0 %v1997_v32, %s8606_s29  ;;  %v810_v49 = vpack.c.bf16 %v6997_v46, %v6997_v46  ;;  %v7503_v57 = vor.u32 %v8286_v18, %v7502_v22  ;;  %v7125_v32 = vld [vmem:[%s8681_s28 + $0x159] sm:$0xff] }
 0x12e   : > { %8236 = vmatmul.msk.bf16.vlgmr.msrb.gmra.mxu0 %vm495_vm0, %v7471_v58  ;;  %1688 = vst [vmem:[#allocation2 + $0x94] sm:$0xf] %v1624_v36  ;;  %v2136_v58 = vpack.c.b16 %v2104_v47, %v2104_v47  ;;  %v1397_v1 = vpack.c.b16 %v1370_v56, %v1369_v53  ;;  %v1754_v33 = vpack.c.bf16 %v7076_v35, %v7076_v35  ;;  %v8284_v35 = vld [vmem:[#allocation2 + $0x5c] sm:$0xf]  ;;  %v7059_v18 = vld [vmem:[%s8681_s28 + $0x12a] sm:$0xff] }
 0x12f   : > { %v9249_v23 = vpop.f32.mrf.mxu2  ;;  %v9251_v24 = vpop.f32.mrf.mxu3  ;;  %2201 = vst [vmem:[#allocation2 + $0x98] sm:$0xf] %v2137_v60  ;;  %v809_v47 = vpack.c.bf16 %v6996_v42, %v6996_v42  ;;  %1509 = vrot.lane.b32.xlu2 %v1483_v39, %s8606_s29  ;;  %v954_v63 = vunpack.c.l.b16 %v810_v49  ;;  %v1320_v39 = vpack.c.bf16 %v7059_v18, %v7059_v18  ;;  %v7078_v49 = vld [vmem:[%s8681_s28 + $0xa8] sm:$0xff] }
 0x130   : > { %10548 = vst [vmem:[#allocation7_spill] sm:$0xff] %v9249_v23  ;;  %v1882_v17 = vunpack.c.l.b16 %v1754_v33 }
 0x131   : > { %10549 = vst [vmem:[#allocation8_spill] sm:$0xff] %v9251_v24  ;;  %v953_v60 = vunpack.c.l.b16 %v809_v47 }
 0x132   : > { %2200 = vst [vmem:[#allocation2 + $0x84] sm:$0xf] %v2136_v58 }
 0x133   : > { %v9262_v16 = vpop.f32.mrf.mxu0  ;;  %v9264_v45 = vpop.f32.mrf.mxu1  ;;  %v973_v14 = vpack.c.b16 %v954_v63, %v953_v60 }
 0x134   : > { %6201 = vmatmul.bf16.gmra.mxu2 %v7483_v31  ;;  %v1498_v11 = vpop.permute.xlu2 %1497  ;;  %v986_v13 = vpop.permute.xlu1 %985  ;;  %v7522_v3 = vld [vmem:[#allocation2 + $0x80] sm:$0xf] }
 0x135   : > { %v1535_v36 = vsel %vm495_vm0, %v1397_v1, %v1498_v11  ;;  %v1023_v9 = vsel %vm495_vm0, %v885_v7, %v986_v13  ;;  %v1243_v1 = vpack.c.bf16 %v7014_v61, %v7014_v61  ;;  %v9308_v7 = vpack.c.bf16 %v7140_v28, %v7140_v28  ;;  %v9316_v11 = vld [vmem:[#allocation2 + $0x60] sm:$0xf]  ;;  %1001 = vrot.lane.b32.xlu1 %v973_v14, %s8606_s29  ;;  %v8291_v14 = vld [vmem:[#allocation2 + $0x90] sm:$0xf0] }
 0x136   : > { %6032 = vmatmul.bf16.gmra.mxu1 %v7479_v41  ;;  %v1593_v19 = vunpack.c.l.b16 %v1535_v36  ;;  %v1594_v52 = vunpack.c.h.b16 %v1535_v36  ;;  %v1081_v20 = vunpack.c.l.b16 %v1023_v9  ;;  %v1082_v21 = vunpack.c.h.b16 %v1023_v9  ;;  %v8287_v36 = vld [vmem:[#allocation2 + $0x70] sm:$0xf0] }
 0x137   : > { %v9281_v59 = vpop.f32.mrf.mxu2  ;;  %v9283_v6 = vpop.f32.mrf.mxu3  ;;  %v1755_v41 = vpack.c.bf16 %v7077_v26, %v7077_v26  ;;  %2299 = vst.msk [vmem:[#allocation2 + $0xb0] sm:$0xf] %vm2290_vm1, %v9308_v7  ;;  %v7124_v26 = vld [vmem:[%s8681_s28 + $0x151] sm:$0xff]  ;;  %v7511_v42 = vor.u32 %v8287_v36, %v9316_v11  ;;  %v1757_v28 = vpack.c.bf16 %v7079_v54, %v7079_v54 }
 0x138   : > { %10550 = vst [vmem:[#allocation9_spill] sm:$0xff] %v9281_v59  ;;  %v1625_v12 = vpack.c.b16 %v1593_v19, %v1593_v19  ;;  %v1626_v34 = vpack.c.b16 %v1594_v52, %v1594_v52  ;;  %v1113_v40 = vpack.c.b16 %v1081_v20, %v1081_v20  ;;  %v1114_v37 = vpack.c.b16 %v1082_v21, %v1082_v21 }
 0x139   : > { %10551 = vst [vmem:[#allocation10_spill] sm:$0xff] %v9283_v6  ;;  %v1883_v56 = vunpack.c.l.b16 %v1755_v41  ;;  %v1371_v19 = vunpack.c.l.b16 %v1243_v1  ;;  %v1372_v52 = vunpack.c.l.b16 %v1244_v2  ;;  %v859_v20 = vunpack.c.l.b16 %v9258_v43 }
 0x13a   : > { %1689 = vst [vmem:[#allocation2 + $0xa8] sm:$0xf] %v1625_v12  ;;  %v860_v21 = vunpack.c.l.b16 %v9260_v44  ;;  %v1834_v22 = vpack.c.bf16 %v7124_v26, %v7124_v26  ;;  %v1835_v12 = vpack.c.bf16 %v7125_v32, %v7125_v32  ;;  %v7507_v41 = vor.u32 %v8284_v35, %v7504_v25  ;;  %v6999_v25 = vld [vmem:[%s8681_s28 + $0x158] sm:$0xff] }
 0x13b   : > { %v9291_v27 = vpop.f32.mrf.mxu0  ;;  %v9293_v31 = vpop.f32.mrf.mxu1  ;;  %1690 = vst [vmem:[#allocation2 + $0xbc] sm:$0xf] %v1626_v34  ;;  %v1910_v62 = vpack.c.b16 %v1883_v56, %v1882_v17  ;;  %v7058_v34 = vld [vmem:[%s8681_s28 + $0x122] sm:$0xff]  ;;  %v1398_v55 = vpack.c.b16 %v1372_v52, %v1371_v19  ;;  %v8288_v19 = vld [vmem:[#allocation2 + $0x7c] sm:$0xf]  ;;  %v812_v32 = vpack.c.bf16 %v6999_v25, %v6999_v25 }
 0x13c   : > { %6370 = vmatmul.bf16.gmra.mxu3 %v7487_v8  ;;  %1177 = vst [vmem:[#allocation2 + $0xa4] sm:$0xf] %v1113_v40  ;;  %v886_v43 = vpack.c.b16 %v860_v21, %v859_v20  ;;  %v1319_v44 = vpack.c.bf16 %v7058_v34, %v7058_v34  ;;  %v1978_v17 = vunpack.c.l.b16 %v1834_v22  ;;  %v1979_v47 = vunpack.c.l.b16 %v1835_v12  ;;  %v7516_v52 = vld [vmem:[#allocation2 + $0x8c] sm:$0xf0] }
 0x13d   : > { %v2011_v58 = vpop.permute.xlu0 %2010  ;;  %1178 = vst [vmem:[#allocation2 + $0xb8] sm:$0xf] %v1114_v37  ;;  %v7523_v12 = vor.u32 %v8291_v14, %v7522_v3 }
 0x13e   : > { %8237 = vmatmul.msk.bf16.gmra.mxu0 %vm495_vm0, %v7491_v10  ;;  %v2048_v13 = vsel %vm495_vm0, %v1910_v62, %v2011_v58  ;;  %v1464_v58 = vunpack.c.l.b16 %v1320_v39  ;;  %v1998_v38 = vpack.c.b16 %v1979_v47, %v1978_v17  ;;  %v1756_v62 = vpack.c.bf16 %v7078_v49, %v7078_v49  ;;  %v7017_v39 = vld [vmem:[%s8681_s28 + $0xb1] sm:$0xff] }
 0x13f   : > { %v9299_v51 = vpop.f32.mrf.mxu2  ;;  %v9301_v53 = vpop.f32.mrf.mxu3  ;;  %v2106_v9 = vunpack.c.l.b16 %v2048_v13  ;;  %v2107_v15 = vunpack.c.h.b16 %v2048_v13  ;;  %v956_v17 = vunpack.c.l.b16 %v812_v32  ;;  %v7142_v47 = vld [vmem:[%s8681_s28 + $0xaa] sm:$0xff]  ;;  %v8292_v32 = vld [vmem:[#allocation2 + $0x98] sm:$0xf0] }
 0x140   : > { %10552 = vst [vmem:[#allocation11_spill] sm:$0xff] %v9299_v51  ;;  %2026 = vrot.lane.b32.xlu0 %v1998_v38, %s8606_s29  ;;  %v1884_v36 = vunpack.c.l.b16 %v1756_v62  ;;  %v861_v38 = vunpack.c.l.b16 %v9308_v7  ;;  %v862_v62 = vunpack.c.l.b16 %v9310_v29  ;;  %v7090_v51 = vld [vmem:[%s8681_s28 + $0x138] sm:$0xff] }
 0x141   : > { %10553 = vst [vmem:[#allocation12_spill] sm:$0xff] %v9301_v53  ;;  %v2138_v50 = vpack.c.b16 %v2106_v9, %v2106_v9  ;;  %v2139_v33 = vpack.c.b16 %v2107_v15, %v2107_v15  ;;  %v1885_v9 = vunpack.c.l.b16 %v1757_v28  ;;  %v6998_v15 = vld [vmem:[%s8681_s28 + $0x150] sm:$0xff]  ;;  %v8289_v28 = vld [vmem:[#allocation2 + $0x84] sm:$0xf]  ;;  %v1768_v23 = vpack.c.bf16 %v7090_v51, %v7090_v51 }
 0x142   : > { %v988_v46 = vpop.permute.xlu1 %987  ;;  %v811_v26 = vpack.c.bf16 %v6998_v15, %v6998_v15  ;;  %v2939_v51 = vpack.c.bf16 %v7266_v48, %v7266_v48 }
 0x143   : > { %v9312_v8 = vpop.f32.mrf.mxu0  ;;  %v9314_v10 = vpop.f32.mrf.mxu1  ;;  %2202 = vst [vmem:[#allocation2 + $0xac] sm:$0xf] %v2138_v50  ;;  %v1026_v56 = vsel %vm495_vm0, %v886_v43, %v988_v46  ;;  %v1911_v22 = vpack.c.b16 %v1885_v9, %v1884_v36  ;;  %v7126_v36 = vld [vmem:[%s8681_s28 + $0x169] sm:$0xff]  ;;  %v7127_v9 = vld [vmem:[%s8681_s28 + $0x171] sm:$0xff] }
 0x144   : > { %6206 = vmatmul.bf16.gmra.mxu2 %v7503_v57  ;;  %2203 = vst [vmem:[#allocation2 + $0xc0] sm:$0xf] %v2139_v33  ;;  %v1463_v57 = vunpack.c.l.b16 %v1319_v44  ;;  %v1083_v60 = vunpack.c.l.b16 %v1026_v56  ;;  %v1084_v61 = vunpack.c.h.b16 %v1026_v56  ;;  %v7016_v44 = vld [vmem:[%s8681_s28 + $0xa9] sm:$0xff]  ;;  %v955_v46 = vunpack.c.l.b16 %v811_v26 }
 0x145   : > { %v1246_v56 = vpack.c.bf16 %v7017_v39, %v7017_v39  ;;  %v1836_v29 = vpack.c.bf16 %v7126_v36, %v7126_v36  ;;  %v1837_v25 = vpack.c.bf16 %v7127_v9, %v7127_v9  ;;  %v7530_v26 = vld [vmem:[#allocation2 + $0x88] sm:$0xf] }
 0x146   : > { %6037 = vmatmul.bf16.gmra.mxu1 %v7499_v0  ;;  %v1484_v2 = vpack.c.b16 %v1464_v58, %v1463_v57  ;;  %v1500_v0 = vpop.permute.xlu2 %1499  ;;  %v1115_v11 = vpack.c.b16 %v1083_v60, %v1083_v60  ;;  %v1116_v13 = vpack.c.b16 %v1084_v61, %v1084_v61  ;;  %v7143_v57 = vld [vmem:[%s8681_s28 + $0xb2] sm:$0xff]  ;;  %v974_v61 = vpack.c.b16 %v956_v17, %v955_v46 }
 0x147   : > { %v9330_v40 = vpop.f32.mrf.mxu2  ;;  %v9332_v37 = vpop.f32.mrf.mxu3  ;;  %v1538_v35 = vsel %vm495_vm0, %v1398_v55, %v1500_v0  ;;  %v1245_v55 = vpack.c.bf16 %v7016_v44, %v7016_v44  ;;  %v1374_v14 = vunpack.c.l.b16 %v1246_v56  ;;  %v9368_v15 = vpack.c.bf16 %v7143_v57, %v7143_v57  ;;  %v7080_v56 = vld [vmem:[%s8681_s28 + $0xc0] sm:$0xff]  ;;  %v7081_v57 = vld [vmem:[%s8681_s28 + $0xc8] sm:$0xff] }
 0x148   : > { %10554 = vst [vmem:[#allocation13_spill] sm:$0xff] %v9330_v40  ;;  %1511 = vrot.lane.b32.xlu2 %v1484_v2, %s8606_s29  ;;  %v1595_v20 = vunpack.c.l.b16 %v1538_v35  ;;  %v1596_v21 = vunpack.c.h.b16 %v1538_v35  ;;  %v9363_v2 = vpack.c.bf16 %v7142_v47, %v7142_v47  ;;  %1003 = vrot.lane.b32.xlu1 %v974_v61, %s8606_s29  ;;  %v887_v35 = vpack.c.b16 %v862_v62, %v861_v38 }
 0x149   : > { %10555 = vst [vmem:[#allocation14_spill] sm:$0xff] %v9332_v37  ;;  %v1981_v46 = vunpack.c.l.b16 %v1837_v25  ;;  %v7531_v47 = vor.u32 %v8292_v32, %v7530_v26  ;;  %v1758_v9 = vpack.c.bf16 %v7080_v56, %v7080_v56  ;;  %v7001_v25 = vld [vmem:[%s8681_s28 + $0x170] sm:$0xff] }
 0x14a   : > { %1179 = vst [vmem:[#allocation2 + $0xcc] sm:$0xf] %v1115_v11  ;;  %v1627_v34 = vpack.c.b16 %v1595_v20, %v1595_v20  ;;  %v1628_v18 = vpack.c.b16 %v1596_v21, %v1596_v21  ;;  %v2013_v43 = vpop.permute.xlu0 %2012  ;;  %v7524_v11 = vld [vmem:[#allocation2 + $0x94] sm:$0xf0] }
 0x14b   : > { %v9338_v63 = vpop.f32.mrf.mxu0  ;;  %v9340_v1 = vpop.f32.mrf.mxu1  ;;  %1180 = vst [vmem:[#allocation2 + $0xe0] sm:$0xf] %v1116_v13  ;;  %v1373_v13 = vunpack.c.l.b16 %v1245_v55 }
 0x14c   : > { %6375 = vmatmul.bf16.gmra.mxu3 %v7507_v41  ;;  %v7519_v41 = vor.u32 %v8288_v19, %v7516_v52  ;;  %1691 = vst [vmem:[#allocation2 + $0xd0] sm:$0xf] %v1627_v34  ;;  %v7060_v19 = vld [vmem:[%s8681_s28 + $0x13a] sm:$0xff]  ;;  %v7061_v52 = vld [vmem:[%s8681_s28 + $0x142] sm:$0xff] }
 0x14d   : > { %1692 = vst [vmem:[#allocation2 + $0xe4] sm:$0xf] %v1628_v18  ;;  %v1321_v34 = vpack.c.bf16 %v7060_v19, %v7060_v19  ;;  %v7527_v18 = vor.u32 %v8289_v28, %v7524_v11  ;;  %v1322_v17 = vpack.c.bf16 %v7061_v52, %v7061_v52  ;;  %v814_v52 = vpack.c.bf16 %v7001_v25, %v7001_v25  ;;  %v7544_v25 = vld [vmem:[#allocation2 + $0xbc] sm:$0xf0] }
 0x14e   : > { %8238 = vmatmul.msk.bf16.gmra.mxu0 %vm495_vm0, %v7511_v42  ;;  %v2051_v42 = vsel %vm495_vm0, %v1911_v22, %v2013_v43  ;;  %2301 = vst.msk [vmem:[#allocation2 + $0xd8] sm:$0xf] %vm2290_vm1, %v9363_v2  ;;  %v1399_v22 = vpack.c.b16 %v1374_v14, %v1373_v13 }
 0x14f   : > { %v9348_v50 = vpop.f32.mrf.mxu2  ;;  %v9350_v33 = vpop.f32.mrf.mxu3  ;;  %v2108_v49 = vunpack.c.l.b16 %v2051_v42  ;;  %v2109_v54 = vunpack.c.h.b16 %v2051_v42  ;;  %2302 = vst.msk [vmem:[#allocation2 + $0xec] sm:$0xf] %vm2290_vm1, %v9368_v15  ;;  %v1980_v42 = vunpack.c.l.b16 %v1836_v29  ;;  %v1465_v28 = vunpack.c.l.b16 %v1321_v34  ;;  %v7000_v29 = vld [vmem:[%s8681_s28 + $0x168] sm:$0xff] }
 0x150   : > { %10556 = vst [vmem:[#allocation15_spill] sm:$0xff] %v9348_v50  ;;  %v990_v7 = vpop.permute.xlu1 %989  ;;  %v1502_v43 = vpop.permute.xlu2 %1501  ;;  %v813_v19 = vpack.c.bf16 %v7000_v29, %v7000_v29  ;;  %v1886_v34 = vunpack.c.l.b16 %v1758_v9  ;;  %v8297_v9 = vld [vmem:[#allocation2 + $0xc0] sm:$0xf0] }
 0x151   : > { %10557 = vst [vmem:[#allocation16_spill] sm:$0xff] %v9350_v33  ;;  %v2140_v3 = vpack.c.b16 %v2108_v49, %v2108_v49  ;;  %v2141_v0 = vpack.c.b16 %v2109_v54, %v2109_v54  ;;  %v1999_v62 = vpack.c.b16 %v1981_v46, %v1980_v42  ;;  %v7019_v42 = vld [vmem:[%s8681_s28 + $0xc9] sm:$0xff] }
 0x153   : > { %v9357_v58 = vpop.f32.mrf.mxu0  ;;  %v9359_v60 = vpop.f32.mrf.mxu1  ;;  %2204 = vst [vmem:[#allocation2 + $0xd4] sm:$0xf] %v2140_v3  ;;  %v1466_v3 = vunpack.c.l.b16 %v1322_v17  ;;  %2028 = vrot.lane.b32.xlu0 %v1999_v62, %s8606_s29  ;;  %v958_v17 = vunpack.c.l.b16 %v814_v52  ;;  %v863_v52 = vunpack.c.l.b16 %v9363_v2 }
 0x154   : > { %6211 = vmatmul.bf16.gmra.mxu2 %v7523_v12  ;;  %2205 = vst [vmem:[#allocation2 + $0xe8] sm:$0xf] %v2141_v0  ;;  %v1029_v12 = vsel %vm495_vm0, %v887_v35, %v990_v7  ;;  %v7542_v0 = vld [vmem:[#allocation2 + $0xa8] sm:$0xf]  ;;  %v8296_v35 = vld [vmem:[#allocation2 + $0xb8] sm:$0xf0]  ;;  %v1759_v7 = vpack.c.bf16 %v7081_v57, %v7081_v57 }
 0x155   : > { %v1085_v44 = vunpack.c.l.b16 %v1029_v12  ;;  %v1086_v39 = vunpack.c.h.b16 %v1029_v12  ;;  %v1485_v36 = vpack.c.b16 %v1466_v3, %v1465_v28  ;;  %v7536_v12 = vld [vmem:[#allocation2 + $0xb4] sm:$0xf0] }
 0x156   : > { %6042 = vmatmul.bf16.gmra.mxu1 %v7519_v41  ;;  %v1541_v41 = vsel %vm495_vm0, %v1399_v22, %v1502_v43  ;;  %v8293_v22 = vld [vmem:[#allocation2 + $0xa4] sm:$0xf]  ;;  %v7543_v43 = vor.u32 %v8296_v35, %v7542_v0  ;;  %v9409_v0 = vld [vmem:[#allocation2 + $0xb0] sm:$0xf] }
 0x157   : > { %v9374_v20 = vpop.f32.mrf.mxu2  ;;  %v9376_v21 = vpop.f32.mrf.mxu3  ;;  %v1597_v49 = vunpack.c.l.b16 %v1541_v41  ;;  %v1598_v54 = vunpack.c.h.b16 %v1541_v41  ;;  %v1117_v55 = vpack.c.b16 %v1085_v44, %v1085_v44  ;;  %v1118_v14 = vpack.c.b16 %v1086_v39, %v1086_v39  ;;  %1513 = vrot.lane.b32.xlu2 %v1485_v36, %s8606_s29  ;;  %v7018_v41 = vld [vmem:[%s8681_s28 + $0xc1] sm:$0xff]  ;;  %v8294_v36 = vld [vmem:[#allocation2 + $0xac] sm:$0xf] }
 0x158   : > { %10558 = vst [vmem:[#allocation17_spill] sm:$0xff] %v9374_v20  ;;  %v2015_v44 = vpop.permute.xlu0 %2014  ;;  %v957_v39 = vunpack.c.l.b16 %v813_v19  ;;  %v7539_v56 = vor.u32 %v8293_v22, %v7536_v12  ;;  %v864_v22 = vunpack.c.l.b16 %v9368_v15  ;;  %v7128_v12 = vld [vmem:[%s8681_s28 + $0x181] sm:$0xff] }
 0x159   : > { %10559 = vst [vmem:[#allocation18_spill] sm:$0xff] %v9376_v21  ;;  %v1629_v11 = vpack.c.b16 %v1597_v49, %v1597_v49  ;;  %v1630_v13 = vpack.c.b16 %v1598_v54, %v1598_v54  ;;  %v1248_v49 = vpack.c.bf16 %v7019_v42, %v7019_v42  ;;  %v7144_v54 = vld [vmem:[%s8681_s28 + $0xc2] sm:$0xff]  ;;  %v7062_v42 = vld [vmem:[%s8681_s28 + $0x152] sm:$0xff] }
 0x15a   : > { %1181 = vst [vmem:[#allocation2 + $0xf4] sm:$0xf] %v1117_v55  ;;  %v7145_v55 = vld [vmem:[%s8681_s28 + $0xca] sm:$0xff]  ;;  %v9401_v57 = vpack.c.bf16 %v7144_v54, %v7144_v54  ;;  %v888_v2 = vpack.c.b16 %v864_v22, %v863_v52  ;;  %v1323_v15 = vpack.c.bf16 %v7062_v42, %v7062_v42  ;;  %v7547_v54 = vor.u32 %v8294_v36, %v7544_v25  ;;  %v7083_v22 = vld [vmem:[%s8681_s28 + $0xe0] sm:$0xff] }
 0x15b   : > { %v9384_v61 = vpop.f32.mrf.mxu0  ;;  %v9386_v38 = vpop.f32.mrf.mxu1  ;;  %1693 = vst [vmem:[#allocation2 + $0xf8] sm:$0xf] %v1629_v11  ;;  %v9403_v62 = vpack.c.bf16 %v7145_v55, %v7145_v55  ;;  %v1376_v35 = vunpack.c.l.b16 %v1248_v49  ;;  %v7551_v55 = vor.u32 %v8297_v9, %v9409_v0 }
 0x15c   : > { %6380 = vmatmul.bf16.gmra.mxu3 %v7527_v18  ;;  %1694 = vst [vmem:[#allocation2 + $0x10c] sm:$0xf] %v1630_v13  ;;  %v1887_v18 = vunpack.c.l.b16 %v1759_v7  ;;  %v975_v13 = vpack.c.b16 %v958_v17, %v957_v39  ;;  %v1838_v39 = vpack.c.bf16 %v7128_v12, %v7128_v12 }
 0x15d   : > { %1182 = vst [vmem:[#allocation2 + $0x108] sm:$0xf] %v1118_v14 }
 0x15e   : > { %8239 = vmatmul.msk.bf16.gmra.mxu0 %vm495_vm0, %v7531_v47  ;;  %v1912_v46 = vpack.c.b16 %v1887_v18, %v1886_v34  ;;  %v1247_v47 = vpack.c.bf16 %v7018_v41, %v7018_v41  ;;  %2303 = vst.msk [vmem:[#allocation2 + $0x100] sm:$0xf] %vm2290_vm1, %v9401_v57  ;;  %1005 = vrot.lane.b32.xlu1 %v975_v13, %s8606_s29  ;;  %v7129_v34 = vld [vmem:[%s8681_s28 + $0x189] sm:$0xff]  ;;  %v1504_v13 = vpop.permute.xlu2 %1503 }
 0x15f   : > { %v9392_v26 = vpop.f32.mrf.mxu2  ;;  %v9394_v32 = vpop.f32.mrf.mxu3  ;;  %2304 = vst.msk [vmem:[#allocation2 + $0x114] sm:$0xf] %vm2290_vm1, %v9403_v62  ;;  %v1839_v41 = vpack.c.bf16 %v7129_v34, %v7129_v34 }
 0x160   : > { %10560 = vst [vmem:[#allocation19_spill] sm:$0xff] %v9392_v26  ;;  %v2054_v11 = vsel %vm495_vm0, %v1912_v46, %v2015_v44  ;;  %v1375_v14 = vunpack.c.l.b16 %v1247_v47  ;;  %v992_v44 = vpop.permute.xlu1 %991  ;;  %v7063_v46 = vld [vmem:[%s8681_s28 + $0x15a] sm:$0xff] }
 0x161   : > { %10561 = vst [vmem:[#allocation20_spill] sm:$0xff] %v9394_v32  ;;  %v2110_v7 = vunpack.c.l.b16 %v2054_v11  ;;  %v2111_v29 = vunpack.c.h.b16 %v2054_v11  ;;  %v1324_v49 = vpack.c.bf16 %v7063_v46, %v7063_v46  ;;  %v7082_v11 = vld [vmem:[%s8681_s28 + $0xd8] sm:$0xff] }
 0x162   : > { %v1400_v19 = vpack.c.b16 %v1376_v35, %v1375_v14  ;;  %v1032_v14 = vsel %vm495_vm0, %v888_v2, %v992_v44  ;;  %v1983_v35 = vunpack.c.l.b16 %v1839_v41  ;;  %v1760_v42 = vpack.c.bf16 %v7082_v11, %v7082_v11  ;;  %v8301_v41 = vld [vmem:[#allocation2 + $0xe0] sm:$0xf0] }
 0x163   : > { %v9405_v28 = vpop.f32.mrf.mxu0  ;;  %v9407_v3 = vpop.f32.mrf.mxu1  ;;  %v2142_v18 = vpack.c.b16 %v2110_v7, %v2110_v7  ;;  %v1467_v7 = vunpack.c.l.b16 %v1323_v15  ;;  %v1087_v34 = vunpack.c.l.b16 %v1032_v14  ;;  %v1088_v52 = vunpack.c.h.b16 %v1032_v14  ;;  %v7002_v11 = vld [vmem:[%s8681_s28 + $0x180] sm:$0xff] }
 0x164   : > { %6216 = vmatmul.bf16.gmra.mxu2 %v7543_v43  ;;  %v2143_v43 = vpack.c.b16 %v2111_v29, %v2111_v29  ;;  %v1468_v29 = vunpack.c.l.b16 %v1324_v49  ;;  %v1544_v12 = vsel %vm495_vm0, %v1400_v19, %v1504_v13  ;;  %v1761_v15 = vpack.c.bf16 %v7083_v22, %v7083_v22  ;;  %v7003_v13 = vld [vmem:[%s8681_s28 + $0x188] sm:$0xff] }
 0x165   : > { %2206 = vst [vmem:[#allocation2 + $0xfc] sm:$0xf] %v2142_v18  ;;  %v1599_v0 = vunpack.c.l.b16 %v1544_v12  ;;  %v1600_v9 = vunpack.c.h.b16 %v1544_v12  ;;  %v1119_v44 = vpack.c.b16 %v1087_v34, %v1087_v34  ;;  %v1888_v49 = vunpack.c.l.b16 %v1760_v42 }
 0x166   : > { %6047 = vmatmul.bf16.gmra.mxu1 %v7539_v56  ;;  %v1982_v56 = vunpack.c.l.b16 %v1838_v39  ;;  %2207 = vst [vmem:[#allocation2 + $0x110] sm:$0xf] %v2143_v43  ;;  %v1486_v18 = vpack.c.b16 %v1468_v29, %v1467_v7  ;;  %v7562_v43 = vld [vmem:[#allocation2 + $0xd0] sm:$0xf]  ;;  %v1120_v39 = vpack.c.b16 %v1088_v52, %v1088_v52  ;;  %v8298_v7 = vld [vmem:[#allocation2 + $0xcc] sm:$0xf]  ;;  %v1889_v12 = vunpack.c.l.b16 %v1761_v15  ;;  %v2017_v52 = vpop.permute.xlu0 %2016 }
 0x167   : > { %v9423_v17 = vpop.f32.mrf.mxu2  ;;  %v9425_v47 = vpop.f32.mrf.mxu3  ;;  %v1631_v19 = vpack.c.b16 %v1599_v0, %v1599_v0  ;;  %v1632_v2 = vpack.c.b16 %v1600_v9, %v1600_v9  ;;  %1183 = vst [vmem:[#allocation2 + $0x11c] sm:$0xf] %v1119_v44  ;;  %v7556_v29 = vld [vmem:[#allocation2 + $0xdc] sm:$0xf0]  ;;  %v7563_v34 = vor.u32 %v8301_v41, %v7562_v43  ;;  %v865_v15 = vunpack.c.l.b16 %v9401_v57  ;;  %v8302_v57 = vld [vmem:[#allocation2 + $0xe8] sm:$0xf0] }
 0x168   : > { %10562 = vst [vmem:[#allocation21_spill] sm:$0xff] %v9423_v17  ;;  %v2000_v25 = vpack.c.b16 %v1983_v35, %v1982_v56  ;;  %1515 = vrot.lane.b32.xlu2 %v1486_v18, %s8606_s29  ;;  %v816_v56 = vpack.c.bf16 %v7003_v13, %v7003_v13  ;;  %v7021_v0 = vld [vmem:[%s8681_s28 + $0xe1] sm:$0xff]  ;;  %v1913_v9 = vpack.c.b16 %v1889_v12, %v1888_v49  ;;  %v8299_v49 = vld [vmem:[#allocation2 + $0xd4] sm:$0xf] }
 0x169   : > { %10563 = vst [vmem:[#allocation22_spill] sm:$0xff] %v9425_v47  ;;  %v1250_v18 = vpack.c.bf16 %v7021_v0, %v7021_v0  ;;  %v7146_v44 = vld [vmem:[%s8681_s28 + $0xda] sm:$0xff]  ;;  %v7559_v13 = vor.u32 %v8298_v7, %v7556_v29  ;;  %v7564_v29 = vld [vmem:[#allocation2 + $0xe4] sm:$0xf0] }
 0x16a   : > { %2030 = vrot.lane.b32.xlu0 %v2000_v25, %s8606_s29  ;;  %1695 = vst [vmem:[#allocation2 + $0x120] sm:$0xf] %v1631_v19  ;;  %v960_v42 = vunpack.c.l.b16 %v816_v56  ;;  %v9449_v47 = vpack.c.bf16 %v7146_v44, %v7146_v44  ;;  %v2057_v41 = vsel %vm495_vm0, %v1913_v9, %v2017_v52  ;;  %v866_v52 = vunpack.c.l.b16 %v9403_v62 }
 0x16b   : > { %v9432_v46 = vpop.f32.mrf.mxu0  ;;  %v9434_v36 = vpop.f32.mrf.mxu1  ;;  %1696 = vst [vmem:[#allocation2 + $0x134] sm:$0xf] %v1632_v2  ;;  %v1378_v2 = vunpack.c.l.b16 %v1250_v18  ;;  %v2112_v56 = vunpack.c.l.b16 %v2057_v41  ;;  %v2113_v7 = vunpack.c.h.b16 %v2057_v41 }
 0x16c   : > { %6385 = vmatmul.bf16.gmra.mxu3 %v7547_v54  ;;  %v815_v54 = vpack.c.bf16 %v7002_v11, %v7002_v11  ;;  %1184 = vst [vmem:[#allocation2 + $0x130] sm:$0xf] %v1120_v39  ;;  %v7147_v11 = vld [vmem:[%s8681_s28 + $0xe2] sm:$0xff] }
 0x16d   : > { %v9451_v32 = vpack.c.bf16 %v7147_v11, %v7147_v11  ;;  %2305 = vst.msk [vmem:[#allocation2 + $0x128] sm:$0xf] %vm2290_vm1, %v9449_v47  ;;  %v889_v11 = vpack.c.b16 %v866_v52, %v865_v15  ;;  %v7085_v52 = vld [vmem:[%s8681_s28 + $0xf8] sm:$0xff] }
 0x16e   : > { %8240 = vmatmul.msk.bf16.gmra.mxu0 %vm495_vm0, %v7551_v55  ;;  %v959_v22 = vunpack.c.l.b16 %v815_v54  ;;  %v7020_v55 = vld [vmem:[%s8681_s28 + $0xd9] sm:$0xff] }
 0x16f   : > { %v9441_v14 = vpop.f32.mrf.mxu2  ;;  %v9443_v35 = vpop.f32.mrf.mxu3  ;;  %v1249_v25 = vpack.c.bf16 %v7020_v55, %v7020_v55  ;;  %v7570_v54 = vld [vmem:[#allocation2 + $0xd8] sm:$0xf]  ;;  %2306 = vst.msk [vmem:[#allocation2 + $0x13c] sm:$0xf] %vm2290_vm1, %v9451_v32  ;;  %v2145_v55 = vpack.c.b16 %v2113_v7, %v2113_v7 }
 0x170   : > { %10564 = vst [vmem:[#allocation23_spill] sm:$0xff] %v9441_v14  ;;  %v7571_v33 = vor.u32 %v8302_v57, %v7570_v54 }
 0x171   : > { %10565 = vst [vmem:[#allocation24_spill] sm:$0xff] %v9443_v35  ;;  %v976_v35 = vpack.c.b16 %v960_v42, %v959_v22  ;;  %v1377_v39 = vunpack.c.l.b16 %v1249_v25  ;;  %v7130_v22 = vld [vmem:[%s8681_s28 + $0x199] sm:$0xff]  ;;  %v7131_v42 = vld [vmem:[%s8681_s28 + $0x1a1] sm:$0xff] }
 0x172   : > { %v1840_v0 = vpack.c.bf16 %v7130_v22, %v7130_v22  ;;  %v1841_v9 = vpack.c.bf16 %v7131_v42, %v7131_v42  ;;  %v7065_v25 = vld [vmem:[%s8681_s28 + $0x172] sm:$0xff]  ;;  %2209 = vst [vmem:[#allocation2 + $0x138] sm:$0xf] %v2145_v55 }
 0x173   : > { %v9453_v19 = vpop.f32.mrf.mxu0  ;;  %v9455_v43 = vpop.f32.mrf.mxu1  ;;  %1007 = vrot.lane.b32.xlu1 %v976_v35, %s8606_s29  ;;  %v1401_v12 = vpack.c.b16 %v1378_v2, %v1377_v39  ;;  %v7064_v35 = vld [vmem:[%s8681_s28 + $0x16a] sm:$0xff]  ;;  %v1326_v41 = vpack.c.bf16 %v7065_v25, %v7065_v25  ;;  %v7567_v39 = vor.u32 %v8299_v49, %v7564_v29 }
 0x174   : > { %6221 = vmatmul.bf16.gmra.mxu2 %v7563_v34  ;;  %v2144_v34 = vpack.c.b16 %v2112_v56, %v2112_v56  ;;  %v1325_v62 = vpack.c.bf16 %v7064_v35, %v7064_v35  ;;  %v1506_v2 = vpop.permute.xlu2 %1505  ;;  %v1984_v21 = vunpack.c.l.b16 %v1840_v0  ;;  %v7084_v56 = vld [vmem:[%s8681_s28 + $0xf0] sm:$0xff]  ;;  %v1985_v42 = vunpack.c.l.b16 %v1841_v9  ;;  %v8306_v9 = vld [vmem:[#allocation2 + $0x108] sm:$0xf0] }
 0x175   : > { %v1547_v7 = vsel %vm495_vm0, %v1401_v12, %v1506_v2  ;;  %v1470_v54 = vunpack.c.l.b16 %v1326_v41  ;;  %v1762_v57 = vpack.c.bf16 %v7084_v56, %v7084_v56  ;;  %v7582_v12 = vld [vmem:[#allocation2 + $0xf8] sm:$0xf] }
 0x176   : > { %6052 = vmatmul.bf16.gmra.mxu1 %v7559_v13  ;;  %2208 = vst [vmem:[#allocation2 + $0x124] sm:$0xf] %v2144_v34  ;;  %v994_v13 = vpop.permute.xlu1 %993  ;;  %v1601_v37 = vunpack.c.l.b16 %v1547_v7  ;;  %v1602_v53 = vunpack.c.h.b16 %v1547_v7  ;;  %v2001_v29 = vpack.c.b16 %v1985_v42, %v1984_v21  ;;  %v1469_v34 = vunpack.c.l.b16 %v1325_v62  ;;  %v7260_v7 = vld [vmem:[%s8681_s28 + $0x1c8] sm:$0xff] }
 0x177   : > { %v9469_v18 = vpop.f32.mrf.mxu2  ;;  %v9471_v44 = vpop.f32.mrf.mxu3  ;;  %v1035_v22 = vsel %vm495_vm0, %v889_v11, %v994_v13  ;;  %v1763_v13 = vpack.c.bf16 %v7085_v52, %v7085_v52  ;;  %v1890_v21 = vunpack.c.l.b16 %v1762_v57  ;;  %v2933_v62 = vpack.c.bf16 %v7260_v7, %v7260_v7  ;;  %v7148_v7 = vld [vmem:[%s8681_s28 + $0xf2] sm:$0xff] }
 0x178   : > { %10566 = vst [vmem:[#allocation25_spill] sm:$0xff] %v9469_v18  ;;  %v1090_v15 = vunpack.c.h.b16 %v1035_v22  ;;  %v1633_v55 = vpack.c.b16 %v1601_v37, %v1601_v37  ;;  %v1634_v0 = vpack.c.b16 %v1602_v53, %v1602_v53  ;;  %2032 = vrot.lane.b32.xlu0 %v2001_v29, %s8606_s29  ;;  %v1487_v2 = vpack.c.b16 %v1470_v54, %v1469_v34  ;;  %v8303_v37 = vld [vmem:[#allocation2 + $0xf4] sm:$0xf]  ;;  %v7023_v34 = vld [vmem:[%s8681_s28 + $0xf9] sm:$0xff] }
 0x179   : > { %10567 = vst [vmem:[#allocation26_spill] sm:$0xff] %v9471_v44  ;;  %v1089_v44 = vunpack.c.l.b16 %v1035_v22  ;;  %v7261_v22 = vld [vmem:[%s8681_s28 + $0x1d0] sm:$0xff]  ;;  %v1891_v56 = vunpack.c.l.b16 %v1763_v13  ;;  %v7583_v42 = vor.u32 %v8306_v9, %v7582_v12  ;;  %v9494_v24 = vpack.c.bf16 %v7148_v7, %v7148_v7 }
 0x17a   : > { %v1122_v11 = vpack.c.b16 %v1090_v15, %v1090_v15  ;;  %1697 = vst [vmem:[#allocation2 + $0x148] sm:$0xf] %v1633_v55  ;;  %v2934_v41 = vpack.c.bf16 %v7261_v22, %v7261_v22  ;;  %1517 = vrot.lane.b32.xlu2 %v1487_v2, %s8606_s29  ;;  %v3077_v15 = vunpack.c.l.b16 %v2933_v62  ;;  %v7022_v29 = vld [vmem:[%s8681_s28 + $0xf1] sm:$0xff]  ;;  %v1252_v55 = vpack.c.bf16 %v7023_v34, %v7023_v34  ;;  %v7149_v22 = vld [vmem:[%s8681_s28 + $0xfa] sm:$0xff] }
 0x17b   : > { %v9477_v35 = vpop.f32.mrf.mxu0  ;;  %v9479_v49 = vpop.f32.mrf.mxu1  ;;  %v1121_v25 = vpack.c.b16 %v1089_v44, %v1089_v44  ;;  %v7576_v44 = vld [vmem:[#allocation2 + $0x104] sm:$0xf0]  ;;  %1698 = vst [vmem:[#allocation2 + $0x15c] sm:$0xf] %v1634_v0  ;;  %v1914_v54 = vpack.c.b16 %v1891_v56, %v1890_v21  ;;  %v1251_v57 = vpack.c.bf16 %v7022_v29, %v7022_v29  ;;  %v9496_v0 = vpack.c.bf16 %v7149_v22, %v7149_v22  ;;  %v8304_v21 = vld [vmem:[#allocation2 + $0xfc] sm:$0xf] }
 0x17c   : > { %6390 = vmatmul.bf16.gmra.mxu3 %v7567_v39  ;;  %v3078_v52 = vunpack.c.l.b16 %v2934_v41  ;;  %1186 = vst [vmem:[#allocation2 + $0x158] sm:$0xf] %v1122_v11  ;;  %v1380_v11 = vunpack.c.l.b16 %v1252_v55  ;;  %v867_v13 = vunpack.c.l.b16 %v9449_v47  ;;  %v7590_v62 = vld [vmem:[#allocation2 + $0x100] sm:$0xf]  ;;  %v8307_v47 = vld [vmem:[#allocation2 + $0x110] sm:$0xf0] }
 0x17d   : > { %1185 = vst [vmem:[#allocation2 + $0x144] sm:$0xf] %v1121_v25  ;;  %v1379_v25 = vunpack.c.l.b16 %v1251_v57  ;;  %v7067_v57 = vld [vmem:[%s8681_s28 + $0x18a] sm:$0xff] }
 0x17e   : > { %8241 = vmatmul.msk.bf16.gmra.mxu0 %vm495_vm0, %v7571_v33  ;;  %v2019_v33 = vpop.permute.xlu0 %2018  ;;  %v3109_v6 = vpack.c.b16 %v3078_v52, %v3077_v15  ;;  %2307 = vst.msk [vmem:[#allocation2 + $0x150] sm:$0xf] %vm2290_vm1, %v9494_v24  ;;  %v7388_v15 = vld [vmem:[%s8681_s28 + $0x1e1] sm:$0xff]  ;;  %v7389_v52 = vld [vmem:[%s8681_s28 + $0x1e9] sm:$0xff] }
 0x17f   : > { %v9485_v39 = vpop.f32.mrf.mxu2  ;;  %v9487_v53 = vpop.f32.mrf.mxu3  ;;  %v2060_v9 = vsel %vm495_vm0, %v1914_v54, %v2019_v33  ;;  %v1402_v56 = vpack.c.b16 %v1380_v11, %v1379_v25  ;;  %v868_v33 = vunpack.c.l.b16 %v9451_v32  ;;  %2308 = vst.msk [vmem:[#allocation2 + $0x164] sm:$0xf] %vm2290_vm1, %v9496_v0  ;;  %v3958_v34 = vpack.c.bf16 %v7388_v15, %v7388_v15  ;;  %v7066_v54 = vld [vmem:[%s8681_s28 + $0x182] sm:$0xff]  ;;  %v7087_v18 = vld [vmem:[%s8681_s28 + $0x110] sm:$0xff] }
 0x180   : > { %10568 = vst [vmem:[#allocation27_spill] sm:$0xff] %v9485_v39  ;;  %v2114_v41 = vunpack.c.l.b16 %v2060_v9  ;;  %3125 = vrot.lane.b32.xlu1 %v3109_v6, %s8606_s29  ;;  %v3959_v6 = vpack.c.bf16 %v7389_v52, %v7389_v52  ;;  %v1327_v22 = vpack.c.bf16 %v7066_v54, %v7066_v54  ;;  %v1508_v11 = vpop.permute.xlu2 %1507  ;;  %v7591_v15 = vor.u32 %v8307_v47, %v7590_v62  ;;  %v7602_v47 = vld [vmem:[#allocation2 + $0x120] sm:$0xf] }
 0x181   : > { %10569 = vst [vmem:[#allocation28_spill] sm:$0xff] %v9487_v53  ;;  %v7579_v53 = vor.u32 %v8303_v37, %v7576_v44  ;;  %v2115_v37 = vunpack.c.h.b16 %v2060_v9  ;;  %v7584_v44 = vld [vmem:[#allocation2 + $0x10c] sm:$0xf0]  ;;  %v890_v32 = vpack.c.b16 %v868_v33, %v867_v13  ;;  %v1328_v9 = vpack.c.bf16 %v7067_v57, %v7067_v57 }
 0x182   : > { %v7587_v25 = vor.u32 %v8304_v21, %v7584_v44  ;;  %v4102_v39 = vunpack.c.l.b16 %v3958_v34  ;;  %v1550_v52 = vsel %vm495_vm0, %v1402_v56, %v1508_v11  ;;  %v1765_v62 = vpack.c.bf16 %v7087_v18, %v7087_v18  ;;  %v7262_v11 = vld [vmem:[%s8681_s28 + $0x1e0] sm:$0xff] }
 0x183   : > { %v9498_v2 = vpop.f32.mrf.mxu0  ;;  %v9500_v12 = vpop.f32.mrf.mxu1  ;;  %v2147_v29 = vpack.c.b16 %v2115_v37, %v2115_v37  ;;  %v7086_v37 = vld [vmem:[%s8681_s28 + $0x108] sm:$0xff]  ;;  %v1603_v17 = vunpack.c.l.b16 %v1550_v52  ;;  %v2935_v18 = vpack.c.bf16 %v7262_v11, %v7262_v11 }
 0x184   : > { %6226 = vmatmul.bf16.gmra.mxu2 %v7583_v42  ;;  %v2146_v42 = vpack.c.b16 %v2114_v41, %v2114_v41  ;;  %v4103_v41 = vunpack.c.l.b16 %v3959_v6  ;;  %v1764_v34 = vpack.c.bf16 %v7086_v37, %v7086_v37  ;;  %v8311_v6 = vld [vmem:[#allocation2 + $0x130] sm:$0xf0] }
 0x185   : > { %2211 = vst [vmem:[#allocation2 + $0x160] sm:$0xf] %v2147_v29  ;;  %v1635_v56 = vpack.c.b16 %v1603_v17, %v1603_v17 }
 0x186   : > { %6057 = vmatmul.bf16.gmra.mxu1 %v7579_v53  ;;  %2210 = vst [vmem:[#allocation2 + $0x14c] sm:$0xf] %v2146_v42  ;;  %v996_v53 = vpop.permute.xlu1 %995  ;;  %v4134_v44 = vpack.c.b16 %v4103_v41, %v4102_v39  ;;  %v1472_v42 = vunpack.c.l.b16 %v1328_v9  ;;  %v1893_v39 = vunpack.c.l.b16 %v1765_v62  ;;  %v7596_v41 = vld [vmem:[#allocation2 + $0x12c] sm:$0xf0] }
 0x187   : > { %v9514_v55 = vpop.f32.mrf.mxu2  ;;  %v9516_v7 = vpop.f32.mrf.mxu3  ;;  %v1038_v14 = vsel %vm495_vm0, %v890_v32, %v996_v53  ;;  %v7263_v53 = vld [vmem:[%s8681_s28 + $0x1e8] sm:$0xff]  ;;  %1699 = vst [vmem:[#allocation2 + $0x170] sm:$0xf] %v1635_v56  ;;  %v7151_v56 = vld [vmem:[%s8681_s28 + $0x112] sm:$0xff] }
 0x188   : > { %10570 = vst [vmem:[#allocation29_spill] sm:$0xff] %v9514_v55  ;;  %v1471_v55 = vunpack.c.l.b16 %v1327_v22  ;;  %v1091_v13 = vunpack.c.l.b16 %v1038_v14  ;;  %v1092_v33 = vunpack.c.h.b16 %v1038_v14  ;;  %4150 = vrot.lane.b32.xlu0 %v4134_v44, %s8606_s29  ;;  %v1892_v22 = vunpack.c.l.b16 %v1764_v34  ;;  %v7150_v62 = vld [vmem:[%s8681_s28 + $0x10a] sm:$0xff] }
 0x189   : > { %10571 = vst [vmem:[#allocation30_spill] sm:$0xff] %v9516_v7  ;;  %v1604_v7 = vunpack.c.h.b16 %v1550_v52  ;;  %v2936_v9 = vpack.c.bf16 %v7263_v53, %v7263_v53  ;;  %v3079_v52 = vunpack.c.l.b16 %v2935_v18  ;;  %v7610_v18 = vld [vmem:[#allocation2 + $0x128] sm:$0xf]  ;;  %v1510_v20 = vpop.permute.xlu2 %1509 }
 0x18a   : > { %v1123_v57 = vpack.c.b16 %v1091_v13, %v1091_v13  ;;  %v1124_v32 = vpack.c.b16 %v1092_v33, %v1092_v33  ;;  %v1488_v14 = vpack.c.b16 %v1472_v42, %v1471_v55  ;;  %v7603_v55 = vor.u32 %v8311_v6, %v7602_v47  ;;  %v7024_v13 = vld [vmem:[%s8681_s28 + $0x109] sm:$0xff]  ;;  %v7025_v33 = vld [vmem:[%s8681_s28 + $0x111] sm:$0xff] }
 0x18b   : > { %v9522_v54 = vpop.f32.mrf.mxu0  ;;  %v9524_v21 = vpop.f32.mrf.mxu1  ;;  %v1636_v29 = vpack.c.b16 %v1604_v7, %v1604_v7  ;;  %v8308_v7 = vld [vmem:[#allocation2 + $0x11c] sm:$0xf]  ;;  %v1915_v37 = vpack.c.b16 %v1893_v39, %v1892_v22  ;;  %v3080_v44 = vunpack.c.l.b16 %v2936_v9  ;;  %v1253_v42 = vpack.c.bf16 %v7024_v13, %v7024_v13  ;;  %v8309_v39 = vld [vmem:[#allocation2 + $0x124] sm:$0xf] }
 0x18c   : > { %6395 = vmatmul.bf16.gmra.mxu3 %v7587_v25  ;;  %1519 = vrot.lane.b32.xlu2 %v1488_v14, %s8606_s29  ;;  %1187 = vst [vmem:[#allocation2 + $0x16c] sm:$0xf] %v1123_v57  ;;  %v1254_v34 = vpack.c.bf16 %v7025_v33, %v7025_v33  ;;  %v7599_v11 = vor.u32 %v8308_v7, %v7596_v41  ;;  %v869_v7 = vunpack.c.l.b16 %v9494_v24  ;;  %v7604_v41 = vld [vmem:[#allocation2 + $0x134] sm:$0xf0]  ;;  %v870_v13 = vunpack.c.l.b16 %v9496_v0  ;;  %v7391_v33 = vld [vmem:[%s8681_s28 + $0x201] sm:$0xff] }
 0x18d   : > { %1700 = vst [vmem:[#allocation2 + $0x184] sm:$0xf] %v1636_v29  ;;  %v9542_v29 = vpack.c.bf16 %v7151_v56, %v7151_v56  ;;  %v3110_v14 = vpack.c.b16 %v3080_v44, %v3079_v52  ;;  %v1381_v22 = vunpack.c.l.b16 %v1253_v42  ;;  %v7390_v52 = vld [vmem:[%s8681_s28 + $0x1f9] sm:$0xff] }
 0x18e   : > { %8242 = vmatmul.msk.bf16.gmra.mxu0 %vm495_vm0, %v7591_v15  ;;  %v2021_v15 = vpop.permute.xlu0 %2020  ;;  %1188 = vst [vmem:[#allocation2 + $0x180] sm:$0xf] %v1124_v32  ;;  %v1382_v9 = vunpack.c.l.b16 %v1254_v34  ;;  %v998_v44 = vpop.permute.xlu1 %997  ;;  %v3960_v42 = vpack.c.bf16 %v7390_v52, %v7390_v52  ;;  %v3961_v34 = vpack.c.bf16 %v7391_v33, %v7391_v33  ;;  %v7325_v56 = vld [vmem:[%s8681_s28 + $0x1d2] sm:$0xff]  ;;  %v891_v0 = vpack.c.b16 %v870_v13, %v869_v7  ;;  %v7089_v7 = vld [vmem:[%s8681_s28 + $0x128] sm:$0xff] }
 0x18f   : > { %v9530_v25 = vpop.f32.mrf.mxu2  ;;  %v9532_v17 = vpop.f32.mrf.mxu3  ;;  %v2063_v53 = vsel %vm495_vm0, %v1915_v37, %v2021_v15  ;;  %3127 = vrot.lane.b32.xlu1 %v3110_v14, %s8606_s29  ;;  %2310 = vst.msk [vmem:[#allocation2 + $0x18c] sm:$0xf] %vm2290_vm1, %v9542_v29  ;;  %v3446_v14 = vpack.c.bf16 %v7325_v56, %v7325_v56 }
 0x190   : > { %10572 = vst [vmem:[#allocation31_spill] sm:$0xff] %v9530_v25  ;;  %v2116_v57 = vunpack.c.l.b16 %v2063_v53  ;;  %v2117_v32 = vunpack.c.h.b16 %v2063_v53  ;;  %v1403_v24 = vpack.c.b16 %v1382_v9, %v1381_v22  ;;  %v7607_v25 = vor.u32 %v8309_v39, %v7604_v41  ;;  %v7088_v22 = vld [vmem:[%s8681_s28 + $0x120] sm:$0xff] }
 0x191   : > { %10573 = vst [vmem:[#allocation32_spill] sm:$0xff] %v9532_v17  ;;  %v9540_v17 = vpack.c.bf16 %v7150_v62, %v7150_v62  ;;  %v7324_v62 = vld [vmem:[%s8681_s28 + $0x1ca] sm:$0xff]  ;;  %v4105_v26 = vunpack.c.l.b16 %v3961_v34  ;;  %v1041_v52 = vsel %vm495_vm0, %v891_v0, %v998_v44  ;;  %v3590_v50 = vunpack.c.l.b16 %v3446_v14  ;;  %v8316_v34 = vld [vmem:[#allocation2 + $0x158] sm:$0xf0]  ;;  %v7616_v14 = vld [vmem:[#allocation2 + $0x154] sm:$0xf0] }
 0x192   : > { %v2148_v37 = vpack.c.b16 %v2116_v57, %v2116_v57  ;;  %v2149_v15 = vpack.c.b16 %v2117_v32, %v2117_v32  ;;  %v3445_v32 = vpack.c.bf16 %v7324_v62, %v7324_v62  ;;  %v1093_v40 = vunpack.c.l.b16 %v1041_v52  ;;  %v7264_v0 = vld [vmem:[%s8681_s28 + $0x1f8] sm:$0xff] }
 0x193   : > { %v9544_v47 = vpop.f32.mrf.mxu0  ;;  %v9546_v6 = vpop.f32.mrf.mxu1  ;;  %2309 = vst.msk [vmem:[#allocation2 + $0x178] sm:$0xf] %vm2290_vm1, %v9540_v17 }
 0x194   : > { %6231 = vmatmul.bf16.gmra.mxu2 %v7603_v55  ;;  %v8312_v55 = vld [vmem:[#allocation2 + $0x138] sm:$0xf0]  ;;  %2212 = vst [vmem:[#allocation2 + $0x174] sm:$0xf] %v2148_v37  ;;  %v3589_v33 = vunpack.c.l.b16 %v3445_v32  ;;  %v1125_v44 = vpack.c.b16 %v1093_v40, %v1093_v40  ;;  %v7265_v32 = vld [vmem:[%s8681_s28 + $0x200] sm:$0xff] }
 0x195   : > { %2213 = vst [vmem:[#allocation2 + $0x188] sm:$0xf] %v2149_v15  ;;  %v7611_v9 = vor.u32 %v8312_v55, %v7610_v18  ;;  %v1766_v15 = vpack.c.bf16 %v7088_v22, %v7088_v22  ;;  %v7622_v55 = vld [vmem:[#allocation2 + $0x148] sm:$0xf]  ;;  %v9583_v22 = vld [vmem:[%s10543_s2] ss:$0 sm:$0xff] }
 0x196   : > { %6062 = vmatmul.bf16.gmra.mxu1 %v7599_v11  ;;  %v4104_v11 = vunpack.c.l.b16 %v3960_v42  ;;  %v3621_v18 = vpack.c.b16 %v3590_v50, %v3589_v33  ;;  %1189 = vst [vmem:[#allocation2 + $0x194] sm:$0xf] %v1125_v44  ;;  %v2937_v50 = vpack.c.bf16 %v7264_v0, %v7264_v0  ;;  %v7152_v44 = vld [vmem:[%s8681_s28 + $0x122] sm:$0xff]  ;;  %v7153_v0 = vld [vmem:[%s8681_s28 + $0x12a] sm:$0xff] }
 0x197   : > { %v9559_v53 = vpop.f32.mrf.mxu2  ;;  %v9561_v57 = vpop.f32.mrf.mxu3  ;;  %v1894_v56 = vunpack.c.l.b16 %v1766_v15 }
 0x198   : > { %10574 = vst [vmem:[#allocation33_spill] sm:$0xff] %v9559_v53  ;;  %v1553_v53 = vsel %vm495_vm0, %v1403_v24, %v1510_v20  ;;  %v4135_v37 = vpack.c.b16 %v4105_v26, %v4104_v11  ;;  %3637 = vrot.lane.b32.xlu2 %v3621_v18, %s8606_s29  ;;  %v1767_v26 = vpack.c.bf16 %v7089_v7, %v7089_v7  ;;  %v3081_v33 = vunpack.c.l.b16 %v2937_v50  ;;  %v7027_v7 = vld [vmem:[%s8681_s28 + $0x129] sm:$0xff] }
 0x199   : > { %10575 = vst [vmem:[#allocation34_spill] sm:$0xff] %v9561_v57  ;;  %v1094_v57 = vunpack.c.h.b16 %v1041_v52  ;;  %v1605_v39 = vunpack.c.l.b16 %v1553_v53  ;;  %v1606_v41 = vunpack.c.h.b16 %v1553_v53  ;;  %v2023_v52 = vpop.permute.xlu0 %2022  ;;  %v1256_v15 = vpack.c.bf16 %v7027_v7, %v7027_v7 }
 0x19a   : > { %4152 = vrot.lane.b32.xlu0 %v4135_v37, %s8606_s29  ;;  %v1895_v11 = vunpack.c.l.b16 %v1767_v26  ;;  %v7026_v37 = vld [vmem:[%s8681_s28 + $0x121] sm:$0xff]  ;;  %v872_v7 = vunpack.c.l.b16 %v9542_v29 }
 0x19b   : > { %v9567_v13 = vpop.f32.mrf.mxu0  ;;  %v9569_v62 = vpop.f32.mrf.mxu1  ;;  %v1126_v42 = vpack.c.b16 %v1094_v57, %v1094_v57  ;;  %v1637_v20 = vpack.c.b16 %v1605_v39, %v1605_v39  ;;  %v1638_v24 = vpack.c.b16 %v1606_v41, %v1606_v41  ;;  %v8313_v57 = vld [vmem:[#allocation2 + $0x144] sm:$0xf]  ;;  %v1255_v18 = vpack.c.bf16 %v7026_v37, %v7026_v37  ;;  %v9598_v37 = vld [vmem:[#allocation2 + $0x150] sm:$0xf] }
 0x19c   : > { %6400 = vmatmul.bf16.gmra.mxu3 %v7607_v25  ;;  %v2938_v25 = vpack.c.bf16 %v7265_v32, %v7265_v32  ;;  %v1916_v39 = vpack.c.b16 %v1895_v11, %v1894_v56  ;;  %v7619_v26 = vor.u32 %v8313_v57, %v7616_v14  ;;  %v9591_v32 = vpack.c.bf16 %v7152_v44, %v7152_v44  ;;  %v8314_v11 = vld [vmem:[#allocation2 + $0x14c] sm:$0xf]  ;;  %v7624_v14 = vld [vmem:[#allocation2 + $0x15c] sm:$0xf0] }
 0x19d   : > { %1701 = vst [vmem:[#allocation2 + $0x198] sm:$0xf] %v1637_v20  ;;  %v5860_v20 = vadd.f32 %v9583_v22, %v9240_v4  ;;  %v1383_v56 = vunpack.c.l.b16 %v1255_v18  ;;  %v1384_v50 = vunpack.c.l.b16 %v1256_v15 }
 0x19e   : > { %8243 = vmatmul.msk.bf16.gmra.mxu0 %vm495_vm0, %v7611_v9  ;;  %v7623_v9 = vor.u32 %v8316_v34, %v7622_v55  ;;  %1702 = vst [vmem:[#allocation2 + $0x1ac] sm:$0xf] %v1638_v24  ;;  %v3082_v41 = vunpack.c.l.b16 %v2938_v25  ;;  %v2066_v24 = vsel %vm495_vm0, %v1916_v39, %v2023_v52  ;;  %v7392_v39 = vld [vmem:[%s8681_s28 + $0x211] sm:$0xff] }
 0x19f   : > { %v9576_v40 = vpop.f32.mrf.mxu2  ;;  %v9578_v53 = vpop.f32.mrf.mxu3  ;;  %1190 = vst [vmem:[#allocation2 + $0x1a8] sm:$0xf] %v1126_v42  ;;  %v2118_v4 = vunpack.c.l.b16 %v2066_v24  ;;  %v2119_v57 = vunpack.c.h.b16 %v2066_v24  ;;  %v1404_v52 = vpack.c.b16 %v1384_v50, %v1383_v56  ;;  %v3962_v44 = vpack.c.bf16 %v7392_v39, %v7392_v39 }
 0x1a0   : > { %10576 = vst [vmem:[#allocation35_spill] sm:$0xff] %v9576_v40  ;;  %v3111_v42 = vpack.c.b16 %v3082_v41, %v3081_v33  ;;  %v871_v33 = vunpack.c.l.b16 %v9540_v17  ;;  %v8317_v41 = vld [vmem:[#allocation2 + $0x160] sm:$0xf0]  ;;  %v5862_v50 = vadd.f32 %v9583_v22, %v9262_v16 }
 0x1a1   : > { %10577 = vst [vmem:[#allocation36_spill] sm:$0xff] %v9578_v53  ;;  %v9593_v53 = vpack.c.bf16 %v7153_v0, %v7153_v0  ;;  %v2150_v18 = vpack.c.b16 %v2118_v4, %v2118_v4  ;;  %v2151_v15 = vpack.c.b16 %v2119_v57, %v2119_v57  ;;  %v1000_v57 = vpop.permute.xlu1 %999  ;;  %v4106_v39 = vunpack.c.l.b16 %v3962_v44 }
 0x1a2   : > { %2311 = vst.msk [vmem:[#allocation2 + $0x1a0] sm:$0xf] %vm2290_vm1, %v9591_v32  ;;  %3129 = vrot.lane.b32.xlu1 %v3111_v42, %s8606_s29  ;;  %v892_v17 = vpack.c.b16 %v872_v7, %v871_v33  ;;  %v1512_v4 = vpop.permute.xlu2 %1511 }
 0x1a3   : > { %v9595_v55 = vpop.f32.mrf.mxu0  ;;  %v6028_v34 = vpop.f32.mrf.mxu1  ;;  %2312 = vst.msk [vmem:[#allocation2 + $0x1b4] sm:$0xf] %vm2290_vm1, %v9593_v53 }
 0x1a4   : > { %v6029_v25 = vadd.f32 %v6028_v34, %v5860_v20  ;;  %6236 = vmatmul.bf16.gmra.mxu2 %v7623_v9  ;;  %v7393_v9 = vld [vmem:[%s8681_s28 + $0x219] sm:$0xff]  ;;  %v7326_v20 = vld [vmem:[%s8681_s28 + $0x1e2] sm:$0xff]  ;;  %v7327_v34 = vld [vmem:[%s8681_s28 + $0x1ea] sm:$0xff]  ;;  %2214 = vst [vmem:[#allocation2 + $0x19c] sm:$0xf] %v2150_v18  ;;  %v1044_v33 = vsel %vm495_vm0, %v892_v17, %v1000_v57 }
 0x1a5   : > { %v3963_v0 = vpack.c.bf16 %v7393_v9, %v7393_v9  ;;  %v3447_v56 = vpack.c.bf16 %v7326_v20, %v7326_v20  ;;  %v3448_v29 = vpack.c.bf16 %v7327_v34, %v7327_v34  ;;  %v7631_v9 = vor.u32 %v8317_v41, %v9598_v37  ;;  %2215 = vst [vmem:[#allocation2 + $0x1b0] sm:$0xf] %v2151_v15  ;;  %v7642_v41 = vld [vmem:[#allocation2 + $0x170] sm:$0xf] }
 0x1a6   : > { %6067 = vmatmul.bf16.gmra.mxu1 %v7619_v26  ;;  %v7627_v26 = vor.u32 %v8314_v11, %v7624_v14  ;;  %v1095_v59 = vunpack.c.l.b16 %v1044_v33  ;;  %v1096_v16 = vunpack.c.h.b16 %v1044_v33  ;;  %v1896_v33 = vunpack.c.l.b16 %v1768_v23 }
 0x1a7   : > { %v9611_v24 = vpop.f32.mrf.mxu3  ;;  %v6197_v42 = vpop.f32.mrf.mxu2  ;;  %v4107_v7 = vunpack.c.l.b16 %v3963_v0  ;;  %v3591_v18 = vunpack.c.l.b16 %v3447_v56  ;;  %v3592_v44 = vunpack.c.l.b16 %v3448_v29  ;;  %v8318_v56 = vld [vmem:[#allocation2 + $0x16c] sm:$0xf]  ;;  %v7636_v29 = vld [vmem:[#allocation2 + $0x17c] sm:$0xf0] }
 0x1a8   : > { %10578 = vst [vmem:[#allocation37_spill] sm:$0xff] %v9611_v24  ;;  %v6198_v40 = vadd.f32 %v6197_v42, %v6029_v25  ;;  %v1556_v24 = vsel %vm495_vm0, %v1404_v52, %v1512_v4  ;;  %v7091_v25 = vld [vmem:[%s8681_s28 + $0x140] sm:$0xff]  ;;  %v1127_v0 = vpack.c.b16 %v1095_v59, %v1095_v59  ;;  %v1128_v4 = vpack.c.b16 %v1096_v16, %v1096_v16  ;;  %v2025_v16 = vpop.permute.xlu0 %2024 }
 0x1a9   : > { %v1607_v20 = vunpack.c.l.b16 %v1556_v24  ;;  %v1608_v34 = vunpack.c.h.b16 %v1556_v24  ;;  %v4136_v14 = vpack.c.b16 %v4107_v7, %v4106_v39  ;;  %v8321_v52 = vld [vmem:[#allocation2 + $0x180] sm:$0xf0]  ;;  %v3622_v24 = vpack.c.b16 %v3592_v44, %v3591_v18  ;;  %v7267_v39 = vld [vmem:[%s8681_s28 + $0x218] sm:$0xff] }
 0x1aa   : > { %v1769_v57 = vpack.c.bf16 %v7091_v25, %v7091_v25  ;;  %v5865_v59 = vadd.f32 %v9583_v22, %v9291_v27  ;;  %1191 = vst [vmem:[#allocation2 + $0x1bc] sm:$0xf] %v1127_v0  ;;  %v3083_v25 = vunpack.c.l.b16 %v2939_v51  ;;  %v7639_v18 = vor.u32 %v8318_v56, %v7636_v29  ;;  %v8319_v51 = vld [vmem:[#allocation2 + $0x174] sm:$0xf] }
 0x1ab   : > { %v6030_v42 = vpop.f32.mrf.mxu1  ;;  %v6535_v11 = vpop.f32.mrf.mxu0  ;;  %v1639_v15 = vpack.c.b16 %v1607_v20, %v1607_v20  ;;  %v1640_v17 = vpack.c.b16 %v1608_v34, %v1608_v34  ;;  %4154 = vrot.lane.b32.xlu0 %v4136_v14, %s8606_s29  ;;  %v7643_v20 = vor.u32 %v8321_v52, %v7642_v41  ;;  %3639 = vrot.lane.b32.xlu2 %v3622_v24, %s8606_s29  ;;  %v7029_v14 = vld [vmem:[%s8681_s28 + $0x141] sm:$0xff] }
 0x1ac   : > { %v6031_v37 = vadd.f32 %v6030_v42, %v5862_v50  ;;  %6405 = vmatmul.bf16.gmra.mxu3 %v7627_v26  ;;  %v2940_v50 = vpack.c.bf16 %v7267_v39, %v7267_v39  ;;  %v1897_v23 = vunpack.c.l.b16 %v1769_v57  ;;  %v7028_v42 = vld [vmem:[%s8681_s28 + $0x139] sm:$0xff]  ;;  %1192 = vst [vmem:[#allocation2 + $0x1d0] sm:$0xf] %v1128_v4  ;;  %v7155_v52 = vld [vmem:[%s8681_s28 + $0x142] sm:$0xff] }
 0x1ad   : > { %1703 = vst [vmem:[#allocation2 + $0x1c0] sm:$0xf] %v1639_v15  ;;  %v1257_v44 = vpack.c.bf16 %v7028_v42, %v7028_v42  ;;  %v1258_v15 = vpack.c.bf16 %v7029_v14, %v7029_v14  ;;  %v7154_v41 = vld [vmem:[%s8681_s28 + $0x13a] sm:$0xff] }
 0x1ae   : > { %8244 = vmatmul.msk.bf16.gmra.mxu0 %vm495_vm0, %v7631_v9  ;;  %1704 = vst [vmem:[#allocation2 + $0x1d4] sm:$0xf] %v1640_v17  ;;  %v3084_v48 = vunpack.c.l.b16 %v2940_v50  ;;  %v1917_v27 = vpack.c.b16 %v1897_v23, %v1896_v33  ;;  %v9633_v39 = vpack.c.bf16 %v7154_v41, %v7154_v41  ;;  %v873_v33 = vunpack.c.l.b16 %v9591_v32  ;;  %v7644_v23 = vld [vmem:[#allocation2 + $0x184] sm:$0xf0]  ;;  %v7395_v32 = vld [vmem:[%s8681_s28 + $0x231] sm:$0xff]  ;;  %v7328_v14 = vld [vmem:[%s8681_s28 + $0x1fa] sm:$0xff] }
 0x1af   : > { %v6199_v26 = vpop.f32.mrf.mxu2  ;;  %v6366_v7 = vpop.f32.mrf.mxu3  ;;  %v1385_v56 = vunpack.c.l.b16 %v1257_v44  ;;  %v1386_v4 = vunpack.c.l.b16 %v1258_v15  ;;  %v3965_v41 = vpack.c.bf16 %v7395_v32, %v7395_v32 }
 0x1b0   : > { %v6200_v9 = vadd.f32 %v6199_v26, %v6031_v37  ;;  %v6367_v34 = vadd.f32 %v6366_v7, %v6198_v40  ;;  %v3112_v24 = vpack.c.b16 %v3084_v48, %v3083_v25  ;;  %v9635_v37 = vpack.c.bf16 %v7155_v52, %v7155_v52  ;;  %2313 = vst.msk [vmem:[#allocation2 + $0x1c8] sm:$0xf] %vm2290_vm1, %v9633_v39 }
 0x1b1   : > { %v2069_v57 = vsel %vm495_vm0, %v1917_v27, %v2025_v16  ;;  %v874_v7 = vunpack.c.l.b16 %v9593_v53  ;;  %v7394_v16 = vld [vmem:[%s8681_s28 + $0x229] sm:$0xff]  ;;  %v5867_v53 = vadd.f32 %v9583_v22, %v9312_v8  ;;  %v3449_v52 = vpack.c.bf16 %v7328_v14, %v7328_v14  ;;  %v7093_v14 = vld [vmem:[%s8681_s28 + $0x158] sm:$0xff] }
 0x1b2   : > { %v9631_v17 = vadd.f32 %v6535_v11, %v6367_v34  ;;  %v9639_v11 = vld [vmem:[#allocation2 + $0x178] sm:$0xf]  ;;  %v2120_v50 = vunpack.c.l.b16 %v2069_v57  ;;  %v2121_v26 = vunpack.c.h.b16 %v2069_v57  ;;  %3131 = vrot.lane.b32.xlu1 %v3112_v24, %s8606_s29  ;;  %v1405_v34 = vpack.c.b16 %v1386_v4, %v1385_v56  ;;  %2314 = vst.msk [vmem:[#allocation2 + $0x1dc] sm:$0xf] %vm2290_vm1, %v9635_v37  ;;  %v7329_v27 = vld [vmem:[%s8681_s28 + $0x202] sm:$0xff]  ;;  %v1002_v56 = vpop.permute.xlu1 %1001 }
 0x1b3   : > { %v6033_v40 = vpop.f32.mrf.mxu1  ;;  %v6537_v0 = vpop.f32.mrf.mxu0  ;;  %v893_v48 = vpack.c.b16 %v874_v7, %v873_v33  ;;  %v3964_v42 = vpack.c.bf16 %v7394_v16, %v7394_v16  ;;  %v3450_v24 = vpack.c.bf16 %v7329_v27, %v7329_v27  ;;  %v4109_v8 = vunpack.c.l.b16 %v3965_v41  ;;  %v7092_v16 = vld [vmem:[%s8681_s28 + $0x150] sm:$0xff]  ;;  %v8326_v27 = vld [vmem:[#allocation2 + $0x1a8] sm:$0xf0] }
 0x1b4   : > { %10579 = vst [vmem:[#allocation38_spill] sm:$0xff] %v9631_v17  ;;  %v6034_v29 = vadd.f32 %v6033_v40, %v5865_v59  ;;  %6241 = vmatmul.bf16.gmra.mxu2 %v7643_v20  ;;  %v8322_v59 = vld [vmem:[#allocation2 + $0x188] sm:$0xf0]  ;;  %v2152_v20 = vpack.c.b16 %v2120_v50, %v2120_v50  ;;  %v2153_v25 = vpack.c.b16 %v2121_v26, %v2121_v26  ;;  %v1514_v50 = vpop.permute.xlu2 %1513  ;;  %v3593_v7 = vunpack.c.l.b16 %v3449_v52 }
 0x1b5   : > { %v4108_v4 = vunpack.c.l.b16 %v3964_v42  ;;  %v7651_v33 = vor.u32 %v8322_v59, %v9639_v11  ;;  %v1047_v26 = vsel %vm495_vm0, %v893_v48, %v1002_v56  ;;  %v1559_v32 = vsel %vm495_vm0, %v1405_v34, %v1514_v50  ;;  %v7662_v48 = vld [vmem:[#allocation2 + $0x198] sm:$0xf]  ;;  %v7268_v56 = vld [vmem:[%s8681_s28 + $0x228] sm:$0xff]  ;;  %v7269_v50 = vld [vmem:[%s8681_s28 + $0x230] sm:$0xff] }
 0x1b6   : > { %6072 = vmatmul.bf16.gmra.mxu1 %v7639_v18  ;;  %v7647_v18 = vor.u32 %v8319_v51, %v7644_v23  ;;  %2216 = vst [vmem:[#allocation2 + $0x1c4] sm:$0xf] %v2152_v20  ;;  %v1609_v20 = vunpack.c.l.b16 %v1559_v32  ;;  %v1610_v42 = vunpack.c.h.b16 %v1559_v32  ;;  %v3594_v59 = vunpack.c.l.b16 %v3450_v24 }
 0x1b7   : > { %v6202_v44 = vpop.f32.mrf.mxu2  ;;  %v6368_v15 = vpop.f32.mrf.mxu3  ;;  %2217 = vst [vmem:[#allocation2 + $0x1d8] sm:$0xf] %v2153_v25  ;;  %v4137_v11 = vpack.c.b16 %v4109_v8, %v4108_v4  ;;  %v7656_v4 = vld [vmem:[#allocation2 + $0x1a4] sm:$0xf0]  ;;  %v2941_v24 = vpack.c.bf16 %v7268_v56, %v7268_v56  ;;  %v5870_v8 = vadd.f32 %v9583_v22, %v9338_v63 }
 0x1b8   : > { %v6203_v40 = vadd.f32 %v6202_v44, %v6034_v29  ;;  %v6369_v57 = vadd.f32 %v6368_v15, %v6200_v9  ;;  %v1097_v29 = vunpack.c.l.b16 %v1047_v26  ;;  %v1098_v9 = vunpack.c.h.b16 %v1047_v26  ;;  %v8323_v26 = vld [vmem:[#allocation2 + $0x194] sm:$0xf] }
 0x1b9   : > { %v1770_v15 = vpack.c.bf16 %v7092_v16, %v7092_v16  ;;  %v1641_v41 = vpack.c.b16 %v1609_v20, %v1609_v20  ;;  %v1642_v34 = vpack.c.b16 %v1610_v42, %v1610_v42  ;;  %4156 = vrot.lane.b32.xlu0 %v4137_v11, %s8606_s29  ;;  %v3623_v52 = vpack.c.b16 %v3594_v59, %v3593_v7  ;;  %v7030_v42 = vld [vmem:[%s8681_s28 + $0x151] sm:$0xff]  ;;  %v7031_v11 = vld [vmem:[%s8681_s28 + $0x159] sm:$0xff] }
 0x1ba   : > { %v9656_v17 = vadd.f32 %v6537_v0, %v6369_v57  ;;  %v1129_v44 = vpack.c.b16 %v1097_v29, %v1097_v29  ;;  %v1130_v0 = vpack.c.b16 %v1098_v9, %v1098_v9  ;;  %v1771_v57 = vpack.c.bf16 %v7093_v14, %v7093_v14  ;;  %v2027_v14 = vpop.permute.xlu0 %2026 }
 0x1bb   : > { %v6035_v51 = vpop.f32.mrf.mxu1  ;;  %v6540_v23 = vpop.f32.mrf.mxu0  ;;  %v7663_v29 = vor.u32 %v8326_v27, %v7662_v48  ;;  %1705 = vst [vmem:[#allocation2 + $0x1e8] sm:$0xf] %v1641_v41  ;;  %3641 = vrot.lane.b32.xlu2 %v3623_v52, %s8606_s29  ;;  %v7659_v59 = vor.u32 %v8323_v26, %v7656_v4  ;;  %v7156_v48 = vld [vmem:[%s8681_s28 + $0x152] sm:$0xff]  ;;  %v7157_v27 = vld [vmem:[%s8681_s28 + $0x15a] sm:$0xff]  ;;  %v875_v26 = vunpack.c.l.b16 %v9633_v39  ;;  %v7397_v39 = vld [vmem:[%s8681_s28 + $0x249] sm:$0xff] }
 0x1bc   : > { %v6036_v25 = vadd.f32 %v6035_v51, %v5867_v53  ;;  %6410 = vmatmul.bf16.gmra.mxu3 %v7647_v18  ;;  %1193 = vst [vmem:[#allocation2 + $0x1e4] sm:$0xf] %v1129_v44  ;;  %v1898_v53 = vunpack.c.l.b16 %v1770_v15  ;;  %v2942_v18 = vpack.c.bf16 %v7269_v50, %v7269_v50  ;;  %v3085_v51 = vunpack.c.l.b16 %v2941_v24 }
 0x1bd   : > { %1706 = vst [vmem:[#allocation2 + $0x1fc] sm:$0xf] %v1642_v34  ;;  %v1259_v44 = vpack.c.bf16 %v7030_v42, %v7030_v42  ;;  %v1260_v15 = vpack.c.bf16 %v7031_v11, %v7031_v11  ;;  %v9673_v56 = vpack.c.bf16 %v7156_v48, %v7156_v48  ;;  %v7330_v42 = vld [vmem:[%s8681_s28 + $0x212] sm:$0xff]  ;;  %v7331_v11 = vld [vmem:[%s8681_s28 + $0x21a] sm:$0xff] }
 0x1be   : > { %8245 = vmatmul.msk.bf16.gmra.mxu0 %vm495_vm0, %v7651_v33  ;;  %v1899_v33 = vunpack.c.l.b16 %v1771_v57  ;;  %v3086_v20 = vunpack.c.l.b16 %v2942_v18  ;;  %1194 = vst [vmem:[#allocation2 + $0x1f8] sm:$0xf] %v1130_v0  ;;  %v3451_v48 = vpack.c.bf16 %v7330_v42, %v7330_v42  ;;  %v7095_v42 = vld [vmem:[%s8681_s28 + $0x170] sm:$0xff] }
 0x1bf   : > { %v6204_v16 = vpop.f32.mrf.mxu2  ;;  %v6371_v32 = vpop.f32.mrf.mxu3  ;;  %v1387_v50 = vunpack.c.l.b16 %v1259_v44  ;;  %v1388_v0 = vunpack.c.l.b16 %v1260_v15  ;;  %2315 = vst.msk [vmem:[#allocation2 + $0x1f0] sm:$0xf] %vm2290_vm1, %v9673_v56  ;;  %v3967_v15 = vpack.c.bf16 %v7397_v39, %v7397_v39 }
 0x1c0   : > { %v6205_v7 = vadd.f32 %v6204_v16, %v6036_v25  ;;  %v6372_v9 = vadd.f32 %v6371_v32, %v6203_v40  ;;  %v1918_v63 = vpack.c.b16 %v1899_v33, %v1898_v53  ;;  %v3113_v52 = vpack.c.b16 %v3086_v20, %v3085_v51  ;;  %v8324_v53 = vld [vmem:[#allocation2 + $0x19c] sm:$0xf]  ;;  %v7664_v32 = vld [vmem:[#allocation2 + $0x1ac] sm:$0xf0] }
 0x1c1   : > { %v9675_v25 = vpack.c.bf16 %v7157_v27, %v7157_v27  ;;  %v876_v16 = vunpack.c.l.b16 %v9635_v37  ;;  %v1406_v33 = vpack.c.b16 %v1388_v0, %v1387_v50  ;;  %v5872_v37 = vadd.f32 %v9583_v22, %v9357_v58  ;;  %v1004_v50 = vpop.permute.xlu1 %1003 }
 0x1c2   : > { %v9671_v41 = vadd.f32 %v6540_v23, %v6372_v9  ;;  %v2072_v57 = vsel %vm495_vm0, %v1918_v63, %v2027_v14  ;;  %v9679_v23 = vld [vmem:[#allocation2 + $0x1a0] sm:$0xf]  ;;  %3133 = vrot.lane.b32.xlu1 %v3113_v52, %s8606_s29  ;;  %v3452_v27 = vpack.c.bf16 %v7331_v11, %v7331_v11 }
 0x1c3   : > { %v6038_v40 = vpop.f32.mrf.mxu1  ;;  %v6542_v34 = vpop.f32.mrf.mxu0  ;;  %v2122_v24 = vunpack.c.l.b16 %v2072_v57  ;;  %v2123_v18 = vunpack.c.h.b16 %v2072_v57  ;;  %v7396_v9 = vld [vmem:[%s8681_s28 + $0x241] sm:$0xff]  ;;  %2316 = vst.msk [vmem:[#allocation2 + $0x204] sm:$0xf] %vm2290_vm1, %v9675_v25  ;;  %v894_v51 = vpack.c.b16 %v876_v16, %v875_v26 }
 0x1c4   : > { %v6039_v4 = vadd.f32 %v6038_v40, %v5870_v8  ;;  %6246 = vmatmul.bf16.gmra.mxu2 %v7663_v29  ;;  %v8327_v8 = vld [vmem:[#allocation2 + $0x1b0] sm:$0xf0]  ;;  %v3966_v20 = vpack.c.bf16 %v7396_v9, %v7396_v9  ;;  %v1516_v57 = vpop.permute.xlu2 %1515 }
 0x1c5   : > { %v2154_v29 = vpack.c.b16 %v2122_v24, %v2122_v24  ;;  %v2155_v14 = vpack.c.b16 %v2123_v18, %v2123_v18  ;;  %v7671_v26 = vor.u32 %v8327_v8, %v9679_v23  ;;  %v1562_v24 = vsel %vm495_vm0, %v1406_v33, %v1516_v57  ;;  %v7682_v33 = vld [vmem:[#allocation2 + $0x1c0] sm:$0xf] }
 0x1c6   : > { %6077 = vmatmul.bf16.gmra.mxu1 %v7659_v59  ;;  %v7667_v59 = vor.u32 %v8324_v53, %v7664_v32  ;;  %v4110_v0 = vunpack.c.l.b16 %v3966_v20  ;;  %v1050_v58 = vsel %vm495_vm0, %v894_v51, %v1004_v50  ;;  %v4111_v18 = vunpack.c.l.b16 %v3967_v15  ;;  %v8331_v51 = vld [vmem:[#allocation2 + $0x1d0] sm:$0xf0]  ;;  %v7270_v50 = vld [vmem:[%s8681_s28 + $0x240] sm:$0xff] }
 0x1c7   : > { %v6207_v63 = vpop.f32.mrf.mxu2  ;;  %v6373_v44 = vpop.f32.mrf.mxu3  ;;  %2218 = vst [vmem:[#allocation2 + $0x1ec] sm:$0xf] %v2154_v29  ;;  %v1611_v9 = vunpack.c.l.b16 %v1562_v24  ;;  %v1099_v39 = vunpack.c.l.b16 %v1050_v58  ;;  %v1100_v29 = vunpack.c.h.b16 %v1050_v58  ;;  %v3595_v23 = vunpack.c.l.b16 %v3451_v48  ;;  %v7676_v48 = vld [vmem:[#allocation2 + $0x1cc] sm:$0xf0] }
 0x1c8   : > { %v6208_v52 = vadd.f32 %v6207_v63, %v6039_v4  ;;  %v6374_v40 = vadd.f32 %v6373_v44, %v6205_v7  ;;  %2219 = vst [vmem:[#allocation2 + $0x200] sm:$0xf] %v2155_v14  ;;  %v1612_v4 = vunpack.c.h.b16 %v1562_v24  ;;  %v7094_v7 = vld [vmem:[%s8681_s28 + $0x168] sm:$0xff]  ;;  %v4138_v20 = vpack.c.b16 %v4111_v18, %v4110_v0  ;;  %v8328_v0 = vld [vmem:[#allocation2 + $0x1bc] sm:$0xf] }
 0x1c9   : > { %v3596_v8 = vunpack.c.l.b16 %v3452_v27  ;;  %v1643_v11 = vpack.c.b16 %v1611_v9, %v1611_v9  ;;  %v1131_v63 = vpack.c.b16 %v1099_v39, %v1099_v39  ;;  %v1132_v44 = vpack.c.b16 %v1100_v29, %v1100_v29  ;;  %v7271_v24 = vld [vmem:[%s8681_s28 + $0x248] sm:$0xff] }
 0x1ca   : > { %v9696_v16 = vadd.f32 %v6542_v34, %v6374_v40  ;;  %v1644_v34 = vpack.c.b16 %v1612_v4, %v1612_v4  ;;  %4158 = vrot.lane.b32.xlu0 %v4138_v20, %s8606_s29  ;;  %v1772_v40 = vpack.c.bf16 %v7094_v7, %v7094_v7  ;;  %v1773_v57 = vpack.c.bf16 %v7095_v42, %v7095_v42  ;;  %v2029_v42 = vpop.permute.xlu0 %2028  ;;  %v7032_v20 = vld [vmem:[%s8681_s28 + $0x169] sm:$0xff] }
 0x1cb   : > { %v6040_v53 = vpop.f32.mrf.mxu1  ;;  %v6545_v32 = vpop.f32.mrf.mxu0  ;;  %v3624_v15 = vpack.c.b16 %v3596_v8, %v3595_v23  ;;  %1707 = vst [vmem:[#allocation2 + $0x210] sm:$0xf] %v1643_v11  ;;  %v2944_v27 = vpack.c.bf16 %v7271_v24, %v7271_v24  ;;  %v7683_v9 = vor.u32 %v8331_v51, %v7682_v33  ;;  %v7033_v23 = vld [vmem:[%s8681_s28 + $0x171] sm:$0xff]  ;;  %v7679_v8 = vor.u32 %v8328_v0, %v7676_v48 }
 0x1cc   : > { %v6041_v14 = vadd.f32 %v6040_v53, %v5872_v37  ;;  %6415 = vmatmul.bf16.gmra.mxu3 %v7667_v59  ;;  %v2943_v37 = vpack.c.bf16 %v7270_v50, %v7270_v50  ;;  %v5875_v59 = vadd.f32 %v9583_v22, %v9384_v61  ;;  %1708 = vst [vmem:[#allocation2 + $0x224] sm:$0xf] %v1644_v34  ;;  %v1900_v4 = vunpack.c.l.b16 %v1772_v40  ;;  %v7158_v51 = vld [vmem:[%s8681_s28 + $0x16a] sm:$0xff]  ;;  %v7159_v34 = vld [vmem:[%s8681_s28 + $0x172] sm:$0xff] }
 0x1cd   : > { %3643 = vrot.lane.b32.xlu2 %v3624_v15, %s8606_s29  ;;  %1195 = vst [vmem:[#allocation2 + $0x20c] sm:$0xf] %v1131_v63  ;;  %v3088_v29 = vunpack.c.l.b16 %v2944_v27  ;;  %v1261_v11 = vpack.c.bf16 %v7032_v20, %v7032_v20  ;;  %v1262_v33 = vpack.c.bf16 %v7033_v23, %v7033_v23  ;;  %v9713_v50 = vpack.c.bf16 %v7158_v51, %v7158_v51  ;;  %v7332_v20 = vld [vmem:[%s8681_s28 + $0x22a] sm:$0xff]  ;;  %v7333_v23 = vld [vmem:[%s8681_s28 + $0x232] sm:$0xff] }
 0x1ce   : > { %8246 = vmatmul.msk.bf16.gmra.mxu0 %vm495_vm0, %v7671_v26  ;;  %v1901_v26 = vunpack.c.l.b16 %v1773_v57  ;;  %v3087_v53 = vunpack.c.l.b16 %v2943_v37  ;;  %1196 = vst [vmem:[#allocation2 + $0x220] sm:$0xf] %v1132_v44  ;;  %v877_v0 = vunpack.c.l.b16 %v9673_v56  ;;  %v8329_v37 = vld [vmem:[#allocation2 + $0x1c4] sm:$0xf]  ;;  %v3453_v51 = vpack.c.bf16 %v7332_v20, %v7332_v20  ;;  %v7097_v20 = vld [vmem:[%s8681_s28 + $0x188] sm:$0xff] }
 0x1cf   : > { %v6209_v58 = vpop.f32.mrf.mxu2  ;;  %v6376_v18 = vpop.f32.mrf.mxu3  ;;  %v1389_v24 = vunpack.c.l.b16 %v1261_v11  ;;  %v1390_v44 = vunpack.c.l.b16 %v1262_v33  ;;  %2317 = vst.msk [vmem:[#allocation2 + $0x218] sm:$0xf] %vm2290_vm1, %v9713_v50  ;;  %v7399_v56 = vld [vmem:[%s8681_s28 + $0x261] sm:$0xff] }
 0x1d0   : > { %v6210_v39 = vadd.f32 %v6209_v58, %v6041_v14  ;;  %v6377_v7 = vadd.f32 %v6376_v18, %v6208_v52  ;;  %v1919_v61 = vpack.c.b16 %v1901_v26, %v1900_v4  ;;  %v3114_v40 = vpack.c.b16 %v3088_v29, %v3087_v53  ;;  %v7684_v4 = vld [vmem:[#allocation2 + $0x1d4] sm:$0xf0] }
 0x1d1   : > { %v9715_v14 = vpack.c.bf16 %v7159_v34, %v7159_v34  ;;  %v878_v18 = vunpack.c.l.b16 %v9675_v25  ;;  %v1407_v26 = vpack.c.b16 %v1390_v44, %v1389_v24  ;;  %v5877_v25 = vadd.f32 %v9583_v22, %v9405_v28 }
 0x1d2   : > { %v9711_v15 = vadd.f32 %v6545_v32, %v6377_v7  ;;  %v2075_v57 = vsel %vm495_vm0, %v1919_v61, %v2029_v42  ;;  %v9719_v32 = vld [vmem:[#allocation2 + $0x1c8] sm:$0xf]  ;;  %3135 = vrot.lane.b32.xlu1 %v3114_v40, %s8606_s29  ;;  %v7398_v7 = vld [vmem:[%s8681_s28 + $0x259] sm:$0xff]  ;;  %v3969_v33 = vpack.c.bf16 %v7399_v56, %v7399_v56  ;;  %v3454_v34 = vpack.c.bf16 %v7333_v23, %v7333_v23 }
 0x1d3   : > { %v6043_v52 = vpop.f32.mrf.mxu1  ;;  %v6547_v63 = vpop.f32.mrf.mxu0  ;;  %v2124_v27 = vunpack.c.l.b16 %v2075_v57  ;;  %v2125_v58 = vunpack.c.h.b16 %v2075_v57  ;;  %2318 = vst.msk [vmem:[#allocation2 + $0x22c] sm:$0xf] %vm2290_vm1, %v9715_v14  ;;  %v895_v53 = vpack.c.b16 %v878_v18, %v877_v0  ;;  %v3968_v29 = vpack.c.bf16 %v7398_v7, %v7398_v7  ;;  %v7096_v18 = vld [vmem:[%s8681_s28 + $0x180] sm:$0xff]  ;;  %v8336_v23 = vld [vmem:[#allocation2 + $0x1f8] sm:$0xf0] }
 0x1d4   : > { %v6044_v48 = vadd.f32 %v6043_v52, %v5875_v59  ;;  %6251 = vmatmul.bf16.gmra.mxu2 %v7683_v9  ;;  %v8332_v59 = vld [vmem:[#allocation2 + $0x1d8] sm:$0xf0]  ;;  %v1006_v57 = vpop.permute.xlu1 %1005  ;;  %v1518_v0 = vpop.permute.xlu2 %1517  ;;  %v4113_v28 = vunpack.c.l.b16 %v3969_v33 }
 0x1d5   : > { %v2156_v9 = vpack.c.b16 %v2124_v27, %v2124_v27  ;;  %v2157_v42 = vpack.c.b16 %v2125_v58, %v2125_v58  ;;  %v4112_v24 = vunpack.c.l.b16 %v3968_v29  ;;  %v7691_v44 = vor.u32 %v8332_v59, %v9719_v32 }
 0x1d6   : > { %6082 = vmatmul.bf16.gmra.mxu1 %v7679_v8  ;;  %v7687_v8 = vor.u32 %v8329_v37, %v7684_v4  ;;  %v1053_v27 = vsel %vm495_vm0, %v895_v53, %v1006_v57  ;;  %v3597_v58 = vunpack.c.l.b16 %v3453_v51  ;;  %v1565_v56 = vsel %vm495_vm0, %v1407_v26, %v1518_v0  ;;  %v7702_v53 = vld [vmem:[#allocation2 + $0x1e8] sm:$0xf]  ;;  %v7272_v57 = vld [vmem:[%s8681_s28 + $0x258] sm:$0xff]  ;;  %v7273_v0 = vld [vmem:[%s8681_s28 + $0x260] sm:$0xff] }
 0x1d7   : > { %v6212_v61 = vpop.f32.mrf.mxu2  ;;  %v6378_v11 = vpop.f32.mrf.mxu3  ;;  %2220 = vst [vmem:[#allocation2 + $0x214] sm:$0xf] %v2156_v9  ;;  %v1613_v9 = vunpack.c.l.b16 %v1565_v56  ;;  %v1614_v29 = vunpack.c.h.b16 %v1565_v56  ;;  %v4139_v32 = vpack.c.b16 %v4113_v28, %v4112_v24  ;;  %v3598_v59 = vunpack.c.l.b16 %v3454_v34  ;;  %v7696_v24 = vld [vmem:[#allocation2 + $0x1f4] sm:$0xf0] }
 0x1d8   : > { %v6213_v40 = vadd.f32 %v6212_v61, %v6044_v48  ;;  %v6379_v52 = vadd.f32 %v6378_v11, %v6210_v39  ;;  %2221 = vst [vmem:[#allocation2 + $0x228] sm:$0xf] %v2157_v42  ;;  %v1101_v48 = vunpack.c.l.b16 %v1053_v27  ;;  %v1102_v39 = vunpack.c.h.b16 %v1053_v27  ;;  %v8333_v27 = vld [vmem:[#allocation2 + $0x1e4] sm:$0xf] }
 0x1d9   : > { %v1774_v11 = vpack.c.bf16 %v7096_v18, %v7096_v18  ;;  %v1645_v33 = vpack.c.b16 %v1613_v9, %v1613_v9  ;;  %v1646_v26 = vpack.c.b16 %v1614_v29, %v1614_v29  ;;  %4160 = vrot.lane.b32.xlu0 %v4139_v32, %s8606_s29  ;;  %v3625_v51 = vpack.c.b16 %v3598_v59, %v3597_v58  ;;  %v7034_v29 = vld [vmem:[%s8681_s28 + $0x181] sm:$0xff]  ;;  %v7035_v32 = vld [vmem:[%s8681_s28 + $0x189] sm:$0xff] }
 0x1da   : > { %v9736_v7 = vadd.f32 %v6547_v63, %v6379_v52  ;;  %v1133_v61 = vpack.c.b16 %v1101_v48, %v1101_v48  ;;  %v1134_v63 = vpack.c.b16 %v1102_v39, %v1102_v39  ;;  %v1775_v52 = vpack.c.bf16 %v7097_v20, %v7097_v20 }
 0x1db   : > { %v6045_v37 = vpop.f32.mrf.mxu1  ;;  %v6550_v4 = vpop.f32.mrf.mxu0  ;;  %v2945_v34 = vpack.c.bf16 %v7272_v57, %v7272_v57  ;;  %v5880_v28 = vadd.f32 %v9583_v22, %v9432_v46  ;;  %v7703_v48 = vor.u32 %v8336_v23, %v7702_v53  ;;  %1709 = vst [vmem:[#allocation2 + $0x238] sm:$0xf] %v1645_v33  ;;  %3645 = vrot.lane.b32.xlu2 %v3625_v51, %s8606_s29  ;;  %v7160_v53 = vld [vmem:[%s8681_s28 + $0x182] sm:$0xff]  ;;  %v7161_v23 = vld [vmem:[%s8681_s28 + $0x18a] sm:$0xff] }
 0x1dc   : > { %v6046_v42 = vadd.f32 %v6045_v37, %v5877_v25  ;;  %6420 = vmatmul.bf16.gmra.mxu3 %v7687_v8  ;;  %1197 = vst [vmem:[#allocation2 + $0x234] sm:$0xf] %v1133_v61  ;;  %v1902_v25 = vunpack.c.l.b16 %v1774_v11  ;;  %v2946_v8 = vpack.c.bf16 %v7273_v0, %v7273_v0  ;;  %v2031_v20 = vpop.permute.xlu0 %2030  ;;  %v7699_v59 = vor.u32 %v8333_v27, %v7696_v24  ;;  %v8334_v24 = vld [vmem:[#allocation2 + $0x1ec] sm:$0xf] }
 0x1dd   : > { %1710 = vst [vmem:[#allocation2 + $0x24c] sm:$0xf] %v1646_v26  ;;  %v3089_v37 = vunpack.c.l.b16 %v2945_v34  ;;  %v1263_v61 = vpack.c.bf16 %v7034_v29, %v7034_v29  ;;  %v1264_v11 = vpack.c.bf16 %v7035_v32, %v7035_v32  ;;  %v2286_v57 = vpack.c.bf16 %v7160_v53, %v7160_v53  ;;  %v7334_v32 = vld [vmem:[%s8681_s28 + $0x242] sm:$0xff] }
 0x1de   : > { %8247 = vmatmul.msk.bf16.gmra.mxu0 %vm495_vm0, %v7691_v44  ;;  %v1903_v44 = vunpack.c.l.b16 %v1775_v52  ;;  %v3090_v9 = vunpack.c.l.b16 %v2946_v8  ;;  %1198 = vst [vmem:[#allocation2 + $0x248] sm:$0xf] %v1134_v63  ;;  %v2287_v52 = vpack.c.bf16 %v7161_v23, %v7161_v23  ;;  %v879_v63 = vunpack.c.l.b16 %v9713_v50  ;;  %v8337_v50 = vld [vmem:[#allocation2 + $0x200] sm:$0xf0] }
 0x1df   : > { %v6214_v18 = vpop.f32.mrf.mxu2  ;;  %v6381_v56 = vpop.f32.mrf.mxu3  ;;  %v1391_v0 = vunpack.c.l.b16 %v1263_v61  ;;  %v1392_v34 = vunpack.c.l.b16 %v1264_v11  ;;  %2319 = vst.msk [vmem:[#allocation2 + $0x240] sm:$0xf] %vm2290_vm1, %v2286_v57 }
 0x1e0   : > { %v6215_v58 = vadd.f32 %v6214_v18, %v6046_v42  ;;  %v6382_v39 = vadd.f32 %v6381_v56, %v6213_v40  ;;  %v1920_v46 = vpack.c.b16 %v1903_v44, %v1902_v25  ;;  %v3115_v51 = vpack.c.b16 %v3090_v9, %v3089_v37  ;;  %v7704_v25 = vld [vmem:[#allocation2 + $0x1fc] sm:$0xf0]  ;;  %v7710_v56 = vld [vmem:[#allocation2 + $0x1f0] sm:$0xf]  ;;  %2320 = vst.msk [vmem:[#allocation2 + $0x254] sm:$0xf] %vm2290_vm1, %v2287_v52 }
 0x1e1   : > { %v880_v18 = vunpack.c.l.b16 %v9715_v14  ;;  %v1408_v44 = vpack.c.b16 %v1392_v34, %v1391_v0  ;;  %v5882_v14 = vadd.f32 %v9583_v22, %v9453_v19  ;;  %v7707_v53 = vor.u32 %v8334_v24, %v7704_v25  ;;  %v7098_v19 = vld [vmem:[%s8681_s28 + $0x198] sm:$0xff] }
 0x1e2   : > { %v9751_v33 = vadd.f32 %v6550_v4, %v6382_v39  ;;  %v2078_v26 = vsel %vm495_vm0, %v1920_v46, %v2031_v20  ;;  %3137 = vrot.lane.b32.xlu1 %v3115_v51, %s8606_s29  ;;  %v7400_v39 = vld [vmem:[%s8681_s28 + $0x271] sm:$0xff]  ;;  %v7401_v20 = vld [vmem:[%s8681_s28 + $0x279] sm:$0xff]  ;;  %v3455_v51 = vpack.c.bf16 %v7334_v32, %v7334_v32 }
 0x1e3   : > { %v6048_v42 = vpop.f32.mrf.mxu1  ;;  %v6552_v40 = vpop.f32.mrf.mxu0  ;;  %v2126_v8 = vunpack.c.l.b16 %v2078_v26  ;;  %v2127_v4 = vunpack.c.h.b16 %v2078_v26  ;;  %v896_v37 = vpack.c.b16 %v880_v18, %v879_v63  ;;  %v3970_v29 = vpack.c.bf16 %v7400_v39, %v7400_v39  ;;  %v7335_v46 = vld [vmem:[%s8681_s28 + $0x24a] sm:$0xff] }
 0x1e4   : > { %v6049_v27 = vadd.f32 %v6048_v42, %v5880_v28  ;;  %6256 = vmatmul.bf16.gmra.mxu2 %v7703_v48  ;;  %v3971_v23 = vpack.c.bf16 %v7401_v20, %v7401_v20  ;;  %v3456_v42 = vpack.c.bf16 %v7335_v46, %v7335_v46  ;;  %v7711_v26 = vor.u32 %v8337_v50, %v7710_v56 }
 0x1e5   : > { %v2158_v28 = vpack.c.b16 %v2126_v8, %v2126_v8  ;;  %v2159_v48 = vpack.c.b16 %v2127_v4, %v2127_v4  ;;  %v1008_v9 = vpop.permute.xlu1 %1007  ;;  %v4114_v8 = vunpack.c.l.b16 %v3970_v29  ;;  %v3599_v4 = vunpack.c.l.b16 %v3455_v51  ;;  %v8341_v29 = vld [vmem:[#allocation2 + $0x220] sm:$0xf0]  ;;  %v7716_v51 = vld [vmem:[#allocation2 + $0x21c] sm:$0xf0] }
 0x1e6   : > { %6087 = vmatmul.bf16.gmra.mxu1 %v7699_v59  ;;  %v1056_v52 = vsel %vm495_vm0, %v896_v37, %v1008_v9  ;;  %v1520_v0 = vpop.permute.xlu2 %1519  ;;  %v4115_v25 = vunpack.c.l.b16 %v3971_v23  ;;  %v3600_v9 = vunpack.c.l.b16 %v3456_v42  ;;  %v8338_v23 = vld [vmem:[#allocation2 + $0x20c] sm:$0xf] }
 0x1e7   : > { %v6217_v61 = vpop.f32.mrf.mxu2  ;;  %v6383_v11 = vpop.f32.mrf.mxu3  ;;  %2222 = vst [vmem:[#allocation2 + $0x23c] sm:$0xf] %v2158_v28  ;;  %v1103_v34 = vunpack.c.l.b16 %v1056_v52  ;;  %v1104_v63 = vunpack.c.h.b16 %v1056_v52  ;;  %v1568_v24 = vsel %vm495_vm0, %v1408_v44, %v1520_v0  ;;  %v9778_v52 = vld [vmem:[%s10543_s2] ss:$0 sm:$0xff] }
 0x1e8   : > { %v6218_v57 = vadd.f32 %v6217_v61, %v6049_v27  ;;  %v6384_v59 = vadd.f32 %v6383_v11, %v6215_v58  ;;  %2223 = vst [vmem:[#allocation2 + $0x250] sm:$0xf] %v2159_v48  ;;  %v7099_v27 = vld [vmem:[%s8681_s28 + $0x1a0] sm:$0xff]  ;;  %v1615_v39 = vunpack.c.l.b16 %v1568_v24  ;;  %v1616_v20 = vunpack.c.h.b16 %v1568_v24  ;;  %v7722_v48 = vld [vmem:[#allocation2 + $0x210] sm:$0xf]  ;;  %v7275_v11 = vld [vmem:[%s8681_s28 + $0x278] sm:$0xff] }
 0x1e9   : > { %v1135_v56 = vpack.c.b16 %v1103_v34, %v1103_v34  ;;  %v1136_v50 = vpack.c.b16 %v1104_v63, %v1104_v63  ;;  %v4140_v37 = vpack.c.b16 %v4115_v25, %v4114_v8  ;;  %v1777_v46 = vpack.c.bf16 %v7099_v27, %v7099_v27  ;;  %v7274_v61 = vld [vmem:[%s8681_s28 + $0x270] sm:$0xff] }
 0x1ea   : > { %v9767_v22 = vadd.f32 %v6552_v40, %v6384_v59  ;;  %v1776_v40 = vpack.c.bf16 %v7098_v19, %v7098_v19  ;;  %v1647_v32 = vpack.c.b16 %v1615_v39, %v1615_v39  ;;  %v1648_v44 = vpack.c.b16 %v1616_v20, %v1616_v20  ;;  %v2033_v25 = vpop.permute.xlu0 %2032  ;;  %v7292_v27 = vld [vmem:[%s8681_s28 + $0x1c9] sm:$0xff] }
 0x1eb   : > { %v6050_v18 = vpop.f32.mrf.mxu1  ;;  %v6555_v58 = vpop.f32.mrf.mxu0  ;;  %1199 = vst [vmem:[#allocation2 + $0x25c] sm:$0xf] %v1135_v56  ;;  %4162 = vrot.lane.b32.xlu0 %v4140_v37, %s8606_s29  ;;  %v2947_v59 = vpack.c.bf16 %v7274_v61, %v7274_v61  ;;  %v5885_v42 = vadd.f32 %v9778_v52, %v9477_v35  ;;  %v1905_v34 = vunpack.c.l.b16 %v1777_v46  ;;  %v2948_v63 = vpack.c.bf16 %v7275_v11, %v7275_v11  ;;  %v7229_v37 = vld [vmem:[%s8681_s28 + $0x1ba] sm:$0xff]  ;;  %v9793_v61 = vld [vmem:[#allocation2 + $0x228] sm:$0xf0] }
 0x1ec   : > { %v6051_v28 = vadd.f32 %v6050_v18, %v5882_v14  ;;  %6425 = vmatmul.bf16.gmra.mxu3 %v7707_v53  ;;  %1200 = vst [vmem:[#allocation2 + $0x270] sm:$0xf] %v1136_v50  ;;  %v3626_v14 = vpack.c.b16 %v3600_v9, %v3599_v4  ;;  %v1904_v53 = vunpack.c.l.b16 %v1776_v40  ;;  %v7723_v24 = vor.u32 %v8341_v29, %v7722_v48  ;;  %v7293_v18 = vld [vmem:[%s8681_s28 + $0x1d1] sm:$0xff]  ;;  %v7162_v9 = vld [vmem:[%s8681_s28 + $0x19a] sm:$0xff]  ;;  %v7163_v29 = vld [vmem:[%s8681_s28 + $0x1a2] sm:$0xff] }
 0x1ed   : > { %1711 = vst [vmem:[#allocation2 + $0x260] sm:$0xf] %v1647_v32  ;;  %v3091_v4 = vunpack.c.l.b16 %v2947_v59  ;;  %v7719_v35 = vor.u32 %v8338_v23, %v7716_v51  ;;  %v3092_v20 = vunpack.c.l.b16 %v2948_v63  ;;  %v3381_v56 = vpack.c.bf16 %v7292_v27, %v7292_v27  ;;  %v7228_v50 = vld [vmem:[%s8681_s28 + $0x1b2] sm:$0xff]  ;;  %v7724_v63 = vld [vmem:[#allocation2 + $0x224] sm:$0xf0] }
 0x1ee   : > { %8248 = vmatmul.msk.bf16.gmra.mxu0 %vm495_vm0, %v7711_v26  ;;  %1712 = vst [vmem:[#allocation2 + $0x274] sm:$0xf] %v1648_v44  ;;  %3647 = vrot.lane.b32.xlu2 %v3626_v14, %s8606_s29  ;;  %v1921_v39 = vpack.c.b16 %v1905_v34, %v1904_v53  ;;  %v2869_v48 = vpack.c.bf16 %v7229_v37, %v7229_v37  ;;  %v9791_v46 = vld [vmem:[#allocation2 + $0x218] sm:$0xf]  ;;  %v7402_v27 = vld [vmem:[%s8681_s28 + $0x289] sm:$0xff] }
 0x1ef   : > { %v6219_v0 = vpop.f32.mrf.mxu2  ;;  %v6386_v26 = vpop.f32.mrf.mxu3  ;;  %v3116_v23 = vpack.c.b16 %v3092_v20, %v3091_v4  ;;  %v3509_v51 = vunpack.c.l.b16 %v3381_v56  ;;  %v2288_v14 = vpack.c.bf16 %v7162_v9, %v7162_v9  ;;  %v5887_v34 = vadd.f32 %v9778_v52, %v9498_v2  ;;  %v7403_v4 = vld [vmem:[%s8681_s28 + $0x291] sm:$0xff]  ;;  %v7336_v2 = vld [vmem:[%s8681_s28 + $0x25a] sm:$0xff] }
 0x1f0   : > { %v6220_v8 = vadd.f32 %v6219_v0, %v6051_v28  ;;  %v6387_v19 = vadd.f32 %v6386_v26, %v6218_v57  ;;  %v3382_v28 = vpack.c.bf16 %v7293_v18, %v7293_v18  ;;  %v2868_v57 = vpack.c.bf16 %v7228_v50, %v7228_v50  ;;  %v7337_v50 = vld [vmem:[%s8681_s28 + $0x262] sm:$0xff] }
 0x1f1   : > { %v2081_v11 = vsel %vm495_vm0, %v1921_v39, %v2033_v25  ;;  %3139 = vrot.lane.b32.xlu1 %v3116_v23, %s8606_s29  ;;  %v2998_v25 = vunpack.c.l.b16 %v2869_v48  ;;  %v2289_v18 = vpack.c.bf16 %v7163_v29, %v7163_v29  ;;  %2321 = vst.msk [vmem:[#allocation2 + $0x268] sm:$0xf] %vm2290_vm1, %v2288_v14  ;;  %v3973_v48 = vpack.c.bf16 %v7403_v4, %v7403_v4 }
 0x1f2   : > { %v9788_v40 = vadd.f32 %v6555_v58, %v6387_v19  ;;  %v8339_v58 = vld [vmem:[#allocation2 + $0x214] sm:$0xf]  ;;  %v2128_v59 = vunpack.c.l.b16 %v2081_v11  ;;  %v2129_v0 = vunpack.c.h.b16 %v2081_v11  ;;  %v3510_v26 = vunpack.c.l.b16 %v3382_v28  ;;  %v3126_v56 = vpop.permute.xlu1 %3125 }
 0x1f3   : > { %v6053_v32 = vpop.f32.mrf.mxu1  ;;  %v6557_v44 = vpop.f32.mrf.mxu0  ;;  %v2997_v19 = vunpack.c.l.b16 %v2868_v57  ;;  %v3972_v57 = vpack.c.bf16 %v7402_v27, %v7402_v27  ;;  %2322 = vst.msk [vmem:[#allocation2 + $0x27c] sm:$0xf] %vm2290_vm1, %v2289_v18  ;;  %v7727_v11 = vor.u32 %v8339_v58, %v7724_v63  ;;  %v7356_v27 = vld [vmem:[%s8681_s28 + $0x1e0] sm:$0xff] }
 0x1f4   : > { %v6054_v53 = vadd.f32 %v6053_v32, %v5885_v42  ;;  %6261 = vmatmul.bf16.gmra.mxu2 %v7723_v24  ;;  %v7731_v42 = vor.u32 %v9793_v61, %v9791_v46  ;;  %v2160_v24 = vpack.c.b16 %v2128_v59, %v2128_v59  ;;  %v2161_v39 = vpack.c.b16 %v2129_v0, %v2129_v0  ;;  %v3638_v46 = vpop.permute.xlu2 %3637 }
 0x1f5   : > { %v3541_v20 = vpack.c.b16 %v3510_v26, %v3509_v51  ;;  %v3029_v28 = vpack.c.b16 %v2998_v25, %v2997_v19  ;;  %v3457_v32 = vpack.c.bf16 %v7336_v2, %v7336_v2  ;;  %v3458_v61 = vpack.c.bf16 %v7337_v50, %v7337_v50 }
 0x1f6   : > { %6092 = vmatmul.bf16.gmra.mxu1 %v7719_v35  ;;  %2224 = vst [vmem:[#allocation2 + $0x264] sm:$0xf] %v2160_v24  ;;  %v4116_v14 = vunpack.c.l.b16 %v3972_v57  ;;  %v4117_v59 = vunpack.c.l.b16 %v3973_v48  ;;  %v7276_v48 = vld [vmem:[%s8681_s28 + $0x288] sm:$0xff] }
 0x1f7   : > { %v6222_v37 = vpop.f32.mrf.mxu2  ;;  %v6388_v9 = vpop.f32.mrf.mxu3  ;;  %2225 = vst [vmem:[#allocation2 + $0x278] sm:$0xf] %v2161_v39  ;;  %v3671_v23 = vsel %vm495_vm0, %v3541_v20, %v3638_v46  ;;  %v3159_v51 = vsel %vm495_vm0, %v3029_v28, %v3126_v56  ;;  %v3601_v18 = vunpack.c.l.b16 %v3457_v32  ;;  %v3602_v24 = vunpack.c.l.b16 %v3458_v61  ;;  %v7742_v20 = vld [vmem:[#allocation2 + $0x238] sm:$0xf]  ;;  %v8346_v56 = vld [vmem:[#allocation2 + $0x248] sm:$0xf0] }
 0x1f8   : > { %v6223_v29 = vadd.f32 %v6222_v37, %v6054_v53  ;;  %v6389_v35 = vadd.f32 %v6388_v9, %v6220_v8  ;;  %v3733_v26 = vunpack.c.l.b16 %v3671_v23  ;;  %v3734_v19 = vunpack.c.h.b16 %v3671_v23  ;;  %v7357_v53 = vld [vmem:[%s8681_s28 + $0x1e8] sm:$0xff]  ;;  %v8343_v46 = vld [vmem:[#allocation2 + $0x234] sm:$0xf] }
 0x1f9   : > { %v3221_v25 = vunpack.c.l.b16 %v3159_v51  ;;  %v3222_v58 = vunpack.c.h.b16 %v3159_v51  ;;  %v4141_v63 = vpack.c.b16 %v4117_v59, %v4116_v14  ;;  %v3627_v9 = vpack.c.b16 %v3602_v24, %v3601_v18  ;;  %v7736_v32 = vld [vmem:[#allocation2 + $0x244] sm:$0xf0] }
 0x1fa   : > { %v9809_v0 = vadd.f32 %v6557_v44, %v6389_v35  ;;  %v3765_v2 = vpack.c.b16 %v3733_v26, %v3733_v26  ;;  %v3766_v44 = vpack.c.b16 %v3734_v19, %v3734_v19  ;;  %v3894_v28 = vpack.c.bf16 %v7356_v27, %v7356_v27  ;;  %v7277_v35 = vld [vmem:[%s8681_s28 + $0x290] sm:$0xff] }
 0x1fb   : > { %v6055_v4 = vpop.f32.mrf.mxu1  ;;  %v6560_v8 = vpop.f32.mrf.mxu0  ;;  %v3253_v50 = vpack.c.b16 %v3221_v25, %v3221_v25  ;;  %v3254_v37 = vpack.c.b16 %v3222_v58, %v3222_v58  ;;  %4164 = vrot.lane.b32.xlu0 %v4141_v63, %s8606_s29  ;;  %v3895_v57 = vpack.c.bf16 %v7357_v53, %v7357_v53  ;;  %v5890_v61 = vadd.f32 %v9778_v52, %v9522_v54  ;;  %v7295_v54 = vld [vmem:[%s8681_s28 + $0x1e9] sm:$0xff] }
 0x1fc   : > { %v6056_v39 = vadd.f32 %v6055_v4, %v5887_v34  ;;  %6430 = vmatmul.bf16.gmra.mxu3 %v7727_v11  ;;  %3829 = vst [vmem:[#allocation2 + $0x288] sm:$0xf] %v3765_v2  ;;  %v2949_v34 = vpack.c.bf16 %v7276_v48, %v7276_v48  ;;  %v2950_v11 = vpack.c.bf16 %v7277_v35, %v7277_v35  ;;  %v4022_v59 = vunpack.c.l.b16 %v3894_v28  ;;  %v4151_v25 = vpop.permute.xlu0 %4150  ;;  %v7294_v4 = vld [vmem:[%s8681_s28 + $0x1e1] sm:$0xff] }
 0x1fd   : > { %v7743_v14 = vor.u32 %v8346_v56, %v7742_v20  ;;  %3830 = vst [vmem:[#allocation2 + $0x29c] sm:$0xf] %v3766_v44  ;;  %3649 = vrot.lane.b32.xlu2 %v3627_v9, %s8606_s29  ;;  %v7739_v58 = vor.u32 %v8343_v46, %v7736_v32  ;;  %v3383_v18 = vpack.c.bf16 %v7294_v4, %v7294_v4  ;;  %v7230_v20 = vld [vmem:[%s8681_s28 + $0x1ca] sm:$0xff]  ;;  %v7231_v56 = vld [vmem:[%s8681_s28 + $0x1d2] sm:$0xff]  ;;  %v7420_v2 = vld [vmem:[%s8681_s28 + $0x1e2] sm:$0xff] }
 0x1fe   : > { %8249 = vmatmul.msk.bf16.gmra.mxu0 %vm495_vm0, %v7731_v42  ;;  %v4023_v42 = vunpack.c.l.b16 %v3895_v57  ;;  %3317 = vst [vmem:[#allocation2 + $0x284] sm:$0xf] %v3253_v50  ;;  %v3093_v27 = vunpack.c.l.b16 %v2949_v34  ;;  %v3094_v53 = vunpack.c.l.b16 %v2950_v11  ;;  %v3384_v24 = vpack.c.bf16 %v7295_v54, %v7295_v54  ;;  %v7421_v50 = vld [vmem:[%s8681_s28 + $0x1ea] sm:$0xff]  ;;  %v8344_v34 = vld [vmem:[#allocation2 + $0x23c] sm:$0xf] }
 0x1ff   : > { %v6224_v23 = vpop.f32.mrf.mxu2  ;;  %v6391_v51 = vpop.f32.mrf.mxu3  ;;  %3318 = vst [vmem:[#allocation2 + $0x298] sm:$0xf] %v3254_v37  ;;  %v3511_v35 = vunpack.c.l.b16 %v3383_v18  ;;  %v9829_v46 = vpack.c.bf16 %v7420_v2, %v7420_v2  ;;  %v7744_v11 = vld [vmem:[#allocation2 + $0x24c] sm:$0xf0]  ;;  %v9836_v4 = vpack.c.bf16 %v7421_v50, %v7421_v50 }
 0x200   : > { %v6225_v26 = vadd.f32 %v6224_v23, %v6056_v39  ;;  %v6392_v19 = vadd.f32 %v6391_v51, %v6223_v29  ;;  %v4054_v63 = vpack.c.b16 %v4023_v42, %v4022_v59  ;;  %v3117_v9 = vpack.c.b16 %v3094_v53, %v3093_v27  ;;  %v7750_v42 = vld [vmem:[#allocation2 + $0x240] sm:$0xf]  ;;  %v7405_v53 = vld [vmem:[%s8681_s28 + $0x2a9] sm:$0xff] }
 0x201   : > { %v2870_v39 = vpack.c.bf16 %v7230_v20, %v7230_v20  ;;  %v2871_v29 = vpack.c.bf16 %v7231_v56, %v7231_v56  ;;  %v3512_v37 = vunpack.c.l.b16 %v3384_v24  ;;  %v5892_v59 = vadd.f32 %v9778_v52, %v9544_v47  ;;  %v7404_v27 = vld [vmem:[%s8681_s28 + $0x2a1] sm:$0xff]  ;;  %4438 = vst.msk [vmem:[#allocation2 + $0x290] sm:$0xf] %vm2290_vm1, %v9829_v46  ;;  %v7338_v24 = vld [vmem:[%s8681_s28 + $0x272] sm:$0xff] }
 0x202   : > { %v9825_v44 = vadd.f32 %v6560_v8, %v6392_v19  ;;  %v4184_v48 = vsel %vm495_vm0, %v4054_v63, %v4151_v25  ;;  %3141 = vrot.lane.b32.xlu1 %v3117_v9, %s8606_s29  ;;  %v3974_v63 = vpack.c.bf16 %v7404_v27, %v7404_v27  ;;  %v3975_v18 = vpack.c.bf16 %v7405_v53, %v7405_v53  ;;  %v7339_v20 = vld [vmem:[%s8681_s28 + $0x27a] sm:$0xff] }
 0x203   : > { %v6058_v28 = vpop.f32.mrf.mxu1  ;;  %v6562_v57 = vpop.f32.mrf.mxu0  ;;  %v4246_v8 = vunpack.c.l.b16 %v4184_v48  ;;  %v4247_v23 = vunpack.c.h.b16 %v4184_v48  ;;  %v2999_v51 = vunpack.c.l.b16 %v2870_v39  ;;  %v3542_v19 = vpack.c.b16 %v3512_v37, %v3511_v35  ;;  %4439 = vst.msk [vmem:[#allocation2 + $0x2a4] sm:$0xf] %vm2290_vm1, %v9836_v4 }
 0x204   : > { %v6059_v32 = vadd.f32 %v6058_v28, %v5890_v61  ;;  %6266 = vmatmul.bf16.gmra.mxu2 %v7743_v14  ;;  %v3000_v25 = vunpack.c.l.b16 %v2871_v29  ;;  %v8347_v61 = vld [vmem:[#allocation2 + $0x250] sm:$0xf0]  ;;  %v7747_v2 = vor.u32 %v8344_v34, %v7744_v11  ;;  %v3459_v39 = vpack.c.bf16 %v7338_v24, %v7338_v24 }
 0x205   : > { %v4278_v14 = vpack.c.b16 %v4246_v8, %v4246_v8  ;;  %v4279_v54 = vpack.c.b16 %v4247_v23, %v4247_v23  ;;  %v3460_v29 = vpack.c.bf16 %v7339_v20, %v7339_v20  ;;  %v4118_v48 = vunpack.c.l.b16 %v3974_v63  ;;  %v3640_v8 = vpop.permute.xlu2 %3639 }
 0x206   : > { %6097 = vmatmul.bf16.gmra.mxu1 %v7739_v58  ;;  %v3030_v9 = vpack.c.b16 %v3000_v25, %v2999_v51  ;;  %v3128_v58 = vpop.permute.xlu1 %3127  ;;  %v4119_v35 = vunpack.c.l.b16 %v3975_v18  ;;  %v7751_v37 = vor.u32 %v8347_v61, %v7750_v42  ;;  %v3603_v34 = vunpack.c.l.b16 %v3459_v39  ;;  %v7358_v51 = vld [vmem:[%s8681_s28 + $0x1f8] sm:$0xff]  ;;  %v7762_v18 = vld [vmem:[#allocation2 + $0x260] sm:$0xf] }
 0x207   : > { %v6227_v56 = vpop.f32.mrf.mxu2  ;;  %v6393_v47 = vpop.f32.mrf.mxu3  ;;  %4342 = vst [vmem:[#allocation2 + $0x28c] sm:$0xf] %v4278_v14  ;;  %v3604_v11 = vunpack.c.l.b16 %v3460_v29  ;;  %v3674_v27 = vsel %vm495_vm0, %v3542_v19, %v3640_v8 }
 0x208   : > { %v6228_v50 = vadd.f32 %v6227_v56, %v6059_v32  ;;  %v6394_v28 = vadd.f32 %v6393_v47, %v6225_v26  ;;  %4343 = vst [vmem:[#allocation2 + $0x2a0] sm:$0xf] %v4279_v54  ;;  %v3162_v23 = vsel %vm495_vm0, %v3030_v9, %v3128_v58  ;;  %v7359_v26 = vld [vmem:[%s8681_s28 + $0x200] sm:$0xff]  ;;  %v3735_v20 = vunpack.c.l.b16 %v3674_v27  ;;  %v8351_v56 = vld [vmem:[#allocation2 + $0x270] sm:$0xf0]  ;;  %v7279_v58 = vld [vmem:[%s8681_s28 + $0x2a8] sm:$0xff] }
 0x209   : > { %v3223_v53 = vunpack.c.l.b16 %v3162_v23  ;;  %v3224_v32 = vunpack.c.h.b16 %v3162_v23  ;;  %v3736_v63 = vunpack.c.h.b16 %v3674_v27  ;;  %v4142_v42 = vpack.c.b16 %v4119_v35, %v4118_v48  ;;  %v8348_v48 = vld [vmem:[#allocation2 + $0x25c] sm:$0xf]  ;;  %v7756_v35 = vld [vmem:[#allocation2 + $0x26c] sm:$0xf0] }
 0x20a   : > { %v9846_v25 = vadd.f32 %v6562_v57, %v6394_v28  ;;  %v3628_v61 = vpack.c.b16 %v3604_v11, %v3603_v34  ;;  %v3896_v9 = vpack.c.bf16 %v7358_v51, %v7358_v51  ;;  %v3767_v39 = vpack.c.b16 %v3735_v20, %v3735_v20  ;;  %v7278_v28 = vld [vmem:[%s8681_s28 + $0x2a0] sm:$0xff] }
 0x20b   : > { %v6060_v24 = vpop.f32.mrf.mxu1  ;;  %v6565_v14 = vpop.f32.mrf.mxu0  ;;  %v3255_v47 = vpack.c.b16 %v3223_v53, %v3223_v53  ;;  %v3256_v57 = vpack.c.b16 %v3224_v32, %v3224_v32  ;;  %v3768_v19 = vpack.c.b16 %v3736_v63, %v3736_v63  ;;  %4166 = vrot.lane.b32.xlu0 %v4142_v42, %s8606_s29  ;;  %v3897_v29 = vpack.c.bf16 %v7359_v26, %v7359_v26  ;;  %v7296_v20 = vld [vmem:[%s8681_s28 + $0x1f9] sm:$0xff]  ;;  %v7297_v63 = vld [vmem:[%s8681_s28 + $0x201] sm:$0xff] }
 0x20c   : > { %v6061_v54 = vadd.f32 %v6060_v24, %v5892_v59  ;;  %6435 = vmatmul.bf16.gmra.mxu3 %v7747_v2  ;;  %3651 = vrot.lane.b32.xlu2 %v3628_v61, %s8606_s29  ;;  %v4024_v59 = vunpack.c.l.b16 %v3896_v9  ;;  %v2951_v2 = vpack.c.bf16 %v7278_v28, %v7278_v28  ;;  %v2952_v8 = vpack.c.bf16 %v7279_v58, %v7279_v58  ;;  %v4153_v32 = vpop.permute.xlu0 %4152  ;;  %v7422_v9 = vld [vmem:[%s8681_s28 + $0x1fa] sm:$0xff]  ;;  %v7423_v28 = vld [vmem:[%s8681_s28 + $0x202] sm:$0xff] }
 0x20d   : > { %3319 = vst [vmem:[#allocation2 + $0x2ac] sm:$0xf] %v3255_v47  ;;  %v5895_v23 = vadd.f32 %v9778_v52, %v9567_v13  ;;  %v7763_v51 = vor.u32 %v8351_v56, %v7762_v18  ;;  %v4025_v27 = vunpack.c.l.b16 %v3897_v29  ;;  %v7759_v42 = vor.u32 %v8348_v48, %v7756_v35 }
 0x20e   : > { %8250 = vmatmul.msk.bf16.gmra.mxu0 %vm495_vm0, %v7751_v37  ;;  %3831 = vst [vmem:[#allocation2 + $0x2b0] sm:$0xf] %v3767_v39  ;;  %v3095_v26 = vunpack.c.l.b16 %v2951_v2  ;;  %v3096_v24 = vunpack.c.l.b16 %v2952_v8  ;;  %v3385_v47 = vpack.c.bf16 %v7296_v20, %v7296_v20  ;;  %v3386_v13 = vpack.c.bf16 %v7297_v63, %v7297_v63  ;;  %v7340_v20 = vld [vmem:[%s8681_s28 + $0x28a] sm:$0xff]  ;;  %v7341_v63 = vld [vmem:[%s8681_s28 + $0x292] sm:$0xff] }
 0x20f   : > { %v6229_v34 = vpop.f32.mrf.mxu2  ;;  %v6396_v11 = vpop.f32.mrf.mxu3  ;;  %3832 = vst [vmem:[#allocation2 + $0x2c4] sm:$0xf] %v3768_v19  ;;  %v4055_v61 = vpack.c.b16 %v4025_v27, %v4024_v59  ;;  %v9863_v39 = vpack.c.bf16 %v7422_v9, %v7422_v9  ;;  %v3001_v48 = vunpack.c.l.b16 %v9829_v46  ;;  %v8349_v59 = vld [vmem:[#allocation2 + $0x264] sm:$0xf]  ;;  %v3461_v9 = vpack.c.bf16 %v7340_v20, %v7340_v20  ;;  %v7361_v20 = vld [vmem:[%s8681_s28 + $0x218] sm:$0xff] }
 0x210   : > { %v6230_v53 = vadd.f32 %v6229_v34, %v6061_v54  ;;  %v6397_v37 = vadd.f32 %v6396_v11, %v6228_v50  ;;  %3320 = vst [vmem:[#allocation2 + $0x2c0] sm:$0xf] %v3256_v57  ;;  %v3118_v56 = vpack.c.b16 %v3096_v24, %v3095_v26  ;;  %v9865_v54 = vpack.c.bf16 %v7423_v28, %v7423_v28  ;;  %v7764_v11 = vld [vmem:[#allocation2 + $0x274] sm:$0xf0]  ;;  %v7407_v46 = vld [vmem:[%s8681_s28 + $0x2c1] sm:$0xff] }
 0x211   : > { %v4187_v29 = vsel %vm495_vm0, %v4055_v61, %v4153_v32  ;;  %v3513_v58 = vunpack.c.l.b16 %v3385_v47  ;;  %v3514_v57 = vunpack.c.l.b16 %v3386_v13  ;;  %v3002_v34 = vunpack.c.l.b16 %v9836_v4  ;;  %4440 = vst.msk [vmem:[#allocation2 + $0x2b8] sm:$0xf] %vm2290_vm1, %v9863_v39 }
 0x212   : > { %v9861_v18 = vadd.f32 %v6565_v14, %v6397_v37  ;;  %v9869_v14 = vld [vmem:[#allocation2 + $0x268] sm:$0xf]  ;;  %v4248_v2 = vunpack.c.l.b16 %v4187_v29  ;;  %v4249_v8 = vunpack.c.h.b16 %v4187_v29  ;;  %3143 = vrot.lane.b32.xlu1 %v3118_v56, %s8606_s29  ;;  %v7406_v37 = vld [vmem:[%s8681_s28 + $0x2b9] sm:$0xff]  ;;  %4441 = vst.msk [vmem:[#allocation2 + $0x2cc] sm:$0xf] %vm2290_vm1, %v9865_v54  ;;  %v5897_v4 = vadd.f32 %v9778_v52, %v9595_v55 }
 0x213   : > { %v6063_v50 = vpop.f32.mrf.mxu1  ;;  %v6567_v19 = vpop.f32.mrf.mxu0  ;;  %v3543_v27 = vpack.c.b16 %v3514_v57, %v3513_v58  ;;  %v3031_v26 = vpack.c.b16 %v3002_v34, %v3001_v48  ;;  %v3976_v24 = vpack.c.bf16 %v7406_v37, %v7406_v37  ;;  %v3977_v13 = vpack.c.bf16 %v7407_v46, %v7407_v46  ;;  %v7360_v34 = vld [vmem:[%s8681_s28 + $0x210] sm:$0xff] }
 0x214   : > { %v6064_v35 = vadd.f32 %v6063_v50, %v5895_v23  ;;  %6271 = vmatmul.bf16.gmra.mxu2 %v7763_v51  ;;  %v8352_v23 = vld [vmem:[#allocation2 + $0x278] sm:$0xf0]  ;;  %v4280_v51 = vpack.c.b16 %v4248_v2, %v4248_v2  ;;  %v4281_v32 = vpack.c.b16 %v4249_v8, %v4249_v8  ;;  %v3462_v28 = vpack.c.bf16 %v7341_v63, %v7341_v63  ;;  %v3130_v29 = vpop.permute.xlu1 %3129 }
 0x215   : > { %v4120_v58 = vunpack.c.l.b16 %v3976_v24  ;;  %v7771_v57 = vor.u32 %v8352_v23, %v9869_v14  ;;  %v3642_v48 = vpop.permute.xlu2 %3641  ;;  %v3165_v2 = vsel %vm495_vm0, %v3031_v26, %v3130_v29  ;;  %v4121_v55 = vunpack.c.l.b16 %v3977_v13  ;;  %v7782_v26 = vld [vmem:[#allocation2 + $0x288] sm:$0xf]  ;;  %v8356_v63 = vld [vmem:[#allocation2 + $0x298] sm:$0xf0] }
 0x216   : > { %6102 = vmatmul.bf16.gmra.mxu1 %v7759_v42  ;;  %v7767_v42 = vor.u32 %v8349_v59, %v7764_v11  ;;  %4344 = vst [vmem:[#allocation2 + $0x2b4] sm:$0xf] %v4280_v51  ;;  %v3605_v8 = vunpack.c.l.b16 %v3461_v9  ;;  %v3677_v46 = vsel %vm495_vm0, %v3543_v27, %v3642_v48  ;;  %v3606_v23 = vunpack.c.l.b16 %v3462_v28  ;;  %v7280_v29 = vld [vmem:[%s8681_s28 + $0x2b8] sm:$0xff]  ;;  %v7281_v48 = vld [vmem:[%s8681_s28 + $0x2c0] sm:$0xff] }
 0x217   : > { %v6232_v61 = vpop.f32.mrf.mxu2  ;;  %v6398_v47 = vpop.f32.mrf.mxu3  ;;  %4345 = vst [vmem:[#allocation2 + $0x2c8] sm:$0xf] %v4281_v32  ;;  %v3737_v51 = vunpack.c.l.b16 %v3677_v46  ;;  %v3738_v24 = vunpack.c.h.b16 %v3677_v46  ;;  %v4143_v14 = vpack.c.b16 %v4121_v55, %v4120_v58  ;;  %v7776_v58 = vld [vmem:[#allocation2 + $0x294] sm:$0xf0]  ;;  %v2953_v28 = vpack.c.bf16 %v7280_v29, %v7280_v29 }
 0x218   : > { %v6233_v56 = vadd.f32 %v6232_v61, %v6064_v35  ;;  %v6399_v50 = vadd.f32 %v6398_v47, %v6230_v53  ;;  %v3225_v35 = vunpack.c.l.b16 %v3165_v2  ;;  %v3226_v53 = vunpack.c.h.b16 %v3165_v2  ;;  %v8353_v2 = vld [vmem:[#allocation2 + $0x284] sm:$0xf] }
 0x219   : > { %v3898_v47 = vpack.c.bf16 %v7360_v34, %v7360_v34  ;;  %v3769_v13 = vpack.c.b16 %v3737_v51, %v3737_v51  ;;  %v3770_v27 = vpack.c.b16 %v3738_v24, %v3738_v24  ;;  %4168 = vrot.lane.b32.xlu0 %v4143_v14, %s8606_s29  ;;  %v3629_v9 = vpack.c.b16 %v3606_v23, %v3605_v8  ;;  %v7298_v24 = vld [vmem:[%s8681_s28 + $0x211] sm:$0xff]  ;;  %v7299_v14 = vld [vmem:[%s8681_s28 + $0x219] sm:$0xff] }
 0x21a   : > { %v9886_v37 = vadd.f32 %v6567_v19, %v6399_v50  ;;  %v3257_v61 = vpack.c.b16 %v3225_v35, %v3225_v35  ;;  %v3258_v19 = vpack.c.b16 %v3226_v53, %v3226_v53  ;;  %v3899_v50 = vpack.c.bf16 %v7361_v20, %v7361_v20 }
 0x21b   : > { %v6065_v59 = vpop.f32.mrf.mxu1  ;;  %v6570_v11 = vpop.f32.mrf.mxu0  ;;  %v5900_v55 = vadd.f32 %v9778_v52, %v9221_v30  ;;  %v7783_v35 = vor.u32 %v8356_v63, %v7782_v26  ;;  %3833 = vst [vmem:[#allocation2 + $0x2d8] sm:$0xf] %v3769_v13  ;;  %3653 = vrot.lane.b32.xlu2 %v3629_v9, %s8606_s29  ;;  %v7779_v23 = vor.u32 %v8353_v2, %v7776_v58  ;;  %v7424_v26 = vld [vmem:[%s8681_s28 + $0x212] sm:$0xff]  ;;  %v7425_v63 = vld [vmem:[%s8681_s28 + $0x21a] sm:$0xff]  ;;  %v3003_v2 = vunpack.c.l.b16 %v9863_v39  ;;  %v8357_v39 = vld [vmem:[#allocation2 + $0x2a0] sm:$0xf0] }
 0x21c   : > { %v6066_v32 = vadd.f32 %v6065_v59, %v5897_v4  ;;  %6440 = vmatmul.bf16.gmra.mxu3 %v7767_v42  ;;  %3321 = vst [vmem:[#allocation2 + $0x2d4] sm:$0xf] %v3257_v61  ;;  %v4026_v4 = vunpack.c.l.b16 %v3898_v47  ;;  %v2954_v42 = vpack.c.bf16 %v7281_v48, %v7281_v48  ;;  %v3097_v59 = vunpack.c.l.b16 %v2953_v28 }
 0x21d   : > { %3834 = vst [vmem:[#allocation2 + $0x2ec] sm:$0xf] %v3770_v27  ;;  %v4155_v20 = vpop.permute.xlu0 %4154  ;;  %v3387_v61 = vpack.c.bf16 %v7298_v24, %v7298_v24  ;;  %v3388_v47 = vpack.c.bf16 %v7299_v14, %v7299_v14  ;;  %v9903_v29 = vpack.c.bf16 %v7424_v26, %v7424_v26  ;;  %v7342_v14 = vld [vmem:[%s8681_s28 + $0x2a2] sm:$0xff] }
 0x21e   : > { %8251 = vmatmul.msk.bf16.gmra.mxu0 %vm495_vm0, %v7771_v57  ;;  %v4027_v57 = vunpack.c.l.b16 %v3899_v50  ;;  %v3098_v51 = vunpack.c.l.b16 %v2954_v42  ;;  %3322 = vst [vmem:[#allocation2 + $0x2e8] sm:$0xf] %v3258_v19 }
 0x21f   : > { %v6234_v34 = vpop.f32.mrf.mxu2  ;;  %v6401_v46 = vpop.f32.mrf.mxu3  ;;  %v3515_v48 = vunpack.c.l.b16 %v3387_v61  ;;  %v3516_v19 = vunpack.c.l.b16 %v3388_v47  ;;  %4442 = vst.msk [vmem:[#allocation2 + $0x2e0] sm:$0xf] %vm2290_vm1, %v9903_v29 }
 0x220   : > { %v6235_v8 = vadd.f32 %v6234_v34, %v6066_v32  ;;  %v6402_v53 = vadd.f32 %v6401_v46, %v6233_v56  ;;  %v4056_v30 = vpack.c.b16 %v4027_v57, %v4026_v4  ;;  %v3119_v9 = vpack.c.b16 %v3098_v51, %v3097_v59  ;;  %v8354_v4 = vld [vmem:[#allocation2 + $0x28c] sm:$0xf]  ;;  %v7790_v46 = vld [vmem:[#allocation2 + $0x290] sm:$0xf] }
 0x221   : > { %v9905_v32 = vpack.c.bf16 %v7425_v63, %v7425_v63  ;;  %v3004_v34 = vunpack.c.l.b16 %v9865_v54  ;;  %v3544_v57 = vpack.c.b16 %v3516_v19, %v3515_v48  ;;  %v5902_v54 = vadd.f32 %v9778_v52, %v9242_v5  ;;  %v7362_v5 = vld [vmem:[%s8681_s28 + $0x228] sm:$0xff] }
 0x222   : > { %v9901_v13 = vadd.f32 %v6570_v11, %v6402_v53  ;;  %v4190_v50 = vsel %vm495_vm0, %v4056_v30, %v4155_v20  ;;  %v7784_v11 = vld [vmem:[#allocation2 + $0x29c] sm:$0xf0]  ;;  %3145 = vrot.lane.b32.xlu1 %v3119_v9, %s8606_s29  ;;  %v7408_v53 = vld [vmem:[%s8681_s28 + $0x2d1] sm:$0xff]  ;;  %v3463_v9 = vpack.c.bf16 %v7342_v14, %v7342_v14  ;;  %v7791_v19 = vor.u32 %v8357_v39, %v7790_v46 }
 0x223   : > { %v6068_v56 = vpop.f32.mrf.mxu1  ;;  %v6572_v27 = vpop.f32.mrf.mxu0  ;;  %v4250_v28 = vunpack.c.l.b16 %v4190_v50  ;;  %v4251_v42 = vunpack.c.h.b16 %v4190_v50  ;;  %v7409_v20 = vld [vmem:[%s8681_s28 + $0x2d9] sm:$0xff]  ;;  %4443 = vst.msk [vmem:[#allocation2 + $0x2f4] sm:$0xf] %vm2290_vm1, %v9905_v32  ;;  %v3032_v59 = vpack.c.b16 %v3004_v34, %v3003_v2  ;;  %v3978_v24 = vpack.c.bf16 %v7408_v53, %v7408_v53  ;;  %v7343_v30 = vld [vmem:[%s8681_s28 + $0x2aa] sm:$0xff] }
 0x224   : > { %v6069_v58 = vadd.f32 %v6068_v56, %v5900_v55  ;;  %6276 = vmatmul.bf16.gmra.mxu2 %v7783_v35  ;;  %v3132_v51 = vpop.permute.xlu1 %3131  ;;  %v7787_v26 = vor.u32 %v8354_v4, %v7784_v11  ;;  %v3979_v63 = vpack.c.bf16 %v7409_v20, %v7409_v20  ;;  %v3464_v48 = vpack.c.bf16 %v7343_v30, %v7343_v30 }
 0x225   : > { %v4282_v55 = vpack.c.b16 %v4250_v28, %v4250_v28  ;;  %v4283_v35 = vpack.c.b16 %v4251_v42, %v4251_v42  ;;  %v3168_v50 = vsel %vm495_vm0, %v3032_v59, %v3132_v51  ;;  %v4122_v34 = vunpack.c.l.b16 %v3978_v24  ;;  %v7802_v51 = vld [vmem:[#allocation2 + $0x2b0] sm:$0xf] }
 0x226   : > { %6107 = vmatmul.bf16.gmra.mxu1 %v7779_v23  ;;  %v3227_v28 = vunpack.c.l.b16 %v3168_v50  ;;  %v3228_v42 = vunpack.c.h.b16 %v3168_v50  ;;  %v4123_v11 = vunpack.c.l.b16 %v3979_v63  ;;  %v3607_v20 = vunpack.c.l.b16 %v3463_v9  ;;  %v7282_v9 = vld [vmem:[%s8681_s28 + $0x2d0] sm:$0xff]  ;;  %v8358_v50 = vld [vmem:[#allocation2 + $0x2ac] sm:$0xf] }
 0x227   : > { %v6237_v61 = vpop.f32.mrf.mxu2  ;;  %v6403_v47 = vpop.f32.mrf.mxu3  ;;  %4346 = vst [vmem:[#allocation2 + $0x2dc] sm:$0xf] %v4282_v55  ;;  %v3608_v30 = vunpack.c.l.b16 %v3464_v48  ;;  %v2955_v48 = vpack.c.bf16 %v7282_v9, %v7282_v9 }
 0x228   : > { %v6238_v56 = vadd.f32 %v6237_v61, %v6069_v58  ;;  %v6404_v23 = vadd.f32 %v6403_v47, %v6235_v8  ;;  %4347 = vst [vmem:[#allocation2 + $0x2f0] sm:$0xf] %v4283_v35  ;;  %v3644_v2 = vpop.permute.xlu2 %3643  ;;  %v7363_v58 = vld [vmem:[%s8681_s28 + $0x230] sm:$0xff]  ;;  %v3259_v46 = vpack.c.b16 %v3227_v28, %v3227_v28  ;;  %v3260_v39 = vpack.c.b16 %v3228_v42, %v3228_v42  ;;  %v8361_v61 = vld [vmem:[#allocation2 + $0x2c0] sm:$0xf0] }
 0x229   : > { %v3680_v4 = vsel %vm495_vm0, %v3544_v57, %v3644_v2  ;;  %v4144_v24 = vpack.c.b16 %v4123_v11, %v4122_v34  ;;  %v3901_v63 = vpack.c.bf16 %v7363_v58, %v7363_v58  ;;  %v7796_v2 = vld [vmem:[#allocation2 + $0x2bc] sm:$0xf0]  ;;  %v5905_v28 = vadd.f32 %v9778_v52, %v9264_v45 }
 0x22a   : > { %v9923_v53 = vadd.f32 %v6572_v27, %v6404_v23  ;;  %v3739_v55 = vunpack.c.l.b16 %v3680_v4  ;;  %v3740_v59 = vunpack.c.h.b16 %v3680_v4  ;;  %v3900_v27 = vpack.c.bf16 %v7362_v5, %v7362_v5  ;;  %3323 = vst [vmem:[#allocation2 + $0x2fc] sm:$0xf] %v3259_v46  ;;  %v7283_v23 = vld [vmem:[%s8681_s28 + $0x2d8] sm:$0xff] }
 0x22b   : > { %v6070_v14 = vpop.f32.mrf.mxu1  ;;  %v6575_v8 = vpop.f32.mrf.mxu0  ;;  %3324 = vst [vmem:[#allocation2 + $0x310] sm:$0xf] %v3260_v39  ;;  %4170 = vrot.lane.b32.xlu0 %v4144_v24, %s8606_s29  ;;  %v4029_v5 = vunpack.c.l.b16 %v3901_v63  ;;  %v7803_v58 = vor.u32 %v8361_v61, %v7802_v51  ;;  %v7799_v46 = vor.u32 %v8358_v50, %v7796_v2  ;;  %v9944_v61 = vld [vmem:[#allocation2 + $0x2b8] sm:$0xf] }
 0x22c   : > { %v6071_v35 = vadd.f32 %v6070_v14, %v5902_v54  ;;  %6445 = vmatmul.bf16.gmra.mxu3 %v7787_v26  ;;  %v3771_v47 = vpack.c.b16 %v3739_v55, %v3739_v55  ;;  %v3772_v57 = vpack.c.b16 %v3740_v59, %v3740_v59  ;;  %v3630_v54 = vpack.c.b16 %v3608_v30, %v3607_v20  ;;  %v4157_v20 = vpop.permute.xlu0 %4156  ;;  %v7300_v55 = vld [vmem:[%s8681_s28 + $0x229] sm:$0xff]  ;;  %v7301_v59 = vld [vmem:[%s8681_s28 + $0x231] sm:$0xff] }
 0x22d   : > { %v4028_v26 = vunpack.c.l.b16 %v3900_v27  ;;  %v3099_v14 = vunpack.c.l.b16 %v2955_v48  ;;  %v3389_v24 = vpack.c.bf16 %v7300_v55, %v7300_v55  ;;  %v7426_v30 = vld [vmem:[%s8681_s28 + $0x22a] sm:$0xff]  ;;  %v7427_v27 = vld [vmem:[%s8681_s28 + $0x232] sm:$0xff]  ;;  %v3390_v63 = vpack.c.bf16 %v7301_v59, %v7301_v59 }
 0x22e   : > { %8252 = vmatmul.msk.bf16.gmra.mxu0 %vm495_vm0, %v7791_v19  ;;  %3835 = vst [vmem:[#allocation2 + $0x300] sm:$0xf] %v3771_v47  ;;  %v2956_v19 = vpack.c.bf16 %v7283_v23, %v7283_v23  ;;  %3655 = vrot.lane.b32.xlu2 %v3630_v54, %s8606_s29  ;;  %v9940_v9 = vpack.c.bf16 %v7426_v30, %v7426_v30 }
 0x22f   : > { %v6239_v42 = vpop.f32.mrf.mxu2  ;;  %v6406_v34 = vpop.f32.mrf.mxu3  ;;  %3836 = vst [vmem:[#allocation2 + $0x314] sm:$0xf] %v3772_v57  ;;  %v4057_v39 = vpack.c.b16 %v4029_v5, %v4028_v26  ;;  %v9946_v57 = vld [vmem:[#allocation2 + $0x2c8] sm:$0xf0]  ;;  %v3517_v2 = vunpack.c.l.b16 %v3389_v24  ;;  %v8359_v26 = vld [vmem:[#allocation2 + $0x2b4] sm:$0xf]  ;;  %v5907_v5 = vadd.f32 %v9778_v52, %v9293_v31 }
 0x230   : > { %v6240_v4 = vadd.f32 %v6239_v42, %v6071_v35  ;;  %v6407_v11 = vadd.f32 %v6406_v34, %v6238_v56  ;;  %v3100_v45 = vunpack.c.l.b16 %v2956_v19  ;;  %v9942_v56 = vpack.c.bf16 %v7427_v27, %v7427_v27  ;;  %4444 = vst.msk [vmem:[#allocation2 + $0x308] sm:$0xf] %vm2290_vm1, %v9940_v9  ;;  %v7804_v19 = vld [vmem:[#allocation2 + $0x2c4] sm:$0xf0] }
 0x231   : > { %v4193_v23 = vsel %vm495_vm0, %v4057_v39, %v4157_v20  ;;  %v3518_v34 = vunpack.c.l.b16 %v3390_v63  ;;  %v7344_v39 = vld [vmem:[%s8681_s28 + $0x2ba] sm:$0xff]  ;;  %v7345_v31 = vld [vmem:[%s8681_s28 + $0x2c2] sm:$0xff] }
 0x232   : > { %v9938_v47 = vadd.f32 %v6575_v8, %v6407_v11  ;;  %v3120_v50 = vpack.c.b16 %v3100_v45, %v3099_v14  ;;  %v3005_v8 = vunpack.c.l.b16 %v9903_v29  ;;  %v4252_v48 = vunpack.c.l.b16 %v4193_v23  ;;  %v7410_v29 = vld [vmem:[%s8681_s28 + $0x2e9] sm:$0xff]  ;;  %4445 = vst.msk [vmem:[#allocation2 + $0x31c] sm:$0xf] %vm2290_vm1, %v9942_v56 }
 0x233   : > { %v6073_v35 = vpop.f32.mrf.mxu1  ;;  %v6577_v51 = vpop.f32.mrf.mxu0  ;;  %v4253_v42 = vunpack.c.h.b16 %v4193_v23  ;;  %v3006_v11 = vunpack.c.l.b16 %v9905_v32  ;;  %v3545_v55 = vpack.c.b16 %v3518_v34, %v3517_v2  ;;  %v3980_v32 = vpack.c.bf16 %v7410_v29, %v7410_v29 }
 0x234   : > { %v6074_v54 = vadd.f32 %v6073_v35, %v5905_v28  ;;  %6281 = vmatmul.bf16.gmra.mxu2 %v7803_v58  ;;  %3147 = vrot.lane.b32.xlu1 %v3120_v50, %s8606_s29  ;;  %v7411_v28 = vld [vmem:[%s8681_s28 + $0x2f1] sm:$0xff]  ;;  %v7811_v58 = vor.u32 %v9946_v57, %v9944_v61  ;;  %v4284_v20 = vpack.c.b16 %v4252_v48, %v4252_v48  ;;  %v3134_v59 = vpop.permute.xlu1 %3133 }
 0x235   : > { %v4285_v14 = vpack.c.b16 %v4253_v42, %v4253_v42  ;;  %v3033_v24 = vpack.c.b16 %v3006_v11, %v3005_v8  ;;  %v3981_v30 = vpack.c.bf16 %v7411_v28, %v7411_v28  ;;  %v3465_v27 = vpack.c.bf16 %v7344_v39, %v7344_v39  ;;  %v3646_v61 = vpop.permute.xlu2 %3645  ;;  %v7364_v42 = vld [vmem:[%s8681_s28 + $0x240] sm:$0xff]  ;;  %v7822_v39 = vld [vmem:[#allocation2 + $0x2d8] sm:$0xf] }
 0x236   : > { %6112 = vmatmul.bf16.gmra.mxu1 %v7799_v46  ;;  %v7807_v46 = vor.u32 %v8359_v26, %v7804_v19  ;;  %4348 = vst [vmem:[#allocation2 + $0x304] sm:$0xf] %v4284_v20  ;;  %v3466_v23 = vpack.c.bf16 %v7345_v31, %v7345_v31  ;;  %v4124_v50 = vunpack.c.l.b16 %v3980_v32  ;;  %v3683_v8 = vsel %vm495_vm0, %v3545_v55, %v3646_v61  ;;  %v8366_v31 = vld [vmem:[#allocation2 + $0x2e8] sm:$0xf0]  ;;  %v8363_v61 = vld [vmem:[#allocation2 + $0x2d4] sm:$0xf] }
 0x237   : > { %v6242_v52 = vpop.f32.mrf.mxu2  ;;  %v6408_v45 = vpop.f32.mrf.mxu3  ;;  %4349 = vst [vmem:[#allocation2 + $0x318] sm:$0xf] %v4285_v14  ;;  %v3171_v57 = vsel %vm495_vm0, %v3033_v24, %v3134_v59  ;;  %v4125_v2 = vunpack.c.l.b16 %v3981_v30  ;;  %v3609_v48 = vunpack.c.l.b16 %v3465_v27  ;;  %v3741_v26 = vunpack.c.l.b16 %v3683_v8  ;;  %v7284_v27 = vld [vmem:[%s8681_s28 + $0x2e8] sm:$0xff] }
 0x238   : > { %v6243_v63 = vadd.f32 %v6242_v52, %v6074_v54  ;;  %v6409_v35 = vadd.f32 %v6408_v45, %v6240_v4  ;;  %v3229_v11 = vunpack.c.l.b16 %v3171_v57  ;;  %v3230_v29 = vunpack.c.h.b16 %v3171_v57  ;;  %v7365_v54 = vld [vmem:[%s8681_s28 + $0x248] sm:$0xff] }
 0x239   : > { %v3742_v19 = vunpack.c.h.b16 %v3683_v8  ;;  %v4145_v20 = vpack.c.b16 %v4125_v2, %v4124_v50  ;;  %v3610_v14 = vunpack.c.l.b16 %v3466_v23  ;;  %v3902_v45 = vpack.c.bf16 %v7364_v42, %v7364_v42  ;;  %v7816_v57 = vld [vmem:[#allocation2 + $0x2e4] sm:$0xf0]  ;;  %v9977_v50 = vld [vmem:[%s10543_s2] ss:$0 sm:$0xff] }
 0x23a   : > { %v9966_v34 = vadd.f32 %v6577_v51, %v6409_v35  ;;  %v3261_v52 = vpack.c.b16 %v3229_v11, %v3229_v11  ;;  %v3262_v51 = vpack.c.b16 %v3230_v29, %v3230_v29  ;;  %v3773_v24 = vpack.c.b16 %v3741_v26, %v3741_v26  ;;  %v7285_v35 = vld [vmem:[%s8681_s28 + $0x2f0] sm:$0xff] }
 0x23b   : > { %v6075_v28 = vpop.f32.mrf.mxu1  ;;  %v6580_v4 = vpop.f32.mrf.mxu0  ;;  %v3774_v55 = vpack.c.b16 %v3742_v19, %v3742_v19  ;;  %4172 = vrot.lane.b32.xlu0 %v4145_v20, %s8606_s29  ;;  %v3631_v32 = vpack.c.b16 %v3610_v14, %v3609_v48  ;;  %v3903_v30 = vpack.c.bf16 %v7365_v54, %v7365_v54  ;;  %v2958_v23 = vpack.c.bf16 %v7285_v35, %v7285_v35  ;;  %v7302_v19 = vld [vmem:[%s8681_s28 + $0x241] sm:$0xff]  ;;  %v7303_v20 = vld [vmem:[%s8681_s28 + $0x249] sm:$0xff] }
 0x23c   : > { %10580 = vst [vmem:[#allocation39_spill] sm:$0xff] %v9966_v34  ;;  %v6076_v59 = vadd.f32 %v6075_v28, %v5907_v5  ;;  %6450 = vmatmul.bf16.gmra.mxu3 %v7807_v46  ;;  %v4030_v5 = vunpack.c.l.b16 %v3902_v45  ;;  %v2957_v46 = vpack.c.bf16 %v7284_v27, %v7284_v27  ;;  %v5910_v2 = vadd.f32 %v9977_v50, %v9314_v10  ;;  %v4159_v54 = vpop.permute.xlu0 %4158 }
 0x23d   : > { %3325 = vst [vmem:[#allocation2 + $0x324] sm:$0xf] %v3261_v52  ;;  %v7823_v8 = vor.u32 %v8366_v31, %v7822_v39  ;;  %3657 = vrot.lane.b32.xlu2 %v3631_v32, %s8606_s29  ;;  %v3102_v26 = vunpack.c.l.b16 %v2958_v23  ;;  %v7819_v14 = vor.u32 %v8363_v61, %v7816_v57  ;;  %v3391_v52 = vpack.c.bf16 %v7302_v19, %v7302_v19  ;;  %v7428_v39 = vld [vmem:[%s8681_s28 + $0x242] sm:$0xff]  ;;  %v7429_v31 = vld [vmem:[%s8681_s28 + $0x24a] sm:$0xff]  ;;  %v7346_v19 = vld [vmem:[%s8681_s28 + $0x2d2] sm:$0xff] }
 0x23e   : > { %8253 = vmatmul.msk.bf16.gmra.mxu0 %vm495_vm0, %v7811_v58  ;;  %3837 = vst [vmem:[#allocation2 + $0x328] sm:$0xf] %v3773_v24  ;;  %v4031_v58 = vunpack.c.l.b16 %v3903_v30  ;;  %v3101_v28 = vunpack.c.l.b16 %v2957_v46  ;;  %v3392_v45 = vpack.c.bf16 %v7303_v20, %v7303_v20  ;;  %v9988_v27 = vpack.c.bf16 %v7428_v39, %v7428_v39  ;;  %v7347_v20 = vld [vmem:[%s8681_s28 + $0x2da] sm:$0xff] }
 0x23f   : > { %v6244_v48 = vpop.f32.mrf.mxu2  ;;  %v6411_v42 = vpop.f32.mrf.mxu3  ;;  %3838 = vst [vmem:[#allocation2 + $0x33c] sm:$0xf] %v3774_v55  ;;  %v3519_v35 = vunpack.c.l.b16 %v3391_v52  ;;  %v3007_v61 = vunpack.c.l.b16 %v9940_v9  ;;  %v7824_v9 = vld [vmem:[#allocation2 + $0x2ec] sm:$0xf0]  ;;  %v3467_v39 = vpack.c.bf16 %v7346_v19, %v7346_v19 }
 0x240   : > { %v6245_v11 = vadd.f32 %v6244_v48, %v6076_v59  ;;  %v6412_v29 = vadd.f32 %v6411_v42, %v6243_v63  ;;  %3326 = vst [vmem:[#allocation2 + $0x338] sm:$0xf] %v3262_v51  ;;  %v4058_v10 = vpack.c.b16 %v4031_v58, %v4030_v5  ;;  %v3121_v32 = vpack.c.b16 %v3102_v26, %v3101_v28  ;;  %v8364_v5 = vld [vmem:[#allocation2 + $0x2dc] sm:$0xf]  ;;  %v8367_v58 = vld [vmem:[#allocation2 + $0x2f0] sm:$0xf0] }
 0x241   : > { %v9990_v59 = vpack.c.bf16 %v7429_v31, %v7429_v31  ;;  %v3520_v51 = vunpack.c.l.b16 %v3392_v45  ;;  %v3008_v48 = vunpack.c.l.b16 %v9942_v56  ;;  %4446 = vst.msk [vmem:[#allocation2 + $0x330] sm:$0xf] %vm2290_vm1, %v9988_v27  ;;  %v5912_v42 = vadd.f32 %v9977_v50, %v9340_v1 }
 0x242   : > { %v9986_v24 = vadd.f32 %v6580_v4, %v6412_v29  ;;  %v4196_v30 = vsel %vm495_vm0, %v4058_v10, %v4159_v54  ;;  %v9994_v4 = vld [vmem:[#allocation2 + $0x2e0] sm:$0xf]  ;;  %3149 = vrot.lane.b32.xlu1 %v3121_v32, %s8606_s29  ;;  %v3468_v31 = vpack.c.bf16 %v7347_v20, %v7347_v20 }
 0x243   : > { %v6078_v63 = vpop.f32.mrf.mxu1  ;;  %v6582_v55 = vpop.f32.mrf.mxu0  ;;  %v4254_v46 = vunpack.c.l.b16 %v4196_v30  ;;  %v4255_v23 = vunpack.c.h.b16 %v4196_v30  ;;  %4447 = vst.msk [vmem:[#allocation2 + $0x344] sm:$0xf] %vm2290_vm1, %v9990_v59  ;;  %v3034_v28 = vpack.c.b16 %v3008_v48, %v3007_v61  ;;  %v3546_v45 = vpack.c.b16 %v3520_v51, %v3519_v35 }
 0x244   : > { %v6079_v57 = vadd.f32 %v6078_v63, %v5910_v2  ;;  %6286 = vmatmul.bf16.gmra.mxu2 %v7823_v8  ;;  %v7412_v2 = vld [vmem:[%s8681_s28 + $0x301] sm:$0xff]  ;;  %v7413_v8 = vld [vmem:[%s8681_s28 + $0x309] sm:$0xff]  ;;  %v3136_v26 = vpop.permute.xlu1 %3135  ;;  %v7827_v30 = vor.u32 %v8364_v5, %v7824_v9  ;;  %v7831_v61 = vor.u32 %v8367_v58, %v9994_v4  ;;  %v3612_v19 = vunpack.c.l.b16 %v3468_v31 }
 0x245   : > { %v4286_v29 = vpack.c.b16 %v4254_v46, %v4254_v46  ;;  %v4287_v54 = vpack.c.b16 %v4255_v23, %v4255_v23  ;;  %v3982_v56 = vpack.c.bf16 %v7412_v2, %v7412_v2  ;;  %v3983_v1 = vpack.c.bf16 %v7413_v8, %v7413_v8  ;;  %v7366_v46 = vld [vmem:[%s8681_s28 + $0x258] sm:$0xff]  ;;  %v7287_v31 = vld [vmem:[%s8681_s28 + $0x308] sm:$0xff] }
 0x246   : > { %6117 = vmatmul.bf16.gmra.mxu1 %v7819_v14  ;;  %v3174_v14 = vsel %vm495_vm0, %v3034_v28, %v3136_v26  ;;  %v3611_v8 = vunpack.c.l.b16 %v3467_v39  ;;  %v3904_v4 = vpack.c.bf16 %v7366_v46, %v7366_v46  ;;  %v7286_v39 = vld [vmem:[%s8681_s28 + $0x300] sm:$0xff] }
 0x247   : > { %v6247_v10 = vpop.f32.mrf.mxu2  ;;  %v6413_v52 = vpop.f32.mrf.mxu3  ;;  %4350 = vst [vmem:[#allocation2 + $0x32c] sm:$0xf] %v4286_v29  ;;  %v3231_v23 = vunpack.c.l.b16 %v3174_v14  ;;  %v3232_v48 = vunpack.c.h.b16 %v3174_v14  ;;  %v4126_v2 = vunpack.c.l.b16 %v3982_v56  ;;  %v4127_v51 = vunpack.c.l.b16 %v3983_v1  ;;  %v8371_v56 = vld [vmem:[#allocation2 + $0x310] sm:$0xf0] }
 0x248   : > { %v6248_v32 = vadd.f32 %v6247_v10, %v6079_v57  ;;  %v6414_v63 = vadd.f32 %v6413_v52, %v6245_v11  ;;  %4351 = vst [vmem:[#allocation2 + $0x340] sm:$0xf] %v4287_v54  ;;  %v3648_v35 = vpop.permute.xlu2 %3647  ;;  %v7367_v57 = vld [vmem:[%s8681_s28 + $0x260] sm:$0xff]  ;;  %v3632_v10 = vpack.c.b16 %v3612_v19, %v3611_v8  ;;  %v4032_v1 = vunpack.c.l.b16 %v3904_v4 }
 0x249   : > { %v3686_v5 = vsel %vm495_vm0, %v3546_v45, %v3648_v35  ;;  %v3263_v9 = vpack.c.b16 %v3231_v23, %v3231_v23  ;;  %v3264_v29 = vpack.c.b16 %v3232_v48, %v3232_v48  ;;  %v7842_v54 = vld [vmem:[#allocation2 + $0x300] sm:$0xf]  ;;  %v4146_v26 = vpack.c.b16 %v4127_v51, %v4126_v2  ;;  %v8368_v45 = vld [vmem:[#allocation2 + $0x2fc] sm:$0xf] }
 0x24a   : > { %v10011_v34 = vadd.f32 %v6582_v55, %v6414_v63  ;;  %v3743_v28 = vunpack.c.l.b16 %v3686_v5  ;;  %v3744_v55 = vunpack.c.h.b16 %v3686_v5  ;;  %v3905_v52 = vpack.c.bf16 %v7367_v57, %v7367_v57  ;;  %v7836_v63 = vld [vmem:[#allocation2 + $0x30c] sm:$0xf0]  ;;  %3659 = vrot.lane.b32.xlu2 %v3632_v10, %s8606_s29  ;;  %v7305_v5 = vld [vmem:[%s8681_s28 + $0x261] sm:$0xff] }
 0x24b   : > { %v6080_v20 = vpop.f32.mrf.mxu1  ;;  %v6585_v11 = vpop.f32.mrf.mxu0  ;;  %3327 = vst [vmem:[#allocation2 + $0x34c] sm:$0xf] %v3263_v9  ;;  %4174 = vrot.lane.b32.xlu0 %v4146_v26, %s8606_s29  ;;  %v7843_v8 = vor.u32 %v8371_v56, %v7842_v54  ;;  %v7839_v9 = vor.u32 %v8368_v45, %v7836_v63  ;;  %v3394_v10 = vpack.c.bf16 %v7305_v5, %v7305_v5  ;;  %v8369_v63 = vld [vmem:[#allocation2 + $0x304] sm:$0xf]  ;;  %v7349_v5 = vld [vmem:[%s8681_s28 + $0x2f2] sm:$0xff] }
 0x24c   : > { %v6081_v58 = vadd.f32 %v6080_v20, %v5912_v42  ;;  %6455 = vmatmul.bf16.gmra.mxu3 %v7827_v30  ;;  %v3775_v14 = vpack.c.b16 %v3743_v28, %v3743_v28  ;;  %v3776_v23 = vpack.c.b16 %v3744_v55, %v3744_v55  ;;  %3328 = vst [vmem:[#allocation2 + $0x360] sm:$0xf] %v3264_v29  ;;  %v4033_v2 = vunpack.c.l.b16 %v3905_v52  ;;  %v4161_v19 = vpop.permute.xlu0 %4160  ;;  %v7304_v20 = vld [vmem:[%s8681_s28 + $0x259] sm:$0xff]  ;;  %v7431_v55 = vld [vmem:[%s8681_s28 + $0x262] sm:$0xff] }
 0x24d   : > { %v2959_v42 = vpack.c.bf16 %v7286_v39, %v7286_v39  ;;  %v5915_v30 = vadd.f32 %v9977_v50, %v9359_v60  ;;  %v3393_v4 = vpack.c.bf16 %v7304_v20, %v7304_v20  ;;  %v7430_v28 = vld [vmem:[%s8681_s28 + $0x25a] sm:$0xff]  ;;  %v7348_v20 = vld [vmem:[%s8681_s28 + $0x2ea] sm:$0xff] }
 0x24e   : > { %8254 = vmatmul.msk.bf16.gmra.mxu0 %vm495_vm0, %v7831_v61  ;;  %v2960_v61 = vpack.c.bf16 %v7287_v31, %v7287_v31  ;;  %3839 = vst [vmem:[#allocation2 + $0x350] sm:$0xf] %v3775_v14  ;;  %v4059_v29 = vpack.c.b16 %v4033_v2, %v4032_v1  ;;  %v10028_v52 = vpack.c.bf16 %v7430_v28, %v7430_v28  ;;  %v3009_v1 = vunpack.c.l.b16 %v9988_v27  ;;  %v7414_v2 = vld [vmem:[%s8681_s28 + $0x319] sm:$0xff]  ;;  %v7415_v27 = vld [vmem:[%s8681_s28 + $0x321] sm:$0xff] }
 0x24f   : > { %v6249_v46 = vpop.f32.mrf.mxu2  ;;  %v6416_v48 = vpop.f32.mrf.mxu3  ;;  %v3103_v57 = vunpack.c.l.b16 %v2959_v42  ;;  %3840 = vst [vmem:[#allocation2 + $0x364] sm:$0xf] %v3776_v23  ;;  %v3521_v31 = vunpack.c.l.b16 %v3393_v4  ;;  %v3522_v42 = vunpack.c.l.b16 %v3394_v10  ;;  %v3985_v28 = vpack.c.bf16 %v7415_v27, %v7415_v27  ;;  %v7369_v27 = vld [vmem:[%s8681_s28 + $0x278] sm:$0xff] }
 0x250   : > { %v6250_v35 = vadd.f32 %v6249_v46, %v6081_v58  ;;  %v6417_v51 = vadd.f32 %v6416_v48, %v6248_v32  ;;  %v3104_v60 = vunpack.c.l.b16 %v2960_v61  ;;  %v10030_v58 = vpack.c.bf16 %v7431_v55, %v7431_v55  ;;  %4448 = vst.msk [vmem:[#allocation2 + $0x358] sm:$0xf] %vm2290_vm1, %v10028_v52  ;;  %v7844_v46 = vld [vmem:[#allocation2 + $0x314] sm:$0xf0]  ;;  %v8372_v61 = vld [vmem:[#allocation2 + $0x318] sm:$0xf0] }
 0x251   : > { %v4199_v56 = vsel %vm495_vm0, %v4059_v29, %v4161_v19  ;;  %v3010_v48 = vunpack.c.l.b16 %v9990_v59  ;;  %v3547_v19 = vpack.c.b16 %v3522_v42, %v3521_v31  ;;  %v3984_v59 = vpack.c.bf16 %v7414_v2, %v7414_v2 }
 0x252   : > { %v10026_v26 = vadd.f32 %v6585_v11, %v6417_v51  ;;  %v3122_v39 = vpack.c.b16 %v3104_v60, %v3103_v57  ;;  %v10034_v11 = vld [vmem:[#allocation2 + $0x308] sm:$0xf]  ;;  %v4256_v14 = vunpack.c.l.b16 %v4199_v56  ;;  %v4257_v23 = vunpack.c.h.b16 %v4199_v56  ;;  %4449 = vst.msk [vmem:[#allocation2 + $0x36c] sm:$0xf] %vm2290_vm1, %v10030_v58 }
 0x253   : > { %v6083_v32 = vpop.f32.mrf.mxu1  ;;  %v6587_v54 = vpop.f32.mrf.mxu0  ;;  %v3035_v4 = vpack.c.b16 %v3010_v48, %v3009_v1  ;;  %v3469_v55 = vpack.c.bf16 %v7348_v20, %v7348_v20  ;;  %v7847_v56 = vor.u32 %v8369_v63, %v7844_v46 }
 0x254   : > { %v6084_v45 = vadd.f32 %v6083_v32, %v5915_v30  ;;  %6291 = vmatmul.bf16.gmra.mxu2 %v7843_v8  ;;  %3151 = vrot.lane.b32.xlu1 %v3122_v39, %s8606_s29  ;;  %v5917_v30 = vadd.f32 %v9977_v50, %v9386_v38  ;;  %v4288_v51 = vpack.c.b16 %v4256_v14, %v4256_v14  ;;  %v3138_v57 = vpop.permute.xlu1 %3137  ;;  %v4128_v14 = vunpack.c.l.b16 %v3984_v59 }
 0x255   : > { %v4289_v8 = vpack.c.b16 %v4257_v23, %v4257_v23  ;;  %v3470_v38 = vpack.c.bf16 %v7349_v5, %v7349_v5  ;;  %v3177_v31 = vsel %vm495_vm0, %v3035_v4, %v3138_v57  ;;  %v4129_v23 = vunpack.c.l.b16 %v3985_v28  ;;  %v7862_v57 = vld [vmem:[#allocation2 + $0x328] sm:$0xf]  ;;  %v7288_v28 = vld [vmem:[%s8681_s28 + $0x318] sm:$0xff] }
 0x256   : > { %6122 = vmatmul.bf16.gmra.mxu1 %v7839_v9  ;;  %4352 = vst [vmem:[#allocation2 + $0x354] sm:$0xf] %v4288_v51  ;;  %v7851_v9 = vor.u32 %v8372_v61, %v10034_v11  ;;  %v3233_v48 = vunpack.c.l.b16 %v3177_v31  ;;  %v3234_v2 = vunpack.c.h.b16 %v3177_v31  ;;  %v3613_v61 = vunpack.c.l.b16 %v3469_v55  ;;  %v7856_v31 = vld [vmem:[#allocation2 + $0x334] sm:$0xf0] }
 0x257   : > { %v6252_v29 = vpop.f32.mrf.mxu2  ;;  %v6418_v60 = vpop.f32.mrf.mxu3  ;;  %4353 = vst [vmem:[#allocation2 + $0x368] sm:$0xf] %v4289_v8  ;;  %v4147_v11 = vpack.c.b16 %v4129_v23, %v4128_v14  ;;  %v3614_v5 = vunpack.c.l.b16 %v3470_v38  ;;  %v3907_v59 = vpack.c.bf16 %v7369_v27, %v7369_v27  ;;  %v2961_v55 = vpack.c.bf16 %v7288_v28, %v7288_v28 }
 0x258   : > { %v6253_v10 = vadd.f32 %v6252_v29, %v6084_v45  ;;  %v6419_v32 = vadd.f32 %v6418_v60, %v6250_v35  ;;  %v3650_v39 = vpop.permute.xlu2 %3649  ;;  %v7368_v45 = vld [vmem:[%s8681_s28 + $0x270] sm:$0xff]  ;;  %v3265_v20 = vpack.c.b16 %v3233_v48, %v3233_v48  ;;  %v8376_v29 = vld [vmem:[#allocation2 + $0x338] sm:$0xf0] }
 0x259   : > { %v3689_v1 = vsel %vm495_vm0, %v3547_v19, %v3650_v39  ;;  %4176 = vrot.lane.b32.xlu0 %v4147_v11, %s8606_s29  ;;  %v3906_v4 = vpack.c.bf16 %v7368_v45, %v7368_v45  ;;  %v8373_v39 = vld [vmem:[#allocation2 + $0x324] sm:$0xf]  ;;  %v7863_v45 = vor.u32 %v8376_v29, %v7862_v57 }
 0x25a   : > { %v10050_v42 = vadd.f32 %v6587_v54, %v6419_v32  ;;  %v3745_v46 = vunpack.c.l.b16 %v3689_v1  ;;  %v3746_v51 = vunpack.c.h.b16 %v3689_v1  ;;  %v3266_v54 = vpack.c.b16 %v3234_v2, %v3234_v2  ;;  %v7289_v32 = vld [vmem:[%s8681_s28 + $0x320] sm:$0xff]  ;;  %3329 = vst [vmem:[#allocation2 + $0x374] sm:$0xf] %v3265_v20 }
 0x25b   : > { %v6085_v35 = vpop.f32.mrf.mxu1  ;;  %v6590_v63 = vpop.f32.mrf.mxu0  ;;  %v4034_v23 = vunpack.c.l.b16 %v3906_v4  ;;  %v4035_v1 = vunpack.c.l.b16 %v3907_v59  ;;  %v2962_v48 = vpack.c.bf16 %v7289_v32, %v7289_v32  ;;  %v7859_v11 = vor.u32 %v8373_v39, %v7856_v31  ;;  %v8374_v31 = vld [vmem:[#allocation2 + $0x32c] sm:$0xf] }
 0x25c   : > { %v6086_v8 = vadd.f32 %v6085_v35, %v5917_v30  ;;  %6460 = vmatmul.bf16.gmra.mxu3 %v7847_v56  ;;  %v3777_v19 = vpack.c.b16 %v3745_v46, %v3745_v46  ;;  %v3778_v60 = vpack.c.b16 %v3746_v51, %v3746_v51  ;;  %v3633_v30 = vpack.c.b16 %v3614_v5, %v3613_v61  ;;  %v7306_v46 = vld [vmem:[%s8681_s28 + $0x271] sm:$0xff]  ;;  %v7307_v51 = vld [vmem:[%s8681_s28 + $0x279] sm:$0xff] }
 0x25d   : > { %v5920_v56 = vadd.f32 %v9977_v50, %v9407_v3  ;;  %v4163_v27 = vpop.permute.xlu0 %4162  ;;  %v3105_v35 = vunpack.c.l.b16 %v2961_v55  ;;  %3330 = vst [vmem:[#allocation2 + $0x388] sm:$0xf] %v3266_v54  ;;  %v4060_v3 = vpack.c.b16 %v4035_v1, %v4034_v23  ;;  %v3106_v61 = vunpack.c.l.b16 %v2962_v48  ;;  %v7432_v5 = vld [vmem:[%s8681_s28 + $0x272] sm:$0xff]  ;;  %v7864_v23 = vld [vmem:[#allocation2 + $0x33c] sm:$0xf0] }
 0x25e   : > { %8255 = vmatmul.msk.bf16.gmra.mxu0 %vm495_vm0, %v7851_v9  ;;  %3841 = vst [vmem:[#allocation2 + $0x378] sm:$0xf] %v3777_v19  ;;  %3661 = vrot.lane.b32.xlu2 %v3633_v30, %s8606_s29  ;;  %v3395_v20 = vpack.c.bf16 %v7306_v46, %v7306_v46  ;;  %v7433_v19 = vld [vmem:[%s8681_s28 + $0x27a] sm:$0xff]  ;;  %v3396_v59 = vpack.c.bf16 %v7307_v51, %v7307_v51  ;;  %v3011_v32 = vunpack.c.l.b16 %v10028_v52  ;;  %v3012_v52 = vunpack.c.l.b16 %v10030_v58  ;;  %v8377_v48 = vld [vmem:[#allocation2 + $0x340] sm:$0xf0]  ;;  %v7351_v51 = vld [vmem:[%s8681_s28 + $0x30a] sm:$0xff] }
 0x25f   : > { %v6254_v38 = vpop.f32.mrf.mxu2  ;;  %v6421_v14 = vpop.f32.mrf.mxu3  ;;  %3842 = vst [vmem:[#allocation2 + $0x38c] sm:$0xf] %v3778_v60  ;;  %v4202_v60 = vsel %vm495_vm0, %v4060_v3, %v4163_v27  ;;  %v3123_v28 = vpack.c.b16 %v3106_v61, %v3105_v35  ;;  %v7417_v1 = vld [vmem:[%s8681_s28 + $0x339] sm:$0xff]  ;;  %v7350_v46 = vld [vmem:[%s8681_s28 + $0x302] sm:$0xff] }
 0x260   : > { %v6255_v2 = vadd.f32 %v6254_v38, %v6086_v8  ;;  %v6422_v9 = vadd.f32 %v6421_v14, %v6253_v10  ;;  %v10068_v8 = vpack.c.bf16 %v7432_v5, %v7432_v5  ;;  %v10070_v10 = vpack.c.bf16 %v7433_v19, %v7433_v19 }
 0x261   : > { %v3523_v54 = vunpack.c.l.b16 %v3395_v20  ;;  %v4258_v30 = vunpack.c.l.b16 %v4202_v60  ;;  %v4259_v55 = vunpack.c.h.b16 %v4202_v60  ;;  %v3524_v38 = vunpack.c.l.b16 %v3396_v59  ;;  %3153 = vrot.lane.b32.xlu1 %v3123_v28, %s8606_s29 }
 0x262   : > { %v10066_v4 = vadd.f32 %v6590_v63, %v6422_v9  ;;  %v10074_v63 = vld [vmem:[#allocation2 + $0x330] sm:$0xf]  ;;  %4450 = vst.msk [vmem:[#allocation2 + $0x380] sm:$0xf] %vm2290_vm1, %v10068_v8  ;;  %v5922_v14 = vadd.f32 %v9977_v50, %v9434_v36  ;;  %v3036_v61 = vpack.c.b16 %v3012_v52, %v3011_v32  ;;  %v3987_v20 = vpack.c.bf16 %v7417_v1, %v7417_v1 }
 0x263   : > { %v6088_v57 = vpop.f32.mrf.mxu1  ;;  %v6592_v29 = vpop.f32.mrf.mxu0  ;;  %4451 = vst.msk [vmem:[#allocation2 + $0x394] sm:$0xf] %vm2290_vm1, %v10070_v10  ;;  %v4290_v9 = vpack.c.b16 %v4258_v30, %v4258_v30  ;;  %v3548_v27 = vpack.c.b16 %v3524_v38, %v3523_v54  ;;  %v3471_v5 = vpack.c.bf16 %v7350_v46, %v7350_v46  ;;  %v3472_v19 = vpack.c.bf16 %v7351_v51, %v7351_v51  ;;  %v7371_v1 = vld [vmem:[%s8681_s28 + $0x290] sm:$0xff]  ;;  %v8381_v46 = vld [vmem:[#allocation2 + $0x360] sm:$0xf0] }
 0x264   : > { %v6089_v39 = vadd.f32 %v6088_v57, %v5920_v56  ;;  %6296 = vmatmul.bf16.gmra.mxu2 %v7863_v45  ;;  %v7416_v56 = vld [vmem:[%s8681_s28 + $0x331] sm:$0xff]  ;;  %v4291_v45 = vpack.c.b16 %v4259_v55, %v4259_v55  ;;  %v7867_v57 = vor.u32 %v8374_v31, %v7864_v23  ;;  %v3140_v60 = vpop.permute.xlu1 %3139  ;;  %v7871_v54 = vor.u32 %v8377_v48, %v10074_v63 }
 0x265   : > { %v3986_v35 = vpack.c.bf16 %v7416_v56, %v7416_v56  ;;  %4354 = vst [vmem:[#allocation2 + $0x37c] sm:$0xf] %v4290_v9  ;;  %v3180_v55 = vsel %vm495_vm0, %v3036_v61, %v3140_v60  ;;  %v4131_v32 = vunpack.c.l.b16 %v3987_v20  ;;  %v3615_v63 = vunpack.c.l.b16 %v3471_v5  ;;  %v7291_v60 = vld [vmem:[%s8681_s28 + $0x338] sm:$0xff]  ;;  %v7876_v5 = vld [vmem:[#allocation2 + $0x35c] sm:$0xf0] }
 0x266   : > { %6127 = vmatmul.bf16.gmra.mxu1 %v7859_v11  ;;  %v3652_v11 = vpop.permute.xlu2 %3651  ;;  %4355 = vst [vmem:[#allocation2 + $0x390] sm:$0xf] %v4291_v45  ;;  %v3235_v56 = vunpack.c.l.b16 %v3180_v55  ;;  %v3236_v9 = vunpack.c.h.b16 %v3180_v55  ;;  %v3616_v48 = vunpack.c.l.b16 %v3472_v19  ;;  %v2964_v19 = vpack.c.bf16 %v7291_v60, %v7291_v60 }
 0x267   : > { %v6257_v3 = vpop.f32.mrf.mxu2  ;;  %v6423_v36 = vpop.f32.mrf.mxu3  ;;  %v4130_v28 = vunpack.c.l.b16 %v3986_v35  ;;  %v3692_v30 = vsel %vm495_vm0, %v3548_v27, %v3652_v11  ;;  %v7882_v27 = vld [vmem:[#allocation2 + $0x350] sm:$0xf]  ;;  %v3013_v60 = vunpack.c.l.b16 %v10068_v8 }
 0x268   : > { %v6258_v58 = vadd.f32 %v6257_v3, %v6089_v39  ;;  %v6424_v59 = vadd.f32 %v6423_v36, %v6255_v2  ;;  %v3747_v52 = vunpack.c.l.b16 %v3692_v30  ;;  %v3748_v39 = vunpack.c.h.b16 %v3692_v30  ;;  %v7370_v2 = vld [vmem:[%s8681_s28 + $0x288] sm:$0xff]  ;;  %v7290_v11 = vld [vmem:[%s8681_s28 + $0x330] sm:$0xff] }
 0x269   : > { %v4148_v35 = vpack.c.b16 %v4131_v32, %v4130_v28  ;;  %v3267_v3 = vpack.c.b16 %v3235_v56, %v3235_v56  ;;  %v3268_v36 = vpack.c.b16 %v3236_v9, %v3236_v9  ;;  %v3634_v61 = vpack.c.b16 %v3616_v48, %v3615_v63  ;;  %v8378_v28 = vld [vmem:[#allocation2 + $0x34c] sm:$0xf] }
 0x26a   : > { %v10091_v38 = vadd.f32 %v6592_v29, %v6424_v59  ;;  %v3779_v51 = vpack.c.b16 %v3747_v52, %v3747_v52  ;;  %v3780_v29 = vpack.c.b16 %v3748_v39, %v3748_v39  ;;  %v3908_v20 = vpack.c.bf16 %v7370_v2, %v7370_v2  ;;  %v7308_v9 = vld [vmem:[%s8681_s28 + $0x289] sm:$0xff] }
 0x26b   : > { %v6090_v31 = vpop.f32.mrf.mxu1  ;;  %v6595_v23 = vpop.f32.mrf.mxu0  ;;  %4178 = vrot.lane.b32.xlu0 %v4148_v35, %s8606_s29  ;;  %v3909_v59 = vpack.c.bf16 %v7371_v1, %v7371_v1  ;;  %v7883_v32 = vor.u32 %v8381_v46, %v7882_v27  ;;  %3663 = vrot.lane.b32.xlu2 %v3634_v61, %s8606_s29  ;;  %3331 = vst [vmem:[#allocation2 + $0x39c] sm:$0xf] %v3267_v3  ;;  %v7309_v35 = vld [vmem:[%s8681_s28 + $0x291] sm:$0xff] }
 0x26c   : > { %v6091_v45 = vadd.f32 %v6090_v31, %v5922_v14  ;;  %6465 = vmatmul.bf16.gmra.mxu3 %v7867_v57  ;;  %3843 = vst [vmem:[#allocation2 + $0x3a0] sm:$0xf] %v3779_v51  ;;  %v2963_v14 = vpack.c.bf16 %v7290_v11, %v7290_v11  ;;  %v5925_v57 = vadd.f32 %v9977_v50, %v9455_v43  ;;  %v4036_v52 = vunpack.c.l.b16 %v3908_v20  ;;  %v7434_v46 = vld [vmem:[%s8681_s28 + $0x28a] sm:$0xff]  ;;  %v7435_v51 = vld [vmem:[%s8681_s28 + $0x292] sm:$0xff] }
 0x26d   : > { %3844 = vst [vmem:[#allocation2 + $0x3b4] sm:$0xf] %v3780_v29  ;;  %v4165_v2 = vpop.permute.xlu0 %4164  ;;  %v3108_v31 = vunpack.c.l.b16 %v2964_v19  ;;  %v7879_v63 = vor.u32 %v8378_v28, %v7876_v5  ;;  %v3397_v48 = vpack.c.bf16 %v7308_v9, %v7308_v9  ;;  %v3398_v27 = vpack.c.bf16 %v7309_v35, %v7309_v35  ;;  %v8379_v5 = vld [vmem:[#allocation2 + $0x354] sm:$0xf]  ;;  %v7352_v9 = vld [vmem:[%s8681_s28 + $0x31a] sm:$0xff]  ;;  %v7353_v35 = vld [vmem:[%s8681_s28 + $0x322] sm:$0xff] }
 0x26e   : > { %8256 = vmatmul.msk.bf16.gmra.mxu0 %vm495_vm0, %v7871_v54  ;;  %v4037_v54 = vunpack.c.l.b16 %v3909_v59  ;;  %v3107_v1 = vunpack.c.l.b16 %v2963_v14  ;;  %3332 = vst [vmem:[#allocation2 + $0x3b0] sm:$0xf] %v3268_v36  ;;  %v10108_v20 = vpack.c.bf16 %v7434_v46, %v7434_v46  ;;  %v3473_v46 = vpack.c.bf16 %v7352_v9, %v7352_v9 }
 0x26f   : > { %v6259_v30 = vpop.f32.mrf.mxu2  ;;  %v6426_v55 = vpop.f32.mrf.mxu3  ;;  %v3525_v11 = vunpack.c.l.b16 %v3397_v48  ;;  %v3526_v36 = vunpack.c.l.b16 %v3398_v27 }
 0x270   : > { %v6260_v39 = vadd.f32 %v6259_v30, %v6091_v45  ;;  %v6427_v56 = vadd.f32 %v6426_v55, %v6258_v58  ;;  %v4061_v43 = vpack.c.b16 %v4037_v54, %v4036_v52  ;;  %v3124_v61 = vpack.c.b16 %v3108_v31, %v3107_v1  ;;  %4452 = vst.msk [vmem:[#allocation2 + $0x3a8] sm:$0xf] %vm2290_vm1, %v10108_v20  ;;  %v7890_v52 = vld [vmem:[#allocation2 + $0x358] sm:$0xf]  ;;  %v8382_v54 = vld [vmem:[#allocation2 + $0x368] sm:$0xf0] }
 0x271   : > { %v10110_v45 = vpack.c.bf16 %v7435_v51, %v7435_v51  ;;  %v3014_v30 = vunpack.c.l.b16 %v10070_v10  ;;  %v5927_v55 = vadd.f32 %v9977_v50, %v9479_v49  ;;  %v3549_v8 = vpack.c.b16 %v3526_v36, %v3525_v11 }
 0x272   : > { %v10106_v29 = vadd.f32 %v6595_v23, %v6427_v56  ;;  %v4205_v59 = vsel %vm495_vm0, %v4061_v43, %v4165_v2  ;;  %v7884_v23 = vld [vmem:[#allocation2 + $0x364] sm:$0xf0]  ;;  %3155 = vrot.lane.b32.xlu1 %v3124_v61, %s8606_s29  ;;  %v3474_v51 = vpack.c.bf16 %v7353_v35, %v7353_v35  ;;  %v7891_v11 = vor.u32 %v8382_v54, %v7890_v52 }
 0x273   : > { %v6093_v58 = vpop.f32.mrf.mxu1  ;;  %v6597_v3 = vpop.f32.mrf.mxu0  ;;  %v4260_v14 = vunpack.c.l.b16 %v4205_v59  ;;  %v4261_v19 = vunpack.c.h.b16 %v4205_v59  ;;  %4453 = vst.msk [vmem:[#allocation2 + $0x3bc] sm:$0xf] %vm2290_vm1, %v10110_v45  ;;  %v3037_v1 = vpack.c.b16 %v3014_v30, %v3013_v60  ;;  %v7887_v49 = vor.u32 %v8379_v5, %v7884_v23  ;;  %v7372_v30 = vld [vmem:[%s8681_s28 + $0x2a0] sm:$0xff] }
 0x274   : > { %v6094_v28 = vadd.f32 %v6093_v58, %v5925_v57  ;;  %6301 = vmatmul.bf16.gmra.mxu2 %v7883_v32  ;;  %v7418_v57 = vld [vmem:[%s8681_s28 + $0x349] sm:$0xff]  ;;  %v7419_v32 = vld [vmem:[%s8681_s28 + $0x351] sm:$0xff]  ;;  %v3142_v10 = vpop.permute.xlu1 %3141  ;;  %v3617_v23 = vunpack.c.l.b16 %v3473_v46 }
 0x275   : > { %v4292_v56 = vpack.c.b16 %v4260_v14, %v4260_v14  ;;  %v4293_v2 = vpack.c.b16 %v4261_v19, %v4261_v19  ;;  %v3988_v31 = vpack.c.bf16 %v7418_v57, %v7418_v57  ;;  %v3989_v27 = vpack.c.bf16 %v7419_v32, %v7419_v32  ;;  %v3654_v36 = vpop.permute.xlu2 %3653 }
 0x276   : > { %6132 = vmatmul.bf16.gmra.mxu1 %v7879_v63  ;;  %v3183_v63 = vsel %vm495_vm0, %v3037_v1, %v3142_v10  ;;  %v3695_v5 = vsel %vm495_vm0, %v3549_v8, %v3654_v36  ;;  %v3618_v32 = vunpack.c.l.b16 %v3474_v51 }
 0x277   : > { %v6262_v43 = vpop.f32.mrf.mxu2  ;;  %v6428_v48 = vpop.f32.mrf.mxu3  ;;  %4356 = vst [vmem:[#allocation2 + $0x3a4] sm:$0xf] %v4292_v56  ;;  %v4132_v59 = vunpack.c.l.b16 %v3988_v31  ;;  %v3237_v60 = vunpack.c.l.b16 %v3183_v63  ;;  %v3238_v14 = vunpack.c.h.b16 %v3183_v63  ;;  %v4133_v19 = vunpack.c.l.b16 %v3989_v27 }
 0x278   : > { %v6263_v61 = vadd.f32 %v6262_v43, %v6094_v28  ;;  %v6429_v58 = vadd.f32 %v6428_v48, %v6260_v39  ;;  %4357 = vst [vmem:[#allocation2 + $0x3b8] sm:$0xf] %v4293_v2  ;;  %v7373_v28 = vld [vmem:[%s8681_s28 + $0x2a8] sm:$0xff]  ;;  %v3749_v56 = vunpack.c.l.b16 %v3695_v5  ;;  %v3750_v35 = vunpack.c.h.b16 %v3695_v5  ;;  %v7902_v43 = vld [vmem:[#allocation2 + $0x378] sm:$0xf] }
 0x279   : > { %v3269_v1 = vpack.c.b16 %v3237_v60, %v3237_v60  ;;  %v3270_v10 = vpack.c.b16 %v3238_v14, %v3238_v14  ;;  %v4149_v54 = vpack.c.b16 %v4133_v19, %v4132_v59  ;;  %v3635_v2 = vpack.c.b16 %v3618_v32, %v3617_v23  ;;  %v8386_v48 = vld [vmem:[#allocation2 + $0x388] sm:$0xf0]  ;;  %v7310_v14 = vld [vmem:[%s8681_s28 + $0x2a1] sm:$0xff] }
 0x27a   : > { %v10128_v57 = vadd.f32 %v6597_v3, %v6429_v58  ;;  %v3910_v31 = vpack.c.bf16 %v7372_v30, %v7372_v30  ;;  %v3781_v3 = vpack.c.b16 %v3749_v56, %v3749_v56  ;;  %v3782_v27 = vpack.c.b16 %v3750_v35, %v3750_v35  ;;  %v7896_v58 = vld [vmem:[#allocation2 + $0x384] sm:$0xf0] }
 0x27b   : > { %v6095_v9 = vpop.f32.mrf.mxu1  ;;  %v6600_v39 = vpop.f32.mrf.mxu0  ;;  %3333 = vst [vmem:[#allocation2 + $0x3c4] sm:$0xf] %v3269_v1  ;;  %v3911_v8 = vpack.c.bf16 %v7373_v28, %v7373_v28  ;;  %4180 = vrot.lane.b32.xlu0 %v4149_v54, %s8606_s29  ;;  %3665 = vrot.lane.b32.xlu2 %v3635_v2, %s8606_s29  ;;  %v7903_v60 = vor.u32 %v8386_v48, %v7902_v43  ;;  %v7311_v19 = vld [vmem:[%s8681_s28 + $0x2a9] sm:$0xff]  ;;  %v8384_v48 = vld [vmem:[#allocation2 + $0x37c] sm:$0xf] }
 0x27c   : > { %v6096_v52 = vadd.f32 %v6095_v9, %v5927_v55  ;;  %6470 = vmatmul.bf16.gmra.mxu3 %v7887_v49  ;;  %3334 = vst [vmem:[#allocation2 + $0x3d8] sm:$0xf] %v3270_v10  ;;  %v4038_v46 = vunpack.c.l.b16 %v3910_v31  ;;  %v8383_v49 = vld [vmem:[#allocation2 + $0x374] sm:$0xf]  ;;  %v5930_v30 = vadd.f32 %v9977_v50, %v9500_v12  ;;  %v3399_v23 = vpack.c.bf16 %v7310_v14, %v7310_v14  ;;  %v7436_v28 = vld [vmem:[%s8681_s28 + $0x2a2] sm:$0xff]  ;;  %v7437_v9 = vld [vmem:[%s8681_s28 + $0x2aa] sm:$0xff] }
 0x27d   : > { %3845 = vst [vmem:[#allocation2 + $0x3c8] sm:$0xf] %v3781_v3  ;;  %v4039_v63 = vunpack.c.l.b16 %v3911_v8  ;;  %v3400_v32 = vpack.c.bf16 %v7311_v19, %v7311_v19  ;;  %v7899_v35 = vor.u32 %v8383_v49, %v7896_v58  ;;  %v10143_v1 = vpack.c.bf16 %v7436_v28, %v7436_v28  ;;  %v7904_v8 = vld [vmem:[#allocation2 + $0x38c] sm:$0xf0] }
 0x27e   : > { %8257 = vmatmul.msk.bf16.gmra.mxu0 %vm495_vm0, %v7891_v11  ;;  %3846 = vst [vmem:[#allocation2 + $0x3dc] sm:$0xf] %v3782_v27  ;;  %v4167_v11 = vpop.permute.xlu0 %4166  ;;  %v3527_v2 = vunpack.c.l.b16 %v3399_v23  ;;  %v3015_v31 = vunpack.c.l.b16 %v10108_v20  ;;  %v3016_v27 = vunpack.c.l.b16 %v10110_v45 }
 0x27f   : > { %v6264_v51 = vpop.f32.mrf.mxu2  ;;  %v6431_v55 = vpop.f32.mrf.mxu3  ;;  %v4062_v5 = vpack.c.b16 %v4039_v63, %v4038_v46  ;;  %v3528_v12 = vunpack.c.l.b16 %v3400_v32  ;;  %4454 = vst.msk [vmem:[#allocation2 + $0x3d0] sm:$0xf] %vm2290_vm1, %v10143_v1  ;;  %v7354_v46 = vld [vmem:[%s8681_s28 + $0x332] sm:$0xff]  ;;  %v5932_v63 = vadd.f32 %v9977_v50, %v9524_v21  ;;  %v7907_v32 = vor.u32 %v8384_v48, %v7904_v8 }
 0x280   : > { %v6265_v59 = vadd.f32 %v6264_v51, %v6096_v52  ;;  %v6432_v36 = vadd.f32 %v6431_v55, %v6263_v61  ;;  %v10145_v61 = vpack.c.bf16 %v7437_v9, %v7437_v9  ;;  %v7355_v51 = vld [vmem:[%s8681_s28 + $0x33a] sm:$0xff]  ;;  %v3038_v20 = vpack.c.b16 %v3016_v27, %v3015_v31 }
 0x281   : > { %v4208_v54 = vsel %vm495_vm0, %v4062_v5, %v4167_v11  ;;  %v8387_v11 = vld [vmem:[#allocation2 + $0x390] sm:$0xf0]  ;;  %v3550_v14 = vpack.c.b16 %v3528_v12, %v3527_v2  ;;  %v3475_v19 = vpack.c.bf16 %v7354_v46, %v7354_v46  ;;  %v7374_v9 = vld [vmem:[%s8681_s28 + $0x2b8] sm:$0xff] }
 0x282   : > { %v10141_v56 = vadd.f32 %v6600_v39, %v6432_v36  ;;  %v4262_v39 = vunpack.c.l.b16 %v4208_v54  ;;  %v4263_v3 = vunpack.c.h.b16 %v4208_v54  ;;  %4455 = vst.msk [vmem:[#allocation2 + $0x3e4] sm:$0xf] %vm2290_vm1, %v10145_v61  ;;  %v3912_v2 = vpack.c.bf16 %v7374_v9, %v7374_v9 }
 0x283   : > { %v6098_v10 = vpop.f32.mrf.mxu1  ;;  %v6602_v52 = vpop.f32.mrf.mxu0  ;;  %v3619_v31 = vunpack.c.l.b16 %v3475_v19 }
 0x284   : > { %v6099_v43 = vadd.f32 %v6098_v10, %v5930_v30  ;;  %6306 = vmatmul.bf16.gmra.mxu2 %v7903_v60  ;;  %v4294_v55 = vpack.c.b16 %v4262_v39, %v4262_v39  ;;  %v4295_v49 = vpack.c.b16 %v4263_v3, %v4263_v3  ;;  %v3144_v58 = vpop.permute.xlu1 %3143  ;;  %v7910_v60 = vld [vmem:[#allocation2 + $0x380] sm:$0xf]  ;;  %v3476_v30 = vpack.c.bf16 %v7355_v51, %v7355_v51 }
 0x285   : > { %v3186_v28 = vsel %vm495_vm0, %v3038_v20, %v3144_v58  ;;  %v7911_v3 = vor.u32 %v8387_v11, %v7910_v60  ;;  %v4040_v58 = vunpack.c.l.b16 %v3912_v2  ;;  %v8388_v60 = vld [vmem:[#allocation2 + $0x39c] sm:$0xf]  ;;  %v7916_v11 = vld [vmem:[#allocation2 + $0x3ac] sm:$0xf0] }
 0x286   : > { %6137 = vmatmul.bf16.gmra.mxu1 %v7899_v35  ;;  %4358 = vst [vmem:[#allocation2 + $0x3cc] sm:$0xf] %v4294_v55  ;;  %v7375_v35 = vld [vmem:[%s8681_s28 + $0x2c0] sm:$0xff]  ;;  %v3239_v10 = vunpack.c.l.b16 %v3186_v28  ;;  %v3240_v54 = vunpack.c.h.b16 %v3186_v28  ;;  %v3620_v21 = vunpack.c.l.b16 %v3476_v30 }
 0x287   : > { %v6267_v45 = vpop.f32.mrf.mxu2  ;;  %v6433_v36 = vpop.f32.mrf.mxu3  ;;  %4359 = vst [vmem:[#allocation2 + $0x3e0] sm:$0xf] %v4295_v49  ;;  %v3913_v12 = vpack.c.bf16 %v7375_v35, %v7375_v35 }
 0x288   : > { %v6268_v5 = vadd.f32 %v6267_v45, %v6099_v43  ;;  %v6434_v23 = vadd.f32 %v6433_v36, %v6265_v59  ;;  %v3656_v27 = vpop.permute.xlu2 %3655  ;;  %v3271_v48 = vpack.c.b16 %v3239_v10, %v3239_v10  ;;  %v3272_v8 = vpack.c.b16 %v3240_v54, %v3240_v54  ;;  %v7922_v45 = vld [vmem:[#allocation2 + $0x3a0] sm:$0xf]  ;;  %v8391_v36 = vld [vmem:[#allocation2 + $0x3b0] sm:$0xf0] }
 0x289   : > { %v3698_v59 = vsel %vm495_vm0, %v3550_v14, %v3656_v27  ;;  %v3636_v51 = vpack.c.b16 %v3620_v21, %v3619_v31  ;;  %v7923_v35 = vor.u32 %v8391_v36, %v7922_v45  ;;  %v7312_v54 = vld [vmem:[%s8681_s28 + $0x2b9] sm:$0xff]  ;;  %v7313_v31 = vld [vmem:[%s8681_s28 + $0x2c1] sm:$0xff]  ;;  %v7919_v21 = vor.u32 %v8388_v60, %v7916_v11 }
 0x28a   : > { %v10161_v39 = vadd.f32 %v6602_v52, %v6434_v23  ;;  %v3751_v49 = vunpack.c.l.b16 %v3698_v59  ;;  %v3752_v20 = vunpack.c.h.b16 %v3698_v59  ;;  %3335 = vst [vmem:[#allocation2 + $0x3ec] sm:$0xf] %v3271_v48  ;;  %v4041_v52 = vunpack.c.l.b16 %v3913_v12  ;;  %v7438_v12 = vld [vmem:[%s8681_s28 + $0x2ba] sm:$0xff]  ;;  %v8389_v45 = vld [vmem:[#allocation2 + $0x3a4] sm:$0xf] }
 0x28b   : > { %v6100_v46 = vpop.f32.mrf.mxu1  ;;  %v6605_v43 = vpop.f32.mrf.mxu0  ;;  %3667 = vrot.lane.b32.xlu2 %v3636_v51, %s8606_s29  ;;  %3336 = vst [vmem:[#allocation2 + $0x400] sm:$0xf] %v3272_v8  ;;  %v3401_v27 = vpack.c.bf16 %v7312_v54, %v7312_v54  ;;  %v3402_v2 = vpack.c.bf16 %v7313_v31, %v7313_v31  ;;  %v7924_v36 = vld [vmem:[#allocation2 + $0x3b4] sm:$0xf0]  ;;  %v7376_v31 = vld [vmem:[%s8681_s28 + $0x2d0] sm:$0xff] }
 0x28c   : > { %v6101_v55 = vadd.f32 %v6100_v46, %v5932_v63  ;;  %6475 = vmatmul.bf16.gmra.mxu3 %v7907_v32  ;;  %v3783_v14 = vpack.c.b16 %v3751_v49, %v3751_v49  ;;  %v3784_v19 = vpack.c.b16 %v3752_v20, %v3752_v20  ;;  %v4063_v23 = vpack.c.b16 %v4041_v52, %v4040_v58  ;;  %v4169_v10 = vpop.permute.xlu0 %4168  ;;  %v7439_v46 = vld [vmem:[%s8681_s28 + $0x2c2] sm:$0xff] }
 0x28d   : > { %v5935_v32 = vadd.f32 %v9977_v50, %v9546_v6  ;;  %v10175_v6 = vpack.c.bf16 %v7438_v12, %v7438_v12  ;;  %v3529_v51 = vunpack.c.l.b16 %v3401_v27  ;;  %v3017_v49 = vunpack.c.l.b16 %v10143_v1 }
 0x28e   : > { %8258 = vmatmul.msk.bf16.gmra.mxu0 %vm495_vm0, %v7911_v3  ;;  %3847 = vst [vmem:[#allocation2 + $0x3f0] sm:$0xf] %v3783_v14  ;;  %v4211_v3 = vsel %vm495_vm0, %v4063_v23, %v4169_v10  ;;  %v3018_v20 = vunpack.c.l.b16 %v10145_v61  ;;  %v7930_v14 = vld [vmem:[#allocation2 + $0x3a8] sm:$0xf]  ;;  %v7927_v23 = vor.u32 %v8389_v45, %v7924_v36 }
 0x28f   : > { %v6269_v63 = vpop.f32.mrf.mxu2  ;;  %v6436_v30 = vpop.f32.mrf.mxu3  ;;  %3848 = vst [vmem:[#allocation2 + $0x404] sm:$0xf] %v3784_v19  ;;  %v4264_v48 = vunpack.c.l.b16 %v4211_v3  ;;  %v4265_v8 = vunpack.c.h.b16 %v4211_v3  ;;  %v8392_v19 = vld [vmem:[#allocation2 + $0x3b8] sm:$0xf0] }
 0x290   : > { %v6270_v28 = vadd.f32 %v6269_v63, %v6101_v55  ;;  %v6437_v9 = vadd.f32 %v6436_v30, %v6268_v5  ;;  %v3530_v55 = vunpack.c.l.b16 %v3402_v2  ;;  %v3039_v11 = vpack.c.b16 %v3018_v20, %v3017_v49  ;;  %4456 = vst.msk [vmem:[#allocation2 + $0x3f8] sm:$0xf] %vm2290_vm1, %v10175_v6  ;;  %v7377_v3 = vld [vmem:[%s8681_s28 + $0x2d8] sm:$0xff] }
 0x291   : > { %v4296_v52 = vpack.c.b16 %v4264_v48, %v4264_v48  ;;  %v4297_v60 = vpack.c.b16 %v4265_v8, %v4265_v8  ;;  %v7931_v2 = vor.u32 %v8392_v19, %v7930_v14  ;;  %v3915_v48 = vpack.c.bf16 %v7377_v3, %v7377_v3  ;;  %v8393_v19 = vld [vmem:[#allocation2 + $0x3c4] sm:$0xf] }
 0x292   : > { %v10173_v59 = vadd.f32 %v6605_v43, %v6437_v9  ;;  %v10179_v43 = vpack.c.bf16 %v7439_v46, %v7439_v46  ;;  %v3551_v1 = vpack.c.b16 %v3530_v55, %v3529_v51  ;;  %v3914_v46 = vpack.c.bf16 %v7376_v31, %v7376_v31 }
 0x293   : > { %v6103_v50 = vpop.f32.mrf.mxu1  ;;  %v6607_v5 = vpop.f32.mrf.mxu0  ;;  %4360 = vst [vmem:[#allocation2 + $0x3f4] sm:$0xf] %v4296_v52  ;;  %v4043_v36 = vunpack.c.l.b16 %v3915_v48 }
 0x294   : > { %v6104_v58 = vadd.f32 %v6103_v50, %v5935_v32  ;;  %6311 = vmatmul.bf16.gmra.mxu2 %v7923_v35  ;;  %v3146_v61 = vpop.permute.xlu1 %3145  ;;  %4361 = vst [vmem:[#allocation2 + $0x408] sm:$0xf] %v4297_v60  ;;  %v4042_v45 = vunpack.c.l.b16 %v3914_v46  ;;  %v8396_v60 = vld [vmem:[#allocation2 + $0x3d8] sm:$0xf0] }
 0x295   : > { %v3189_v32 = vsel %vm495_vm0, %v3039_v11, %v3146_v61  ;;  %4457 = vst.msk [vmem:[#allocation2 + $0x40c] sm:$0xf] %vm2290_vm1, %v10179_v43  ;;  %v7441_v46 = vld [vmem:[%s8681_s28 + $0x2da] sm:$0xff] }
 0x296   : > { %6142 = vmatmul.bf16.gmra.mxu1 %v7919_v21  ;;  %v3241_v10 = vunpack.c.l.b16 %v3189_v32  ;;  %v3242_v54 = vunpack.c.h.b16 %v3189_v32  ;;  %v10191_v21 = vld [vmem:[%s10543_s2] ss:$0 sm:$0xff]  ;;  %v4064_v14 = vpack.c.b16 %v4043_v36, %v4042_v45  ;;  %v3019_v45 = vunpack.c.l.b16 %v10175_v6 }
 0x297   : > { %v6272_v63 = vpop.f32.mrf.mxu2  ;;  %v6438_v30 = vpop.f32.mrf.mxu3  ;;  %v5937_v27 = vadd.f32 %v10191_v21, %v9569_v62  ;;  %v7942_v62 = vld [vmem:[#allocation2 + $0x3c8] sm:$0xf]  ;;  %v3020_v36 = vunpack.c.l.b16 %v10179_v43 }
 0x298   : > { %v6273_v9 = vadd.f32 %v6272_v63, %v6104_v58  ;;  %v6439_v35 = vadd.f32 %v6438_v30, %v6270_v28  ;;  %v3658_v12 = vpop.permute.xlu2 %3657  ;;  %v3273_v50 = vpack.c.b16 %v3241_v10, %v3241_v10  ;;  %v3274_v51 = vpack.c.b16 %v3242_v54, %v3242_v54  ;;  %v7314_v10 = vld [vmem:[%s8681_s28 + $0x2d1] sm:$0xff]  ;;  %v7315_v54 = vld [vmem:[%s8681_s28 + $0x2d9] sm:$0xff] }
 0x299   : > { %v3701_v8 = vsel %vm495_vm0, %v3551_v1, %v3658_v12  ;;  %v7936_v1 = vld [vmem:[#allocation2 + $0x3d4] sm:$0xf0]  ;;  %v7943_v32 = vor.u32 %v8396_v60, %v7942_v62  ;;  %v3404_v12 = vpack.c.bf16 %v7315_v54, %v7315_v54  ;;  %v10210_v60 = vpack.c.bf16 %v7441_v46, %v7441_v46  ;;  %v7379_v54 = vld [vmem:[%s8681_s28 + $0x2f0] sm:$0xff] }
 0x29a   : > { %v10195_v28 = vadd.f32 %v6607_v5, %v6439_v35  ;;  %v3753_v20 = vunpack.c.l.b16 %v3701_v8  ;;  %v3754_v58 = vunpack.c.h.b16 %v3701_v8  ;;  %3337 = vst [vmem:[#allocation2 + $0x414] sm:$0xf] %v3273_v50  ;;  %v7939_v31 = vor.u32 %v8393_v19, %v7936_v1  ;;  %v8397_v19 = vld [vmem:[#allocation2 + $0x3e0] sm:$0xf0] }
 0x29b   : > { %v6105_v55 = vpop.f32.mrf.mxu1  ;;  %v6610_v49 = vpop.f32.mrf.mxu0  ;;  %3338 = vst [vmem:[#allocation2 + $0x428] sm:$0xf] %v3274_v51 }
 0x29c   : > { %v6106_v52 = vadd.f32 %v6105_v55, %v5937_v27  ;;  %6480 = vmatmul.bf16.gmra.mxu3 %v7927_v23  ;;  %v3785_v11 = vpack.c.b16 %v3753_v20, %v3753_v20  ;;  %v3786_v5 = vpack.c.b16 %v3754_v58, %v3754_v58  ;;  %v3403_v27 = vpack.c.bf16 %v7314_v10, %v7314_v10  ;;  %v7378_v10 = vld [vmem:[%s8681_s28 + $0x2e8] sm:$0xff] }
 0x29d   : > { %v4171_v35 = vpop.permute.xlu0 %4170  ;;  %v3532_v58 = vunpack.c.l.b16 %v3404_v12  ;;  %4459 = vst.msk [vmem:[#allocation2 + $0x434] sm:$0xf] %vm2290_vm1, %v10210_v60  ;;  %v3916_v12 = vpack.c.bf16 %v7378_v10, %v7378_v10 }
 0x29e   : > { %8259 = vmatmul.msk.bf16.gmra.mxu0 %vm495_vm0, %v7931_v2  ;;  %3849 = vst [vmem:[#allocation2 + $0x418] sm:$0xf] %v3785_v11  ;;  %v4214_v3 = vsel %vm495_vm0, %v4064_v14, %v4171_v35  ;;  %v7440_v2 = vld [vmem:[%s8681_s28 + $0x2d2] sm:$0xff]  ;;  %v3531_v20 = vunpack.c.l.b16 %v3403_v27  ;;  %v8394_v11 = vld [vmem:[#allocation2 + $0x3cc] sm:$0xf] }
 0x29f   : > { %v6274_v61 = vpop.f32.mrf.mxu2  ;;  %v6441_v63 = vpop.f32.mrf.mxu3  ;;  %3850 = vst [vmem:[#allocation2 + $0x42c] sm:$0xf] %v3786_v5  ;;  %v4266_v8 = vunpack.c.l.b16 %v4214_v3  ;;  %v4267_v50 = vunpack.c.h.b16 %v4214_v3  ;;  %v10206_v51 = vpack.c.bf16 %v7440_v2, %v7440_v2  ;;  %v3040_v5 = vpack.c.b16 %v3020_v36, %v3019_v45  ;;  %v7950_v14 = vld [vmem:[#allocation2 + $0x3d0] sm:$0xf] }
 0x2a0   : > { %v6275_v30 = vadd.f32 %v6274_v61, %v6106_v52  ;;  %v6442_v23 = vadd.f32 %v6441_v63, %v6273_v9  ;;  %v3552_v6 = vpack.c.b16 %v3532_v58, %v3531_v20  ;;  %v10581_v61 = vld [vmem:[#allocation6_spill] sm:$0xff]  ;;  %v7951_v3 = vor.u32 %v8397_v19, %v7950_v14  ;;  %v7962_v14 = vld [vmem:[#allocation2 + $0x3f0] sm:$0xf] }
 0x2a1   : > { %v4298_v52 = vpack.c.b16 %v4266_v8, %v4266_v8  ;;  %v4299_v62 = vpack.c.b16 %v4267_v50, %v4267_v50  ;;  %4458 = vst.msk [vmem:[#allocation2 + $0x420] sm:$0xf] %vm2290_vm1, %v10206_v51  ;;  %v5940_v63 = vadd.f32 %v10191_v21, %v10581_v61  ;;  %v3917_v2 = vpack.c.bf16 %v7379_v54, %v7379_v54  ;;  %v8401_v19 = vld [vmem:[#allocation2 + $0x400] sm:$0xf0] }
 0x2a2   : > { %v10204_v48 = vadd.f32 %v6610_v49, %v6442_v23  ;;  %v7944_v49 = vld [vmem:[#allocation2 + $0x3dc] sm:$0xf0] }
 0x2a3   : > { %v6108_v55 = vpop.f32.mrf.mxu1  ;;  %v6612_v9 = vpop.f32.mrf.mxu0  ;;  %4362 = vst [vmem:[#allocation2 + $0x41c] sm:$0xf] %v4298_v52  ;;  %v4044_v52 = vunpack.c.l.b16 %v3916_v12  ;;  %v7316_v12 = vld [vmem:[%s8681_s28 + $0x2e9] sm:$0xff] }
 0x2a4   : > { %6316 = vmatmul.bf16.gmra.mxu2 %v7943_v32  ;;  %4363 = vst [vmem:[#allocation2 + $0x430] sm:$0xf] %v4299_v62  ;;  %v7947_v32 = vor.u32 %v8394_v11, %v7944_v49  ;;  %v4045_v62 = vunpack.c.l.b16 %v3917_v2  ;;  %v6109_v11 = vadd.f32 %v6108_v55, %v5940_v63  ;;  %v10582_v55 = vld [vmem:[#allocation7_spill] sm:$0xff]  ;;  %v7317_v2 = vld [vmem:[%s8681_s28 + $0x2f1] sm:$0xff] }
 0x2a5   : > { %v5942_v63 = vadd.f32 %v10191_v21, %v10582_v55 }
 0x2a6   : > { %6147 = vmatmul.bf16.gmra.mxu1 %v7939_v31  ;;  %v3148_v35 = vpop.permute.xlu1 %3147  ;;  %v3660_v31 = vpop.permute.xlu2 %3659  ;;  %v4065_v61 = vpack.c.b16 %v4045_v62, %v4044_v52  ;;  %v7443_v62 = vld [vmem:[%s8681_s28 + $0x2f2] sm:$0xff] }
 0x2a7   : > { %v6277_v1 = vpop.f32.mrf.mxu2  ;;  %v6443_v43 = vpop.f32.mrf.mxu3  ;;  %v3192_v27 = vsel %vm495_vm0, %v3040_v5, %v3148_v35  ;;  %v3704_v8 = vsel %vm495_vm0, %v3552_v6, %v3660_v31  ;;  %v7956_v35 = vld [vmem:[#allocation2 + $0x3fc] sm:$0xf0]  ;;  %v7963_v31 = vor.u32 %v8401_v19, %v7962_v14  ;;  %v10239_v55 = vpack.c.bf16 %v7443_v62, %v7443_v62 }
 0x2a8   : > { %v6444_v23 = vadd.f32 %v6443_v43, %v6275_v30  ;;  %v3243_v50 = vunpack.c.l.b16 %v3192_v27  ;;  %v3244_v20 = vunpack.c.h.b16 %v3192_v27  ;;  %v3755_v45 = vunpack.c.l.b16 %v3704_v8 }
 0x2a9   : > { %v3756_v36 = vunpack.c.h.b16 %v3704_v8  ;;  %v6278_v6 = vadd.f32 %v6277_v1, %v6109_v11  ;;  %v3405_v8 = vpack.c.bf16 %v7316_v12, %v7316_v12  ;;  %4461 = vst.msk [vmem:[#allocation2 + $0x45c] sm:$0xf] %vm2290_vm1, %v10239_v55 }
 0x2aa   : > { %v10221_v46 = vadd.f32 %v6612_v9, %v6444_v23  ;;  %v3275_v49 = vpack.c.b16 %v3243_v50, %v3243_v50  ;;  %v3787_v5 = vpack.c.b16 %v3755_v45, %v3755_v45  ;;  %v3276_v9 = vpack.c.b16 %v3244_v20, %v3244_v20  ;;  %v8398_v23 = vld [vmem:[#allocation2 + $0x3ec] sm:$0xf] }
 0x2ab   : > { %v6110_v30 = vpop.f32.mrf.mxu1  ;;  %v6615_v58 = vpop.f32.mrf.mxu0  ;;  %v3788_v43 = vpack.c.b16 %v3756_v36, %v3756_v36  ;;  %v7959_v1 = vor.u32 %v8398_v23, %v7956_v35  ;;  %v3406_v50 = vpack.c.bf16 %v7317_v2, %v7317_v2  ;;  %v7442_v20 = vld [vmem:[%s8681_s28 + $0x2ea] sm:$0xff]  ;;  %v3533_v14 = vunpack.c.l.b16 %v3405_v8 }
 0x2ac   : > { %6485 = vmatmul.bf16.gmra.mxu3 %v7947_v32  ;;  %3339 = vst [vmem:[#allocation2 + $0x43c] sm:$0xf] %v3275_v49  ;;  %v10232_v11 = vpack.c.bf16 %v7442_v20, %v7442_v20  ;;  %v7964_v35 = vld [vmem:[#allocation2 + $0x404] sm:$0xf0] }
 0x2ad   : > { %3851 = vst [vmem:[#allocation2 + $0x440] sm:$0xf] %v3787_v5  ;;  %v4173_v27 = vpop.permute.xlu0 %4172  ;;  %v3534_v19 = vunpack.c.l.b16 %v3406_v50  ;;  %v7380_v50 = vld [vmem:[%s8681_s28 + $0x300] sm:$0xff]  ;;  %v7381_v20 = vld [vmem:[%s8681_s28 + $0x308] sm:$0xff] }
 0x2ae   : > { %8260 = vmatmul.msk.bf16.gmra.mxu0 %vm495_vm0, %v7951_v3  ;;  %3852 = vst [vmem:[#allocation2 + $0x454] sm:$0xf] %v3788_v43  ;;  %v4217_v3 = vsel %vm495_vm0, %v4065_v61, %v4173_v27  ;;  %v3021_v43 = vunpack.c.l.b16 %v10206_v51 }
 0x2af   : > { %v6279_v10 = vpop.f32.mrf.mxu2  ;;  %v6446_v54 = vpop.f32.mrf.mxu3  ;;  %3340 = vst [vmem:[#allocation2 + $0x450] sm:$0xf] %v3276_v9  ;;  %v4268_v36 = vunpack.c.l.b16 %v4217_v3  ;;  %v4269_v52 = vunpack.c.h.b16 %v4217_v3  ;;  %v6111_v9 = vadd.f32 %v6110_v30, %v5942_v63  ;;  %v7970_v63 = vld [vmem:[#allocation2 + $0x3f8] sm:$0xf]  ;;  %v3553_v27 = vpack.c.b16 %v3534_v19, %v3533_v14 }
 0x2b0   : > { %v6447_v32 = vadd.f32 %v6446_v54, %v6278_v6  ;;  %v3022_v6 = vunpack.c.l.b16 %v10210_v60  ;;  %4460 = vst.msk [vmem:[#allocation2 + $0x448] sm:$0xf] %vm2290_vm1, %v10232_v11 }
 0x2b1   : > { %v4300_v61 = vpack.c.b16 %v4268_v36, %v4268_v36  ;;  %v4301_v23 = vpack.c.b16 %v4269_v52, %v4269_v52  ;;  %v10583_v36 = vld [vmem:[#allocation9_spill] sm:$0xff] }
 0x2b2   : > { %v6616_v45 = vadd.f32 %v6615_v58, %v6447_v32  ;;  %v8399_v58 = vld [vmem:[#allocation2 + $0x3f4] sm:$0xf]  ;;  %v3041_v54 = vpack.c.b16 %v3022_v6, %v3021_v43  ;;  %v6280_v32 = vadd.f32 %v6279_v10, %v6111_v9  ;;  %v5945_v52 = vadd.f32 %v10191_v21, %v10583_v36  ;;  %v7318_v36 = vld [vmem:[%s8681_s28 + $0x301] sm:$0xff] }
 0x2b3   : > { %v6113_v49 = vpop.f32.mrf.mxu1  ;;  %v6617_v5 = vpop.f32.mrf.mxu0  ;;  %4364 = vst [vmem:[#allocation2 + $0x444] sm:$0xf] %v4300_v61  ;;  %v7967_v3 = vor.u32 %v8399_v58, %v7964_v35 }
 0x2b4   : > { %6321 = vmatmul.bf16.gmra.mxu2 %v7963_v31  ;;  %6727 = vrot.lane.b32.xlu2 %v6616_v45, %s8606_s29  ;;  %v3150_v51 = vpop.permute.xlu1 %3149  ;;  %v8402_v31 = vld [vmem:[#allocation2 + $0x408] sm:$0xf0]  ;;  %4365 = vst [vmem:[#allocation2 + $0x458] sm:$0xf] %v4301_v23  ;;  %v3919_v45 = vpack.c.bf16 %v7381_v20, %v7381_v20 }
 0x2b5   : > { %v3195_v12 = vsel %vm495_vm0, %v3041_v54, %v3150_v51  ;;  %v7971_v43 = vor.u32 %v8402_v31, %v7970_v63  ;;  %v6114_v54 = vadd.f32 %v6113_v49, %v5945_v52  ;;  %v8403_v31 = vld [vmem:[#allocation2 + $0x414] sm:$0xf]  ;;  %v7319_v52 = vld [vmem:[%s8681_s28 + $0x309] sm:$0xff] }
 0x2b6   : > { %6152 = vmatmul.bf16.gmra.mxu1 %v7959_v1  ;;  %v3245_v8 = vunpack.c.l.b16 %v3195_v12  ;;  %v3246_v10 = vunpack.c.h.b16 %v3195_v12  ;;  %v3918_v1 = vpack.c.bf16 %v7380_v50, %v7380_v50  ;;  %v4047_v35 = vunpack.c.l.b16 %v3919_v45  ;;  %v8406_v12 = vld [vmem:[#allocation2 + $0x428] sm:$0xf0] }
 0x2b7   : > { %v6282_v60 = vpop.f32.mrf.mxu2  ;;  %v6448_v30 = vpop.f32.mrf.mxu3  ;;  %v10584_v50 = vld [vmem:[#allocation11_spill] sm:$0xff] }
 0x2b8   : > { %v6449_v2 = vadd.f32 %v6448_v30, %v6280_v32  ;;  %v3662_v6 = vpop.permute.xlu2 %3661  ;;  %v3277_v14 = vpack.c.b16 %v3245_v8, %v3245_v8  ;;  %v3278_v23 = vpack.c.b16 %v3246_v10, %v3246_v10  ;;  %v4046_v58 = vunpack.c.l.b16 %v3918_v1  ;;  %v7982_v30 = vld [vmem:[#allocation2 + $0x418] sm:$0xf] }
 0x2b9   : > { %v3707_v61 = vsel %vm495_vm0, %v3553_v27, %v3662_v6  ;;  %v6283_v63 = vadd.f32 %v6282_v60, %v6114_v54  ;;  %v7976_v27 = vld [vmem:[#allocation2 + $0x424] sm:$0xf0]  ;;  %v5947_v20 = vadd.f32 %v10191_v21, %v10584_v50  ;;  %v7983_v1 = vor.u32 %v8406_v12, %v7982_v30 }
 0x2ba   : > { %v6618_v62 = vadd.f32 %v6617_v5, %v6449_v2  ;;  %v3757_v32 = vunpack.c.l.b16 %v3707_v61  ;;  %v3758_v51 = vunpack.c.h.b16 %v3707_v61  ;;  %3341 = vst [vmem:[#allocation2 + $0x464] sm:$0xf] %v3277_v14  ;;  %v4066_v5 = vpack.c.b16 %v4047_v35, %v4046_v58  ;;  %v7444_v14 = vld [vmem:[%s8681_s28 + $0x302] sm:$0xff]  ;;  %v7445_v35 = vld [vmem:[%s8681_s28 + $0x30a] sm:$0xff] }
 0x2bb   : > { %v6115_v19 = vpop.f32.mrf.mxu1  ;;  %v6620_v9 = vpop.f32.mrf.mxu0  ;;  %3342 = vst [vmem:[#allocation2 + $0x478] sm:$0xf] %v3278_v23  ;;  %v7979_v60 = vor.u32 %v8403_v31, %v7976_v27  ;;  %v3408_v6 = vpack.c.bf16 %v7319_v52, %v7319_v52  ;;  %v10258_v54 = vpack.c.bf16 %v7444_v14, %v7444_v14  ;;  %v3024_v31 = vunpack.c.l.b16 %v10239_v55  ;;  %v8407_v55 = vld [vmem:[#allocation2 + $0x430] sm:$0xf0]  ;;  %v7383_v14 = vld [vmem:[%s8681_s28 + $0x320] sm:$0xff] }
 0x2bc   : > { %6490 = vmatmul.bf16.gmra.mxu3 %v7967_v3  ;;  %6729 = vrot.lane.b32.xlu0 %v6618_v62, %s8606_s29  ;;  %v3789_v2 = vpack.c.b16 %v3757_v32, %v3757_v32  ;;  %v3790_v49 = vpack.c.b16 %v3758_v51, %v3758_v51  ;;  %v6116_v27 = vadd.f32 %v6115_v19, %v5947_v20 }
 0x2bd   : > { %v4175_v45 = vpop.permute.xlu0 %4174  ;;  %v3536_v12 = vunpack.c.l.b16 %v3408_v6  ;;  %4462 = vst.msk [vmem:[#allocation2 + $0x470] sm:$0xf] %vm2290_vm1, %v10258_v54  ;;  %v10265_v50 = vpack.c.bf16 %v7445_v35, %v7445_v35  ;;  %v7382_v6 = vld [vmem:[%s8681_s28 + $0x318] sm:$0xff] }
 0x2be   : > { %8261 = vmatmul.msk.bf16.gmra.mxu0 %vm495_vm0, %v7971_v43  ;;  %3853 = vst [vmem:[#allocation2 + $0x468] sm:$0xf] %v3789_v2  ;;  %v4220_v62 = vsel %vm495_vm0, %v4066_v5, %v4175_v45  ;;  %v3407_v43 = vpack.c.bf16 %v7318_v36, %v7318_v36  ;;  %v10585_v45 = vld [vmem:[#allocation13_spill] sm:$0xff] }
 0x2bf   : > { %v6284_v3 = vpop.f32.mrf.mxu2  ;;  %v6451_v8 = vpop.f32.mrf.mxu3  ;;  %3854 = vst [vmem:[#allocation2 + $0x47c] sm:$0xf] %v3790_v49  ;;  %v4270_v23 = vunpack.c.l.b16 %v4220_v62  ;;  %v4271_v58 = vunpack.c.h.b16 %v4220_v62  ;;  %v7984_v49 = vld [vmem:[#allocation2 + $0x42c] sm:$0xf0]  ;;  %v5950_v36 = vadd.f32 %v10191_v21, %v10585_v45 }
 0x2c0   : > { %v6452_v10 = vadd.f32 %v6451_v8, %v6283_v63  ;;  %v3535_v30 = vunpack.c.l.b16 %v3407_v43  ;;  %v3023_v63 = vunpack.c.l.b16 %v10232_v11  ;;  %v7990_v11 = vld [vmem:[#allocation2 + $0x420] sm:$0xf]  ;;  %4463 = vst.msk [vmem:[#allocation2 + $0x484] sm:$0xf] %vm2290_vm1, %v10265_v50 }
 0x2c1   : > { %v4302_v5 = vpack.c.b16 %v4270_v23, %v4270_v23  ;;  %v4303_v2 = vpack.c.b16 %v4271_v58, %v4271_v58  ;;  %v3920_v23 = vpack.c.bf16 %v7382_v6, %v7382_v6  ;;  %v3921_v58 = vpack.c.bf16 %v7383_v14, %v7383_v14  ;;  %v7996_v6 = vld [vmem:[#allocation2 + $0x44c] sm:$0xf0] }
 0x2c2   : > { %v6621_v61 = vadd.f32 %v6620_v9, %v6452_v10  ;;  %v8404_v9 = vld [vmem:[#allocation2 + $0x41c] sm:$0xf]  ;;  %v3042_v8 = vpack.c.b16 %v3024_v31, %v3023_v63  ;;  %v6285_v10 = vadd.f32 %v6284_v3, %v6116_v27  ;;  %v3554_v19 = vpack.c.b16 %v3536_v12, %v3535_v30 }
 0x2c3   : > { %v6118_v32 = vpop.f32.mrf.mxu1  ;;  %v6622_v51 = vpop.f32.mrf.mxu0  ;;  %4366 = vst [vmem:[#allocation2 + $0x46c] sm:$0xf] %v4302_v5  ;;  %v7987_v62 = vor.u32 %v8404_v9, %v7984_v49  ;;  %v7991_v3 = vor.u32 %v8407_v55, %v7990_v11  ;;  %v4048_v9 = vunpack.c.l.b16 %v3920_v23  ;;  %v4049_v49 = vunpack.c.l.b16 %v3921_v58  ;;  %v8002_v55 = vld [vmem:[#allocation2 + $0x440] sm:$0xf] }
 0x2c4   : > { %6326 = vmatmul.bf16.gmra.mxu2 %v7983_v1  ;;  %6731 = vrot.lane.b32.xlu1 %v6621_v61, %s8606_s29  ;;  %4367 = vst [vmem:[#allocation2 + $0x480] sm:$0xf] %v4303_v2  ;;  %v7320_v58 = vld [vmem:[%s8681_s28 + $0x319] sm:$0xff] }
 0x2c6   : > { %6157 = vmatmul.bf16.gmra.mxu1 %v7979_v60  ;;  %v3152_v43 = vpop.permute.xlu1 %3151  ;;  %v3664_v60 = vpop.permute.xlu2 %3663 }
 0x2c7   : > { %v6287_v20 = vpop.f32.mrf.mxu2  ;;  %v6453_v1 = vpop.f32.mrf.mxu3  ;;  %v3198_v61 = vsel %vm495_vm0, %v3042_v8, %v3152_v43  ;;  %v3710_v30 = vsel %vm495_vm0, %v3554_v19, %v3664_v60  ;;  %v8411_v8 = vld [vmem:[#allocation2 + $0x450] sm:$0xf0]  ;;  %v4067_v19 = vpack.c.b16 %v4049_v49, %v4048_v9  ;;  %v8408_v43 = vld [vmem:[#allocation2 + $0x43c] sm:$0xf]  ;;  %v7447_v49 = vld [vmem:[%s8681_s28 + $0x322] sm:$0xff] }
 0x2c8   : > { %v6454_v52 = vadd.f32 %v6453_v1, %v6285_v10  ;;  %v3247_v12 = vunpack.c.l.b16 %v3198_v61  ;;  %v3248_v63 = vunpack.c.h.b16 %v3198_v61  ;;  %v3759_v5 = vunpack.c.l.b16 %v3710_v30 }
 0x2c9   : > { %v3760_v2 = vunpack.c.h.b16 %v3710_v30  ;;  %v6119_v10 = vadd.f32 %v6118_v32, %v5950_v36  ;;  %v8003_v61 = vor.u32 %v8411_v8, %v8002_v55  ;;  %v3409_v30 = vpack.c.bf16 %v7320_v58, %v7320_v58 }
 0x2ca   : > { %v6623_v35 = vadd.f32 %v6622_v51, %v6454_v52  ;;  %v3279_v11 = vpack.c.b16 %v3247_v12, %v3247_v12  ;;  %v3791_v1 = vpack.c.b16 %v3759_v5, %v3759_v5  ;;  %v3280_v51 = vpack.c.b16 %v3248_v63, %v3248_v63  ;;  %v7446_v63 = vld [vmem:[%s8681_s28 + $0x31a] sm:$0xff] }
 0x2cb   : > { %v6120_v31 = vpop.f32.mrf.mxu1  ;;  %v6625_v27 = vpop.f32.mrf.mxu0  ;;  %v3792_v45 = vpack.c.b16 %v3760_v2, %v3760_v2  ;;  %v6288_v52 = vadd.f32 %v6287_v20, %v6119_v10  ;;  %v7999_v20 = vor.u32 %v8408_v43, %v7996_v6  ;;  %v10284_v10 = vpack.c.bf16 %v7446_v63, %v7446_v63  ;;  %v8004_v6 = vld [vmem:[#allocation2 + $0x454] sm:$0xf0] }
 0x2cc   : > { %6495 = vmatmul.bf16.gmra.mxu3 %v7987_v62  ;;  %6733 = vrot.lane.b32.xlu2 %v6623_v35, %s8606_s29  ;;  %3343 = vst [vmem:[#allocation2 + $0x48c] sm:$0xf] %v3279_v11  ;;  %v10586_v62 = vld [vmem:[#allocation15_spill] sm:$0xff]  ;;  %v4177_v23 = vpop.permute.xlu0 %4176  ;;  %v3537_v55 = vunpack.c.l.b16 %v3409_v30  ;;  %v7385_v63 = vld [vmem:[%s8681_s28 + $0x338] sm:$0xff] }
 0x2cd   : > { %3855 = vst [vmem:[#allocation2 + $0x490] sm:$0xf] %v3791_v1  ;;  %v5952_v14 = vadd.f32 %v10191_v21, %v10586_v62  ;;  %v7321_v35 = vld [vmem:[%s8681_s28 + $0x321] sm:$0xff]  ;;  %v10291_v62 = vpack.c.bf16 %v7447_v49, %v7447_v49 }
 0x2ce   : > { %8262 = vmatmul.msk.bf16.gmra.mxu0 %vm495_vm0, %v7991_v3  ;;  %3856 = vst [vmem:[#allocation2 + $0x4a4] sm:$0xf] %v3792_v45  ;;  %v4223_v3 = vsel %vm495_vm0, %v4067_v19, %v4177_v23  ;;  %v3410_v12 = vpack.c.bf16 %v7321_v35, %v7321_v35  ;;  %v3025_v45 = vunpack.c.l.b16 %v10258_v54  ;;  %v8010_v54 = vld [vmem:[#allocation2 + $0x448] sm:$0xf]  ;;  %v10587_v23 = vld [vmem:[#allocation17_spill] sm:$0xff] }
 0x2cf   : > { %v6289_v32 = vpop.f32.mrf.mxu2  ;;  %v6456_v36 = vpop.f32.mrf.mxu3  ;;  %3344 = vst [vmem:[#allocation2 + $0x4a0] sm:$0xf] %v3280_v51  ;;  %v4272_v2 = vunpack.c.l.b16 %v4223_v3  ;;  %v4273_v9 = vunpack.c.h.b16 %v4223_v3  ;;  %v6121_v51 = vadd.f32 %v6120_v31, %v5952_v14  ;;  %v5955_v58 = vadd.f32 %v10191_v21, %v10587_v23 }
 0x2d0   : > { %v6457_v60 = vadd.f32 %v6456_v36, %v6288_v52  ;;  %v3538_v8 = vunpack.c.l.b16 %v3410_v12  ;;  %v3026_v52 = vunpack.c.l.b16 %v10265_v50  ;;  %4464 = vst.msk [vmem:[#allocation2 + $0x498] sm:$0xf] %vm2290_vm1, %v10284_v10  ;;  %v8412_v50 = vld [vmem:[#allocation2 + $0x458] sm:$0xf0]  ;;  %v7384_v12 = vld [vmem:[%s8681_s28 + $0x330] sm:$0xff] }
 0x2d1   : > { %v4304_v19 = vpack.c.b16 %v4272_v2, %v4272_v2  ;;  %v4305_v43 = vpack.c.b16 %v4273_v9, %v4273_v9  ;;  %4465 = vst.msk [vmem:[#allocation2 + $0x4ac] sm:$0xf] %vm2290_vm1, %v10291_v62  ;;  %v3922_v2 = vpack.c.bf16 %v7384_v12, %v7384_v12  ;;  %v3923_v9 = vpack.c.bf16 %v7385_v63, %v7385_v63  ;;  %v8016_v12 = vld [vmem:[#allocation2 + $0x474] sm:$0xf0] }
 0x2d2   : > { %v6626_v5 = vadd.f32 %v6625_v27, %v6457_v60  ;;  %v8409_v27 = vld [vmem:[#allocation2 + $0x444] sm:$0xf]  ;;  %v3043_v36 = vpack.c.b16 %v3026_v52, %v3025_v45  ;;  %v6290_v60 = vadd.f32 %v6289_v32, %v6121_v51  ;;  %v3555_v31 = vpack.c.b16 %v3538_v8, %v3537_v55 }
 0x2d3   : > { %v6123_v11 = vpop.f32.mrf.mxu1  ;;  %v6627_v1 = vpop.f32.mrf.mxu0  ;;  %4368 = vst [vmem:[#allocation2 + $0x494] sm:$0xf] %v4304_v19  ;;  %v8007_v3 = vor.u32 %v8409_v27, %v8004_v6  ;;  %v8011_v32 = vor.u32 %v8412_v50, %v8010_v54  ;;  %v4050_v27 = vunpack.c.l.b16 %v3922_v2  ;;  %v4051_v6 = vunpack.c.l.b16 %v3923_v9  ;;  %v8022_v50 = vld [vmem:[#allocation2 + $0x468] sm:$0xf]  ;;  %v7322_v9 = vld [vmem:[%s8681_s28 + $0x331] sm:$0xff] }
 0x2d4   : > { %6331 = vmatmul.bf16.gmra.mxu2 %v8003_v61  ;;  %6735 = vrot.lane.b32.xlu0 %v6626_v5, %s8606_s29  ;;  %4369 = vst [vmem:[#allocation2 + $0x4a8] sm:$0xf] %v4305_v43  ;;  %v3154_v30 = vpop.permute.xlu1 %3153 }
 0x2d5   : > { %v3201_v5 = vsel %vm495_vm0, %v3043_v36, %v3154_v30  ;;  %v8416_v36 = vld [vmem:[#allocation2 + $0x478] sm:$0xf0]  ;;  %v8413_v30 = vld [vmem:[#allocation2 + $0x464] sm:$0xf] }
 0x2d6   : > { %6162 = vmatmul.bf16.gmra.mxu1 %v7999_v20  ;;  %v3666_v20 = vpop.permute.xlu2 %3665  ;;  %v3249_v8 = vunpack.c.l.b16 %v3201_v5  ;;  %v3250_v45 = vunpack.c.h.b16 %v3201_v5  ;;  %v8023_v5 = vor.u32 %v8416_v36, %v8022_v50  ;;  %v3027_v36 = vunpack.c.l.b16 %v10284_v10  ;;  %v8030_v10 = vld [vmem:[#allocation2 + $0x470] sm:$0xf] }
 0x2d7   : > { %v6292_v14 = vpop.f32.mrf.mxu2  ;;  %v6458_v61 = vpop.f32.mrf.mxu3  ;;  %v3713_v55 = vsel %vm495_vm0, %v3555_v31, %v3666_v20  ;;  %v4068_v31 = vpack.c.b16 %v4051_v6, %v4050_v27  ;;  %v7449_v6 = vld [vmem:[%s8681_s28 + $0x33a] sm:$0xff] }
 0x2d8   : > { %v6459_v35 = vadd.f32 %v6458_v61, %v6290_v60  ;;  %v3761_v19 = vunpack.c.l.b16 %v3713_v55  ;;  %v3762_v43 = vunpack.c.h.b16 %v3713_v55  ;;  %v6124_v60 = vadd.f32 %v6123_v11, %v5955_v58 }
 0x2d9   : > { %v3281_v54 = vpack.c.b16 %v3249_v8, %v3249_v8  ;;  %v3411_v55 = vpack.c.bf16 %v7322_v9, %v7322_v9  ;;  %v8417_v9 = vld [vmem:[#allocation2 + $0x480] sm:$0xf0] }
 0x2da   : > { %v6628_v49 = vadd.f32 %v6627_v1, %v6459_v35  ;;  %v3793_v61 = vpack.c.b16 %v3761_v19, %v3761_v19  ;;  %v3794_v23 = vpack.c.b16 %v3762_v43, %v3762_v43  ;;  %v3282_v1 = vpack.c.b16 %v3250_v45, %v3250_v45  ;;  %v7448_v45 = vld [vmem:[%s8681_s28 + $0x332] sm:$0xff] }
 0x2db   : > { %v6125_v52 = vpop.f32.mrf.mxu1  ;;  %v6630_v51 = vpop.f32.mrf.mxu0  ;;  %v6293_v35 = vadd.f32 %v6292_v14, %v6124_v60  ;;  %3345 = vst [vmem:[#allocation2 + $0x4b4] sm:$0xf] %v3281_v54  ;;  %v8019_v14 = vor.u32 %v8413_v30, %v8016_v12  ;;  %v4434_v60 = vpack.c.bf16 %v7448_v45, %v7448_v45  ;;  %v8024_v12 = vld [vmem:[#allocation2 + $0x47c] sm:$0xf0] }
 0x2dc   : > { %6500 = vmatmul.bf16.gmra.mxu3 %v8007_v3  ;;  %6737 = vrot.lane.b32.xlu1 %v6628_v49, %s8606_s29  ;;  %3857 = vst [vmem:[#allocation2 + $0x4b8] sm:$0xf] %v3793_v61  ;;  %v10588_v3 = vld [vmem:[#allocation19_spill] sm:$0xff]  ;;  %v7323_v49 = vld [vmem:[%s8681_s28 + $0x339] sm:$0xff] }
 0x2dd   : > { %v5957_v63 = vadd.f32 %v10191_v21, %v10588_v3  ;;  %3858 = vst [vmem:[#allocation2 + $0x4cc] sm:$0xf] %v3794_v23  ;;  %v4179_v2 = vpop.permute.xlu0 %4178  ;;  %v3412_v8 = vpack.c.bf16 %v7323_v49, %v7323_v49  ;;  %v3028_v23 = vunpack.c.l.b16 %v10291_v62  ;;  %v10589_v49 = vld [vmem:[#allocation21_spill] sm:$0xff] }
 0x2de   : > { %8263 = vmatmul.msk.bf16.gmra.mxu0 %vm495_vm0, %v8011_v32  ;;  %3346 = vst [vmem:[#allocation2 + $0x4c8] sm:$0xf] %v3282_v1  ;;  %v4226_v32 = vsel %vm495_vm0, %v4068_v31, %v4179_v2 }
 0x2df   : > { %v6294_v11 = vpop.f32.mrf.mxu2  ;;  %v6461_v58 = vpop.f32.mrf.mxu3  ;;  %v4274_v43 = vunpack.c.l.b16 %v4226_v32  ;;  %v4275_v27 = vunpack.c.h.b16 %v4226_v32  ;;  %v3540_v50 = vunpack.c.l.b16 %v3412_v8  ;;  %v6126_v30 = vadd.f32 %v6125_v52, %v5957_v63  ;;  %4466 = vst.msk [vmem:[#allocation2 + $0x4c0] sm:$0xf] %vm2290_vm1, %v4434_v60 }
 0x2e0   : > { %v6462_v20 = vadd.f32 %v6461_v58, %v6293_v35  ;;  %v3539_v35 = vunpack.c.l.b16 %v3411_v55  ;;  %v3044_v3 = vpack.c.b16 %v3028_v23, %v3027_v36  ;;  %v5960_v32 = vadd.f32 %v10191_v21, %v10589_v49 }
 0x2e1   : > { %v4306_v1 = vpack.c.b16 %v4274_v43, %v4274_v43  ;;  %v4307_v31 = vpack.c.b16 %v4275_v27, %v4275_v27  ;;  %v6295_v2 = vadd.f32 %v6294_v11, %v6126_v30  ;;  %v7386_v43 = vld [vmem:[%s8681_s28 + $0x348] sm:$0xff]  ;;  %v7387_v11 = vld [vmem:[%s8681_s28 + $0x350] sm:$0xff] }
 0x2e2   : > { %v6631_v19 = vadd.f32 %v6630_v51, %v6462_v20  ;;  %v8414_v51 = vld [vmem:[#allocation2 + $0x46c] sm:$0xf]  ;;  %v3556_v58 = vpack.c.b16 %v3540_v50, %v3539_v35  ;;  %v4435_v20 = vpack.c.bf16 %v7449_v6, %v7449_v6  ;;  %v3924_v60 = vpack.c.bf16 %v7386_v43, %v7386_v43 }
 0x2e3   : > { %v6128_v54 = vpop.f32.mrf.mxu1  ;;  %v6632_v61 = vpop.f32.mrf.mxu0  ;;  %4370 = vst [vmem:[#allocation2 + $0x4bc] sm:$0xf] %v4306_v1  ;;  %v8027_v8 = vor.u32 %v8414_v51, %v8024_v12 }
 0x2e4   : > { %6336 = vmatmul.bf16.gmra.mxu2 %v8023_v5  ;;  %6739 = vrot.lane.b32.xlu2 %v6631_v19, %s8606_s29  ;;  %v3156_v62 = vpop.permute.xlu1 %3155  ;;  %4371 = vst [vmem:[#allocation2 + $0x4d0] sm:$0xf] %v4307_v31  ;;  %v4052_v51 = vunpack.c.l.b16 %v3924_v60  ;;  %v6129_v12 = vadd.f32 %v6128_v54, %v5960_v32 }
 0x2e5   : > { %v3204_v5 = vsel %vm495_vm0, %v3044_v3, %v3156_v62  ;;  %v3668_v45 = vpop.permute.xlu2 %3667  ;;  %4467 = vst.msk [vmem:[#allocation2 + $0x4d4] sm:$0xf] %vm2290_vm1, %v4435_v20  ;;  %v3925_v3 = vpack.c.bf16 %v7387_v11, %v7387_v11  ;;  %v8418_v62 = vld [vmem:[#allocation2 + $0x48c] sm:$0xf] }
 0x2e6   : > { %6167 = vmatmul.bf16.gmra.mxu1 %v8019_v14  ;;  %v3251_v19 = vunpack.c.l.b16 %v3204_v5  ;;  %v8031_v14 = vor.u32 %v8417_v9, %v8030_v10  ;;  %v3716_v27 = vsel %vm495_vm0, %v3556_v58, %v3668_v45  ;;  %v3252_v6 = vunpack.c.h.b16 %v3204_v5  ;;  %v8042_v10 = vld [vmem:[#allocation2 + $0x490] sm:$0xf]  ;;  %v8421_v58 = vld [vmem:[#allocation2 + $0x4a0] sm:$0xf0]  ;;  %v10590_v45 = vld [vmem:[#allocation23_spill] sm:$0xff] }
 0x2e7   : > { %v6297_v52 = vpop.f32.mrf.mxu2  ;;  %v6463_v63 = vpop.f32.mrf.mxu3  ;;  %v3763_v50 = vunpack.c.l.b16 %v3716_v27  ;;  %v3764_v36 = vunpack.c.h.b16 %v3716_v27  ;;  %v4053_v9 = vunpack.c.l.b16 %v3925_v3  ;;  %v7451_v27 = vld [vmem:[%s8681_s28 + $0x352] sm:$0xff] }
 0x2e8   : > { %v6464_v55 = vadd.f32 %v6463_v63, %v6295_v2  ;;  %v3283_v23 = vpack.c.b16 %v3251_v19, %v3251_v19  ;;  %v3284_v31 = vpack.c.b16 %v3252_v6, %v3252_v6  ;;  %v8036_v63 = vld [vmem:[#allocation2 + $0x49c] sm:$0xf0]  ;;  %v5962_v19 = vadd.f32 %v10191_v21, %v10590_v45  ;;  %v8426_v45 = vld [vmem:[#allocation2 + $0x4c8] sm:$0xf0] }
 0x2e9   : > { %v3795_v2 = vpack.c.b16 %v3763_v50, %v3763_v50  ;;  %v3796_v20 = vpack.c.b16 %v3764_v36, %v3764_v36  ;;  %v4069_v49 = vpack.c.b16 %v4053_v9, %v4052_v51  ;;  %v8039_v43 = vor.u32 %v8418_v62, %v8036_v63  ;;  %v8422_v9 = vld [vmem:[#allocation2 + $0x4a8] sm:$0xf0]  ;;  %v10591_v62 = vld [vmem:[#allocation25_spill] sm:$0xff] }
 0x2ea   : > { %v6633_v35 = vadd.f32 %v6632_v61, %v6464_v55  ;;  %3347 = vst [vmem:[#allocation2 + $0x4dc] sm:$0xf] %v3283_v23  ;;  %v6298_v61 = vadd.f32 %v6297_v52, %v6129_v12  ;;  %v8043_v55 = vor.u32 %v8421_v58, %v8042_v10  ;;  %v7450_v52 = vld [vmem:[%s8681_s28 + $0x34a] sm:$0xff]  ;;  %v4437_v23 = vpack.c.bf16 %v7451_v27, %v7451_v27  ;;  %v8419_v12 = vld [vmem:[#allocation2 + $0x494] sm:$0xf]  ;;  %s164_s28 = sand.u32 1, %s8596_s13  }
 0x2eb   : > { %v6130_v30 = vpop.f32.mrf.mxu1  ;;  %v6635_v1 = vpop.f32.mrf.mxu0  ;;  %3348 = vst [vmem:[#allocation2 + $0x4f0] sm:$0xf] %v3284_v31  ;;  %v8050_v58 = vld [vmem:[#allocation2 + $0x498] sm:$0xf]  ;;  %v5965_v63 = vadd.f32 %v10191_v21, %v10591_v62  ;;  %v8056_v27 = vld [vmem:[#allocation2 + $0x4c4] sm:$0xf0] }
 0x2ec   : > { %6505 = vmatmul.bf16.gmra.mxu3 %v8027_v8  ;;  %6741 = vrot.lane.b32.xlu0 %v6633_v35, %s8606_s29  ;;  %3859 = vst [vmem:[#allocation2 + $0x4e0] sm:$0xf] %v3795_v2  ;;  %v4436_v35 = vpack.c.bf16 %v7450_v52, %v7450_v52  ;;  %v6131_v31 = vadd.f32 %v6130_v30, %v5962_v19  ;;  %v8044_v2 = vld [vmem:[#allocation2 + $0x4a4] sm:$0xf0]  ;;  %v8423_v52 = vld [vmem:[#allocation2 + $0x4b4] sm:$0xf] }
 0x2ed   : > { %3860 = vst [vmem:[#allocation2 + $0x4f4] sm:$0xf] %v3796_v20  ;;  %v4181_v8 = vpop.permute.xlu0 %4180  ;;  %s6969_s5 = sshll.u32 %s164_s28, 8  ;;  %s6888_s17 = scalar_lea.sflag [#allocation4], %s164_s28 }
 0x2ee   : > { %8264 = vmatmul.msk.bf16.gmra.mxu0 %vm495_vm0, %v8031_v14  ;;  %v4229_v11 = vsel %vm495_vm0, %v4069_v49, %v4181_v8  ;;  %4468 = vst.msk [vmem:[#allocation2 + $0x4e8] sm:$0xf] %vm2290_vm1, %v4436_v35  ;;  %v8051_v49 = vor.u32 %v8422_v9, %v8050_v58  ;;  %v8427_v58 = vld [vmem:[#allocation2 + $0x4d0] sm:$0xf0]  ;;  %s10352_s6 = scalar_lea.vmem [#allocation3], %s6969_s5 }
 0x2ef   : > { %v6299_v5 = vpop.f32.mrf.mxu2  ;;  %v6466_v54 = vpop.f32.mrf.mxu3  ;;  %v4276_v14 = vunpack.c.l.b16 %v4229_v11  ;;  %v4277_v60 = vunpack.c.h.b16 %v4229_v11  ;;  %4469 = vst.msk [vmem:[#allocation2 + $0x4fc] sm:$0xf] %vm2290_vm1, %v4437_v23  ;;  %s6900_s10 = sshll.u32 %s10352_s6, 4  ;;  %s6901_s10 = int_to_ptr.vmem [resolvable:$true] %s6900_s10 }
 0x2f0   : > { %v6467_v32 = vadd.f32 %v6466_v54, %v6298_v61  ;;  %v6300_v20 = vadd.f32 %v6299_v5, %v6131_v31  ;;  %v8047_v61 = vor.u32 %v8419_v12, %v8044_v2  ;;  %v8062_v5 = vld [vmem:[#allocation2 + $0x4b8] sm:$0xf]  ;;  %v8064_v12 = vld [vmem:[#allocation2 + $0x4cc] sm:$0xf0] }
 0x2f1   : > { %v4308_v3 = vpack.c.b16 %v4276_v14, %v4276_v14  ;;  %v4309_v51 = vpack.c.b16 %v4277_v60, %v4277_v60  ;;  %v8063_v14 = vor.u32 %v8426_v45, %v8062_v5  ;;  %v10592_v60 = vld [vmem:[#allocation27_spill] sm:$0xff] }
 0x2f2   : > { %v6636_v6 = vadd.f32 %v6635_v1, %v6467_v32  ;;  %v5967_v35 = vadd.f32 %v10191_v21, %v10592_v60 }
 0x2f3   : > { %v6133_v50 = vpop.f32.mrf.mxu1  ;;  %v6637_v36 = vpop.f32.mrf.mxu0  ;;  %4372 = vst [vmem:[#allocation2 + $0x4e4] sm:$0xf] %v4308_v3 }
 0x2f4   : > { %6341 = vmatmul.bf16.gmra.mxu2 %v8043_v55  ;;  %6743 = vrot.lane.b32.xlu1 %v6636_v6, %s8606_s29  ;;  %4373 = vst [vmem:[#allocation2 + $0x4f8] sm:$0xf] %v4309_v51  ;;  %v6134_v8 = vadd.f32 %v6133_v50, %v5965_v63  ;;  %v8059_v50 = vor.u32 %v8423_v52, %v8056_v27  ;;  %v8424_v51 = vld [vmem:[#allocation2 + $0x4bc] sm:$0xf]  ;;  %v8431_v5 = vld [vmem:[#allocation2 + $0x4f0] sm:$0xf0] }
 0x2f5   : > { %v8067_v9 = vor.u32 %v8424_v51, %v8064_v12 }
 0x2f6   : > { %6172 = vmatmul.bf16.gmra.mxu1 %v8039_v43 }
 0x2f7   : > { %v6302_v1 = vpop.f32.mrf.mxu2  ;;  %v6468_v10 = vpop.f32.mrf.mxu3 }
 0x2f8   : > { %v6469_v30 = vadd.f32 %v6468_v10, %v6300_v20  ;;  %v6303_v19 = vadd.f32 %v6302_v1, %v6134_v8  ;;  %v8070_v10 = vld [vmem:[#allocation2 + $0x4c0] sm:$0xf] }
 0x2f9   : > { %v8082_v8 = vld [vmem:[#allocation2 + $0x4e0] sm:$0xf] }
 0x2fa   : > { %v6638_v54 = vadd.f32 %v6637_v36, %v6469_v30  ;;  %v10342_v30 = vld [vmem:[%s10543_s2] ss:$0 sm:$0xff] }
 0x2fb   : > { %v6135_v32 = vpop.f32.mrf.mxu1  ;;  %v6640_v55 = vpop.f32.mrf.mxu0 }
 0x2fc   : > { %6510 = vmatmul.bf16.gmra.mxu3 %v8047_v61  ;;  %6745 = vrot.lane.b32.xlu2 %v6638_v54, %s8606_s29  ;;  %v6136_v3 = vadd.f32 %v6135_v32, %v5967_v35  ;;  %v10593_v61 = vld [vmem:[#allocation29_spill] sm:$0xff]  ;;  %v8071_v54 = vor.u32 %v8427_v58, %v8070_v10  ;;  %v8083_v35 = vor.u32 %v8431_v5, %v8082_v8 }
 0x2fd   : > { %v5970_v62 = vadd.f32 %v10342_v30, %v10593_v61 }
 0x2fe   : > { %8265 = vmatmul.msk.bf16.gmra.mxu0 %vm495_vm0, %v8051_v49 }
 0x2ff   : > { %v6304_v43 = vpop.f32.mrf.mxu2  ;;  %v6471_v11 = vpop.f32.mrf.mxu3 }
 0x300   : > { %v6472_v6 = vadd.f32 %v6471_v11, %v6303_v19  ;;  %v6305_v2 = vadd.f32 %v6304_v43, %v6136_v3  ;;  %v10594_v43 = vld [vmem:[#allocation38_spill] sm:$0xff] }
 0x302   : > { %v6641_v36 = vadd.f32 %v6640_v55, %v6472_v6  ;;  %v8428_v6 = vld [vmem:[#allocation2 + $0x4dc] sm:$0xf] }
 0x303   : > { %v6138_v23 = vpop.f32.mrf.mxu1  ;;  %v6642_v31 = vpop.f32.mrf.mxu0 }
 0x304   : > { %6346 = vmatmul.bf16.gmra.mxu2 %v8063_v14  ;;  %6747 = vrot.lane.b32.xlu0 %v6641_v36, %s8606_s29  ;;  %v6139_v55 = vadd.f32 %v6138_v23, %v5970_v62  ;;  %v8076_v14 = vld [vmem:[#allocation2 + $0x4ec] sm:$0xf0]  ;;  %v10595_v36 = vld [vmem:[#allocation31_spill] sm:$0xff] }
 0x306   : > { %6177 = vmatmul.bf16.gmra.mxu1 %v8059_v50  ;;  %v5972_v50 = vadd.f32 %v10342_v30, %v10595_v36 }
 0x307   : > { %v6307_v20 = vpop.f32.mrf.mxu2  ;;  %v6473_v1 = vpop.f32.mrf.mxu3 }
 0x308   : > { %v6474_v21 = vadd.f32 %v6473_v1, %v6305_v2  ;;  %v6308_v45 = vadd.f32 %v6307_v20, %v6139_v55  ;;  %v8429_v2 = vld [vmem:[#allocation2 + $0x4e4] sm:$0xf]  ;;  %v8084_v20 = vld [vmem:[#allocation2 + $0x4f4] sm:$0xf0] }
 0x309   : > { %v8087_v62 = vor.u32 %v8429_v2, %v8084_v20 }
 0x30a   : > { %v6643_v63 = vadd.f32 %v6642_v31, %v6474_v21  ;;  %v8079_v31 = vor.u32 %v8428_v6, %v8076_v14  ;;  %v8090_v21 = vld [vmem:[#allocation2 + $0x4e8] sm:$0xf] }
 0x30b   : > { %v6140_v49 = vpop.f32.mrf.mxu1  ;;  %v6645_v32 = vpop.f32.mrf.mxu0 }
 0x30c   : > { %6515 = vmatmul.bf16.gmra.mxu3 %v8067_v9  ;;  %6749 = vrot.lane.b32.xlu1 %v6643_v63, %s8606_s29  ;;  %v6141_v12 = vadd.f32 %v6140_v49, %v5972_v50  ;;  %v8432_v9 = vld [vmem:[#allocation2 + $0x4f8] sm:$0xf0] }
 0x30d   : > { %v10596_v63 = vld [vmem:[#allocation33_spill] sm:$0xff]  ;;  %v8091_v55 = vor.u32 %v8432_v9, %v8090_v21 }
 0x30e   : > { %8266 = vmatmul.msk.bf16.gmra.mxu0 %vm495_vm0, %v8071_v54  ;;  %v6728_v19 = vpop.permute.xlu2 %6727  ;;  %v5975_v54 = vadd.f32 %v10342_v30, %v10596_v63 }
 0x30f   : > { %v6823_v11 = vsel %vm495_vm0, %v10594_v43, %v6728_v19  ;;  %v6309_v52 = vpop.f32.mrf.mxu2  ;;  %v6476_v27 = vpop.f32.mrf.mxu3 }
 0x310   : > { %6855 = vst [vmem:[%s10352_s6] sm:$0xff] %v6823_v11  ;;  %v6477_v60 = vadd.f32 %v6476_v27, %v6308_v45  ;;  %v6310_v1 = vadd.f32 %v6309_v52, %v6141_v12  ;;  %v10597_v52 = vld [vmem:[#allocation35_spill] sm:$0xff]  ;;  %v10598_v12 = vld [vmem:[#allocation8_spill] sm:$0xff] }
 0x311   : > { %v5977_v27 = vadd.f32 %v10342_v30, %v10597_v52  ;;  %v5980_v2 = vadd.f32 %v10342_v30, %v10598_v12  ;;  %v10601_v12 = vld [vmem:[#allocation14_spill] sm:$0xff] }
 0x312   : > { %v6646_v23 = vadd.f32 %v6645_v32, %v6477_v60 }
 0x313   : > { %v6143_v3 = vpop.f32.mrf.mxu1  ;;  %v6647_v51 = vpop.f32.mrf.mxu0 }
 0x314   : > { %6351 = vmatmul.bf16.gmra.mxu2 %v8083_v35  ;;  %6751 = vrot.lane.b32.xlu2 %v6646_v23, %s8606_s29  ;;  %v6144_v5 = vadd.f32 %v6143_v3, %v5975_v54  ;;  %v10599_v54 = vld [vmem:[#allocation10_spill] sm:$0xff] }
 0x316   : > { %6182 = vmatmul.bf16.gmra.mxu1 %v8079_v31 }
 0x317   : > { %v6312_v10 = vpop.f32.mrf.mxu2  ;;  %v6478_v58 = vpop.f32.mrf.mxu3 }
 0x318   : > { %v6479_v61 = vadd.f32 %v6478_v58, %v6310_v1  ;;  %v6313_v45 = vadd.f32 %v6312_v10, %v6144_v5 }
 0x31a   : > { %v6648_v32 = vadd.f32 %v6647_v51, %v6479_v61 }
 0x31b   : > { %v6145_v8 = vpop.f32.mrf.mxu1  ;;  %v6650_v49 = vpop.f32.mrf.mxu0 }
 0x31c   : > { %6520 = vmatmul.bf16.gmra.mxu3 %v8087_v62  ;;  %6753 = vrot.lane.b32.xlu0 %v6648_v32, %s8606_s29  ;;  %v6146_v35 = vadd.f32 %v6145_v8, %v5977_v27  ;;  %v5982_v32 = vadd.f32 %v10342_v30, %v10599_v54  ;;  %v10600_v27 = vld [vmem:[#allocation12_spill] sm:$0xff] }
 0x31e   : > { %8267 = vmatmul.msk.bf16.gmra.mxu0 %vm495_vm0, %v8091_v55 }
 0x31f   : > { %v6314_v19 = vpop.f32.mrf.mxu2  ;;  %v6481_v43 = vpop.f32.mrf.mxu3 }
 0x320   : > { %v6482_v11 = vadd.f32 %v6481_v43, %v6313_v45  ;;  %v6315_v36 = vadd.f32 %v6314_v19, %v6146_v35 }
 0x322   : > { %v6651_v6 = vadd.f32 %v6650_v49, %v6482_v11 }
 0x323   : > { %v6148_v14 = vpop.f32.mrf.mxu1  ;;  %v6652_v60 = vpop.f32.mrf.mxu0 }
 0x324   : > { %6755 = vrot.lane.b32.xlu1 %v6651_v6, %s8606_s29  ;;  %v6149_v58 = vadd.f32 %v6148_v14, %v5980_v2  ;;  %v5985_v6 = vadd.f32 %v10342_v30, %v10600_v27  ;;  %v5987_v2 = vadd.f32 %v10342_v30, %v10601_v12 }
 0x326   : > { %v6734_v50 = vpop.permute.xlu2 %6733 }
 0x327   : > { %v6826_v23 = vsel %vm495_vm0, %v9696_v16, %v6734_v50  ;;  %v6317_v31 = vpop.f32.mrf.mxu2  ;;  %v6483_v3 = vpop.f32.mrf.mxu3 }
 0x328   : > { %6858 = vst [vmem:[%s10352_s6 + $0x18] sm:$0xff] %v6826_v23  ;;  %v6484_v51 = vadd.f32 %v6483_v3, %v6315_v36  ;;  %v6318_v21 = vadd.f32 %v6317_v31, %v6149_v58 }
 0x32a   : > { %v6653_v20 = vadd.f32 %v6652_v60, %v6484_v51 }
 0x32b   : > { %v6150_v1 = vpop.f32.mrf.mxu1  ;;  %v6655_v10 = vpop.f32.mrf.mxu0 }
 0x32c   : > { %6757 = vrot.lane.b32.xlu2 %v6653_v20, %s8606_s29  ;;  %v6151_v5 = vadd.f32 %v6150_v1, %v5982_v32 }
 0x32e   : > { %v6730_v9 = vpop.permute.xlu0 %6729 }
 0x32f   : > { %v6824_v61 = vsel %vm495_vm0, %v9656_v17, %v6730_v9  ;;  %v6319_v16 = vpop.f32.mrf.mxu2  ;;  %v6486_v62 = vpop.f32.mrf.mxu3 }
 0x330   : > { %6856 = vst [vmem:[%s10352_s6 + $0x8] sm:$0xff] %v6824_v61  ;;  %v6487_v63 = vadd.f32 %v6486_v62, %v6318_v21  ;;  %v6320_v45 = vadd.f32 %v6319_v16, %v6151_v5 }
 0x332   : > { %v6656_v55 = vadd.f32 %v6655_v10, %v6487_v63  ;;  %v10602_v63 = vld [vmem:[#allocation16_spill] sm:$0xff] }
 0x333   : > { %v6153_v8 = vpop.f32.mrf.mxu1  ;;  %v6657_v49 = vpop.f32.mrf.mxu0  ;;  %v5990_v54 = vadd.f32 %v10342_v30, %v10602_v63 }
 0x334   : > { %6759 = vrot.lane.b32.xlu0 %v6656_v55, %s8606_s29  ;;  %v6154_v36 = vadd.f32 %v6153_v8, %v5985_v6 }
 0x336   : > { %v6732_v19 = vpop.permute.xlu1 %6731 }
 0x337   : > { %v6825_v43 = vsel %vm495_vm0, %v9671_v41, %v6732_v19  ;;  %v6322_v17 = vpop.f32.mrf.mxu2  ;;  %v6488_v11 = vpop.f32.mrf.mxu3 }
 0x338   : > { %6857 = vst [vmem:[%s10352_s6 + $0x10] sm:$0xff] %v6825_v43  ;;  %v6489_v52 = vadd.f32 %v6488_v11, %v6320_v45  ;;  %v6323_v50 = vadd.f32 %v6322_v17, %v6154_v36  ;;  %v10603_v11 = vld [vmem:[#allocation18_spill] sm:$0xff] }
 0x33a   : > { %v6658_v14 = vadd.f32 %v6657_v49, %v6489_v52  ;;  %v5992_v52 = vadd.f32 %v10342_v30, %v10603_v11 }
 0x33b   : > { %v6155_v60 = vpop.f32.mrf.mxu1  ;;  %v6660_v35 = vpop.f32.mrf.mxu0 }
 0x33c   : > { %6761 = vrot.lane.b32.xlu1 %v6658_v14, %s8606_s29  ;;  %v6156_v58 = vadd.f32 %v6155_v60, %v5987_v2 }
 0x33e   : > { %v6740_v23 = vpop.permute.xlu2 %6739 }
 0x33f   : > { %v6829_v31 = vsel %vm495_vm0, %v9751_v33, %v6740_v23  ;;  %v6324_v41 = vpop.f32.mrf.mxu2  ;;  %v6491_v3 = vpop.f32.mrf.mxu3 }
 0x340   : > { %6861 = vst [vmem:[%s10352_s6 + $0x30] sm:$0xff] %v6829_v31  ;;  %v6492_v51 = vadd.f32 %v6491_v3, %v6323_v50  ;;  %v6325_v21 = vadd.f32 %v6324_v41, %v6156_v58  ;;  %v10604_v41 = vld [vmem:[#allocation20_spill] sm:$0xff] }
 0x341   : > { %v5995_v3 = vadd.f32 %v10342_v30, %v10604_v41 }
 0x342   : > { %v6661_v20 = vadd.f32 %v6660_v35, %v6492_v51 }
 0x343   : > { %v6158_v1 = vpop.f32.mrf.mxu1  ;;  %v6662_v10 = vpop.f32.mrf.mxu0 }
 0x344   : > { %6763 = vrot.lane.b32.xlu2 %v6661_v20, %s8606_s29  ;;  %v6159_v49 = vadd.f32 %v6158_v1, %v5990_v54 }
 0x346   : > { %v6736_v9 = vpop.permute.xlu0 %6735 }
 0x347   : > { %v6827_v61 = vsel %vm495_vm0, %v9711_v15, %v6736_v9  ;;  %v6327_v33 = vpop.f32.mrf.mxu2  ;;  %v6493_v16 = vpop.f32.mrf.mxu3 }
 0x348   : > { %6859 = vst [vmem:[%s10352_s6 + $0x20] sm:$0xff] %v6827_v61  ;;  %v6494_v62 = vadd.f32 %v6493_v16, %v6325_v21  ;;  %v6328_v5 = vadd.f32 %v6327_v33, %v6159_v49  ;;  %v10605_v61 = vld [vmem:[#allocation22_spill] sm:$0xff] }
 0x349   : > { %v5997_v33 = vadd.f32 %v10342_v30, %v10605_v61 }
 0x34a   : > { %v6663_v32 = vadd.f32 %v6662_v10, %v6494_v62 }
 0x34b   : > { %v6160_v55 = vpop.f32.mrf.mxu1  ;;  %v6665_v8 = vpop.f32.mrf.mxu0 }
 0x34c   : > { %6765 = vrot.lane.b32.xlu0 %v6663_v32, %s8606_s29  ;;  %v6161_v60 = vadd.f32 %v6160_v55, %v5992_v52 }
 0x34e   : > { %v6738_v45 = vpop.permute.xlu1 %6737 }
 0x34f   : > { %v6828_v19 = vsel %vm495_vm0, %v9736_v7, %v6738_v45  ;;  %v6329_v15 = vpop.f32.mrf.mxu2  ;;  %v6496_v43 = vpop.f32.mrf.mxu3  ;;  %v10606_v45 = vld [vmem:[#allocation24_spill] sm:$0xff] }
 0x350   : > { %6860 = vst [vmem:[%s10352_s6 + $0x28] sm:$0xff] %v6828_v19  ;;  %v6497_v17 = vadd.f32 %v6496_v43, %v6328_v5  ;;  %v6330_v35 = vadd.f32 %v6329_v15, %v6161_v60  ;;  %v6000_v19 = vadd.f32 %v10342_v30, %v10606_v45 }
 0x352   : > { %v6666_v27 = vadd.f32 %v6665_v8, %v6497_v17 }
 0x353   : > { %v6163_v6 = vpop.f32.mrf.mxu1  ;;  %v6667_v14 = vpop.f32.mrf.mxu0 }
 0x354   : > { %6767 = vrot.lane.b32.xlu1 %v6666_v27, %s8606_s29  ;;  %v6164_v20 = vadd.f32 %v6163_v6, %v5995_v3 }
 0x356   : > { %v6746_v36 = vpop.permute.xlu2 %6745 }
 0x357   : > { %v6832_v50 = vsel %vm495_vm0, %v9809_v0, %v6746_v36  ;;  %v6332_v7 = vpop.f32.mrf.mxu2  ;;  %v6498_v23 = vpop.f32.mrf.mxu3 }
 0x358   : > { %6864 = vst [vmem:[%s10352_s6 + $0x48] sm:$0xff] %v6832_v50  ;;  %v6499_v31 = vadd.f32 %v6498_v23, %v6330_v35  ;;  %v6333_v1 = vadd.f32 %v6332_v7, %v6164_v20  ;;  %v10607_v35 = vld [vmem:[#allocation26_spill] sm:$0xff]  ;;  %v10608_v20 = vld [vmem:[#allocation28_spill] sm:$0xff] }
 0x359   : > { %v6002_v36 = vadd.f32 %v10342_v30, %v10607_v35 }
 0x35a   : > { %v6668_v51 = vadd.f32 %v6667_v14, %v6499_v31 }
 0x35b   : > { %v6165_v12 = vpop.f32.mrf.mxu1  ;;  %v6670_v2 = vpop.f32.mrf.mxu0 }
 0x35c   : > { %6769 = vrot.lane.b32.xlu2 %v6668_v51, %s8606_s29  ;;  %v6166_v54 = vadd.f32 %v6165_v12, %v5997_v33 }
 0x35e   : > { %v6742_v10 = vpop.permute.xlu0 %6741 }
 0x35f   : > { %v6830_v58 = vsel %vm495_vm0, %v9767_v22, %v6742_v10  ;;  %v6334_v0 = vpop.f32.mrf.mxu2  ;;  %v6501_v21 = vpop.f32.mrf.mxu3 }
 0x360   : > { %6862 = vst [vmem:[%s10352_s6 + $0x38] sm:$0xff] %v6830_v58  ;;  %v6502_v9 = vadd.f32 %v6501_v21, %v6333_v1  ;;  %v6335_v32 = vadd.f32 %v6334_v0, %v6166_v54  ;;  %v6005_v1 = vadd.f32 %v10342_v30, %v10608_v20 }
 0x362   : > { %v6671_v16 = vadd.f32 %v6670_v2, %v6502_v9 }
 0x363   : > { %v6168_v62 = vpop.f32.mrf.mxu1  ;;  %v6672_v63 = vpop.f32.mrf.mxu0 }
 0x364   : > { %6771 = vrot.lane.b32.xlu0 %v6671_v16, %s8606_s29  ;;  %v6169_v11 = vadd.f32 %v6168_v62, %v6000_v19 }
 0x366   : > { %v6744_v55 = vpop.permute.xlu1 %6743 }
 0x367   : > { %v6831_v8 = vsel %vm495_vm0, %v9788_v40, %v6744_v55  ;;  %v6337_v22 = vpop.f32.mrf.mxu2  ;;  %v6503_v49 = vpop.f32.mrf.mxu3 }
 0x368   : > { %6863 = vst [vmem:[%s10352_s6 + $0x40] sm:$0xff] %v6831_v8  ;;  %v6504_v5 = vadd.f32 %v6503_v49, %v6335_v32  ;;  %v6338_v52 = vadd.f32 %v6337_v22, %v6169_v11 }
 0x36a   : > { %v6673_v15 = vadd.f32 %v6672_v63, %v6504_v5  ;;  %v10609_v63 = vld [vmem:[#allocation30_spill] sm:$0xff] }
 0x36b   : > { %v6170_v43 = vpop.f32.mrf.mxu1  ;;  %v6675_v17 = vpop.f32.mrf.mxu0  ;;  %v6007_v54 = vadd.f32 %v10342_v30, %v10609_v63 }
 0x36c   : > { %6773 = vrot.lane.b32.xlu1 %v6673_v15, %s8606_s29  ;;  %v6171_v31 = vadd.f32 %v6170_v43, %v6002_v36  ;;  %v10610_v43 = vld [vmem:[#allocation32_spill] sm:$0xff] }
 0x36e   : > { %v6752_v27 = vpop.permute.xlu2 %6751 }
 0x36f   : > { %v6835_v6 = vsel %vm495_vm0, %v9861_v18, %v6752_v27  ;;  %v6339_v40 = vpop.f32.mrf.mxu2  ;;  %v6506_v14 = vpop.f32.mrf.mxu3 }
 0x370   : > { %6867 = vst [vmem:[%s10352_s6 + $0x60] sm:$0xff] %v6835_v6  ;;  %v6507_v60 = vadd.f32 %v6506_v14, %v6338_v52  ;;  %v6340_v41 = vadd.f32 %v6339_v40, %v6171_v31 }
 0x372   : > { %v6676_v50 = vadd.f32 %v6675_v17, %v6507_v60  ;;  %v6010_v17 = vadd.f32 %v10342_v30, %v10610_v43 }
 0x373   : > { %v6173_v7 = vpop.f32.mrf.mxu1  ;;  %v6677_v23 = vpop.f32.mrf.mxu0 }
 0x374   : > { %6775 = vrot.lane.b32.xlu2 %v6676_v50, %s8606_s29  ;;  %v6174_v21 = vadd.f32 %v6173_v7, %v6005_v1  ;;  %v10611_v50 = vld [vmem:[#allocation34_spill] sm:$0xff]  ;;  %v10612_v1 = vld [vmem:[#allocation36_spill] sm:$0xff] }
 0x375   : > { %v6012_v7 = vadd.f32 %v10342_v30, %v10611_v50 }
 0x376   : > { %v6748_v3 = vpop.permute.xlu0 %6747 }
 0x377   : > { %v6833_v51 = vsel %vm495_vm0, %v9825_v44, %v6748_v3  ;;  %v6342_v18 = vpop.f32.mrf.mxu2  ;;  %v6508_v12 = vpop.f32.mrf.mxu3 }
 0x378   : > { %6865 = vst [vmem:[%s10352_s6 + $0x50] sm:$0xff] %v6833_v51  ;;  %v6509_v2 = vadd.f32 %v6508_v12, %v6340_v41  ;;  %v6343_v9 = vadd.f32 %v6342_v18, %v6174_v21 }
 0x37a   : > { %v6678_v10 = vadd.f32 %v6677_v23, %v6509_v2 }
 0x37b   : > { %v6175_v58 = vpop.f32.mrf.mxu1  ;;  %v6680_v0 = vpop.f32.mrf.mxu0 }
 0x37c   : > { %6777 = vrot.lane.b32.xlu0 %v6678_v10, %s8606_s29  ;;  %v6176_v22 = vadd.f32 %v6175_v58, %v6007_v54  ;;  %v6015_v10 = vadd.f32 %v10342_v30, %v10612_v1 }
 0x37e   : > { %v6750_v61 = vpop.permute.xlu1 %6749 }
 0x37f   : > { %v6834_v33 = vsel %vm495_vm0, %v9846_v25, %v6750_v61  ;;  %v6344_v44 = vpop.f32.mrf.mxu2  ;;  %v6511_v16 = vpop.f32.mrf.mxu3 }
 0x380   : > { %6866 = vst [vmem:[%s10352_s6 + $0x58] sm:$0xff] %v6834_v33  ;;  %v6512_v62 = vadd.f32 %v6511_v16, %v6343_v9  ;;  %v6345_v49 = vadd.f32 %v6344_v44, %v6176_v22 }
 0x382   : > { %v6681_v32 = vadd.f32 %v6680_v0, %v6512_v62  ;;  %v10613_v62 = vld [vmem:[#allocation37_spill] sm:$0xff] }
 0x383   : > { %v6178_v55 = vpop.f32.mrf.mxu1  ;;  %v6682_v8 = vpop.f32.mrf.mxu0  ;;  %v6017_v63 = vadd.f32 %v10342_v30, %v10613_v62 }
 0x384   : > { %6779 = vrot.lane.b32.xlu1 %v6681_v32, %s8606_s29  ;;  %v6179_v27 = vadd.f32 %v6178_v55, %v6010_v17 }
 0x386   : > { %v6758_v5 = vpop.permute.xlu2 %6757 }
 0x387   : > { %v6838_v45 = vsel %vm495_vm0, %v9923_v53, %v6758_v5  ;;  %v6347_v25 = vpop.f32.mrf.mxu2  ;;  %v6513_v19 = vpop.f32.mrf.mxu3 }
 0x388   : > { %6870 = vst [vmem:[%s10352_s6 + $0x78] sm:$0xff] %v6838_v45  ;;  %v6514_v15 = vadd.f32 %v6513_v19, %v6345_v49  ;;  %v6348_v40 = vadd.f32 %v6347_v25, %v6179_v27  ;;  %v10614_v19 = vld [vmem:[#allocation39_spill] sm:$0xff] }
 0x38a   : > { %v6683_v11 = vadd.f32 %v6682_v8, %v6514_v15 }
 0x38b   : > { %v6685_v52 = vpop.f32.mrf.mxu0  ;;  %v6180_v6 = vpop.f32.mrf.mxu1 }
 0x38c   : > { %6781 = vrot.lane.b32.xlu2 %v6683_v11, %s8606_s29  ;;  %v6181_v31 = vadd.f32 %v6180_v6, %v6012_v7 }
 0x38e   : > { %v6754_v14 = vpop.permute.xlu0 %6753 }
 0x38f   : > { %v6836_v53 = vsel %vm495_vm0, %v9886_v37, %v6754_v14  ;;  %v6349_v60 = vpop.f32.mrf.mxu2  ;;  %v6516_v35 = vpop.f32.mrf.mxu3 }
 0x390   : > { %6868 = vst [vmem:[%s10352_s6 + $0x68] sm:$0xff] %v6836_v53  ;;  %v6517_v36 = vadd.f32 %v6516_v35, %v6348_v40  ;;  %v6350_v3 = vadd.f32 %v6349_v60, %v6181_v31 }
 0x392   : > { %v6686_v23 = vadd.f32 %v6685_v52, %v6517_v36 }
 0x393   : > { %v6687_v41 = vpop.f32.mrf.mxu0  ;;  %v6183_v18 = vpop.f32.mrf.mxu1 }
 0x394   : > { %6783 = vrot.lane.b32.xlu0 %v6686_v23, %s8606_s29  ;;  %v6184_v0 = vadd.f32 %v6183_v18, %v6015_v10 }
 0x396   : > { %v6756_v51 = vpop.permute.xlu1 %6755 }
 0x397   : > { %v6837_v12 = vsel %vm495_vm0, %v9901_v13, %v6756_v51  ;;  %v6518_v37 = vpop.f32.mrf.mxu3  ;;  %v6352_v20 = vpop.f32.mrf.mxu2 }
 0x398   : > { %6869 = vst [vmem:[%s10352_s6 + $0x70] sm:$0xff] %v6837_v12  ;;  %v6519_v2 = vadd.f32 %v6518_v37, %v6350_v3  ;;  %v6353_v21 = vadd.f32 %v6352_v20, %v6184_v0 }
 0x39a   : > { %v6688_v58 = vadd.f32 %v6687_v41, %v6519_v2 }
 0x39b   : > { %v6690_v61 = vpop.f32.mrf.mxu0  ;;  %v6185_v16 = vpop.f32.mrf.mxu1 }
 0x39c   : > { %6785 = vrot.lane.b32.xlu1 %v6688_v58, %s8606_s29  ;;  %v6186_v55 = vadd.f32 %v6185_v16, %v6017_v63 }
 0x39e   : > { %v6764_v9 = vpop.permute.xlu2 %6763 }
 0x39f   : > { %v6841_v33 = vsel %vm495_vm0, %v9986_v24, %v6764_v9  ;;  %v6521_v44 = vpop.f32.mrf.mxu3  ;;  %v6354_v32 = vpop.f32.mrf.mxu2 }
 0x3a0   : > { %6873 = vst [vmem:[%s10352_s6 + $0x90] sm:$0xff] %v6841_v33  ;;  %v6522_v13 = vadd.f32 %v6521_v44, %v6353_v21  ;;  %v6355_v8 = vadd.f32 %v6354_v32, %v6186_v55 }
 0x3a2   : > { %v6691_v54 = vadd.f32 %v6690_v61, %v6522_v13 }
 0x3a3   : > { %v6692_v45 = vpop.f32.mrf.mxu0 }
 0x3a4   : > { %6787 = vrot.lane.b32.xlu2 %v6691_v54, %s8606_s29 }
 0x3a6   : > { %v6760_v22 = vpop.permute.xlu0 %6759 }
 0x3a7   : > { %v6839_v24 = vsel %vm495_vm0, %v9938_v47, %v6760_v22  ;;  %v6523_v49 = vpop.f32.mrf.mxu3 }
 0x3a8   : > { %6871 = vst [vmem:[%s10352_s6 + $0x80] sm:$0xff] %v6839_v24  ;;  %v6524_v5 = vadd.f32 %v6523_v49, %v6355_v8 }
 0x3aa   : > { %v6693_v25 = vadd.f32 %v6692_v45, %v6524_v5 }
 0x3ac   : > { %6789 = vrot.lane.b32.xlu0 %v6693_v25, %s8606_s29  ;;  %s8469_s29 = sshll.u32 %s8650_s16, 8 }
 0x3ad   : > { %s6899_s9 = scalar_lea.hbm %s10544_s3, %s8469_s29 }
 0x3ae   : > { %v6762_v30 = vpop.permute.xlu1 %6761  ;;  %s6902_s11 = sshll.u32 %s6899_s9, 4  ;;  %s6903_s11 = int_to_ptr.hbm [resolvable:$true] %s6902_s11 }
 0x3af   : > { %v6840_v15 = vsel %vm495_vm0, %v10614_v19, %v6762_v30  ;;  %s8556_s19 = sshra.s32 %s6903_s11, 4  ;;  %s8557_s19 = int_to_ptr.hbm [resolvable:$true] %s8556_s19 }
 0x3b0   : > { %6872 = vst [vmem:[%s10352_s6 + $0x88] sm:$0xff] %v6840_v15  ;;  %s8558_s20 = scalar_lea.hbm %s8557_s19, 256  ;;  %p8563_p0 = scmp.lt.s32.totalorder %s8557_s19, %s10544_s3 }
 0x3b1   : > { %p8559_p11 = scmp.ne.s32.totalorder %s8557_s19, %s8558_s20  ;;  %p8564_p1 = scmp.lt.s32.totalorder %s8562_s25, %s8558_s20 }
 0x3b3   : > { %p8560_p12 = pnand %p8559_p11, %p8667_p5  ;;  %p8565_p2 = por %p8564_p1, %p8563_p0 }
 0x3b5   : > { %p8561_p13 = pneg %p8560_p12 }
 0x3b6   : > { %v6770_v43 = vpop.permute.xlu2 %6769 }
 0x3b7   : > { %v6844_v17 = vsel %vm495_vm0, %v10050_v42, %v6770_v43  ;;  %p8566_p3 = pnand %p8565_p2, %p8561_p13 }
 0x3b8   : > { %6876 = vst [vmem:[%s10352_s6 + $0xa8] sm:$0xff] %v6844_v17 }
 0x3be   : > { %v6766_v47 = vpop.permute.xlu0 %6765 }
 0x3bf   : > { %v6842_v11 = vsel %vm495_vm0, %v10011_v34, %v6766_v47 }
 0x3c0   : > { %6874 = vst [vmem:[%s10352_s6 + $0x98] sm:$0xff] %v6842_v11 }
 0x3c6   : > { %v6768_v52 = vpop.permute.xlu1 %6767 }
 0x3c7   : > { %v6843_v27 = vsel %vm495_vm0, %v10026_v26, %v6768_v52 }
 0x3c8   : > { %6875 = vst [vmem:[%s10352_s6 + $0xa0] sm:$0xff] %v6843_v27 }
 0x3ce   : > { %v6776_v6 = vpop.permute.xlu2 %6775 }
 0x3cf   : > { %v6847_v40 = vsel %vm495_vm0, %v10106_v29, %v6776_v6 }
 0x3d0   : > { %6879 = vst [vmem:[%s10352_s6 + $0xc0] sm:$0xff] %v6847_v40 }
 0x3d6   : > { %v6772_v42 = vpop.permute.xlu0 %6771 }
 0x3d7   : > { %v6845_v14 = vsel %vm495_vm0, %v10066_v4, %v6772_v42 }
 0x3d8   : > { %6877 = vst [vmem:[%s10352_s6 + $0xb0] sm:$0xff] %v6845_v14 }
 0x3de   : > { %v6774_v34 = vpop.permute.xlu1 %6773 }
 0x3df   : > { %v6846_v53 = vsel %vm495_vm0, %v10091_v38, %v6774_v34 }
 0x3e0   : > { %6878 = vst [vmem:[%s10352_s6 + $0xb8] sm:$0xff] %v6846_v53 }
 0x3e6   : > { %v6782_v26 = vpop.permute.xlu2 %6781 }
 0x3e7   : > { %v6850_v60 = vsel %vm495_vm0, %v10161_v39, %v6782_v26 }
 0x3e8   : > { %6882 = vst [vmem:[%s10352_s6 + $0xd8] sm:$0xff] %v6850_v60 }
 0x3ee   : > { %v6778_v29 = vpop.permute.xlu0 %6777 }
 0x3ef   : > { %v6848_v35 = vsel %vm495_vm0, %v10128_v57, %v6778_v29 }
 0x3f0   : > { %6880 = vst [vmem:[%s10352_s6 + $0xc8] sm:$0xff] %v6848_v35 }
 0x3f6   : > { %v6780_v4 = vpop.permute.xlu1 %6779 }
 0x3f7   : > { %v6849_v36 = vsel %vm495_vm0, %v10141_v56, %v6780_v4 }
 0x3f8   : > { %6881 = vst [vmem:[%s10352_s6 + $0xd0] sm:$0xff] %v6849_v36 }
 0x3fe   : > { %v6788_v38 = vpop.permute.xlu2 %6787 }
 0x3ff   : > { %v6853_v50 = vsel %vm495_vm0, %v10204_v48, %v6788_v38 }
 0x400   : > { %6885 = vst [vmem:[%s10352_s6 + $0xf0] sm:$0xff] %v6853_v50 }
 0x406   : > { %v6784_v39 = vpop.permute.xlu0 %6783 }
 0x407   : > { %v6851_v7 = vsel %vm495_vm0, %v10173_v59, %v6784_v39 }
 0x408   : > { %6883 = vst [vmem:[%s10352_s6 + $0xe0] sm:$0xff] %v6851_v7 }
 0x40e   : > { %v6786_v57 = vpop.permute.xlu1 %6785 }
 0x40f   : > { %v6852_v23 = vsel %vm495_vm0, %v10195_v28, %v6786_v57 }
 0x410   : > { %6884 = vst [vmem:[%s10352_s6 + $0xe8] sm:$0xff] %v6852_v23 }
 0x41e   : > { %v6790_v56 = vpop.permute.xlu0 %6789 }
 0x41f   : > { %v6854_v59 = vsel %vm495_vm0, %v10221_v46, %v6790_v56 }
 0x420   : > { %6886 = vst [vmem:[%s10352_s6 + $0xf8] sm:$0xff] %v6854_v59 }
 0x421   : > { %8569 = shalt.err (!%p8566_p3)
}
 0x422   : > { %s8607_s28 = smov 128   ;;  %s8608_s30 = smov 8  }
 0x423   : > { %8495 = dma.vmem_to_hbm [thread:$0]  (%p8667_p5), %s6901_s10, 4096, %s6903_s11, %s6888_s17, %s8607_s28, %s8607_s28, %s8608_s30  }
 0x424 PF: > { %p8501_p4 = scmp.ge.s32.totalorder %s8604_s15, 2  ;;  %s6917_s4 = sand.u32 1, %s8592_s12  }
 0x425   : > { %s6918_s5 = scalar_lea.sflag [#allocation4], %s6917_s4 }
 0x426   : > { %p8498_p7 = pnand %p8501_p4, %p8671_p6 }
 0x428   : > { %p8499_p8 = pneg %p8498_p7 }
 0x42a   : > { %8587 = dma.done.wait (%p8499_p8), %s6918_s5, 4096  }
 0x42b   : > { %8589 = vsyncadd (%p8499_p8), %s6918_s5, 4294963200  ;;  %p13_p9 = scmp.ge.s32.totalorder %s8654_s18, 4   ;;  %s10615_s12 = smov %s8596_s13 }
 0x42c   : > { %s10616_s13 = smov %s8600_s14  ;;  %s10617_s14 = smov %s8665_s21 }
 0x42d   : > { %s10618_s15 = smov %s8654_s18  ;;  %15 = sbr.rel (!%p13_p9) target bundleno = 3 (0x3), region = 72 }
 0x432   :  { %6924 = vsyncpa [#allocation4], 1 }
 0x433   :  { %6926 = vsyncpa [#allocation4 + $0x1], 1 }

</bundles_post_ra>
